<compile_context>
chip_gen: v7x
topology: tpu7x:2x2x1
jax: 0.10.0
libtpu: 0.0.40
codegen_flags: <defaults>
</compile_context>

<pallas_src>
import functools

import jax
import jax.numpy as jnp
from jax.experimental import pallas as pl
from jax.experimental.pallas import tpu as pltpu  # noqa: F401  (TPU backend)


# ----------------------------------------------------------------------------
# Pallas kernels
# ----------------------------------------------------------------------------
def _conv_bn_relu_kernel(p_ref, w_ref, s_ref, o_ref, *, eps):
    """Fused: Y = relu(BN_train(P @ W + b)) on a single full tile.

    p_ref : (M, K)  bf16 im2col patches
    w_ref : (K, N)  bf16 flattened conv weights
    s_ref : (3, N)  f32  [conv bias; BN gamma; BN beta]
    o_ref : (M, N)  f32
    """
    y = jnp.dot(p_ref[...], w_ref[...], preferred_element_type=jnp.float32)
    s = s_ref[...]
    y = y + s[0:1, :]      # conv bias (cancelled by BN mean, kept for fidelity)
    inv_m = 1.0 / y.shape[0]
    mean = jnp.sum(y, axis=0, keepdims=True) * inv_m
    var = jnp.sum(y * y, axis=0, keepdims=True) * inv_m - mean * mean  # biased
    y_hat = (y - mean) * jax.lax.rsqrt(var + eps)
    o_ref[...] = jnp.maximum(y_hat * s[1:2, :] + s[2:3, :], 0.0)


def _maxpool_kernel(x_ref, o_ref, *, taps):
    """Max-reduce over the leading 'taps' axis of pre-gathered window views."""
    m = x_ref[0]
    for t in range(1, taps):
        m = jnp.maximum(m, x_ref[t])
    o_ref[...] = m


def _avgpool_fc_kernel(x_ref, w_ref, b_ref, o_ref):
    """Fused tail: 2x2 average pool + flatten + Linear.

    x_ref : (N, 4, C) spatial positions on axis 1
    w_ref : (C, Nout), b_ref : (1, Nout)
    """
    x = jnp.mean(x_ref[...], axis=1)                       # (N, C)
    o_ref[...] = jnp.dot(x, w_ref[...],
                         preferred_element_type=jnp.float32) + b_ref[...]


# ----------------------------------------------------------------------------
# Pallas-call wrappers
# ----------------------------------------------------------------------------
def _im2col(x, k, stride, pad):
    """x: (N,H,W,C) NHWC -> (N*Ho*Wo, k*k*C) patches (feature order: kh,kw,C)."""
    N, H, W, C = x.shape
    Ho = (H + 2 * pad - k) // stride + 1
    Wo = (W + 2 * pad - k) // stride + 1
    xp = jnp.pad(x, ((0, 0), (pad, pad), (pad, pad), (0, 0)))
    cols = []
    for i in range(k):
        for j in range(k):
            cols.append(xp[:, i:i + stride * (Ho - 1) + 1:stride,
                           j:j + stride * (Wo - 1) + 1:stride, :])
    patches = jnp.concatenate(cols, axis=-1)
    return patches.reshape(N * Ho * Wo, k * k * C), (N, Ho, Wo)


def conv_bn_relu(x, p, k, stride, pad, eps=1e-5):
    cout, cin = p['w'].shape[0], p['w'].shape[1]
    patches, (N, Ho, Wo) = _im2col(x, k, stride, pad)
    # PyTorch weight (Cout,Cin,kh,kw) -> (kh,kw,Cin,Cout) -> (kh*kw*Cin, Cout)
    wf = jnp.transpose(p['w'], (2, 3, 1, 0)).reshape(k * k * cin, cout)

    M, K = patches.shape
    pm = patches.astype(jnp.bfloat16)     # MXU-native operands, f32 accumulate
    wm = wf.astype(jnp.bfloat16)
    sm = jnp.stack([p['b'], p['gamma'], p['beta']], axis=0)    # (3, Cout) f32

    out = pl.pallas_call(
        functools.partial(_conv_bn_relu_kernel, eps=eps),
        grid=(1,),
        in_specs=[pl.BlockSpec((M, K), lambda i: (0, 0)),
                  pl.BlockSpec((K, cout), lambda i: (0, 0)),
                  pl.BlockSpec((3, cout), lambda i: (0, 0))],
        out_specs=pl.BlockSpec((M, cout), lambda i: (0, 0)),
        out_shape=jax.ShapeDtypeStruct((M, cout), jnp.float32),
    )(pm, wm, sm)
    return out.reshape(N, Ho, Wo, cout)


def maxpool(x, k, stride, pad):
    """PyTorch MaxPool2d(k, stride, pad) on NHWC input.

    The k*k shifted + strided window views are staged outside (XLA slices) and
    stacked; the kernel does the max-reduce and writes only the strided output.
    """
    N, H, W, C = x.shape
    Ho = (H + 2 * pad - k) // stride + 1
    Wo = (W + 2 * pad - k) // stride + 1
    xp = jnp.pad(x, ((0, 0), (pad, pad), (pad, pad), (0, 0)),
                 constant_values=-jnp.inf)
    views = [xp[:, i:i + stride * (Ho - 1) + 1:stride,
                j:j + stride * (Wo - 1) + 1:stride, :]
             for i in range(k) for j in range(k)]
    stacked = jnp.stack(views, axis=0)                  # (k*k, N, Ho, Wo, C)
    return pl.pallas_call(
        functools.partial(_maxpool_kernel, taps=k * k),
        grid=(1,),
        in_specs=[pl.BlockSpec((k * k, N, Ho, Wo, C),
                               lambda i: (0, 0, 0, 0, 0))],
        out_specs=pl.BlockSpec((N, Ho, Wo, C), lambda i: (0, 0, 0, 0)),
        out_shape=jax.ShapeDtypeStruct((N, Ho, Wo, C), jnp.float32),
    )(stacked)


def avgpool_fc(x, w, b):
    """F.avg_pool2d(x, 2) + flatten + Linear fused.  x: (N,2,2,C) NHWC."""
    N, H, W, C = x.shape
    assert H == 2 and W == 2, (H, W)
    xr = x.reshape(N, H * W, C)
    nout = w.shape[1]
    bm = b.reshape(1, nout)
    return pl.pallas_call(
        _avgpool_fc_kernel,
        grid=(1,),
        in_specs=[pl.BlockSpec((N, H * W, C), lambda i: (0, 0, 0)),
                  pl.BlockSpec((C, nout), lambda i: (0, 0)),
                  pl.BlockSpec((1, nout), lambda i: (0, 0))],
        out_specs=pl.BlockSpec((N, nout), lambda i: (0, 0)),
        out_shape=jax.ShapeDtypeStruct((N, nout), jnp.float32),
    )(xr, w, bm)


# ----------------------------------------------------------------------------
# Model definition (parameters + forward)
# ----------------------------------------------------------------------------
def init_cbr(key, cin, cout, k):
    ks = jax.random.split(key, 4)
    fan = float(cin * k * k)
    return {
        'w': jax.random.normal(ks[0], (cout, cin, k, k), jnp.float32) / jnp.sqrt(fan),
        'b': 0.01 * jax.random.normal(ks[1], (cout,), jnp.float32),
        'gamma': 1.0 + 0.1 * jax.random.normal(ks[2], (cout,), jnp.float32),
        'beta': 0.1 * jax.random.normal(ks[3], (cout,), jnp.float32),
    }


def init_inception(key, cin, out_list, red_list):
    ks = jax.random.split(key, 6)
    return {
        'b1':   init_cbr(ks[0], cin, out_list[0], 1),
        'b2_1': init_cbr(ks[1], cin, red_list[0], 1),
        'b2_2': init_cbr(ks[2], red_list[0], out_list[1], 3),
        'b3_1': init_cbr(ks[3], cin, red_list[1], 1),
        'b3_2': init_cbr(ks[4], red_list[1], out_list[2], 5),
        'b4':   init_cbr(ks[5], cin, out_list[3], 3),
    }


def init_params(key):
    ks = jax.random.split(key, 5)
    return {
        'block1': init_cbr(ks[0], 3, 64, 7),
        'block2': init_cbr(ks[1], 64, 128, 3),
        'block3': init_inception(ks[2], 128, [64, 64, 64, 64], [16, 16]),
        'block4': init_inception(ks[3], 256, [96, 96, 96, 96], [32, 32]),
        'fc_w': 0.05 * jax.random.normal(ks[4], (10, 384), jnp.float32),
        'fc_b': jnp.zeros((10,), jnp.float32),
    }


def _concat_cbr(ps):
    """Concatenate conv+BN parameter dicts along the output-channel axis."""
    return {
        'w': jnp.concatenate([p['w'] for p in ps], axis=0),
        'b': jnp.concatenate([p['b'] for p in ps], axis=0),
        'gamma': jnp.concatenate([p['gamma'] for p in ps], axis=0),
        'beta': jnp.concatenate([p['beta'] for p in ps], axis=0),
    }


def inception_base(x, p):
    # Fuse the three 1x1 convs that share the same input (b1, b2_1, b3_1) into
    # ONE fused conv+BN+ReLU call (BN statistics are per-channel => exact).
    c1 = p['b1']['w'].shape[0]
    c2 = p['b2_1']['w'].shape[0]
    c3 = p['b3_1']['w'].shape[0]
    fused = _concat_cbr([p['b1'], p['b2_1'], p['b3_1']])
    y = conv_bn_relu(x, fused, 1, 1, 0)
    out1 = y[..., :c1]
    out2 = conv_bn_relu(y[..., c1:c1 + c2], p['b2_2'], 3, 1, 1)
    out3 = conv_bn_relu(y[..., c1 + c2:c1 + c2 + c3], p['b3_2'], 5, 1, 2)
    out4 = maxpool(x, 3, 1, 1)
    out4 = conv_bn_relu(out4, p['b4'], 3, 1, 1)
    # torch.cat(dim=1) on NCHW == channel concat == last axis in NHWC
    return jnp.concatenate([out1, out2, out3, out4], axis=-1)


def inception_net(x_nchw, params):
    x = jnp.transpose(x_nchw, (0, 2, 3, 1))           # NCHW -> NHWC
    x = conv_bn_relu(x, params['block1'], 7, 2, 1)    # (N,14,14, 64)
    x = conv_bn_relu(x, params['block2'], 3, 2, 1)    # (N, 7, 7,128)
    x = inception_base(x, params['block3'])           # (N, 7, 7,256)
    x = maxpool(x, 3, 2, 1)                           # (N, 4, 4,256)
    x = inception_base(x, params['block4'])           # (N, 4, 4,384)
    x = maxpool(x, 3, 2, 1)                           # (N, 2, 2,384)
    # fused avg_pool2d(2) + flatten + fc
    return avgpool_fc(x, params['fc_w'].T, params['fc_b'])   # (N,10)


# ----------------------------------------------------------------------------
if __name__ == "__main__":
    key = jax.random.PRNGKey(0)
    k_param, k_in = jax.random.split(key)
    params = init_params(k_param)
    # 32x32 input so the flattened feature size is exactly 384 (as the fc expects)
    x = jax.random.normal(k_in, (2, 3, 32, 32), jnp.float32)

    fwd = jax.jit(inception_net)
    out = fwd(x, params)
    out = jax.block_until_ready(out)
    assert out.shape == (2, 10), out.shape
    print("KERNEL_OK")
</pallas_src>

<mosaic_0001>
module attributes {stable_mosaic.version = 11 : i64} {
  func.func @_conv_bn_relu_kernel(%arg0: i32, %arg1: memref<392x147xbf16, #tpu.memory_space<vmem>>, %arg2: memref<147x64xbf16, #tpu.memory_space<vmem>>, %arg3: memref<3x64xf32, #tpu.memory_space<vmem>>, %arg4: memref<392x64xf32, #tpu.memory_space<vmem>>) attributes {dimension_semantics = [#tpu.dimension_semantics<arbitrary>], iteration_bounds = array<i64: 1>, scalar_prefetch = 0 : i64, scratch_operands = 0 : i64, tpu.core_type = #tpu.core_type<tc>, window_params = [{pipeline_mode = #tpu.pipeline_mode<synchronous>, transform_indices = @transform_0, window_bounds = array<i64: 392, 147>}, {pipeline_mode = #tpu.pipeline_mode<synchronous>, transform_indices = @transform_1, window_bounds = array<i64: 147, 64>}, {pipeline_mode = #tpu.pipeline_mode<synchronous>, transform_indices = @transform_2, window_bounds = array<i64: 3, 64>}, {pipeline_mode = #tpu.pipeline_mode<synchronous>, transform_indices = @transform_3, window_bounds = array<i64: 392, 64>}]} {
    %c0 = arith.constant 0 : index
    %c0_0 = arith.constant 0 : index
    %0 = vector.load %arg1[%c0, %c0_0] : memref<392x147xbf16, #tpu.memory_space<vmem>>, vector<392x147xbf16>
    %c0_1 = arith.constant 0 : index
    %c0_2 = arith.constant 0 : index
    %1 = vector.load %arg2[%c0_1, %c0_2] : memref<147x64xbf16, #tpu.memory_space<vmem>>, vector<147x64xbf16>
    %cst = arith.constant dense<0.000000e+00> : vector<392x64xf32>
    %2 = tpu.matmul %0, %1, %cst {dimension_numbers = #tpu.dot_dimension_numbers<[1], [0], [0], [1], [0, 0, 1, 1], [], []>} : vector<392x147xbf16>, vector<147x64xbf16>, vector<392x64xf32> -> vector<392x64xf32>
    %c0_3 = arith.constant 0 : index
    %c0_4 = arith.constant 0 : index
    %3 = vector.load %arg3[%c0_3, %c0_4] : memref<3x64xf32, #tpu.memory_space<vmem>>, vector<3x64xf32>
    %4 = vector.extract_strided_slice %3 {offsets = [0, 0], sizes = [1, 64], strides = [1, 1]} : vector<3x64xf32> to vector<1x64xf32>
    %5 = vector.broadcast %4 : vector<1x64xf32> to vector<392x64xf32>
    %6 = arith.addf %2, %5 : vector<392x64xf32>
    %cst_5 = arith.constant dense<0.000000e+00> : vector<64xf32>
    %7 = vector.multi_reduction <add>, %6, %cst_5 [0] : vector<392x64xf32> to vector<64xf32>
    %8 = vector.shape_cast %7 : vector<64xf32> to vector<1x64xf32>
    %cst_6 = arith.constant 0.00255102036 : f32
    %9 = vector.broadcast %cst_6 : f32 to vector<1x64xf32>
    %10 = arith.mulf %8, %9 : vector<1x64xf32>
    %11 = arith.mulf %6, %6 : vector<392x64xf32>
    %cst_7 = arith.constant dense<0.000000e+00> : vector<64xf32>
    %12 = vector.multi_reduction <add>, %11, %cst_7 [0] : vector<392x64xf32> to vector<64xf32>
    %13 = vector.shape_cast %12 : vector<64xf32> to vector<1x64xf32>
    %cst_8 = arith.constant 0.00255102036 : f32
    %14 = vector.broadcast %cst_8 : f32 to vector<1x64xf32>
    %15 = arith.mulf %13, %14 : vector<1x64xf32>
    %16 = arith.mulf %10, %10 : vector<1x64xf32>
    %17 = arith.subf %15, %16 : vector<1x64xf32>
    %18 = vector.broadcast %10 : vector<1x64xf32> to vector<392x64xf32>
    %19 = arith.subf %6, %18 : vector<392x64xf32>
    %cst_9 = arith.constant 9.99999974E-6 : f32
    %20 = vector.broadcast %cst_9 : f32 to vector<1x64xf32>
    %21 = arith.addf %17, %20 : vector<1x64xf32>
    %22 = math.rsqrt %21 : vector<1x64xf32>
    %23 = vector.broadcast %22 : vector<1x64xf32> to vector<392x64xf32>
    %24 = arith.mulf %19, %23 : vector<392x64xf32>
    %25 = vector.extract_strided_slice %3 {offsets = [1, 0], sizes = [1, 64], strides = [1, 1]} : vector<3x64xf32> to vector<1x64xf32>
    %26 = vector.broadcast %25 : vector<1x64xf32> to vector<392x64xf32>
    %27 = arith.mulf %24, %26 : vector<392x64xf32>
    %28 = vector.extract_strided_slice %3 {offsets = [2, 0], sizes = [1, 64], strides = [1, 1]} : vector<3x64xf32> to vector<1x64xf32>
    %29 = vector.broadcast %28 : vector<1x64xf32> to vector<392x64xf32>
    %30 = arith.addf %27, %29 : vector<392x64xf32>
    %cst_10 = arith.constant 0.000000e+00 : f32
    %31 = vector.broadcast %cst_10 : f32 to vector<392x64xf32>
    %32 = arith.maximumf %30, %31 : vector<392x64xf32>
    %c0_11 = arith.constant 0 : index
    %c0_12 = arith.constant 0 : index
    %33 = vector.load %arg4[%c0_11, %c0_12] : memref<392x64xf32, #tpu.memory_space<vmem>>, vector<392x64xf32>
    tpu.vector_store %arg4[%c0_11, %c0_12], %32 {strides = array<i32>} : memref<392x64xf32, #tpu.memory_space<vmem>>, vector<392x64xf32>,
    return
  }
  func.func @transform_0(%arg0: i32) -> (i32, i32) {
    %c0_i32 = arith.constant 0 : i32
    %c0_i32_0 = arith.constant 0 : i32
    %c0_i32_1 = arith.constant 0 : i32
    return %c0_i32, %c0_i32_0 : i32, i32
  }
  func.func @transform_1(%arg0: i32) -> (i32, i32) {
    %c0_i32 = arith.constant 0 : i32
    %c0_i32_0 = arith.constant 0 : i32
    %c0_i32_1 = arith.constant 0 : i32
    return %c0_i32, %c0_i32_0 : i32, i32
  }
  func.func @transform_2(%arg0: i32) -> (i32, i32) {
    %c0_i32 = arith.constant 0 : i32
    %c0_i32_0 = arith.constant 0 : i32
    %c0_i32_1 = arith.constant 0 : i32
    return %c0_i32, %c0_i32_0 : i32, i32
  }
  func.func @transform_3(%arg0: i32) -> (i32, i32) {
    %c0_i32 = arith.constant 0 : i32
    %c0_i32_0 = arith.constant 0 : i32
    %c0_i32_1 = arith.constant 0 : i32
    return %c0_i32, %c0_i32_0 : i32, i32
  }
}

module attributes {stable_mosaic.version = 11 : i64} {
  func.func @_conv_bn_relu_kernel(%arg0: i32, %arg1: memref<98x576xbf16, #tpu.memory_space<vmem>>, %arg2: memref<576x128xbf16, #tpu.memory_space<vmem>>, %arg3: memref<3x128xf32, #tpu.memory_space<vmem>>, %arg4: memref<98x128xf32, #tpu.memory_space<vmem>>) attributes {dimension_semantics = [#tpu.dimension_semantics<arbitrary>], iteration_bounds = array<i64: 1>, scalar_prefetch = 0 : i64, scratch_operands = 0 : i64, tpu.core_type = #tpu.core_type<tc>, window_params = [{pipeline_mode = #tpu.pipeline_mode<synchronous>, transform_indices = @transform_0, window_bounds = array<i64: 98, 576>}, {pipeline_mode = #tpu.pipeline_mode<synchronous>, transform_indices = @transform_1, window_bounds = array<i64: 576, 128>}, {pipeline_mode = #tpu.pipeline_mode<synchronous>, transform_indices = @transform_2, window_bounds = array<i64: 3, 128>}, {pipeline_mode = #tpu.pipeline_mode<synchronous>, transform_indices = @transform_3, window_bounds = array<i64: 98, 128>}]} {
    %c0 = arith.constant 0 : index
    %c0_0 = arith.constant 0 : index
    %0 = vector.load %arg1[%c0, %c0_0] : memref<98x576xbf16, #tpu.memory_space<vmem>>, vector<98x576xbf16>
    %c0_1 = arith.constant 0 : index
    %c0_2 = arith.constant 0 : index
    %1 = vector.load %arg2[%c0_1, %c0_2] : memref<576x128xbf16, #tpu.memory_space<vmem>>, vector<576x128xbf16>
    %cst = arith.constant dense<0.000000e+00> : vector<98x128xf32>
    %2 = tpu.matmul %0, %1, %cst {dimension_numbers = #tpu.dot_dimension_numbers<[1], [0], [0], [1], [0, 0, 1, 1], [], []>} : vector<98x576xbf16>, vector<576x128xbf16>, vector<98x128xf32> -> vector<98x128xf32>
    %c0_3 = arith.constant 0 : index
    %c0_4 = arith.constant 0 : index
    %3 = vector.load %arg3[%c0_3, %c0_4] : memref<3x128xf32, #tpu.memory_space<vmem>>, vector<3x128xf32>
    %4 = vector.extract_strided_slice %3 {offsets = [0, 0], sizes = [1, 128], strides = [1, 1]} : vector<3x128xf32> to vector<1x128xf32>
    %5 = vector.broadcast %4 : vector<1x128xf32> to vector<98x128xf32>
    %6 = arith.addf %2, %5 : vector<98x128xf32>
    %cst_5 = arith.constant dense<0.000000e+00> : vector<128xf32>
    %7 = vector.multi_reduction <add>, %6, %cst_5 [0] : vector<98x128xf32> to vector<128xf32>
    %8 = vector.shape_cast %7 : vector<128xf32> to vector<1x128xf32>
    %cst_6 = arith.constant 0.0102040814 : f32
    %9 = vector.broadcast %cst_6 : f32 to vector<1x128xf32>
    %10 = arith.mulf %8, %9 : vector<1x128xf32>
    %11 = arith.mulf %6, %6 : vector<98x128xf32>
    %cst_7 = arith.constant dense<0.000000e+00> : vector<128xf32>
    %12 = vector.multi_reduction <add>, %11, %cst_7 [0] : vector<98x128xf32> to vector<128xf32>
    %13 = vector.shape_cast %12 : vector<128xf32> to vector<1x128xf32>
    %cst_8 = arith.constant 0.0102040814 : f32
    %14 = vector.broadcast %cst_8 : f32 to vector<1x128xf32>
    %15 = arith.mulf %13, %14 : vector<1x128xf32>
    %16 = arith.mulf %10, %10 : vector<1x128xf32>
    %17 = arith.subf %15, %16 : vector<1x128xf32>
    %18 = vector.broadcast %10 : vector<1x128xf32> to vector<98x128xf32>
    %19 = arith.subf %6, %18 : vector<98x128xf32>
    %cst_9 = arith.constant 9.99999974E-6 : f32
    %20 = vector.broadcast %cst_9 : f32 to vector<1x128xf32>
    %21 = arith.addf %17, %20 : vector<1x128xf32>
    %22 = math.rsqrt %21 : vector<1x128xf32>
    %23 = vector.broadcast %22 : vector<1x128xf32> to vector<98x128xf32>
    %24 = arith.mulf %19, %23 : vector<98x128xf32>
    %25 = vector.extract_strided_slice %3 {offsets = [1, 0], sizes = [1, 128], strides = [1, 1]} : vector<3x128xf32> to vector<1x128xf32>
    %26 = vector.broadcast %25 : vector<1x128xf32> to vector<98x128xf32>
    %27 = arith.mulf %24, %26 : vector<98x128xf32>
    %28 = vector.extract_strided_slice %3 {offsets = [2, 0], sizes = [1, 128], strides = [1, 1]} : vector<3x128xf32> to vector<1x128xf32>
    %29 = vector.broadcast %28 : vector<1x128xf32> to vector<98x128xf32>
    %30 = arith.addf %27, %29 : vector<98x128xf32>
    %cst_10 = arith.constant 0.000000e+00 : f32
    %31 = vector.broadcast %cst_10 : f32 to vector<98x128xf32>
    %32 = arith.maximumf %30, %31 : vector<98x128xf32>
    %c0_11 = arith.constant 0 : index
    %c0_12 = arith.constant 0 : index
    %33 = vector.load %arg4[%c0_11, %c0_12] : memref<98x128xf32, #tpu.memory_space<vmem>>, vector<98x128xf32>
    tpu.vector_store %arg4[%c0_11, %c0_12], %32 {strides = array<i32>} : memref<98x128xf32, #tpu.memory_space<vmem>>, vector<98x128xf32>,
    return
  }
  func.func @transform_0(%arg0: i32) -> (i32, i32) {
    %c0_i32 = arith.constant 0 : i32
    %c0_i32_0 = arith.constant 0 : i32
    %c0_i32_1 = arith.constant 0 : i32
    return %c0_i32, %c0_i32_0 : i32, i32
  }
  func.func @transform_1(%arg0: i32) -> (i32, i32) {
    %c0_i32 = arith.constant 0 : i32
    %c0_i32_0 = arith.constant 0 : i32
    %c0_i32_1 = arith.constant 0 : i32
    return %c0_i32, %c0_i32_0 : i32, i32
  }
  func.func @transform_2(%arg0: i32) -> (i32, i32) {
    %c0_i32 = arith.constant 0 : i32
    %c0_i32_0 = arith.constant 0 : i32
    %c0_i32_1 = arith.constant 0 : i32
    return %c0_i32, %c0_i32_0 : i32, i32
  }
  func.func @transform_3(%arg0: i32) -> (i32, i32) {
    %c0_i32 = arith.constant 0 : i32
    %c0_i32_0 = arith.constant 0 : i32
    %c0_i32_1 = arith.constant 0 : i32
    return %c0_i32, %c0_i32_0 : i32, i32
  }
}

module attributes {stable_mosaic.version = 11 : i64} {
  func.func @_conv_bn_relu_kernel(%arg0: i32, %arg1: memref<98x128xbf16, #tpu.memory_space<vmem>>, %arg2: memref<128x96xbf16, #tpu.memory_space<vmem>>, %arg3: memref<3x96xf32, #tpu.memory_space<vmem>>, %arg4: memref<98x96xf32, #tpu.memory_space<vmem>>) attributes {dimension_semantics = [#tpu.dimension_semantics<arbitrary>], iteration_bounds = array<i64: 1>, scalar_prefetch = 0 : i64, scratch_operands = 0 : i64, tpu.core_type = #tpu.core_type<tc>, window_params = [{pipeline_mode = #tpu.pipeline_mode<synchronous>, transform_indices = @transform_0, window_bounds = array<i64: 98, 128>}, {pipeline_mode = #tpu.pipeline_mode<synchronous>, transform_indices = @transform_1, window_bounds = array<i64: 128, 96>}, {pipeline_mode = #tpu.pipeline_mode<synchronous>, transform_indices = @transform_2, window_bounds = array<i64: 3, 96>}, {pipeline_mode = #tpu.pipeline_mode<synchronous>, transform_indices = @transform_3, window_bounds = array<i64: 98, 96>}]} {
    %c0 = arith.constant 0 : index
    %c0_0 = arith.constant 0 : index
    %0 = vector.load %arg1[%c0, %c0_0] : memref<98x128xbf16, #tpu.memory_space<vmem>>, vector<98x128xbf16>
    %c0_1 = arith.constant 0 : index
    %c0_2 = arith.constant 0 : index
    %1 = vector.load %arg2[%c0_1, %c0_2] : memref<128x96xbf16, #tpu.memory_space<vmem>>, vector<128x96xbf16>
    %cst = arith.constant dense<0.000000e+00> : vector<98x96xf32>
    %2 = tpu.matmul %0, %1, %cst {dimension_numbers = #tpu.dot_dimension_numbers<[1], [0], [0], [1], [0, 0, 1, 1], [], []>} : vector<98x128xbf16>, vector<128x96xbf16>, vector<98x96xf32> -> vector<98x96xf32>
    %c0_3 = arith.constant 0 : index
    %c0_4 = arith.constant 0 : index
    %3 = vector.load %arg3[%c0_3, %c0_4] : memref<3x96xf32, #tpu.memory_space<vmem>>, vector<3x96xf32>
    %4 = vector.extract_strided_slice %3 {offsets = [0, 0], sizes = [1, 96], strides = [1, 1]} : vector<3x96xf32> to vector<1x96xf32>
    %5 = vector.broadcast %4 : vector<1x96xf32> to vector<98x96xf32>
    %6 = arith.addf %2, %5 : vector<98x96xf32>
    %cst_5 = arith.constant dense<0.000000e+00> : vector<96xf32>
    %7 = vector.multi_reduction <add>, %6, %cst_5 [0] : vector<98x96xf32> to vector<96xf32>
    %8 = vector.shape_cast %7 : vector<96xf32> to vector<1x96xf32>
    %cst_6 = arith.constant 0.0102040814 : f32
    %9 = vector.broadcast %cst_6 : f32 to vector<1x96xf32>
    %10 = arith.mulf %8, %9 : vector<1x96xf32>
    %11 = arith.mulf %6, %6 : vector<98x96xf32>
    %cst_7 = arith.constant dense<0.000000e+00> : vector<96xf32>
    %12 = vector.multi_reduction <add>, %11, %cst_7 [0] : vector<98x96xf32> to vector<96xf32>
    %13 = vector.shape_cast %12 : vector<96xf32> to vector<1x96xf32>
    %cst_8 = arith.constant 0.0102040814 : f32
    %14 = vector.broadcast %cst_8 : f32 to vector<1x96xf32>
    %15 = arith.mulf %13, %14 : vector<1x96xf32>
    %16 = arith.mulf %10, %10 : vector<1x96xf32>
    %17 = arith.subf %15, %16 : vector<1x96xf32>
    %18 = vector.broadcast %10 : vector<1x96xf32> to vector<98x96xf32>
    %19 = arith.subf %6, %18 : vector<98x96xf32>
    %cst_9 = arith.constant 9.99999974E-6 : f32
    %20 = vector.broadcast %cst_9 : f32 to vector<1x96xf32>
    %21 = arith.addf %17, %20 : vector<1x96xf32>
    %22 = math.rsqrt %21 : vector<1x96xf32>
    %23 = vector.broadcast %22 : vector<1x96xf32> to vector<98x96xf32>
    %24 = arith.mulf %19, %23 : vector<98x96xf32>
    %25 = vector.extract_strided_slice %3 {offsets = [1, 0], sizes = [1, 96], strides = [1, 1]} : vector<3x96xf32> to vector<1x96xf32>
    %26 = vector.broadcast %25 : vector<1x96xf32> to vector<98x96xf32>
    %27 = arith.mulf %24, %26 : vector<98x96xf32>
    %28 = vector.extract_strided_slice %3 {offsets = [2, 0], sizes = [1, 96], strides = [1, 1]} : vector<3x96xf32> to vector<1x96xf32>
    %29 = vector.broadcast %28 : vector<1x96xf32> to vector<98x96xf32>
    %30 = arith.addf %27, %29 : vector<98x96xf32>
    %cst_10 = arith.constant 0.000000e+00 : f32
    %31 = vector.broadcast %cst_10 : f32 to vector<98x96xf32>
    %32 = arith.maximumf %30, %31 : vector<98x96xf32>
    %c0_11 = arith.constant 0 : index
    %c0_12 = arith.constant 0 : index
    %33 = vector.load %arg4[%c0_11, %c0_12] : memref<98x96xf32, #tpu.memory_space<vmem>>, vector<98x96xf32>
    tpu.vector_store %arg4[%c0_11, %c0_12], %32 {strides = array<i32>} : memref<98x96xf32, #tpu.memory_space<vmem>>, vector<98x96xf32>,
    return
  }
  func.func @transform_0(%arg0: i32) -> (i32, i32) {
    %c0_i32 = arith.constant 0 : i32
    %c0_i32_0 = arith.constant 0 : i32
    %c0_i32_1 = arith.constant 0 : i32
    return %c0_i32, %c0_i32_0 : i32, i32
  }
  func.func @transform_1(%arg0: i32) -> (i32, i32) {
    %c0_i32 = arith.constant 0 : i32
    %c0_i32_0 = arith.constant 0 : i32
    %c0_i32_1 = arith.constant 0 : i32
    return %c0_i32, %c0_i32_0 : i32, i32
  }
  func.func @transform_2(%arg0: i32) -> (i32, i32) {
    %c0_i32 = arith.constant 0 : i32
    %c0_i32_0 = arith.constant 0 : i32
    %c0_i32_1 = arith.constant 0 : i32
    return %c0_i32, %c0_i32_0 : i32, i32
  }
  func.func @transform_3(%arg0: i32) -> (i32, i32) {
    %c0_i32 = arith.constant 0 : i32
    %c0_i32_0 = arith.constant 0 : i32
    %c0_i32_1 = arith.constant 0 : i32
    return %c0_i32, %c0_i32_0 : i32, i32
  }
}

module attributes {stable_mosaic.version = 11 : i64} {
  func.func @_conv_bn_relu_kernel(%arg0: i32, %arg1: memref<98x144xbf16, #tpu.memory_space<vmem>>, %arg2: memref<144x64xbf16, #tpu.memory_space<vmem>>, %arg3: memref<3x64xf32, #tpu.memory_space<vmem>>, %arg4: memref<98x64xf32, #tpu.memory_space<vmem>>) attributes {dimension_semantics = [#tpu.dimension_semantics<arbitrary>], iteration_bounds = array<i64: 1>, scalar_prefetch = 0 : i64, scratch_operands = 0 : i64, tpu.core_type = #tpu.core_type<tc>, window_params = [{pipeline_mode = #tpu.pipeline_mode<synchronous>, transform_indices = @transform_0, window_bounds = array<i64: 98, 144>}, {pipeline_mode = #tpu.pipeline_mode<synchronous>, transform_indices = @transform_1, window_bounds = array<i64: 144, 64>}, {pipeline_mode = #tpu.pipeline_mode<synchronous>, transform_indices = @transform_2, window_bounds = array<i64: 3, 64>}, {pipeline_mode = #tpu.pipeline_mode<synchronous>, transform_indices = @transform_3, window_bounds = array<i64: 98, 64>}]} {
    %c0 = arith.constant 0 : index
    %c0_0 = arith.constant 0 : index
    %0 = vector.load %arg1[%c0, %c0_0] : memref<98x144xbf16, #tpu.memory_space<vmem>>, vector<98x144xbf16>
    %c0_1 = arith.constant 0 : index
    %c0_2 = arith.constant 0 : index
    %1 = vector.load %arg2[%c0_1, %c0_2] : memref<144x64xbf16, #tpu.memory_space<vmem>>, vector<144x64xbf16>
    %cst = arith.constant dense<0.000000e+00> : vector<98x64xf32>
    %2 = tpu.matmul %0, %1, %cst {dimension_numbers = #tpu.dot_dimension_numbers<[1], [0], [0], [1], [0, 0, 1, 1], [], []>} : vector<98x144xbf16>, vector<144x64xbf16>, vector<98x64xf32> -> vector<98x64xf32>
    %c0_3 = arith.constant 0 : index
    %c0_4 = arith.constant 0 : index
    %3 = vector.load %arg3[%c0_3, %c0_4] : memref<3x64xf32, #tpu.memory_space<vmem>>, vector<3x64xf32>
    %4 = vector.extract_strided_slice %3 {offsets = [0, 0], sizes = [1, 64], strides = [1, 1]} : vector<3x64xf32> to vector<1x64xf32>
    %5 = vector.broadcast %4 : vector<1x64xf32> to vector<98x64xf32>
    %6 = arith.addf %2, %5 : vector<98x64xf32>
    %cst_5 = arith.constant dense<0.000000e+00> : vector<64xf32>
    %7 = vector.multi_reduction <add>, %6, %cst_5 [0] : vector<98x64xf32> to vector<64xf32>
    %8 = vector.shape_cast %7 : vector<64xf32> to vector<1x64xf32>
    %cst_6 = arith.constant 0.0102040814 : f32
    %9 = vector.broadcast %cst_6 : f32 to vector<1x64xf32>
    %10 = arith.mulf %8, %9 : vector<1x64xf32>
    %11 = arith.mulf %6, %6 : vector<98x64xf32>
    %cst_7 = arith.constant dense<0.000000e+00> : vector<64xf32>
    %12 = vector.multi_reduction <add>, %11, %cst_7 [0] : vector<98x64xf32> to vector<64xf32>
    %13 = vector.shape_cast %12 : vector<64xf32> to vector<1x64xf32>
    %cst_8 = arith.constant 0.0102040814 : f32
    %14 = vector.broadcast %cst_8 : f32 to vector<1x64xf32>
    %15 = arith.mulf %13, %14 : vector<1x64xf32>
    %16 = arith.mulf %10, %10 : vector<1x64xf32>
    %17 = arith.subf %15, %16 : vector<1x64xf32>
    %18 = vector.broadcast %10 : vector<1x64xf32> to vector<98x64xf32>
    %19 = arith.subf %6, %18 : vector<98x64xf32>
    %cst_9 = arith.constant 9.99999974E-6 : f32
    %20 = vector.broadcast %cst_9 : f32 to vector<1x64xf32>
    %21 = arith.addf %17, %20 : vector<1x64xf32>
    %22 = math.rsqrt %21 : vector<1x64xf32>
    %23 = vector.broadcast %22 : vector<1x64xf32> to vector<98x64xf32>
    %24 = arith.mulf %19, %23 : vector<98x64xf32>
    %25 = vector.extract_strided_slice %3 {offsets = [1, 0], sizes = [1, 64], strides = [1, 1]} : vector<3x64xf32> to vector<1x64xf32>
    %26 = vector.broadcast %25 : vector<1x64xf32> to vector<98x64xf32>
    %27 = arith.mulf %24, %26 : vector<98x64xf32>
    %28 = vector.extract_strided_slice %3 {offsets = [2, 0], sizes = [1, 64], strides = [1, 1]} : vector<3x64xf32> to vector<1x64xf32>
    %29 = vector.broadcast %28 : vector<1x64xf32> to vector<98x64xf32>
    %30 = arith.addf %27, %29 : vector<98x64xf32>
    %cst_10 = arith.constant 0.000000e+00 : f32
    %31 = vector.broadcast %cst_10 : f32 to vector<98x64xf32>
    %32 = arith.maximumf %30, %31 : vector<98x64xf32>
    %c0_11 = arith.constant 0 : index
    %c0_12 = arith.constant 0 : index
    %33 = vector.load %arg4[%c0_11, %c0_12] : memref<98x64xf32, #tpu.memory_space<vmem>>, vector<98x64xf32>
    tpu.vector_store %arg4[%c0_11, %c0_12], %32 {strides = array<i32>} : memref<98x64xf32, #tpu.memory_space<vmem>>, vector<98x64xf32>,
    return
  }
  func.func @transform_0(%arg0: i32) -> (i32, i32) {
    %c0_i32 = arith.constant 0 : i32
    %c0_i32_0 = arith.constant 0 : i32
    %c0_i32_1 = arith.constant 0 : i32
    return %c0_i32, %c0_i32_0 : i32, i32
  }
  func.func @transform_1(%arg0: i32) -> (i32, i32) {
    %c0_i32 = arith.constant 0 : i32
    %c0_i32_0 = arith.constant 0 : i32
    %c0_i32_1 = arith.constant 0 : i32
    return %c0_i32, %c0_i32_0 : i32, i32
  }
  func.func @transform_2(%arg0: i32) -> (i32, i32) {
    %c0_i32 = arith.constant 0 : i32
    %c0_i32_0 = arith.constant 0 : i32
    %c0_i32_1 = arith.constant 0 : i32
    return %c0_i32, %c0_i32_0 : i32, i32
  }
  func.func @transform_3(%arg0: i32) -> (i32, i32) {
    %c0_i32 = arith.constant 0 : i32
    %c0_i32_0 = arith.constant 0 : i32
    %c0_i32_1 = arith.constant 0 : i32
    return %c0_i32, %c0_i32_0 : i32, i32
  }
}

module attributes {stable_mosaic.version = 11 : i64} {
  func.func @_conv_bn_relu_kernel(%arg0: i32, %arg1: memref<98x400xbf16, #tpu.memory_space<vmem>>, %arg2: memref<400x64xbf16, #tpu.memory_space<vmem>>, %arg3: memref<3x64xf32, #tpu.memory_space<vmem>>, %arg4: memref<98x64xf32, #tpu.memory_space<vmem>>) attributes {dimension_semantics = [#tpu.dimension_semantics<arbitrary>], iteration_bounds = array<i64: 1>, scalar_prefetch = 0 : i64, scratch_operands = 0 : i64, tpu.core_type = #tpu.core_type<tc>, window_params = [{pipeline_mode = #tpu.pipeline_mode<synchronous>, transform_indices = @transform_0, window_bounds = array<i64: 98, 400>}, {pipeline_mode = #tpu.pipeline_mode<synchronous>, transform_indices = @transform_1, window_bounds = array<i64: 400, 64>}, {pipeline_mode = #tpu.pipeline_mode<synchronous>, transform_indices = @transform_2, window_bounds = array<i64: 3, 64>}, {pipeline_mode = #tpu.pipeline_mode<synchronous>, transform_indices = @transform_3, window_bounds = array<i64: 98, 64>}]} {
    %c0 = arith.constant 0 : index
    %c0_0 = arith.constant 0 : index
    %0 = vector.load %arg1[%c0, %c0_0] : memref<98x400xbf16, #tpu.memory_space<vmem>>, vector<98x400xbf16>
    %c0_1 = arith.constant 0 : index
    %c0_2 = arith.constant 0 : index
    %1 = vector.load %arg2[%c0_1, %c0_2] : memref<400x64xbf16, #tpu.memory_space<vmem>>, vector<400x64xbf16>
    %cst = arith.constant dense<0.000000e+00> : vector<98x64xf32>
    %2 = tpu.matmul %0, %1, %cst {dimension_numbers = #tpu.dot_dimension_numbers<[1], [0], [0], [1], [0, 0, 1, 1], [], []>} : vector<98x400xbf16>, vector<400x64xbf16>, vector<98x64xf32> -> vector<98x64xf32>
    %c0_3 = arith.constant 0 : index
    %c0_4 = arith.constant 0 : index
    %3 = vector.load %arg3[%c0_3, %c0_4] : memref<3x64xf32, #tpu.memory_space<vmem>>, vector<3x64xf32>
    %4 = vector.extract_strided_slice %3 {offsets = [0, 0], sizes = [1, 64], strides = [1, 1]} : vector<3x64xf32> to vector<1x64xf32>
    %5 = vector.broadcast %4 : vector<1x64xf32> to vector<98x64xf32>
    %6 = arith.addf %2, %5 : vector<98x64xf32>
    %cst_5 = arith.constant dense<0.000000e+00> : vector<64xf32>
    %7 = vector.multi_reduction <add>, %6, %cst_5 [0] : vector<98x64xf32> to vector<64xf32>
    %8 = vector.shape_cast %7 : vector<64xf32> to vector<1x64xf32>
    %cst_6 = arith.constant 0.0102040814 : f32
    %9 = vector.broadcast %cst_6 : f32 to vector<1x64xf32>
    %10 = arith.mulf %8, %9 : vector<1x64xf32>
    %11 = arith.mulf %6, %6 : vector<98x64xf32>
    %cst_7 = arith.constant dense<0.000000e+00> : vector<64xf32>
    %12 = vector.multi_reduction <add>, %11, %cst_7 [0] : vector<98x64xf32> to vector<64xf32>
    %13 = vector.shape_cast %12 : vector<64xf32> to vector<1x64xf32>
    %cst_8 = arith.constant 0.0102040814 : f32
    %14 = vector.broadcast %cst_8 : f32 to vector<1x64xf32>
    %15 = arith.mulf %13, %14 : vector<1x64xf32>
    %16 = arith.mulf %10, %10 : vector<1x64xf32>
    %17 = arith.subf %15, %16 : vector<1x64xf32>
    %18 = vector.broadcast %10 : vector<1x64xf32> to vector<98x64xf32>
    %19 = arith.subf %6, %18 : vector<98x64xf32>
    %cst_9 = arith.constant 9.99999974E-6 : f32
    %20 = vector.broadcast %cst_9 : f32 to vector<1x64xf32>
    %21 = arith.addf %17, %20 : vector<1x64xf32>
    %22 = math.rsqrt %21 : vector<1x64xf32>
    %23 = vector.broadcast %22 : vector<1x64xf32> to vector<98x64xf32>
    %24 = arith.mulf %19, %23 : vector<98x64xf32>
    %25 = vector.extract_strided_slice %3 {offsets = [1, 0], sizes = [1, 64], strides = [1, 1]} : vector<3x64xf32> to vector<1x64xf32>
    %26 = vector.broadcast %25 : vector<1x64xf32> to vector<98x64xf32>
    %27 = arith.mulf %24, %26 : vector<98x64xf32>
    %28 = vector.extract_strided_slice %3 {offsets = [2, 0], sizes = [1, 64], strides = [1, 1]} : vector<3x64xf32> to vector<1x64xf32>
    %29 = vector.broadcast %28 : vector<1x64xf32> to vector<98x64xf32>
    %30 = arith.addf %27, %29 : vector<98x64xf32>
    %cst_10 = arith.constant 0.000000e+00 : f32
    %31 = vector.broadcast %cst_10 : f32 to vector<98x64xf32>
    %32 = arith.maximumf %30, %31 : vector<98x64xf32>
    %c0_11 = arith.constant 0 : index
    %c0_12 = arith.constant 0 : index
    %33 = vector.load %arg4[%c0_11, %c0_12] : memref<98x64xf32, #tpu.memory_space<vmem>>, vector<98x64xf32>
    tpu.vector_store %arg4[%c0_11, %c0_12], %32 {strides = array<i32>} : memref<98x64xf32, #tpu.memory_space<vmem>>, vector<98x64xf32>,
    return
  }
  func.func @transform_0(%arg0: i32) -> (i32, i32) {
    %c0_i32 = arith.constant 0 : i32
    %c0_i32_0 = arith.constant 0 : i32
    %c0_i32_1 = arith.constant 0 : i32
    return %c0_i32, %c0_i32_0 : i32, i32
  }
  func.func @transform_1(%arg0: i32) -> (i32, i32) {
    %c0_i32 = arith.constant 0 : i32
    %c0_i32_0 = arith.constant 0 : i32
    %c0_i32_1 = arith.constant 0 : i32
    return %c0_i32, %c0_i32_0 : i32, i32
  }
  func.func @transform_2(%arg0: i32) -> (i32, i32) {
    %c0_i32 = arith.constant 0 : i32
    %c0_i32_0 = arith.constant 0 : i32
    %c0_i32_1 = arith.constant 0 : i32
    return %c0_i32, %c0_i32_0 : i32, i32
  }
  func.func @transform_3(%arg0: i32) -> (i32, i32) {
    %c0_i32 = arith.constant 0 : i32
    %c0_i32_0 = arith.constant 0 : i32
    %c0_i32_1 = arith.constant 0 : i32
    return %c0_i32, %c0_i32_0 : i32, i32
  }
}

module attributes {stable_mosaic.version = 11 : i64} {
  func.func @_maxpool_kernel(%arg0: i32, %arg1: memref<9x2x7x7x128xf32, #tpu.memory_space<vmem>>, %arg2: memref<2x7x7x128xf32, #tpu.memory_space<vmem>>) attributes {dimension_semantics = [#tpu.dimension_semantics<arbitrary>], iteration_bounds = array<i64: 1>, scalar_prefetch = 0 : i64, scratch_operands = 0 : i64, tpu.core_type = #tpu.core_type<tc>, window_params = [{pipeline_mode = #tpu.pipeline_mode<synchronous>, transform_indices = @transform_0, window_bounds = array<i64: 9, 2, 7, 7, 128>}, {pipeline_mode = #tpu.pipeline_mode<synchronous>, transform_indices = @transform_1, window_bounds = array<i64: 2, 7, 7, 128>}]} {
    %c0 = arith.constant 0 : index
    %c0_0 = arith.constant 0 : index
    %c0_1 = arith.constant 0 : index
    %c0_2 = arith.constant 0 : index
    %c0_3 = arith.constant 0 : index
    %0 = vector.load %arg1[%c0, %c0_0, %c0_1, %c0_2, %c0_3] : memref<9x2x7x7x128xf32, #tpu.memory_space<vmem>>, vector<1x2x7x7x128xf32>
    %1 = vector.shape_cast %0 : vector<1x2x7x7x128xf32> to vector<2x7x7x128xf32>
    %c1 = arith.constant 1 : index
    %c0_4 = arith.constant 0 : index
    %c0_5 = arith.constant 0 : index
    %c0_6 = arith.constant 0 : index
    %c0_7 = arith.constant 0 : index
    %2 = vector.load %arg1[%c1, %c0_4, %c0_5, %c0_6, %c0_7] : memref<9x2x7x7x128xf32, #tpu.memory_space<vmem>>, vector<1x2x7x7x128xf32>
    %3 = vector.shape_cast %2 : vector<1x2x7x7x128xf32> to vector<2x7x7x128xf32>
    %4 = arith.maximumf %1, %3 : vector<2x7x7x128xf32>
    %c2 = arith.constant 2 : index
    %c0_8 = arith.constant 0 : index
    %c0_9 = arith.constant 0 : index
    %c0_10 = arith.constant 0 : index
    %c0_11 = arith.constant 0 : index
    %5 = vector.load %arg1[%c2, %c0_8, %c0_9, %c0_10, %c0_11] : memref<9x2x7x7x128xf32, #tpu.memory_space<vmem>>, vector<1x2x7x7x128xf32>
    %6 = vector.shape_cast %5 : vector<1x2x7x7x128xf32> to vector<2x7x7x128xf32>
    %7 = arith.maximumf %4, %6 : vector<2x7x7x128xf32>
    %c3 = arith.constant 3 : index
    %c0_12 = arith.constant 0 : index
    %c0_13 = arith.constant 0 : index
    %c0_14 = arith.constant 0 : index
    %c0_15 = arith.constant 0 : index
    %8 = vector.load %arg1[%c3, %c0_12, %c0_13, %c0_14, %c0_15] : memref<9x2x7x7x128xf32, #tpu.memory_space<vmem>>, vector<1x2x7x7x128xf32>
    %9 = vector.shape_cast %8 : vector<1x2x7x7x128xf32> to vector<2x7x7x128xf32>
    %10 = arith.maximumf %7, %9 : vector<2x7x7x128xf32>
    %c4 = arith.constant 4 : index
    %c0_16 = arith.constant 0 : index
    %c0_17 = arith.constant 0 : index
    %c0_18 = arith.constant 0 : index
    %c0_19 = arith.constant 0 : index
    %11 = vector.load %arg1[%c4, %c0_16, %c0_17, %c0_18, %c0_19] : memref<9x2x7x7x128xf32, #tpu.memory_space<vmem>>, vector<1x2x7x7x128xf32>
    %12 = vector.shape_cast %11 : vector<1x2x7x7x128xf32> to vector<2x7x7x128xf32>
    %13 = arith.maximumf %10, %12 : vector<2x7x7x128xf32>
    %c5 = arith.constant 5 : index
    %c0_20 = arith.constant 0 : index
    %c0_21 = arith.constant 0 : index
    %c0_22 = arith.constant 0 : index
    %c0_23 = arith.constant 0 : index
    %14 = vector.load %arg1[%c5, %c0_20, %c0_21, %c0_22, %c0_23] : memref<9x2x7x7x128xf32, #tpu.memory_space<vmem>>, vector<1x2x7x7x128xf32>
    %15 = vector.shape_cast %14 : vector<1x2x7x7x128xf32> to vector<2x7x7x128xf32>
    %16 = arith.maximumf %13, %15 : vector<2x7x7x128xf32>
    %c6 = arith.constant 6 : index
    %c0_24 = arith.constant 0 : index
    %c0_25 = arith.constant 0 : index
    %c0_26 = arith.constant 0 : index
    %c0_27 = arith.constant 0 : index
    %17 = vector.load %arg1[%c6, %c0_24, %c0_25, %c0_26, %c0_27] : memref<9x2x7x7x128xf32, #tpu.memory_space<vmem>>, vector<1x2x7x7x128xf32>
    %18 = vector.shape_cast %17 : vector<1x2x7x7x128xf32> to vector<2x7x7x128xf32>
    %19 = arith.maximumf %16, %18 : vector<2x7x7x128xf32>
    %c7 = arith.constant 7 : index
    %c0_28 = arith.constant 0 : index
    %c0_29 = arith.constant 0 : index
    %c0_30 = arith.constant 0 : index
    %c0_31 = arith.constant 0 : index
    %20 = vector.load %arg1[%c7, %c0_28, %c0_29, %c0_30, %c0_31] : memref<9x2x7x7x128xf32, #tpu.memory_space<vmem>>, vector<1x2x7x7x128xf32>
    %21 = vector.shape_cast %20 : vector<1x2x7x7x128xf32> to vector<2x7x7x128xf32>
    %22 = arith.maximumf %19, %21 : vector<2x7x7x128xf32>
    %c8 = arith.constant 8 : index
    %c0_32 = arith.constant 0 : index
    %c0_33 = arith.constant 0 : index
    %c0_34 = arith.constant 0 : index
    %c0_35 = arith.constant 0 : index
    %23 = vector.load %arg1[%c8, %c0_32, %c0_33, %c0_34, %c0_35] : memref<9x2x7x7x128xf32, #tpu.memory_space<vmem>>, vector<1x2x7x7x128xf32>
    %24 = vector.shape_cast %23 : vector<1x2x7x7x128xf32> to vector<2x7x7x128xf32>
    %25 = arith.maximumf %22, %24 : vector<2x7x7x128xf32>
    %c0_36 = arith.constant 0 : index
    %c0_37 = arith.constant 0 : index
    %c0_38 = arith.constant 0 : index
    %c0_39 = arith.constant 0 : index
    %26 = vector.load %arg2[%c0_36, %c0_37, %c0_38, %c0_39] : memref<2x7x7x128xf32, #tpu.memory_space<vmem>>, vector<2x7x7x128xf32>
    tpu.vector_store %arg2[%c0_36, %c0_37, %c0_38, %c0_39], %25 {strides = array<i32>} : memref<2x7x7x128xf32, #tpu.memory_space<vmem>>, vector<2x7x7x128xf32>,
    return
  }
  func.func @transform_0(%arg0: i32) -> (i32, i32, i32, i32, i32) {
    %c0_i32 = arith.constant 0 : i32
    %c0_i32_0 = arith.constant 0 : i32
    %c0_i32_1 = arith.constant 0 : i32
    %c0_i32_2 = arith.constant 0 : i32
    %c0_i32_3 = arith.constant 0 : i32
    %c0_i32_4 = arith.constant 0 : i32
    return %c0_i32, %c0_i32_0, %c0_i32_1, %c0_i32_2, %c0_i32_3 : i32, i32, i32, i32, i32
  }
  func.func @transform_1(%arg0: i32) -> (i32, i32, i32, i32) {
    %c0_i32 = arith.constant 0 : i32
    %c0_i32_0 = arith.constant 0 : i32
    %c0_i32_1 = arith.constant 0 : i32
    %c0_i32_2 = arith.constant 0 : i32
    %c0_i32_3 = arith.constant 0 : i32
    return %c0_i32, %c0_i32_0, %c0_i32_1, %c0_i32_2 : i32, i32, i32, i32
  }
}

module attributes {stable_mosaic.version = 11 : i64} {
  func.func @_conv_bn_relu_kernel(%arg0: i32, %arg1: memref<98x1152xbf16, #tpu.memory_space<vmem>>, %arg2: memref<1152x64xbf16, #tpu.memory_space<vmem>>, %arg3: memref<3x64xf32, #tpu.memory_space<vmem>>, %arg4: memref<98x64xf32, #tpu.memory_space<vmem>>) attributes {dimension_semantics = [#tpu.dimension_semantics<arbitrary>], iteration_bounds = array<i64: 1>, scalar_prefetch = 0 : i64, scratch_operands = 0 : i64, tpu.core_type = #tpu.core_type<tc>, window_params = [{pipeline_mode = #tpu.pipeline_mode<synchronous>, transform_indices = @transform_0, window_bounds = array<i64: 98, 1152>}, {pipeline_mode = #tpu.pipeline_mode<synchronous>, transform_indices = @transform_1, window_bounds = array<i64: 1152, 64>}, {pipeline_mode = #tpu.pipeline_mode<synchronous>, transform_indices = @transform_2, window_bounds = array<i64: 3, 64>}, {pipeline_mode = #tpu.pipeline_mode<synchronous>, transform_indices = @transform_3, window_bounds = array<i64: 98, 64>}]} {
    %c0 = arith.constant 0 : index
    %c0_0 = arith.constant 0 : index
    %0 = vector.load %arg1[%c0, %c0_0] : memref<98x1152xbf16, #tpu.memory_space<vmem>>, vector<98x1152xbf16>
    %c0_1 = arith.constant 0 : index
    %c0_2 = arith.constant 0 : index
    %1 = vector.load %arg2[%c0_1, %c0_2] : memref<1152x64xbf16, #tpu.memory_space<vmem>>, vector<1152x64xbf16>
    %cst = arith.constant dense<0.000000e+00> : vector<98x64xf32>
    %2 = tpu.matmul %0, %1, %cst {dimension_numbers = #tpu.dot_dimension_numbers<[1], [0], [0], [1], [0, 0, 1, 1], [], []>} : vector<98x1152xbf16>, vector<1152x64xbf16>, vector<98x64xf32> -> vector<98x64xf32>
    %c0_3 = arith.constant 0 : index
    %c0_4 = arith.constant 0 : index
    %3 = vector.load %arg3[%c0_3, %c0_4] : memref<3x64xf32, #tpu.memory_space<vmem>>, vector<3x64xf32>
    %4 = vector.extract_strided_slice %3 {offsets = [0, 0], sizes = [1, 64], strides = [1, 1]} : vector<3x64xf32> to vector<1x64xf32>
    %5 = vector.broadcast %4 : vector<1x64xf32> to vector<98x64xf32>
    %6 = arith.addf %2, %5 : vector<98x64xf32>
    %cst_5 = arith.constant dense<0.000000e+00> : vector<64xf32>
    %7 = vector.multi_reduction <add>, %6, %cst_5 [0] : vector<98x64xf32> to vector<64xf32>
    %8 = vector.shape_cast %7 : vector<64xf32> to vector<1x64xf32>
    %cst_6 = arith.constant 0.0102040814 : f32
    %9 = vector.broadcast %cst_6 : f32 to vector<1x64xf32>
    %10 = arith.mulf %8, %9 : vector<1x64xf32>
    %11 = arith.mulf %6, %6 : vector<98x64xf32>
    %cst_7 = arith.constant dense<0.000000e+00> : vector<64xf32>
    %12 = vector.multi_reduction <add>, %11, %cst_7 [0] : vector<98x64xf32> to vector<64xf32>
    %13 = vector.shape_cast %12 : vector<64xf32> to vector<1x64xf32>
    %cst_8 = arith.constant 0.0102040814 : f32
    %14 = vector.broadcast %cst_8 : f32 to vector<1x64xf32>
    %15 = arith.mulf %13, %14 : vector<1x64xf32>
    %16 = arith.mulf %10, %10 : vector<1x64xf32>
    %17 = arith.subf %15, %16 : vector<1x64xf32>
    %18 = vector.broadcast %10 : vector<1x64xf32> to vector<98x64xf32>
    %19 = arith.subf %6, %18 : vector<98x64xf32>
    %cst_9 = arith.constant 9.99999974E-6 : f32
    %20 = vector.broadcast %cst_9 : f32 to vector<1x64xf32>
    %21 = arith.addf %17, %20 : vector<1x64xf32>
    %22 = math.rsqrt %21 : vector<1x64xf32>
    %23 = vector.broadcast %22 : vector<1x64xf32> to vector<98x64xf32>
    %24 = arith.mulf %19, %23 : vector<98x64xf32>
    %25 = vector.extract_strided_slice %3 {offsets = [1, 0], sizes = [1, 64], strides = [1, 1]} : vector<3x64xf32> to vector<1x64xf32>
    %26 = vector.broadcast %25 : vector<1x64xf32> to vector<98x64xf32>
    %27 = arith.mulf %24, %26 : vector<98x64xf32>
    %28 = vector.extract_strided_slice %3 {offsets = [2, 0], sizes = [1, 64], strides = [1, 1]} : vector<3x64xf32> to vector<1x64xf32>
    %29 = vector.broadcast %28 : vector<1x64xf32> to vector<98x64xf32>
    %30 = arith.addf %27, %29 : vector<98x64xf32>
    %cst_10 = arith.constant 0.000000e+00 : f32
    %31 = vector.broadcast %cst_10 : f32 to vector<98x64xf32>
    %32 = arith.maximumf %30, %31 : vector<98x64xf32>
    %c0_11 = arith.constant 0 : index
    %c0_12 = arith.constant 0 : index
    %33 = vector.load %arg4[%c0_11, %c0_12] : memref<98x64xf32, #tpu.memory_space<vmem>>, vector<98x64xf32>
    tpu.vector_store %arg4[%c0_11, %c0_12], %32 {strides = array<i32>} : memref<98x64xf32, #tpu.memory_space<vmem>>, vector<98x64xf32>,
    return
  }
  func.func @transform_0(%arg0: i32) -> (i32, i32) {
    %c0_i32 = arith.constant 0 : i32
    %c0_i32_0 = arith.constant 0 : i32
    %c0_i32_1 = arith.constant 0 : i32
    return %c0_i32, %c0_i32_0 : i32, i32
  }
  func.func @transform_1(%arg0: i32) -> (i32, i32) {
    %c0_i32 = arith.constant 0 : i32
    %c0_i32_0 = arith.constant 0 : i32
    %c0_i32_1 = arith.constant 0 : i32
    return %c0_i32, %c0_i32_0 : i32, i32
  }
  func.func @transform_2(%arg0: i32) -> (i32, i32) {
    %c0_i32 = arith.constant 0 : i32
    %c0_i32_0 = arith.constant 0 : i32
    %c0_i32_1 = arith.constant 0 : i32
    return %c0_i32, %c0_i32_0 : i32, i32
  }
  func.func @transform_3(%arg0: i32) -> (i32, i32) {
    %c0_i32 = arith.constant 0 : i32
    %c0_i32_0 = arith.constant 0 : i32
    %c0_i32_1 = arith.constant 0 : i32
    return %c0_i32, %c0_i32_0 : i32, i32
  }
}

module attributes {stable_mosaic.version = 11 : i64} {
  func.func @_maxpool_kernel(%arg0: i32, %arg1: memref<9x2x4x4x256xf32, #tpu.memory_space<vmem>>, %arg2: memref<2x4x4x256xf32, #tpu.memory_space<vmem>>) attributes {dimension_semantics = [#tpu.dimension_semantics<arbitrary>], iteration_bounds = array<i64: 1>, scalar_prefetch = 0 : i64, scratch_operands = 0 : i64, tpu.core_type = #tpu.core_type<tc>, window_params = [{pipeline_mode = #tpu.pipeline_mode<synchronous>, transform_indices = @transform_0, window_bounds = array<i64: 9, 2, 4, 4, 256>}, {pipeline_mode = #tpu.pipeline_mode<synchronous>, transform_indices = @transform_1, window_bounds = array<i64: 2, 4, 4, 256>}]} {
    %c0 = arith.constant 0 : index
    %c0_0 = arith.constant 0 : index
    %c0_1 = arith.constant 0 : index
    %c0_2 = arith.constant 0 : index
    %c0_3 = arith.constant 0 : index
    %0 = vector.load %arg1[%c0, %c0_0, %c0_1, %c0_2, %c0_3] : memref<9x2x4x4x256xf32, #tpu.memory_space<vmem>>, vector<1x2x4x4x256xf32>
    %1 = vector.shape_cast %0 : vector<1x2x4x4x256xf32> to vector<2x4x4x256xf32>
    %c1 = arith.constant 1 : index
    %c0_4 = arith.constant 0 : index
    %c0_5 = arith.constant 0 : index
    %c0_6 = arith.constant 0 : index
    %c0_7 = arith.constant 0 : index
    %2 = vector.load %arg1[%c1, %c0_4, %c0_5, %c0_6, %c0_7] : memref<9x2x4x4x256xf32, #tpu.memory_space<vmem>>, vector<1x2x4x4x256xf32>
    %3 = vector.shape_cast %2 : vector<1x2x4x4x256xf32> to vector<2x4x4x256xf32>
    %4 = arith.maximumf %1, %3 : vector<2x4x4x256xf32>
    %c2 = arith.constant 2 : index
    %c0_8 = arith.constant 0 : index
    %c0_9 = arith.constant 0 : index
    %c0_10 = arith.constant 0 : index
    %c0_11 = arith.constant 0 : index
    %5 = vector.load %arg1[%c2, %c0_8, %c0_9, %c0_10, %c0_11] : memref<9x2x4x4x256xf32, #tpu.memory_space<vmem>>, vector<1x2x4x4x256xf32>
    %6 = vector.shape_cast %5 : vector<1x2x4x4x256xf32> to vector<2x4x4x256xf32>
    %7 = arith.maximumf %4, %6 : vector<2x4x4x256xf32>
    %c3 = arith.constant 3 : index
    %c0_12 = arith.constant 0 : index
    %c0_13 = arith.constant 0 : index
    %c0_14 = arith.constant 0 : index
    %c0_15 = arith.constant 0 : index
    %8 = vector.load %arg1[%c3, %c0_12, %c0_13, %c0_14, %c0_15] : memref<9x2x4x4x256xf32, #tpu.memory_space<vmem>>, vector<1x2x4x4x256xf32>
    %9 = vector.shape_cast %8 : vector<1x2x4x4x256xf32> to vector<2x4x4x256xf32>
    %10 = arith.maximumf %7, %9 : vector<2x4x4x256xf32>
    %c4 = arith.constant 4 : index
    %c0_16 = arith.constant 0 : index
    %c0_17 = arith.constant 0 : index
    %c0_18 = arith.constant 0 : index
    %c0_19 = arith.constant 0 : index
    %11 = vector.load %arg1[%c4, %c0_16, %c0_17, %c0_18, %c0_19] : memref<9x2x4x4x256xf32, #tpu.memory_space<vmem>>, vector<1x2x4x4x256xf32>
    %12 = vector.shape_cast %11 : vector<1x2x4x4x256xf32> to vector<2x4x4x256xf32>
    %13 = arith.maximumf %10, %12 : vector<2x4x4x256xf32>
    %c5 = arith.constant 5 : index
    %c0_20 = arith.constant 0 : index
    %c0_21 = arith.constant 0 : index
    %c0_22 = arith.constant 0 : index
    %c0_23 = arith.constant 0 : index
    %14 = vector.load %arg1[%c5, %c0_20, %c0_21, %c0_22, %c0_23] : memref<9x2x4x4x256xf32, #tpu.memory_space<vmem>>, vector<1x2x4x4x256xf32>
    %15 = vector.shape_cast %14 : vector<1x2x4x4x256xf32> to vector<2x4x4x256xf32>
    %16 = arith.maximumf %13, %15 : vector<2x4x4x256xf32>
    %c6 = arith.constant 6 : index
    %c0_24 = arith.constant 0 : index
    %c0_25 = arith.constant 0 : index
    %c0_26 = arith.constant 0 : index
    %c0_27 = arith.constant 0 : index
    %17 = vector.load %arg1[%c6, %c0_24, %c0_25, %c0_26, %c0_27] : memref<9x2x4x4x256xf32, #tpu.memory_space<vmem>>, vector<1x2x4x4x256xf32>
    %18 = vector.shape_cast %17 : vector<1x2x4x4x256xf32> to vector<2x4x4x256xf32>
    %19 = arith.maximumf %16, %18 : vector<2x4x4x256xf32>
    %c7 = arith.constant 7 : index
    %c0_28 = arith.constant 0 : index
    %c0_29 = arith.constant 0 : index
    %c0_30 = arith.constant 0 : index
    %c0_31 = arith.constant 0 : index
    %20 = vector.load %arg1[%c7, %c0_28, %c0_29, %c0_30, %c0_31] : memref<9x2x4x4x256xf32, #tpu.memory_space<vmem>>, vector<1x2x4x4x256xf32>
    %21 = vector.shape_cast %20 : vector<1x2x4x4x256xf32> to vector<2x4x4x256xf32>
    %22 = arith.maximumf %19, %21 : vector<2x4x4x256xf32>
    %c8 = arith.constant 8 : index
    %c0_32 = arith.constant 0 : index
    %c0_33 = arith.constant 0 : index
    %c0_34 = arith.constant 0 : index
    %c0_35 = arith.constant 0 : index
    %23 = vector.load %arg1[%c8, %c0_32, %c0_33, %c0_34, %c0_35] : memref<9x2x4x4x256xf32, #tpu.memory_space<vmem>>, vector<1x2x4x4x256xf32>
    %24 = vector.shape_cast %23 : vector<1x2x4x4x256xf32> to vector<2x4x4x256xf32>
    %25 = arith.maximumf %22, %24 : vector<2x4x4x256xf32>
    %c0_36 = arith.constant 0 : index
    %c0_37 = arith.constant 0 : index
    %c0_38 = arith.constant 0 : index
    %c0_39 = arith.constant 0 : index
    %26 = vector.load %arg2[%c0_36, %c0_37, %c0_38, %c0_39] : memref<2x4x4x256xf32, #tpu.memory_space<vmem>>, vector<2x4x4x256xf32>
    tpu.vector_store %arg2[%c0_36, %c0_37, %c0_38, %c0_39], %25 {strides = array<i32>} : memref<2x4x4x256xf32, #tpu.memory_space<vmem>>, vector<2x4x4x256xf32>,
    return
  }
  func.func @transform_0(%arg0: i32) -> (i32, i32, i32, i32, i32) {
    %c0_i32 = arith.constant 0 : i32
    %c0_i32_0 = arith.constant 0 : i32
    %c0_i32_1 = arith.constant 0 : i32
    %c0_i32_2 = arith.constant 0 : i32
    %c0_i32_3 = arith.constant 0 : i32
    %c0_i32_4 = arith.constant 0 : i32
    return %c0_i32, %c0_i32_0, %c0_i32_1, %c0_i32_2, %c0_i32_3 : i32, i32, i32, i32, i32
  }
  func.func @transform_1(%arg0: i32) -> (i32, i32, i32, i32) {
    %c0_i32 = arith.constant 0 : i32
    %c0_i32_0 = arith.constant 0 : i32
    %c0_i32_1 = arith.constant 0 : i32
    %c0_i32_2 = arith.constant 0 : i32
    %c0_i32_3 = arith.constant 0 : i32
    return %c0_i32, %c0_i32_0, %c0_i32_1, %c0_i32_2 : i32, i32, i32, i32
  }
}

module attributes {stable_mosaic.version = 11 : i64} {
  func.func @_conv_bn_relu_kernel(%arg0: i32, %arg1: memref<32x256xbf16, #tpu.memory_space<vmem>>, %arg2: memref<256x160xbf16, #tpu.memory_space<vmem>>, %arg3: memref<3x160xf32, #tpu.memory_space<vmem>>, %arg4: memref<32x160xf32, #tpu.memory_space<vmem>>) attributes {dimension_semantics = [#tpu.dimension_semantics<arbitrary>], iteration_bounds = array<i64: 1>, scalar_prefetch = 0 : i64, scratch_operands = 0 : i64, tpu.core_type = #tpu.core_type<tc>, window_params = [{pipeline_mode = #tpu.pipeline_mode<synchronous>, transform_indices = @transform_0, window_bounds = array<i64: 32, 256>}, {pipeline_mode = #tpu.pipeline_mode<synchronous>, transform_indices = @transform_1, window_bounds = array<i64: 256, 160>}, {pipeline_mode = #tpu.pipeline_mode<synchronous>, transform_indices = @transform_2, window_bounds = array<i64: 3, 160>}, {pipeline_mode = #tpu.pipeline_mode<synchronous>, transform_indices = @transform_3, window_bounds = array<i64: 32, 160>}]} {
    %c0 = arith.constant 0 : index
    %c0_0 = arith.constant 0 : index
    %0 = vector.load %arg1[%c0, %c0_0] : memref<32x256xbf16, #tpu.memory_space<vmem>>, vector<32x256xbf16>
    %c0_1 = arith.constant 0 : index
    %c0_2 = arith.constant 0 : index
    %1 = vector.load %arg2[%c0_1, %c0_2] : memref<256x160xbf16, #tpu.memory_space<vmem>>, vector<256x160xbf16>
    %cst = arith.constant dense<0.000000e+00> : vector<32x160xf32>
    %2 = tpu.matmul %0, %1, %cst {dimension_numbers = #tpu.dot_dimension_numbers<[1], [0], [0], [1], [0, 0, 1, 1], [], []>} : vector<32x256xbf16>, vector<256x160xbf16>, vector<32x160xf32> -> vector<32x160xf32>
    %c0_3 = arith.constant 0 : index
    %c0_4 = arith.constant 0 : index
    %3 = vector.load %arg3[%c0_3, %c0_4] : memref<3x160xf32, #tpu.memory_space<vmem>>, vector<3x160xf32>
    %4 = vector.extract_strided_slice %3 {offsets = [0, 0], sizes = [1, 160], strides = [1, 1]} : vector<3x160xf32> to vector<1x160xf32>
    %5 = vector.broadcast %4 : vector<1x160xf32> to vector<32x160xf32>
    %6 = arith.addf %2, %5 : vector<32x160xf32>
    %cst_5 = arith.constant dense<0.000000e+00> : vector<160xf32>
    %7 = vector.multi_reduction <add>, %6, %cst_5 [0] : vector<32x160xf32> to vector<160xf32>
    %8 = vector.shape_cast %7 : vector<160xf32> to vector<1x160xf32>
    %cst_6 = arith.constant 3.125000e-02 : f32
    %9 = vector.broadcast %cst_6 : f32 to vector<1x160xf32>
    %10 = arith.mulf %8, %9 : vector<1x160xf32>
    %11 = arith.mulf %6, %6 : vector<32x160xf32>
    %cst_7 = arith.constant dense<0.000000e+00> : vector<160xf32>
    %12 = vector.multi_reduction <add>, %11, %cst_7 [0] : vector<32x160xf32> to vector<160xf32>
    %13 = vector.shape_cast %12 : vector<160xf32> to vector<1x160xf32>
    %cst_8 = arith.constant 3.125000e-02 : f32
    %14 = vector.broadcast %cst_8 : f32 to vector<1x160xf32>
    %15 = arith.mulf %13, %14 : vector<1x160xf32>
    %16 = arith.mulf %10, %10 : vector<1x160xf32>
    %17 = arith.subf %15, %16 : vector<1x160xf32>
    %18 = vector.broadcast %10 : vector<1x160xf32> to vector<32x160xf32>
    %19 = arith.subf %6, %18 : vector<32x160xf32>
    %cst_9 = arith.constant 9.99999974E-6 : f32
    %20 = vector.broadcast %cst_9 : f32 to vector<1x160xf32>
    %21 = arith.addf %17, %20 : vector<1x160xf32>
    %22 = math.rsqrt %21 : vector<1x160xf32>
    %23 = vector.broadcast %22 : vector<1x160xf32> to vector<32x160xf32>
    %24 = arith.mulf %19, %23 : vector<32x160xf32>
    %25 = vector.extract_strided_slice %3 {offsets = [1, 0], sizes = [1, 160], strides = [1, 1]} : vector<3x160xf32> to vector<1x160xf32>
    %26 = vector.broadcast %25 : vector<1x160xf32> to vector<32x160xf32>
    %27 = arith.mulf %24, %26 : vector<32x160xf32>
    %28 = vector.extract_strided_slice %3 {offsets = [2, 0], sizes = [1, 160], strides = [1, 1]} : vector<3x160xf32> to vector<1x160xf32>
    %29 = vector.broadcast %28 : vector<1x160xf32> to vector<32x160xf32>
    %30 = arith.addf %27, %29 : vector<32x160xf32>
    %cst_10 = arith.constant 0.000000e+00 : f32
    %31 = vector.broadcast %cst_10 : f32 to vector<32x160xf32>
    %32 = arith.maximumf %30, %31 : vector<32x160xf32>
    %c0_11 = arith.constant 0 : index
    %c0_12 = arith.constant 0 : index
    %33 = vector.load %arg4[%c0_11, %c0_12] : memref<32x160xf32, #tpu.memory_space<vmem>>, vector<32x160xf32>
    tpu.vector_store %arg4[%c0_11, %c0_12], %32 {strides = array<i32>} : memref<32x160xf32, #tpu.memory_space<vmem>>, vector<32x160xf32>,
    return
  }
  func.func @transform_0(%arg0: i32) -> (i32, i32) {
    %c0_i32 = arith.constant 0 : i32
    %c0_i32_0 = arith.constant 0 : i32
    %c0_i32_1 = arith.constant 0 : i32
    return %c0_i32, %c0_i32_0 : i32, i32
  }
  func.func @transform_1(%arg0: i32) -> (i32, i32) {
    %c0_i32 = arith.constant 0 : i32
    %c0_i32_0 = arith.constant 0 : i32
    %c0_i32_1 = arith.constant 0 : i32
    return %c0_i32, %c0_i32_0 : i32, i32
  }
  func.func @transform_2(%arg0: i32) -> (i32, i32) {
    %c0_i32 = arith.constant 0 : i32
    %c0_i32_0 = arith.constant 0 : i32
    %c0_i32_1 = arith.constant 0 : i32
    return %c0_i32, %c0_i32_0 : i32, i32
  }
  func.func @transform_3(%arg0: i32) -> (i32, i32) {
    %c0_i32 = arith.constant 0 : i32
    %c0_i32_0 = arith.constant 0 : i32
    %c0_i32_1 = arith.constant 0 : i32
    return %c0_i32, %c0_i32_0 : i32, i32
  }
}

module attributes {stable_mosaic.version = 11 : i64} {
  func.func @_conv_bn_relu_kernel(%arg0: i32, %arg1: memref<32x288xbf16, #tpu.memory_space<vmem>>, %arg2: memref<288x96xbf16, #tpu.memory_space<vmem>>, %arg3: memref<3x96xf32, #tpu.memory_space<vmem>>, %arg4: memref<32x96xf32, #tpu.memory_space<vmem>>) attributes {dimension_semantics = [#tpu.dimension_semantics<arbitrary>], iteration_bounds = array<i64: 1>, scalar_prefetch = 0 : i64, scratch_operands = 0 : i64, tpu.core_type = #tpu.core_type<tc>, window_params = [{pipeline_mode = #tpu.pipeline_mode<synchronous>, transform_indices = @transform_0, window_bounds = array<i64: 32, 288>}, {pipeline_mode = #tpu.pipeline_mode<synchronous>, transform_indices = @transform_1, window_bounds = array<i64: 288, 96>}, {pipeline_mode = #tpu.pipeline_mode<synchronous>, transform_indices = @transform_2, window_bounds = array<i64: 3, 96>}, {pipeline_mode = #tpu.pipeline_mode<synchronous>, transform_indices = @transform_3, window_bounds = array<i64: 32, 96>}]} {
    %c0 = arith.constant 0 : index
    %c0_0 = arith.constant 0 : index
    %0 = vector.load %arg1[%c0, %c0_0] : memref<32x288xbf16, #tpu.memory_space<vmem>>, vector<32x288xbf16>
    %c0_1 = arith.constant 0 : index
    %c0_2 = arith.constant 0 : index
    %1 = vector.load %arg2[%c0_1, %c0_2] : memref<288x96xbf16, #tpu.memory_space<vmem>>, vector<288x96xbf16>
    %cst = arith.constant dense<0.000000e+00> : vector<32x96xf32>
    %2 = tpu.matmul %0, %1, %cst {dimension_numbers = #tpu.dot_dimension_numbers<[1], [0], [0], [1], [0, 0, 1, 1], [], []>} : vector<32x288xbf16>, vector<288x96xbf16>, vector<32x96xf32> -> vector<32x96xf32>
    %c0_3 = arith.constant 0 : index
    %c0_4 = arith.constant 0 : index
    %3 = vector.load %arg3[%c0_3, %c0_4] : memref<3x96xf32, #tpu.memory_space<vmem>>, vector<3x96xf32>
    %4 = vector.extract_strided_slice %3 {offsets = [0, 0], sizes = [1, 96], strides = [1, 1]} : vector<3x96xf32> to vector<1x96xf32>
    %5 = vector.broadcast %4 : vector<1x96xf32> to vector<32x96xf32>
    %6 = arith.addf %2, %5 : vector<32x96xf32>
    %cst_5 = arith.constant dense<0.000000e+00> : vector<96xf32>
    %7 = vector.multi_reduction <add>, %6, %cst_5 [0] : vector<32x96xf32> to vector<96xf32>
    %8 = vector.shape_cast %7 : vector<96xf32> to vector<1x96xf32>
    %cst_6 = arith.constant 3.125000e-02 : f32
    %9 = vector.broadcast %cst_6 : f32 to vector<1x96xf32>
    %10 = arith.mulf %8, %9 : vector<1x96xf32>
    %11 = arith.mulf %6, %6 : vector<32x96xf32>
    %cst_7 = arith.constant dense<0.000000e+00> : vector<96xf32>
    %12 = vector.multi_reduction <add>, %11, %cst_7 [0] : vector<32x96xf32> to vector<96xf32>
    %13 = vector.shape_cast %12 : vector<96xf32> to vector<1x96xf32>
    %cst_8 = arith.constant 3.125000e-02 : f32
    %14 = vector.broadcast %cst_8 : f32 to vector<1x96xf32>
    %15 = arith.mulf %13, %14 : vector<1x96xf32>
    %16 = arith.mulf %10, %10 : vector<1x96xf32>
    %17 = arith.subf %15, %16 : vector<1x96xf32>
    %18 = vector.broadcast %10 : vector<1x96xf32> to vector<32x96xf32>
    %19 = arith.subf %6, %18 : vector<32x96xf32>
    %cst_9 = arith.constant 9.99999974E-6 : f32
    %20 = vector.broadcast %cst_9 : f32 to vector<1x96xf32>
    %21 = arith.addf %17, %20 : vector<1x96xf32>
    %22 = math.rsqrt %21 : vector<1x96xf32>
    %23 = vector.broadcast %22 : vector<1x96xf32> to vector<32x96xf32>
    %24 = arith.mulf %19, %23 : vector<32x96xf32>
    %25 = vector.extract_strided_slice %3 {offsets = [1, 0], sizes = [1, 96], strides = [1, 1]} : vector<3x96xf32> to vector<1x96xf32>
    %26 = vector.broadcast %25 : vector<1x96xf32> to vector<32x96xf32>
    %27 = arith.mulf %24, %26 : vector<32x96xf32>
    %28 = vector.extract_strided_slice %3 {offsets = [2, 0], sizes = [1, 96], strides = [1, 1]} : vector<3x96xf32> to vector<1x96xf32>
    %29 = vector.broadcast %28 : vector<1x96xf32> to vector<32x96xf32>
    %30 = arith.addf %27, %29 : vector<32x96xf32>
    %cst_10 = arith.constant 0.000000e+00 : f32
    %31 = vector.broadcast %cst_10 : f32 to vector<32x96xf32>
    %32 = arith.maximumf %30, %31 : vector<32x96xf32>
    %c0_11 = arith.constant 0 : index
    %c0_12 = arith.constant 0 : index
    %33 = vector.load %arg4[%c0_11, %c0_12] : memref<32x96xf32, #tpu.memory_space<vmem>>, vector<32x96xf32>
    tpu.vector_store %arg4[%c0_11, %c0_12], %32 {strides = array<i32>} : memref<32x96xf32, #tpu.memory_space<vmem>>, vector<32x96xf32>,
    return
  }
  func.func @transform_0(%arg0: i32) -> (i32, i32) {
    %c0_i32 = arith.constant 0 : i32
    %c0_i32_0 = arith.constant 0 : i32
    %c0_i32_1 = arith.constant 0 : i32
    return %c0_i32, %c0_i32_0 : i32, i32
  }
  func.func @transform_1(%arg0: i32) -> (i32, i32) {
    %c0_i32 = arith.constant 0 : i32
    %c0_i32_0 = arith.constant 0 : i32
    %c0_i32_1 = arith.constant 0 : i32
    return %c0_i32, %c0_i32_0 : i32, i32
  }
  func.func @transform_2(%arg0: i32) -> (i32, i32) {
    %c0_i32 = arith.constant 0 : i32
    %c0_i32_0 = arith.constant 0 : i32
    %c0_i32_1 = arith.constant 0 : i32
    return %c0_i32, %c0_i32_0 : i32, i32
  }
  func.func @transform_3(%arg0: i32) -> (i32, i32) {
    %c0_i32 = arith.constant 0 : i32
    %c0_i32_0 = arith.constant 0 : i32
    %c0_i32_1 = arith.constant 0 : i32
    return %c0_i32, %c0_i32_0 : i32, i32
  }
}

module attributes {stable_mosaic.version = 11 : i64} {
  func.func @_conv_bn_relu_kernel(%arg0: i32, %arg1: memref<32x800xbf16, #tpu.memory_space<vmem>>, %arg2: memref<800x96xbf16, #tpu.memory_space<vmem>>, %arg3: memref<3x96xf32, #tpu.memory_space<vmem>>, %arg4: memref<32x96xf32, #tpu.memory_space<vmem>>) attributes {dimension_semantics = [#tpu.dimension_semantics<arbitrary>], iteration_bounds = array<i64: 1>, scalar_prefetch = 0 : i64, scratch_operands = 0 : i64, tpu.core_type = #tpu.core_type<tc>, window_params = [{pipeline_mode = #tpu.pipeline_mode<synchronous>, transform_indices = @transform_0, window_bounds = array<i64: 32, 800>}, {pipeline_mode = #tpu.pipeline_mode<synchronous>, transform_indices = @transform_1, window_bounds = array<i64: 800, 96>}, {pipeline_mode = #tpu.pipeline_mode<synchronous>, transform_indices = @transform_2, window_bounds = array<i64: 3, 96>}, {pipeline_mode = #tpu.pipeline_mode<synchronous>, transform_indices = @transform_3, window_bounds = array<i64: 32, 96>}]} {
    %c0 = arith.constant 0 : index
    %c0_0 = arith.constant 0 : index
    %0 = vector.load %arg1[%c0, %c0_0] : memref<32x800xbf16, #tpu.memory_space<vmem>>, vector<32x800xbf16>
    %c0_1 = arith.constant 0 : index
    %c0_2 = arith.constant 0 : index
    %1 = vector.load %arg2[%c0_1, %c0_2] : memref<800x96xbf16, #tpu.memory_space<vmem>>, vector<800x96xbf16>
    %cst = arith.constant dense<0.000000e+00> : vector<32x96xf32>
    %2 = tpu.matmul %0, %1, %cst {dimension_numbers = #tpu.dot_dimension_numbers<[1], [0], [0], [1], [0, 0, 1, 1], [], []>} : vector<32x800xbf16>, vector<800x96xbf16>, vector<32x96xf32> -> vector<32x96xf32>
    %c0_3 = arith.constant 0 : index
    %c0_4 = arith.constant 0 : index
    %3 = vector.load %arg3[%c0_3, %c0_4] : memref<3x96xf32, #tpu.memory_space<vmem>>, vector<3x96xf32>
    %4 = vector.extract_strided_slice %3 {offsets = [0, 0], sizes = [1, 96], strides = [1, 1]} : vector<3x96xf32> to vector<1x96xf32>
    %5 = vector.broadcast %4 : vector<1x96xf32> to vector<32x96xf32>
    %6 = arith.addf %2, %5 : vector<32x96xf32>
    %cst_5 = arith.constant dense<0.000000e+00> : vector<96xf32>
    %7 = vector.multi_reduction <add>, %6, %cst_5 [0] : vector<32x96xf32> to vector<96xf32>
    %8 = vector.shape_cast %7 : vector<96xf32> to vector<1x96xf32>
    %cst_6 = arith.constant 3.125000e-02 : f32
    %9 = vector.broadcast %cst_6 : f32 to vector<1x96xf32>
    %10 = arith.mulf %8, %9 : vector<1x96xf32>
    %11 = arith.mulf %6, %6 : vector<32x96xf32>
    %cst_7 = arith.constant dense<0.000000e+00> : vector<96xf32>
    %12 = vector.multi_reduction <add>, %11, %cst_7 [0] : vector<32x96xf32> to vector<96xf32>
    %13 = vector.shape_cast %12 : vector<96xf32> to vector<1x96xf32>
    %cst_8 = arith.constant 3.125000e-02 : f32
    %14 = vector.broadcast %cst_8 : f32 to vector<1x96xf32>
    %15 = arith.mulf %13, %14 : vector<1x96xf32>
    %16 = arith.mulf %10, %10 : vector<1x96xf32>
    %17 = arith.subf %15, %16 : vector<1x96xf32>
    %18 = vector.broadcast %10 : vector<1x96xf32> to vector<32x96xf32>
    %19 = arith.subf %6, %18 : vector<32x96xf32>
    %cst_9 = arith.constant 9.99999974E-6 : f32
    %20 = vector.broadcast %cst_9 : f32 to vector<1x96xf32>
    %21 = arith.addf %17, %20 : vector<1x96xf32>
    %22 = math.rsqrt %21 : vector<1x96xf32>
    %23 = vector.broadcast %22 : vector<1x96xf32> to vector<32x96xf32>
    %24 = arith.mulf %19, %23 : vector<32x96xf32>
    %25 = vector.extract_strided_slice %3 {offsets = [1, 0], sizes = [1, 96], strides = [1, 1]} : vector<3x96xf32> to vector<1x96xf32>
    %26 = vector.broadcast %25 : vector<1x96xf32> to vector<32x96xf32>
    %27 = arith.mulf %24, %26 : vector<32x96xf32>
    %28 = vector.extract_strided_slice %3 {offsets = [2, 0], sizes = [1, 96], strides = [1, 1]} : vector<3x96xf32> to vector<1x96xf32>
    %29 = vector.broadcast %28 : vector<1x96xf32> to vector<32x96xf32>
    %30 = arith.addf %27, %29 : vector<32x96xf32>
    %cst_10 = arith.constant 0.000000e+00 : f32
    %31 = vector.broadcast %cst_10 : f32 to vector<32x96xf32>
    %32 = arith.maximumf %30, %31 : vector<32x96xf32>
    %c0_11 = arith.constant 0 : index
    %c0_12 = arith.constant 0 : index
    %33 = vector.load %arg4[%c0_11, %c0_12] : memref<32x96xf32, #tpu.memory_space<vmem>>, vector<32x96xf32>
    tpu.vector_store %arg4[%c0_11, %c0_12], %32 {strides = array<i32>} : memref<32x96xf32, #tpu.memory_space<vmem>>, vector<32x96xf32>,
    return
  }
  func.func @transform_0(%arg0: i32) -> (i32, i32) {
    %c0_i32 = arith.constant 0 : i32
    %c0_i32_0 = arith.constant 0 : i32
    %c0_i32_1 = arith.constant 0 : i32
    return %c0_i32, %c0_i32_0 : i32, i32
  }
  func.func @transform_1(%arg0: i32) -> (i32, i32) {
    %c0_i32 = arith.constant 0 : i32
    %c0_i32_0 = arith.constant 0 : i32
    %c0_i32_1 = arith.constant 0 : i32
    return %c0_i32, %c0_i32_0 : i32, i32
  }
  func.func @transform_2(%arg0: i32) -> (i32, i32) {
    %c0_i32 = arith.constant 0 : i32
    %c0_i32_0 = arith.constant 0 : i32
    %c0_i32_1 = arith.constant 0 : i32
    return %c0_i32, %c0_i32_0 : i32, i32
  }
  func.func @transform_3(%arg0: i32) -> (i32, i32) {
    %c0_i32 = arith.constant 0 : i32
    %c0_i32_0 = arith.constant 0 : i32
    %c0_i32_1 = arith.constant 0 : i32
    return %c0_i32, %c0_i32_0 : i32, i32
  }
}

module attributes {stable_mosaic.version = 11 : i64} {
  func.func @_conv_bn_relu_kernel(%arg0: i32, %arg1: memref<32x2304xbf16, #tpu.memory_space<vmem>>, %arg2: memref<2304x96xbf16, #tpu.memory_space<vmem>>, %arg3: memref<3x96xf32, #tpu.memory_space<vmem>>, %arg4: memref<32x96xf32, #tpu.memory_space<vmem>>) attributes {dimension_semantics = [#tpu.dimension_semantics<arbitrary>], iteration_bounds = array<i64: 1>, scalar_prefetch = 0 : i64, scratch_operands = 0 : i64, tpu.core_type = #tpu.core_type<tc>, window_params = [{pipeline_mode = #tpu.pipeline_mode<synchronous>, transform_indices = @transform_0, window_bounds = array<i64: 32, 2304>}, {pipeline_mode = #tpu.pipeline_mode<synchronous>, transform_indices = @transform_1, window_bounds = array<i64: 2304, 96>}, {pipeline_mode = #tpu.pipeline_mode<synchronous>, transform_indices = @transform_2, window_bounds = array<i64: 3, 96>}, {pipeline_mode = #tpu.pipeline_mode<synchronous>, transform_indices = @transform_3, window_bounds = array<i64: 32, 96>}]} {
    %c0 = arith.constant 0 : index
    %c0_0 = arith.constant 0 : index
    %0 = vector.load %arg1[%c0, %c0_0] : memref<32x2304xbf16, #tpu.memory_space<vmem>>, vector<32x2304xbf16>
    %c0_1 = arith.constant 0 : index
    %c0_2 = arith.constant 0 : index
    %1 = vector.load %arg2[%c0_1, %c0_2] : memref<2304x96xbf16, #tpu.memory_space<vmem>>, vector<2304x96xbf16>
    %cst = arith.constant dense<0.000000e+00> : vector<32x96xf32>
    %2 = tpu.matmul %0, %1, %cst {dimension_numbers = #tpu.dot_dimension_numbers<[1], [0], [0], [1], [0, 0, 1, 1], [], []>} : vector<32x2304xbf16>, vector<2304x96xbf16>, vector<32x96xf32> -> vector<32x96xf32>
    %c0_3 = arith.constant 0 : index
    %c0_4 = arith.constant 0 : index
    %3 = vector.load %arg3[%c0_3, %c0_4] : memref<3x96xf32, #tpu.memory_space<vmem>>, vector<3x96xf32>
    %4 = vector.extract_strided_slice %3 {offsets = [0, 0], sizes = [1, 96], strides = [1, 1]} : vector<3x96xf32> to vector<1x96xf32>
    %5 = vector.broadcast %4 : vector<1x96xf32> to vector<32x96xf32>
    %6 = arith.addf %2, %5 : vector<32x96xf32>
    %cst_5 = arith.constant dense<0.000000e+00> : vector<96xf32>
    %7 = vector.multi_reduction <add>, %6, %cst_5 [0] : vector<32x96xf32> to vector<96xf32>
    %8 = vector.shape_cast %7 : vector<96xf32> to vector<1x96xf32>
    %cst_6 = arith.constant 3.125000e-02 : f32
    %9 = vector.broadcast %cst_6 : f32 to vector<1x96xf32>
    %10 = arith.mulf %8, %9 : vector<1x96xf32>
    %11 = arith.mulf %6, %6 : vector<32x96xf32>
    %cst_7 = arith.constant dense<0.000000e+00> : vector<96xf32>
    %12 = vector.multi_reduction <add>, %11, %cst_7 [0] : vector<32x96xf32> to vector<96xf32>
    %13 = vector.shape_cast %12 : vector<96xf32> to vector<1x96xf32>
    %cst_8 = arith.constant 3.125000e-02 : f32
    %14 = vector.broadcast %cst_8 : f32 to vector<1x96xf32>
    %15 = arith.mulf %13, %14 : vector<1x96xf32>
    %16 = arith.mulf %10, %10 : vector<1x96xf32>
    %17 = arith.subf %15, %16 : vector<1x96xf32>
    %18 = vector.broadcast %10 : vector<1x96xf32> to vector<32x96xf32>
    %19 = arith.subf %6, %18 : vector<32x96xf32>
    %cst_9 = arith.constant 9.99999974E-6 : f32
    %20 = vector.broadcast %cst_9 : f32 to vector<1x96xf32>
    %21 = arith.addf %17, %20 : vector<1x96xf32>
    %22 = math.rsqrt %21 : vector<1x96xf32>
    %23 = vector.broadcast %22 : vector<1x96xf32> to vector<32x96xf32>
    %24 = arith.mulf %19, %23 : vector<32x96xf32>
    %25 = vector.extract_strided_slice %3 {offsets = [1, 0], sizes = [1, 96], strides = [1, 1]} : vector<3x96xf32> to vector<1x96xf32>
    %26 = vector.broadcast %25 : vector<1x96xf32> to vector<32x96xf32>
    %27 = arith.mulf %24, %26 : vector<32x96xf32>
    %28 = vector.extract_strided_slice %3 {offsets = [2, 0], sizes = [1, 96], strides = [1, 1]} : vector<3x96xf32> to vector<1x96xf32>
    %29 = vector.broadcast %28 : vector<1x96xf32> to vector<32x96xf32>
    %30 = arith.addf %27, %29 : vector<32x96xf32>
    %cst_10 = arith.constant 0.000000e+00 : f32
    %31 = vector.broadcast %cst_10 : f32 to vector<32x96xf32>
    %32 = arith.maximumf %30, %31 : vector<32x96xf32>
    %c0_11 = arith.constant 0 : index
    %c0_12 = arith.constant 0 : index
    %33 = vector.load %arg4[%c0_11, %c0_12] : memref<32x96xf32, #tpu.memory_space<vmem>>, vector<32x96xf32>
    tpu.vector_store %arg4[%c0_11, %c0_12], %32 {strides = array<i32>} : memref<32x96xf32, #tpu.memory_space<vmem>>, vector<32x96xf32>,
    return
  }
  func.func @transform_0(%arg0: i32) -> (i32, i32) {
    %c0_i32 = arith.constant 0 : i32
    %c0_i32_0 = arith.constant 0 : i32
    %c0_i32_1 = arith.constant 0 : i32
    return %c0_i32, %c0_i32_0 : i32, i32
  }
  func.func @transform_1(%arg0: i32) -> (i32, i32) {
    %c0_i32 = arith.constant 0 : i32
    %c0_i32_0 = arith.constant 0 : i32
    %c0_i32_1 = arith.constant 0 : i32
    return %c0_i32, %c0_i32_0 : i32, i32
  }
  func.func @transform_2(%arg0: i32) -> (i32, i32) {
    %c0_i32 = arith.constant 0 : i32
    %c0_i32_0 = arith.constant 0 : i32
    %c0_i32_1 = arith.constant 0 : i32
    return %c0_i32, %c0_i32_0 : i32, i32
  }
  func.func @transform_3(%arg0: i32) -> (i32, i32) {
    %c0_i32 = arith.constant 0 : i32
    %c0_i32_0 = arith.constant 0 : i32
    %c0_i32_1 = arith.constant 0 : i32
    return %c0_i32, %c0_i32_0 : i32, i32
  }
}

module attributes {stable_mosaic.version = 11 : i64} {
  func.func @_maxpool_kernel(%arg0: i32, %arg1: memref<9x2x2x2x384xf32, #tpu.memory_space<vmem>>, %arg2: memref<2x2x2x384xf32, #tpu.memory_space<vmem>>) attributes {dimension_semantics = [#tpu.dimension_semantics<arbitrary>], iteration_bounds = array<i64: 1>, scalar_prefetch = 0 : i64, scratch_operands = 0 : i64, tpu.core_type = #tpu.core_type<tc>, window_params = [{pipeline_mode = #tpu.pipeline_mode<synchronous>, transform_indices = @transform_0, window_bounds = array<i64: 9, 2, 2, 2, 384>}, {pipeline_mode = #tpu.pipeline_mode<synchronous>, transform_indices = @transform_1, window_bounds = array<i64: 2, 2, 2, 384>}]} {
    %c0 = arith.constant 0 : index
    %c0_0 = arith.constant 0 : index
    %c0_1 = arith.constant 0 : index
    %c0_2 = arith.constant 0 : index
    %c0_3 = arith.constant 0 : index
    %0 = vector.load %arg1[%c0, %c0_0, %c0_1, %c0_2, %c0_3] : memref<9x2x2x2x384xf32, #tpu.memory_space<vmem>>, vector<1x2x2x2x384xf32>
    %1 = vector.shape_cast %0 : vector<1x2x2x2x384xf32> to vector<2x2x2x384xf32>
    %c1 = arith.constant 1 : index
    %c0_4 = arith.constant 0 : index
    %c0_5 = arith.constant 0 : index
    %c0_6 = arith.constant 0 : index
    %c0_7 = arith.constant 0 : index
    %2 = vector.load %arg1[%c1, %c0_4, %c0_5, %c0_6, %c0_7] : memref<9x2x2x2x384xf32, #tpu.memory_space<vmem>>, vector<1x2x2x2x384xf32>
    %3 = vector.shape_cast %2 : vector<1x2x2x2x384xf32> to vector<2x2x2x384xf32>
    %4 = arith.maximumf %1, %3 : vector<2x2x2x384xf32>
    %c2 = arith.constant 2 : index
    %c0_8 = arith.constant 0 : index
    %c0_9 = arith.constant 0 : index
    %c0_10 = arith.constant 0 : index
    %c0_11 = arith.constant 0 : index
    %5 = vector.load %arg1[%c2, %c0_8, %c0_9, %c0_10, %c0_11] : memref<9x2x2x2x384xf32, #tpu.memory_space<vmem>>, vector<1x2x2x2x384xf32>
    %6 = vector.shape_cast %5 : vector<1x2x2x2x384xf32> to vector<2x2x2x384xf32>
    %7 = arith.maximumf %4, %6 : vector<2x2x2x384xf32>
    %c3 = arith.constant 3 : index
    %c0_12 = arith.constant 0 : index
    %c0_13 = arith.constant 0 : index
    %c0_14 = arith.constant 0 : index
    %c0_15 = arith.constant 0 : index
    %8 = vector.load %arg1[%c3, %c0_12, %c0_13, %c0_14, %c0_15] : memref<9x2x2x2x384xf32, #tpu.memory_space<vmem>>, vector<1x2x2x2x384xf32>
    %9 = vector.shape_cast %8 : vector<1x2x2x2x384xf32> to vector<2x2x2x384xf32>
    %10 = arith.maximumf %7, %9 : vector<2x2x2x384xf32>
    %c4 = arith.constant 4 : index
    %c0_16 = arith.constant 0 : index
    %c0_17 = arith.constant 0 : index
    %c0_18 = arith.constant 0 : index
    %c0_19 = arith.constant 0 : index
    %11 = vector.load %arg1[%c4, %c0_16, %c0_17, %c0_18, %c0_19] : memref<9x2x2x2x384xf32, #tpu.memory_space<vmem>>, vector<1x2x2x2x384xf32>
    %12 = vector.shape_cast %11 : vector<1x2x2x2x384xf32> to vector<2x2x2x384xf32>
    %13 = arith.maximumf %10, %12 : vector<2x2x2x384xf32>
    %c5 = arith.constant 5 : index
    %c0_20 = arith.constant 0 : index
    %c0_21 = arith.constant 0 : index
    %c0_22 = arith.constant 0 : index
    %c0_23 = arith.constant 0 : index
    %14 = vector.load %arg1[%c5, %c0_20, %c0_21, %c0_22, %c0_23] : memref<9x2x2x2x384xf32, #tpu.memory_space<vmem>>, vector<1x2x2x2x384xf32>
    %15 = vector.shape_cast %14 : vector<1x2x2x2x384xf32> to vector<2x2x2x384xf32>
    %16 = arith.maximumf %13, %15 : vector<2x2x2x384xf32>
    %c6 = arith.constant 6 : index
    %c0_24 = arith.constant 0 : index
    %c0_25 = arith.constant 0 : index
    %c0_26 = arith.constant 0 : index
    %c0_27 = arith.constant 0 : index
    %17 = vector.load %arg1[%c6, %c0_24, %c0_25, %c0_26, %c0_27] : memref<9x2x2x2x384xf32, #tpu.memory_space<vmem>>, vector<1x2x2x2x384xf32>
    %18 = vector.shape_cast %17 : vector<1x2x2x2x384xf32> to vector<2x2x2x384xf32>
    %19 = arith.maximumf %16, %18 : vector<2x2x2x384xf32>
    %c7 = arith.constant 7 : index
    %c0_28 = arith.constant 0 : index
    %c0_29 = arith.constant 0 : index
    %c0_30 = arith.constant 0 : index
    %c0_31 = arith.constant 0 : index
    %20 = vector.load %arg1[%c7, %c0_28, %c0_29, %c0_30, %c0_31] : memref<9x2x2x2x384xf32, #tpu.memory_space<vmem>>, vector<1x2x2x2x384xf32>
    %21 = vector.shape_cast %20 : vector<1x2x2x2x384xf32> to vector<2x2x2x384xf32>
    %22 = arith.maximumf %19, %21 : vector<2x2x2x384xf32>
    %c8 = arith.constant 8 : index
    %c0_32 = arith.constant 0 : index
    %c0_33 = arith.constant 0 : index
    %c0_34 = arith.constant 0 : index
    %c0_35 = arith.constant 0 : index
    %23 = vector.load %arg1[%c8, %c0_32, %c0_33, %c0_34, %c0_35] : memref<9x2x2x2x384xf32, #tpu.memory_space<vmem>>, vector<1x2x2x2x384xf32>
    %24 = vector.shape_cast %23 : vector<1x2x2x2x384xf32> to vector<2x2x2x384xf32>
    %25 = arith.maximumf %22, %24 : vector<2x2x2x384xf32>
    %c0_36 = arith.constant 0 : index
    %c0_37 = arith.constant 0 : index
    %c0_38 = arith.constant 0 : index
    %c0_39 = arith.constant 0 : index
    %26 = vector.load %arg2[%c0_36, %c0_37, %c0_38, %c0_39] : memref<2x2x2x384xf32, #tpu.memory_space<vmem>>, vector<2x2x2x384xf32>
    tpu.vector_store %arg2[%c0_36, %c0_37, %c0_38, %c0_39], %25 {strides = array<i32>} : memref<2x2x2x384xf32, #tpu.memory_space<vmem>>, vector<2x2x2x384xf32>,
    return
  }
  func.func @transform_0(%arg0: i32) -> (i32, i32, i32, i32, i32) {
    %c0_i32 = arith.constant 0 : i32
    %c0_i32_0 = arith.constant 0 : i32
    %c0_i32_1 = arith.constant 0 : i32
    %c0_i32_2 = arith.constant 0 : i32
    %c0_i32_3 = arith.constant 0 : i32
    %c0_i32_4 = arith.constant 0 : i32
    return %c0_i32, %c0_i32_0, %c0_i32_1, %c0_i32_2, %c0_i32_3 : i32, i32, i32, i32, i32
  }
  func.func @transform_1(%arg0: i32) -> (i32, i32, i32, i32) {
    %c0_i32 = arith.constant 0 : i32
    %c0_i32_0 = arith.constant 0 : i32
    %c0_i32_1 = arith.constant 0 : i32
    %c0_i32_2 = arith.constant 0 : i32
    %c0_i32_3 = arith.constant 0 : i32
    return %c0_i32, %c0_i32_0, %c0_i32_1, %c0_i32_2 : i32, i32, i32, i32
  }
}

module attributes {stable_mosaic.version = 11 : i64} {
  func.func @_avgpool_fc_kernel(%arg0: i32, %arg1: memref<2x4x384xf32, #tpu.memory_space<vmem>>, %arg2: memref<384x10xf32, #tpu.memory_space<vmem>>, %arg3: memref<1x10xf32, #tpu.memory_space<vmem>>, %arg4: memref<2x10xf32, #tpu.memory_space<vmem>>) attributes {dimension_semantics = [#tpu.dimension_semantics<arbitrary>], iteration_bounds = array<i64: 1>, scalar_prefetch = 0 : i64, scratch_operands = 0 : i64, tpu.core_type = #tpu.core_type<tc>, window_params = [{pipeline_mode = #tpu.pipeline_mode<synchronous>, transform_indices = @transform_0, window_bounds = array<i64: 2, 4, 384>}, {pipeline_mode = #tpu.pipeline_mode<synchronous>, transform_indices = @transform_1, window_bounds = array<i64: 384, 10>}, {pipeline_mode = #tpu.pipeline_mode<synchronous>, transform_indices = @transform_2, window_bounds = array<i64: 1, 10>}, {pipeline_mode = #tpu.pipeline_mode<synchronous>, transform_indices = @transform_3, window_bounds = array<i64: 2, 10>}]} {
    %c0 = arith.constant 0 : index
    %c0_0 = arith.constant 0 : index
    %c0_1 = arith.constant 0 : index
    %0 = vector.load %arg1[%c0, %c0_0, %c0_1] : memref<2x4x384xf32, #tpu.memory_space<vmem>>, vector<2x4x384xf32>
    %cst = arith.constant dense<0.000000e+00> : vector<2x384xf32>
    %1 = vector.multi_reduction <add>, %0, %cst [1] : vector<2x4x384xf32> to vector<2x384xf32>
    %cst_2 = arith.constant 4.000000e+00 : f32
    %2 = vector.broadcast %cst_2 : f32 to vector<2x384xf32>
    %3 = arith.divf %1, %2 : vector<2x384xf32>
    %c0_3 = arith.constant 0 : index
    %c0_4 = arith.constant 0 : index
    %4 = vector.load %arg2[%c0_3, %c0_4] : memref<384x10xf32, #tpu.memory_space<vmem>>, vector<384x10xf32>
    %cst_5 = arith.constant dense<0.000000e+00> : vector<2x10xf32>
    %5 = tpu.matmul %3, %4, %cst_5 {dimension_numbers = #tpu.dot_dimension_numbers<[1], [0], [0], [1], [0, 0, 1, 1], [], []>} : vector<2x384xf32>, vector<384x10xf32>, vector<2x10xf32> -> vector<2x10xf32>
    %c0_6 = arith.constant 0 : index
    %c0_7 = arith.constant 0 : index
    %6 = vector.load %arg3[%c0_6, %c0_7] : memref<1x10xf32, #tpu.memory_space<vmem>>, vector<1x10xf32>
    %7 = vector.broadcast %6 : vector<1x10xf32> to vector<2x10xf32>
    %8 = arith.addf %5, %7 : vector<2x10xf32>
    %c0_8 = arith.constant 0 : index
    %c0_9 = arith.constant 0 : index
    %9 = vector.load %arg4[%c0_8, %c0_9] : memref<2x10xf32, #tpu.memory_space<vmem>>, vector<2x10xf32>
    tpu.vector_store %arg4[%c0_8, %c0_9], %8 {strides = array<i32>} : memref<2x10xf32, #tpu.memory_space<vmem>>, vector<2x10xf32>,
    return
  }
  func.func @transform_0(%arg0: i32) -> (i32, i32, i32) {
    %c0_i32 = arith.constant 0 : i32
    %c0_i32_0 = arith.constant 0 : i32
    %c0_i32_1 = arith.constant 0 : i32
    %c0_i32_2 = arith.constant 0 : i32
    return %c0_i32, %c0_i32_0, %c0_i32_1 : i32, i32, i32
  }
  func.func @transform_1(%arg0: i32) -> (i32, i32) {
    %c0_i32 = arith.constant 0 : i32
    %c0_i32_0 = arith.constant 0 : i32
    %c0_i32_1 = arith.constant 0 : i32
    return %c0_i32, %c0_i32_0 : i32, i32
  }
  func.func @transform_2(%arg0: i32) -> (i32, i32) {
    %c0_i32 = arith.constant 0 : i32
    %c0_i32_0 = arith.constant 0 : i32
    %c0_i32_1 = arith.constant 0 : i32
    return %c0_i32, %c0_i32_0 : i32, i32
  }
  func.func @transform_3(%arg0: i32) -> (i32, i32) {
    %c0_i32 = arith.constant 0 : i32
    %c0_i32_0 = arith.constant 0 : i32
    %c0_i32_1 = arith.constant 0 : i32
    return %c0_i32, %c0_i32_0 : i32, i32
  }
}

</mosaic_0001>

<bundles_post_ra>
// kernel: inception_net.15
= control target key start
LH: loop header
LB: loop body
LE: loop exit
PB: predicated region body
PF: predicated region fallthrough
CT: control target
= control target key end

     0   :  { %v1443_v0 = vmov 0   ;;  %vm367_vm0 = vcmask 154624   ;;  %vm443_vm1 = vcmask 1040384   ;;  %vm444_vm2 = vcmask 1041408   ;;  %s2723_s1 = inlined_call_operand.vmem [shape: bf16[147,64], index: 1, kind: input, shape index: {}]   ;;  %s2724_s0 = inlined_call_operand.vmem [shape: bf16[392,147], index: 0, kind: input, shape index: {}]   ;;  %s2725_s2 = inlined_call_operand.vmem [shape: f32[3,64], index: 2, kind: input, shape index: {}]   ;;  %s2726_s3 = inlined_call_operand.vmem [shape: f32[392,64], index: 3, kind: output, shape index: {}]  }
   0x1   :  { %450 = vmatprep.subr.bf16.mxu0 %v1443_v0  ;;  %v1357_v1 = vld [vmem:[%s2723_s1] sm:$0xff]   ;;  %1335 = vmatprep.subr.bf16.mxu1 %v1443_v0  ;;  %v1358_v2 = vld [vmem:[%s2723_s1 + $0x8] sm:$0xff]   ;;  %v1359_v3 = vld [vmem:[%s2723_s1 + $0x10] sm:$0xff]   ;;  %v1444_v11 = vmov 65535   ;;  %vm682_vm3 = vcmask 523264  }
   0x2   :  { %451 = vmatpush1.bf16.msra.mxu0 %v1357_v1  ;;  %1345 = vmatpush1.bf16.msra.mxu1 %v1357_v1  ;;  %v1360_v4 = vld [vmem:[%s2723_s1 + $0x18] sm:$0xff]   ;;  %v1369_v5 = vld [vmem:[%s2724_s0 + $0x4] ss:$8 sps:$4 sm:$0xff]   ;;  %v1363_v9 = vld [vmem:[%s2723_s1 + $0x30] sm:$0xff]   ;;  %v445_v12 = vsel %vm443_vm1, 4294967295, %v1444_v11 }
   0x3   :  { %452 = vmatprep.subr.bf16.mxu0 %v1443_v0  ;;  %1336 = vmatprep.subr.bf16.mxu1 %v1443_v0  ;;  %v1361_v6 = vld [vmem:[%s2723_s1 + $0x20] sm:$0xff]   ;;  %v1362_v7 = vld [vmem:[%s2723_s1 + $0x28] sm:$0xff]   ;;  %v1390_v8 = vld [vmem:[%s2724_s0 + $0xd4] ss:$8 sps:$4 sm:$0xff]   ;;  %v446_v15 = vsel %vm444_vm2, %v445_v12, 0  ;;  %v84_v12 = vlaneseq }
   0x4   :  { %1310 = vmatprep.mubr.msk.bf16.mxu0 %vm367_vm0, %v1369_v5  ;;  %1323 = vmatprep.mubr.msk.bf16.mxu1 %vm367_vm0, %v1390_v8  ;;  %v1364_v10 = vld [vmem:[%s2723_s1 + $0x38] sm:$0xff]   ;;  %v1365_v13 = vld [vmem:[%s2723_s1 + $0x40] sm:$0xff]   ;;  %v1366_v14 = vld [vmem:[%s2723_s1 + $0x48] ss:$0 sps:$4 sm:$0x33]  }
   0x5   :  { %v448_v16 = vand.u32 %v1366_v14, %v446_v15  ;;  %v1367_v17 = vld [vmem:[%s2724_s0] ss:$8 sps:$4 sm:$0xff]   ;;  %v1388_v18 = vld [vmem:[%s2724_s0 + $0xd0] ss:$8 sps:$4 sm:$0xff]   ;;  %v1370_v19 = vld [vmem:[%s2724_s0 + $0x14] ss:$8 sps:$4 sm:$0xff]  }
   0x6   :  { %453 = vmatpush1.bf16.msra.mxu0 %v1358_v2  ;;  %1346 = vmatpush1.bf16.msra.mxu1 %v1358_v2  ;;  %v1394_v20 = vld [vmem:[%s2724_s0 + $0xe4] ss:$8 sps:$4 sm:$0xff]   ;;  %v1372_v21 = vld [vmem:[%s2724_s0 + $0x10] ss:$8 sps:$4 sm:$0xff]   ;;  %v1396_v22 = vld [vmem:[%s2724_s0 + $0xe0] ss:$8 sps:$4 sm:$0xff]  }
   0x7   :  { %454 = vmatprep.subr.bf16.mxu0 %v1443_v0  ;;  %1337 = vmatprep.subr.bf16.mxu1 %v1443_v0  ;;  %v1373_v23 = vld [vmem:[%s2724_s0 + $0x24] ss:$8 sps:$4 sm:$0xff]   ;;  %v1400_v24 = vld [vmem:[%s2724_s0 + $0xf4] ss:$8 sps:$4 sm:$0xff]   ;;  %v1375_v25 = vld [vmem:[%s2724_s0 + $0x20] ss:$8 sps:$4 sm:$0xff]  }
   0x8   :  { %v1402_v26 = vld [vmem:[%s2724_s0 + $0xf0] ss:$8 sps:$4 sm:$0xff]   ;;  %v1376_v27 = vld [vmem:[%s2724_s0 + $0x34] ss:$8 sps:$4 sm:$0xff]   ;;  %v1406_v28 = vld [vmem:[%s2724_s0 + $0x104] ss:$8 sps:$4 sm:$0xff]  }
   0x9   :  { %v1378_v29 = vld [vmem:[%s2724_s0 + $0x30] ss:$8 sps:$4 sm:$0xff]   ;;  %v1408_v30 = vld [vmem:[%s2724_s0 + $0x100] ss:$8 sps:$4 sm:$0xff]   ;;  %v1379_v31 = vld [vmem:[%s2724_s0 + $0x44] ss:$8 sps:$4 sm:$0xff]  }
   0xa   :  { %455 = vmatpush1.bf16.msra.mxu0 %v1359_v3  ;;  %1347 = vmatpush1.bf16.msra.mxu1 %v1359_v3  ;;  %v1412_v32 = vld [vmem:[%s2724_s0 + $0x114] ss:$8 sps:$4 sm:$0xff]   ;;  %v1381_v33 = vld [vmem:[%s2724_s0 + $0x40] ss:$8 sps:$4 sm:$0xff]   ;;  %v1414_v34 = vld [vmem:[%s2724_s0 + $0x110] ss:$8 sps:$4 sm:$0xff]  }
   0xb   :  { %456 = vmatprep.subr.bf16.mxu0 %v1443_v0  ;;  %1338 = vmatprep.subr.bf16.mxu1 %v1443_v0  ;;  %v1382_v35 = vld [vmem:[%s2724_s0 + $0x54] ss:$8 sps:$4 sm:$0xff]   ;;  %v1418_v36 = vld [vmem:[%s2724_s0 + $0x124] ss:$8 sps:$4 sm:$0xff]   ;;  %v1384_v37 = vld [vmem:[%s2724_s0 + $0x50] ss:$8 sps:$4 sm:$0xff]  }
   0xc   :  { %v1420_v38 = vld [vmem:[%s2724_s0 + $0x120] ss:$8 sps:$4 sm:$0xff]   ;;  %v1385_v39 = vld [vmem:[%s2724_s0 + $0x64] ss:$8 sps:$4 sm:$0xff]   ;;  %v1424_v40 = vld [vmem:[%s2724_s0 + $0x134] ss:$8 sps:$4 sm:$0xff]  }
   0xd   :  { %v1387_v41 = vld [vmem:[%s2724_s0 + $0x60] ss:$8 sps:$4 sm:$0xff]   ;;  %v1426_v42 = vld [vmem:[%s2724_s0 + $0x130] ss:$8 sps:$4 sm:$0xff]   ;;  %v1391_v43 = vld [vmem:[%s2724_s0 + $0x74] ss:$8 sps:$4 sm:$0xff]  }
   0xe   :  { %457 = vmatpush1.bf16.msra.mxu0 %v1360_v4  ;;  %1348 = vmatpush1.bf16.msra.mxu1 %v1360_v4  ;;  %v1427_v44 = vld [vmem:[%s2724_s0 + $0x144] ss:$8 sps:$4 sm:$0xff]   ;;  %v1393_v45 = vld [vmem:[%s2724_s0 + $0x70] ss:$8 sps:$4 sm:$0xff]   ;;  %v1429_v46 = vld [vmem:[%s2724_s0 + $0x140] ss:$8 sps:$4 sm:$0xff]  }
   0xf   :  { %458 = vmatprep.subr.bf16.mxu0 %v1443_v0  ;;  %1339 = vmatprep.subr.bf16.mxu1 %v1443_v0  ;;  %v1397_v47 = vld [vmem:[%s2724_s0 + $0x84] ss:$8 sps:$4 sm:$0xff]   ;;  %v1430_v48 = vld [vmem:[%s2724_s0 + $0x154] ss:$8 sps:$4 sm:$0xff]   ;;  %v1399_v49 = vld [vmem:[%s2724_s0 + $0x80] ss:$8 sps:$4 sm:$0xff]  }
  0x10   :  { %v1432_v50 = vld [vmem:[%s2724_s0 + $0x150] ss:$8 sps:$4 sm:$0xff]   ;;  %v1403_v51 = vld [vmem:[%s2724_s0 + $0x94] ss:$8 sps:$4 sm:$0xff]   ;;  %v1433_v52 = vld [vmem:[%s2724_s0 + $0x164] ss:$8 sps:$4 sm:$0xff]  }
  0x11   :  { %v1405_v53 = vld [vmem:[%s2724_s0 + $0x90] ss:$8 sps:$4 sm:$0xff]   ;;  %v1435_v54 = vld [vmem:[%s2724_s0 + $0x160] ss:$8 sps:$4 sm:$0xff]   ;;  %v1409_v55 = vld [vmem:[%s2724_s0 + $0xa4] ss:$8 sps:$4 sm:$0xff]  }
  0x12   :  { %459 = vmatpush1.bf16.msra.mxu0 %v1361_v6  ;;  %1349 = vmatpush1.bf16.msra.mxu1 %v1361_v6  ;;  %v1436_v56 = vld [vmem:[%s2724_s0 + $0x174] ss:$8 sps:$4 sm:$0xff]   ;;  %v63_v57 = vld [vmem:[%s2724_s0 + $0x180] sm:$0xff]  ;;  %v1438_v59 = vld [vmem:[%s2724_s0 + $0x170] ss:$8 sps:$4 sm:$0xff]  }
  0x13   :  { %460 = vmatprep.subr.bf16.mxu0 %v1443_v0  ;;  %1340 = vmatprep.subr.bf16.mxu1 %v1443_v0  ;;  %v1411_v58 = vld [vmem:[%s2724_s0 + $0xa0] ss:$8 sps:$4 sm:$0xff]   ;;  %v1415_v60 = vld [vmem:[%s2724_s0 + $0xb4] ss:$8 sps:$4 sm:$0xff]   ;;  %v1299_v61 = vcombine.high %v63_v57, %v63_v57  ;;  %v1417_v62 = vld [vmem:[%s2724_s0 + $0xb0] ss:$8 sps:$4 sm:$0xff]   ;;  %v1298_v63 = vcombine.low %v63_v57, %v63_v57 }
  0x14   :  { %v1423_v1 = vld [vmem:[%s2724_s0 + $0xc0] ss:$8 sps:$4 sm:$0xff]  }
  0x16   :  { %461 = vmatpush1.bf16.msra.mxu0 %v1362_v7  ;;  %1350 = vmatpush1.bf16.msra.mxu1 %v1362_v7 }
  0x17   :  { %462 = vmatprep.subr.bf16.mxu0 %v1443_v0  ;;  %1341 = vmatprep.subr.bf16.mxu1 %v1443_v0 }
  0x1a   :  { %463 = vmatpush1.bf16.msra.mxu0 %v1363_v9  ;;  %1351 = vmatpush1.bf16.msra.mxu1 %v1363_v9 }
  0x1b   :  { %464 = vmatprep.subr.bf16.mxu0 %v1443_v0  ;;  %1342 = vmatprep.subr.bf16.mxu1 %v1443_v0 }
  0x1e   :  { %465 = vmatpush1.bf16.msra.mxu0 %v1364_v10  ;;  %1352 = vmatpush1.bf16.msra.mxu1 %v1364_v10 }
  0x1f   :  { %466 = vmatprep.subr.bf16.mxu0 %v1443_v0  ;;  %1343 = vmatprep.subr.bf16.mxu1 %v1443_v0 }
  0x22   :  { %467 = vmatpush1.bf16.msra.mxu0 %v1365_v13  ;;  %1353 = vmatpush1.bf16.msra.mxu1 %v1365_v13 }
  0x23   :  { %468 = vmatprep.subr.bf16.mxu0 %v1443_v0  ;;  %1344 = vmatprep.subr.bf16.mxu1 %v1443_v0  ;;  %v1421_v0 = vld [vmem:[%s2724_s0 + $0xc4] ss:$8 sps:$4 sm:$0xff]  }
  0x26   :  { %469 = vmatpush1.bf16.msra.mxu0 %v448_v16  ;;  %1354 = vmatpush1.bf16.msra.mxu1 %v448_v16 }
  0x29   :  { %483 = vmatmul.mubr.bf16.vlgmr.msra.gmra.mrb[0].mxu0 %v1367_v17  ;;  %587 = vmatmul.mubr.bf16.vlgmr.msra.gmra.mrb[0].mxu1 %v1388_v18 }
  0x2a   :  { %1311 = vmatprep.mubr.msk.bf16.mxu0 %vm367_vm0, %v1370_v19  ;;  %1324 = vmatprep.mubr.msk.bf16.mxu1 %vm367_vm0, %v1394_v20  ;;  %v1675_v19 = vshrl.u32 %v84_v12, 7 }
  0x31   :  { %491 = vmatmul.mubr.bf16.gmra.mrb[4].mxu0 %v1372_v21  ;;  %595 = vmatmul.mubr.bf16.gmra.mrb[4].mxu1 %v1396_v22  ;;  %v86_v22 = vsub.s32 0, %v1675_v19 }
  0x32   :  { %1312 = vmatprep.mubr.msk.bf16.mxu0 %vm367_vm0, %v1373_v23  ;;  %1325 = vmatprep.mubr.msk.bf16.mxu1 %vm367_vm0, %v1400_v24 }
  0x39   :  { %499 = vmatmul.mubr.bf16.gmra.mrb[8].mxu0 %v1375_v25  ;;  %603 = vmatmul.mubr.bf16.gmra.mrb[8].mxu1 %v1402_v26  ;;  %v1683_v25 = vld [vmem:[%s2725_s2] sm:$0x7] }
  0x3a   :  { %1313 = vmatprep.mubr.msk.bf16.mxu0 %vm367_vm0, %v1376_v27  ;;  %1326 = vmatprep.mubr.msk.bf16.mxu1 %vm367_vm0, %v1406_v28 }
  0x41   :  { %507 = vmatmul.mubr.bf16.gmra.mrb[12].mxu0 %v1378_v29  ;;  %611 = vmatmul.mubr.bf16.gmra.mrb[12].mxu1 %v1408_v30  ;;  %v1688_v30 = vrot.slane %v1683_v25, %v86_v22 }
  0x42   :  { %1314 = vmatprep.mubr.msk.bf16.mxu0 %vm367_vm0, %v1379_v31  ;;  %1327 = vmatprep.mubr.msk.bf16.mxu1 %vm367_vm0, %v1412_v32 }
  0x49   :  { %515 = vmatmul.mubr.bf16.gmra.mrb[16].mxu0 %v1381_v33  ;;  %619 = vmatmul.mubr.bf16.gmra.mrb[16].mxu1 %v1414_v34 }
  0x4a   :  { %1315 = vmatprep.mubr.msk.bf16.mxu0 %vm367_vm0, %v1382_v35  ;;  %1328 = vmatprep.mubr.msk.bf16.mxu1 %vm367_vm0, %v1418_v36 }
  0x51   :  { %523 = vmatmul.mubr.bf16.gmra.mrb[20].mxu0 %v1384_v37  ;;  %627 = vmatmul.mubr.bf16.gmra.mrb[20].mxu1 %v1420_v38 }
  0x52   :  { %1316 = vmatprep.mubr.msk.bf16.mxu0 %vm367_vm0, %v1385_v39  ;;  %1329 = vmatprep.mubr.msk.bf16.mxu1 %vm367_vm0, %v1424_v40 }
  0x59   :  { %531 = vmatmul.mubr.bf16.gmra.mrb[24].mxu0 %v1387_v41  ;;  %635 = vmatmul.mubr.bf16.gmra.mrb[24].mxu1 %v1426_v42 }
  0x5a   :  { %1317 = vmatprep.mubr.msk.bf16.mxu0 %vm367_vm0, %v1391_v43  ;;  %1330 = vmatprep.mubr.msk.bf16.mxu1 %vm367_vm0, %v1427_v44 }
  0x61   :  { %539 = vmatmul.mubr.bf16.gmra.mrb[28].mxu0 %v1393_v45  ;;  %643 = vmatmul.mubr.bf16.gmra.mrb[28].mxu1 %v1429_v46 }
  0x62   :  { %1318 = vmatprep.mubr.msk.bf16.mxu0 %vm367_vm0, %v1397_v47  ;;  %1331 = vmatprep.mubr.msk.bf16.mxu1 %vm367_vm0, %v1430_v48 }
  0x69   :  { %547 = vmatmul.mubr.bf16.gmra.mrb[32].mxu0 %v1399_v49  ;;  %651 = vmatmul.mubr.bf16.gmra.mrb[32].mxu1 %v1432_v50 }
  0x6a   :  { %1319 = vmatprep.mubr.msk.bf16.mxu0 %vm367_vm0, %v1403_v51  ;;  %1332 = vmatprep.mubr.msk.bf16.mxu1 %vm367_vm0, %v1433_v52 }
  0x71   :  { %555 = vmatmul.mubr.bf16.gmra.mrb[36].mxu0 %v1405_v53  ;;  %659 = vmatmul.mubr.bf16.gmra.mrb[36].mxu1 %v1435_v54 }
  0x72   :  { %1320 = vmatprep.mubr.msk.bf16.mxu0 %vm367_vm0, %v1409_v55  ;;  %1333 = vmatprep.mubr.msk.bf16.mxu1 %vm367_vm0, %v1436_v56 }
  0x79   :  { %563 = vmatmul.mubr.bf16.gmra.mrb[40].mxu0 %v1411_v58  ;;  %667 = vmatmul.mubr.bf16.gmra.mrb[40].mxu1 %v1438_v59 }
  0x7a   :  { %1321 = vmatprep.mubr.msk.bf16.mxu0 %vm367_vm0, %v1415_v60  ;;  %1334 = vmatprep.mubr.msk.bf16.mxu1 %vm367_vm0, %v1299_v61 }
  0x81   :  { %571 = vmatmul.mubr.bf16.gmra.mrb[44].mxu0 %v1417_v62  ;;  %675 = vmatmul.mubr.bf16.gmra.mrb[44].mxu1 %v1298_v63 }
  0x82   :  { %1322 = vmatprep.mubr.msk.bf16.mxu0 %vm367_vm0, %v1421_v0 }
  0x89   :  { %579 = vmatmul.mubr.bf16.gmra.mrb[48].mxu0 %v1423_v1 }
  0xfc   :  { %v484_v2 = vpop.f32.mrb[0].mxu0  ;;  %v1667_v3 = vpop.f32.mrb[0].mxu1 }
  0xfd   :  { %v486_v4 = vpop.f32.mrb[1].mxu0  ;;  %v590_v5 = vpop.f32.mrb[1].mxu1  ;;  %v1696_v34 = vadd.f32 %v484_v2, %v1688_v30 }
  0xfe   :  { %v487_v6 = vpop.f32.mrb[2].mxu0  ;;  %v1669_v7 = vpop.f32.mrb[2].mxu1 }
  0xff   :  { %v489_v8 = vpop.f32.mrb[3].mxu0  ;;  %v593_v9 = vpop.f32.mrb[3].mxu1  ;;  %v1691_v31 = vadd.f32 %v487_v6, %v1688_v30  ;;  %v787_v43 = vmul.f32 %v1696_v34, %v1696_v34  ;;  %v683_v47 = vsel %vm682_vm3, %v1696_v34, 0.0 }
 0x101   :  { %v788_v40 = vmul.f32 %v1691_v31, %v1691_v31  ;;  %v684_v44 = vsel %vm682_vm3, %v1691_v31, 0.0  ;;  %v836_v54 = vsel %vm682_vm3, %v787_v43, 0.0 }
 0x102   :  { %v685_v51 = vadd.f32 %v684_v44, %v683_v47 }
 0x103   :  { %v837_v48 = vsel %vm682_vm3, %v788_v40, 0.0 }
 0x104   :  { %v492_v10 = vpop.f32.mrb[4].mxu0  ;;  %v1671_v11 = vpop.f32.mrb[4].mxu1  ;;  %v838_v59 = vadd.f32 %v837_v48, %v836_v54 }
 0x105   :  { %v494_v13 = vpop.f32.mrb[5].mxu0  ;;  %v598_v14 = vpop.f32.mrb[5].mxu1  ;;  %v1699_v35 = vadd.f32 %v492_v10, %v1688_v30 }
 0x106   :  { %v495_v15 = vpop.f32.mrb[6].mxu0  ;;  %v1673_v16 = vpop.f32.mrb[6].mxu1 }
 0x107   :  { %v497_v17 = vpop.f32.mrb[7].mxu0  ;;  %v601_v18 = vpop.f32.mrb[7].mxu1  ;;  %v789_v45 = vmul.f32 %v1699_v35, %v1699_v35  ;;  %v1712_v46 = vadd.f32 %v495_v15, %v1688_v30  ;;  %v686_v49 = vsel %vm682_vm3, %v1699_v35, 0.0 }
 0x108   :  { %v687_v60 = vadd.f32 %v686_v49, %v685_v51 }
 0x109   :  { %v839_v55 = vsel %vm682_vm3, %v789_v45, 0.0  ;;  %v790_v56 = vmul.f32 %v1712_v46, %v1712_v46  ;;  %v688_v63 = vsel %vm682_vm3, %v1712_v46, 0.0 }
 0x10a   :  { %v840_v5 = vadd.f32 %v839_v55, %v838_v59  ;;  %v689_v10 = vadd.f32 %v688_v63, %v687_v60 }
 0x10b   :  { %v841_v6 = vsel %vm682_vm3, %v790_v56, 0.0 }
 0x10c   :  { %v500_v20 = vpop.f32.mrb[8].mxu0  ;;  %v1677_v21 = vpop.f32.mrb[8].mxu1  ;;  %v842_v14 = vadd.f32 %v841_v6, %v840_v5 }
 0x10d   :  { %v502_v23 = vpop.f32.mrb[9].mxu0  ;;  %v606_v24 = vpop.f32.mrb[9].mxu1  ;;  %v1720_v50 = vadd.f32 %v500_v20, %v1688_v30 }
 0x10e   :  { %v503_v26 = vpop.f32.mrb[10].mxu0  ;;  %v1685_v27 = vpop.f32.mrb[10].mxu1 }
 0x10f   :  { %v505_v28 = vpop.f32.mrb[11].mxu0  ;;  %v609_v29 = vpop.f32.mrb[11].mxu1  ;;  %v791_v0 = vmul.f32 %v1720_v50, %v1720_v50  ;;  %v1735_v1 = vadd.f32 %v503_v26, %v1688_v30  ;;  %v690_v8 = vsel %vm682_vm3, %v1720_v50, 0.0 }
 0x110   :  { %v691_v15 = vadd.f32 %v690_v8, %v689_v10 }
 0x111   :  { %v843_v12 = vsel %vm682_vm3, %v791_v0, 0.0  ;;  %v792_v13 = vmul.f32 %v1735_v1, %v1735_v1  ;;  %v692_v20 = vsel %vm682_vm3, %v1735_v1, 0.0 }
 0x112   :  { %v844_v28 = vadd.f32 %v843_v12, %v842_v14  ;;  %v693_v43 = vadd.f32 %v692_v20, %v691_v15 }
 0x114   :  { %v508_v32 = vpop.f32.mrb[12].mxu0  ;;  %v1693_v33 = vpop.f32.mrb[12].mxu1 }
 0x115   :  { %v510_v36 = vpop.f32.mrb[13].mxu0  ;;  %v614_v37 = vpop.f32.mrb[13].mxu1  ;;  %v1741_v9 = vadd.f32 %v508_v32, %v1688_v30 }
 0x116   :  { %v511_v38 = vpop.f32.mrb[14].mxu0  ;;  %v1701_v39 = vpop.f32.mrb[14].mxu1  ;;  %v845_v36 = vsel %vm682_vm3, %v792_v13, 0.0 }
 0x117   :  { %v513_v41 = vpop.f32.mrb[15].mxu0  ;;  %v617_v42 = vpop.f32.mrb[15].mxu1  ;;  %v793_v22 = vmul.f32 %v1741_v9, %v1741_v9  ;;  %v1753_v23 = vadd.f32 %v511_v38, %v1688_v30  ;;  %v694_v37 = vsel %vm682_vm3, %v1741_v9, 0.0  ;;  %v846_v45 = vadd.f32 %v845_v36, %v844_v28 }
 0x118   :  { %v695_v47 = vadd.f32 %v694_v37, %v693_v43 }
 0x119   :  { %v847_v38 = vsel %vm682_vm3, %v793_v22, 0.0  ;;  %v794_v44 = vmul.f32 %v1753_v23, %v1753_v23  ;;  %v696_v48 = vsel %vm682_vm3, %v1753_v23, 0.0 }
 0x11a   :  { %v697_v63 = vadd.f32 %v696_v48, %v695_v47 }
 0x11b   :  { %v849_v56 = vsel %vm682_vm3, %v794_v44, 0.0 }
 0x11c   :  { %v516_v52 = vpop.f32.mrb[16].mxu0  ;;  %v1722_v53 = vpop.f32.mrb[16].mxu1 }
 0x11d   :  { %v518_v57 = vpop.f32.mrb[17].mxu0  ;;  %v622_v58 = vpop.f32.mrb[17].mxu1  ;;  %v1761_v40 = vadd.f32 %v516_v52, %v1688_v30  ;;  %v848_v52 = vadd.f32 %v847_v38, %v846_v45 }
 0x11e   :  { %v519_v61 = vpop.f32.mrb[18].mxu0  ;;  %v1728_v62 = vpop.f32.mrb[18].mxu1 }
 0x11f   :  { %v521_v2 = vpop.f32.mrb[19].mxu0  ;;  %v625_v4 = vpop.f32.mrb[19].mxu1  ;;  %v795_v49 = vmul.f32 %v1761_v40, %v1761_v40  ;;  %v1771_v51 = vadd.f32 %v519_v61, %v1688_v30  ;;  %v698_v57 = vsel %vm682_vm3, %v1761_v40, 0.0  ;;  %v850_v8 = vadd.f32 %v849_v56, %v848_v52 }
 0x120   :  { %v699_v10 = vadd.f32 %v698_v57, %v697_v63 }
 0x121   :  { %v851_v61 = vsel %vm682_vm3, %v795_v49, 0.0  ;;  %v796_v4 = vmul.f32 %v1771_v51, %v1771_v51  ;;  %v700_v12 = vsel %vm682_vm3, %v1771_v51, 0.0 }
 0x122   :  { %v852_v15 = vadd.f32 %v851_v61, %v850_v8 }
 0x124   :  { %v524_v17 = vpop.f32.mrb[20].mxu0  ;;  %v1746_v18 = vpop.f32.mrb[20].mxu1 }
 0x125   :  { %v526_v24 = vpop.f32.mrb[21].mxu0  ;;  %v630_v26 = vpop.f32.mrb[21].mxu1  ;;  %v1779_v58 = vadd.f32 %v524_v17, %v1688_v30  ;;  %v853_v17 = vsel %vm682_vm3, %v796_v4, 0.0 }
 0x126   :  { %v527_v29 = vpop.f32.mrb[22].mxu0  ;;  %v1755_v32 = vpop.f32.mrb[22].mxu1  ;;  %v701_v24 = vadd.f32 %v700_v12, %v699_v10 }
 0x127   :  { %v529_v41 = vpop.f32.mrb[23].mxu0  ;;  %v633_v42 = vpop.f32.mrb[23].mxu1  ;;  %v797_v13 = vmul.f32 %v1779_v58, %v1779_v58  ;;  %v1791_v14 = vadd.f32 %v527_v29, %v1688_v30  ;;  %v702_v20 = vsel %vm682_vm3, %v1779_v58, 0.0 }
 0x128   :  { %v854_v42 = vadd.f32 %v853_v17, %v852_v15  ;;  %v703_v43 = vadd.f32 %v702_v20, %v701_v24 }
 0x129   :  { %v855_v36 = vsel %vm682_vm3, %v797_v13, 0.0  ;;  %v798_v37 = vmul.f32 %v1791_v14, %v1791_v14  ;;  %v704_v45 = vsel %vm682_vm3, %v1791_v14, 0.0 }
 0x12b   :  { %v857_v56 = vsel %vm682_vm3, %v798_v37, 0.0 }
 0x12c   :  { %v532_v54 = vpop.f32.mrb[24].mxu0  ;;  %v1773_v55 = vpop.f32.mrb[24].mxu1 }
 0x12d   :  { %v534_v59 = vpop.f32.mrb[25].mxu0  ;;  %v638_v60 = vpop.f32.mrb[25].mxu1  ;;  %v1797_v22 = vadd.f32 %v532_v54, %v1688_v30  ;;  %v856_v54 = vadd.f32 %v855_v36, %v854_v42 }
 0x12e   :  { %v535_v0 = vpop.f32.mrb[26].mxu0  ;;  %v1781_v2 = vpop.f32.mrb[26].mxu1  ;;  %v705_v60 = vadd.f32 %v704_v45, %v703_v43 }
 0x12f   :  { %v537_v5 = vpop.f32.mrb[27].mxu0  ;;  %v641_v6 = vpop.f32.mrb[27].mxu1  ;;  %v799_v47 = vmul.f32 %v1797_v22, %v1797_v22  ;;  %v1811_v48 = vadd.f32 %v535_v0, %v1688_v30  ;;  %v706_v57 = vsel %vm682_vm3, %v1797_v22, 0.0  ;;  %v858_v4 = vadd.f32 %v857_v56, %v856_v54 }
 0x130   :  { %v707_v0 = vadd.f32 %v706_v57, %v705_v60 }
 0x131   :  { %v859_v63 = vsel %vm682_vm3, %v799_v47, 0.0  ;;  %v800_v61 = vmul.f32 %v1811_v48, %v1811_v48  ;;  %v708_v8 = vsel %vm682_vm3, %v1811_v48, 0.0 }
 0x132   :  { %v860_v17 = vadd.f32 %v859_v63, %v858_v4  ;;  %v709_v42 = vadd.f32 %v708_v8, %v707_v0 }
 0x134   :  { %v540_v26 = vpop.f32.mrb[28].mxu0  ;;  %v1799_v28 = vpop.f32.mrb[28].mxu1 }
 0x135   :  { %v542_v29 = vpop.f32.mrb[29].mxu0  ;;  %v646_v41 = vpop.f32.mrb[29].mxu1  ;;  %v1817_v59 = vadd.f32 %v540_v26, %v1688_v30  ;;  %v861_v26 = vsel %vm682_vm3, %v800_v61, 0.0 }
 0x136   :  { %v543_v38 = vpop.f32.mrb[30].mxu0  ;;  %v1804_v44 = vpop.f32.mrb[30].mxu1  ;;  %v862_v45 = vadd.f32 %v861_v26, %v860_v17 }
 0x137   :  { %v545_v49 = vpop.f32.mrb[31].mxu0  ;;  %v649_v52 = vpop.f32.mrb[31].mxu1  ;;  %v801_v10 = vmul.f32 %v1817_v59, %v1817_v59  ;;  %v1829_v12 = vadd.f32 %v543_v38, %v1688_v30  ;;  %v710_v36 = vsel %vm682_vm3, %v1817_v59, 0.0 }
 0x138   :  { %v711_v47 = vadd.f32 %v710_v36, %v709_v42 }
 0x139   :  { %v863_v43 = vsel %vm682_vm3, %v801_v10, 0.0  ;;  %v802_v38 = vmul.f32 %v1829_v12, %v1829_v12  ;;  %v712_v49 = vsel %vm682_vm3, %v1829_v12, 0.0 }
 0x13a   :  { %v864_v56 = vadd.f32 %v863_v43, %v862_v45  ;;  %v713_v8 = vadd.f32 %v712_v49, %v711_v47 }
 0x13b   :  { %v865_v63 = vsel %vm682_vm3, %v802_v38, 0.0 }
 0x13c   :  { %v548_v5 = vpop.f32.mrb[32].mxu0  ;;  %v1822_v6 = vpop.f32.mrb[32].mxu1  ;;  %v866_v36 = vadd.f32 %v865_v63, %v864_v56 }
 0x13d   :  { %v550_v13 = vpop.f32.mrb[33].mxu0  ;;  %v654_v15 = vpop.f32.mrb[33].mxu1  ;;  %v1837_v37 = vadd.f32 %v548_v5, %v1688_v30 }
 0x13e   :  { %v551_v20 = vpop.f32.mrb[34].mxu0  ;;  %v1831_v24 = vpop.f32.mrb[34].mxu1 }
 0x13f   :  { %v553_v29 = vpop.f32.mrb[35].mxu0  ;;  %v657_v41 = vpop.f32.mrb[35].mxu1  ;;  %v803_v52 = vmul.f32 %v1837_v37, %v1837_v37  ;;  %v1847_v54 = vadd.f32 %v551_v20, %v1688_v30  ;;  %v714_v61 = vsel %vm682_vm3, %v1837_v37, 0.0 }
 0x140   :  { %v715_v29 = vadd.f32 %v714_v61, %v713_v8 }
 0x141   :  { %v867_v15 = vsel %vm682_vm3, %v803_v52, 0.0  ;;  %v804_v17 = vmul.f32 %v1847_v54, %v1847_v54  ;;  %v716_v41 = vsel %vm682_vm3, %v1847_v54, 0.0 }
 0x142   :  { %v868_v38 = vadd.f32 %v867_v15, %v866_v36  ;;  %v717_v49 = vadd.f32 %v716_v41, %v715_v29 }
 0x143   :  { %v869_v45 = vsel %vm682_vm3, %v804_v17, 0.0 }
 0x144   :  { %v556_v57 = vpop.f32.mrb[36].mxu0  ;;  %v1849_v60 = vpop.f32.mrb[36].mxu1  ;;  %v870_v8 = vadd.f32 %v869_v45, %v868_v38 }
 0x145   :  { %v1855_v4 = vadd.f32 %v556_v57, %v1688_v30  ;;  %v558_v0 = vpop.f32.mrb[37].mxu0  ;;  %v662_v5 = vpop.f32.mrb[37].mxu1 }
 0x146   :  { %v559_v10 = vpop.f32.mrb[38].mxu0  ;;  %v1857_v13 = vpop.f32.mrb[38].mxu1 }
 0x147   :  { %2748 = vst [vmem:[#allocation2_spill] sm:$0xff] %v1855_v4  ;;  %v561_v20 = vpop.f32.mrb[39].mxu0  ;;  %v665_v26 = vpop.f32.mrb[39].mxu1  ;;  %v805_v42 = vmul.f32 %v1855_v4, %v1855_v4  ;;  %v1867_v43 = vadd.f32 %v559_v10, %v1688_v30  ;;  %v718_v47 = vsel %vm682_vm3, %v1855_v4, 0.0 }
 0x148   :  { %v719_v10 = vadd.f32 %v718_v47, %v717_v49 }
 0x149   :  { %2749 = vst [vmem:[#allocation3_spill] sm:$0xff] %v1867_v43  ;;  %v871_v56 = vsel %vm682_vm3, %v805_v42, 0.0  ;;  %v806_v63 = vmul.f32 %v1867_v43, %v1867_v43  ;;  %v720_v20 = vsel %vm682_vm3, %v1867_v43, 0.0 }
 0x14a   :  { %v872_v42 = vadd.f32 %v871_v56, %v870_v8  ;;  %v721_v45 = vadd.f32 %v720_v20, %v719_v10 }
 0x14c   :  { %v564_v52 = vpop.f32.mrb[40].mxu0  ;;  %v1872_v57 = vpop.f32.mrb[40].mxu1 }
 0x14d   :  { %v1878_v61 = vadd.f32 %v564_v52, %v1688_v30  ;;  %v566_v0 = vpop.f32.mrb[41].mxu0  ;;  %v670_v5 = vpop.f32.mrb[41].mxu1  ;;  %v873_v52 = vsel %vm682_vm3, %v806_v63, 0.0 }
 0x14e   :  { %v567_v15 = vpop.f32.mrb[42].mxu0  ;;  %v1880_v17 = vpop.f32.mrb[42].mxu1  ;;  %v874_v0 = vadd.f32 %v873_v52, %v872_v42 }
 0x14f   :  { %v807_v26 = vmul.f32 %v1878_v61, %v1878_v61  ;;  %v1887_v36 = vadd.f32 %v567_v15, %v1688_v30  ;;  %v569_v29 = vpop.f32.mrb[43].mxu0  ;;  %v673_v41 = vpop.f32.mrb[43].mxu1  ;;  %v722_v38 = vsel %vm682_vm3, %v1878_v61, 0.0 }
 0x150   :  { %v723_v5 = vadd.f32 %v722_v38, %v721_v45 }
 0x151   :  { %v875_v47 = vsel %vm682_vm3, %v807_v26, 0.0  ;;  %v808_v49 = vmul.f32 %v1887_v36, %v1887_v36  ;;  %v724_v15 = vsel %vm682_vm3, %v1887_v36, 0.0 }
 0x152   :  { %v876_v29 = vadd.f32 %v875_v47, %v874_v0 }
 0x153   :  { %v877_v26 = vsel %vm682_vm3, %v808_v49, 0.0 }
 0x154   :  { %v572_v43 = vpop.f32.mrb[44].mxu0  ;;  %v1895_v4 = vpop.f32.mrb[44].mxu1  ;;  %v878_v0 = vadd.f32 %v877_v26, %v876_v29  ;;  %v1925_v29 = vadd.f32 %v1669_v7, %v1688_v30 }
 0x155   :  { %v1900_v56 = vadd.f32 %v572_v43, %v1688_v30  ;;  %v574_v63 = vpop.f32.mrb[45].mxu0  ;;  %v678_v8 = vpop.f32.mrb[45].mxu1  ;;  %v725_v43 = vadd.f32 %v724_v15, %v723_v5 }
 0x156   :  { %v575_v10 = vpop.f32.mrb[46].mxu0  ;;  %v679_v20 = vpop.f32.mrb[46].mxu1 }
 0x157   :  { %2750 = vst [vmem:[#allocation4_spill] sm:$0xff] %v1900_v56  ;;  %v726_v41 = vsel %vm682_vm3, %v1900_v56, 0.0  ;;  %v809_v42 = vmul.f32 %v1900_v56, %v1900_v56  ;;  %v1908_v52 = vadd.f32 %v575_v10, %v1688_v30  ;;  %v577_v38 = vpop.f32.mrb[47].mxu0  ;;  %v680_v45 = vpop.f32.mrb[47].mxu1  ;;  %v1917_v20 = vadd.f32 %v1667_v3, %v1688_v30 }
 0x158   :  { %v727_v8 = vadd.f32 %v726_v41, %v725_v43 }
 0x159   :  { %v879_v63 = vsel %vm682_vm3, %v809_v42, 0.0  ;;  %v810_v47 = vmul.f32 %v1908_v52, %v1908_v52  ;;  %v728_v49 = vsel %vm682_vm3, %v1908_v52, 0.0  ;;  %2751 = vst [vmem:[#allocation5_spill] sm:$0xff] %v1917_v20 }
 0x15a   :  { %v880_v56 = vadd.f32 %v879_v63, %v878_v0  ;;  %v729_v42 = vadd.f32 %v728_v49, %v727_v8  ;;  %v813_v63 = vmul.f32 %v1917_v20, %v1917_v20  ;;  %v1938_v8 = vadd.f32 %v1671_v11, %v1688_v30 }
 0x15b   :  { %v881_v38 = vsel %vm682_vm3, %v810_v47, 0.0  ;;  %v1951_v11 = vadd.f32 %v1673_v16, %v1688_v30 }
 0x15c   :  { %v580_v10 = vpop.f32.mrb[48].mxu0  ;;  %v882_v47 = vadd.f32 %v881_v38, %v880_v56  ;;  %v814_v56 = vmul.f32 %v1925_v29, %v1925_v29 }
 0x15d   :  { %v1921_v5 = vadd.f32 %v580_v10, %v1688_v30  ;;  %v582_v15 = vpop.f32.mrb[49].mxu0  ;;  %2752 = vst [vmem:[#allocation6_spill] sm:$0xff] %v1951_v11 }
 0x15e   :  { %v583_v45 = vpop.f32.mrb[50].mxu0  ;;  %v889_v16 = vsel %vm682_vm3, %v814_v56, 0.0 }
 0x15f   :  { %v730_v26 = vsel %vm682_vm3, %v1921_v5, 0.0  ;;  %v811_v3 = vmul.f32 %v1921_v5, %v1921_v5  ;;  %v1932_v41 = vadd.f32 %v583_v45, %v1688_v30  ;;  %v585_v43 = vpop.f32.mrb[51].mxu0 }
 0x160   :  { %v731_v0 = vadd.f32 %v730_v26, %v729_v42  ;;  %v734_v43 = vsel %vm682_vm3, %v1917_v20, 0.0 }
 0x161   :  { %v883_v7 = vsel %vm682_vm3, %v811_v3, 0.0  ;;  %v732_v49 = vsel %vm682_vm3, %v1932_v41, 0.0  ;;  %v812_v10 = vmul.f32 %v1932_v41, %v1932_v41  ;;  %v887_v3 = vsel %vm682_vm3, %v813_v63, 0.0 }
 0x162   :  { %v884_v15 = vadd.f32 %v883_v7, %v882_v47  ;;  %v733_v45 = vadd.f32 %v732_v49, %v731_v0  ;;  %v736_v47 = vsel %vm682_vm3, %v1925_v29, 0.0  ;;  %v815_v0 = vmul.f32 %v1938_v8, %v1938_v8 }
 0x163   :  { %v885_v38 = vsel %vm682_vm3, %v812_v10, 0.0  ;;  %v1961_v7 = vadd.f32 %v1677_v21, %v1688_v30  ;;  %v738_v10 = vsel %vm682_vm3, %v1938_v8, 0.0  ;;  %v816_v63 = vmul.f32 %v1951_v11, %v1951_v11 }
 0x164   :  { %v735_v42 = vadd.f32 %v734_v43, %v733_v45  ;;  %v886_v26 = vadd.f32 %v885_v38, %v884_v15  ;;  %v1970_v15 = vadd.f32 %v1685_v27, %v1688_v30  ;;  %v891_v38 = vsel %vm682_vm3, %v815_v0, 0.0 }
 0x165   :  { %2753 = vst [vmem:[#allocation7_spill] sm:$0xff] %v1961_v7  ;;  %v740_v21 = vsel %vm682_vm3, %v1951_v11, 0.0  ;;  %v817_v56 = vmul.f32 %v1961_v7, %v1961_v7  ;;  %v742_v27 = vsel %vm682_vm3, %v1961_v7, 0.0  ;;  %v1988_v0 = vadd.f32 %v1701_v39, %v1688_v30 }
 0x166   :  { %v737_v49 = vadd.f32 %v736_v47, %v735_v42  ;;  %v888_v20 = vadd.f32 %v887_v3, %v886_v26  ;;  %2754 = vst [vmem:[#allocation8_spill] sm:$0xff] %v1970_v15  ;;  %v1979_v42 = vadd.f32 %v1693_v33, %v1688_v30  ;;  %v893_v47 = vsel %vm682_vm3, %v816_v63, 0.0 }
 0x167   :  { %2756 = vst [vmem:[#allocation10_spill] sm:$0xff] %v1988_v0  ;;  %v744_v33 = vsel %vm682_vm3, %v1970_v15, 0.0 }
 0x168   :  { %v739_v45 = vadd.f32 %v738_v10, %v737_v49  ;;  %v890_v43 = vadd.f32 %v889_v16, %v888_v20  ;;  %2755 = vst [vmem:[#allocation9_spill] sm:$0xff] %v1979_v42  ;;  %v818_v20 = vmul.f32 %v1970_v15, %v1970_v15  ;;  %v895_v10 = vsel %vm682_vm3, %v817_v56, 0.0 }
 0x169   :  { %v819_v63 = vmul.f32 %v1979_v42, %v1979_v42  ;;  %v746_v39 = vsel %vm682_vm3, %v1979_v42, 0.0  ;;  %v820_v56 = vmul.f32 %v1988_v0, %v1988_v0 }
 0x16a   :  { %v741_v26 = vadd.f32 %v740_v21, %v739_v45  ;;  %v892_v3 = vadd.f32 %v891_v38, %v890_v43  ;;  %v1997_v45 = vadd.f32 %v1722_v53, %v1688_v30  ;;  %v897_v21 = vsel %vm682_vm3, %v818_v20, 0.0 }
 0x16b   :  { %v748_v53 = vsel %vm682_vm3, %v1988_v0, 0.0 }
 0x16c   :  { %v743_v49 = vadd.f32 %v742_v27, %v741_v26  ;;  %v894_v16 = vadd.f32 %v893_v47, %v892_v3  ;;  %2757 = vst [vmem:[#allocation11_spill] sm:$0xff] %v1997_v45  ;;  %v2006_v26 = vadd.f32 %v1728_v62, %v1688_v30  ;;  %v899_v27 = vsel %vm682_vm3, %v819_v63, 0.0 }
 0x16d   :  { %v821_v20 = vmul.f32 %v1997_v45, %v1997_v45  ;;  %v750_v62 = vsel %vm682_vm3, %v1997_v45, 0.0 }
 0x16e   :  { %v745_v43 = vadd.f32 %v744_v33, %v743_v49  ;;  %v896_v38 = vadd.f32 %v895_v10, %v894_v16  ;;  %2758 = vst [vmem:[#allocation12_spill] sm:$0xff] %v2006_v26  ;;  %v2015_v49 = vadd.f32 %v1746_v18, %v1688_v30  ;;  %v901_v33 = vsel %vm682_vm3, %v820_v56, 0.0 }
 0x16f   :  { %v822_v63 = vmul.f32 %v2006_v26, %v2006_v26  ;;  %v752_v18 = vsel %vm682_vm3, %v2006_v26, 0.0 }
 0x170   :  { %v898_v3 = vadd.f32 %v897_v21, %v896_v38  ;;  %v747_v47 = vadd.f32 %v746_v39, %v745_v43  ;;  %2759 = vst [vmem:[#allocation13_spill] sm:$0xff] %v2015_v49  ;;  %v2024_v43 = vadd.f32 %v1755_v32, %v1688_v30  ;;  %v903_v39 = vsel %vm682_vm3, %v821_v20, 0.0 }
 0x171   :  { %v823_v56 = vmul.f32 %v2015_v49, %v2015_v49  ;;  %v754_v32 = vsel %vm682_vm3, %v2015_v49, 0.0 }
 0x172   :  { %v749_v16 = vadd.f32 %v748_v53, %v747_v47  ;;  %v900_v10 = vadd.f32 %v899_v27, %v898_v3  ;;  %v2033_v3 = vadd.f32 %v1773_v55, %v1688_v30  ;;  %v905_v53 = vsel %vm682_vm3, %v822_v63, 0.0 }
 0x173   :  { %v824_v20 = vmul.f32 %v2024_v43, %v2024_v43  ;;  %v756_v55 = vsel %vm682_vm3, %v2024_v43, 0.0 }
 0x174   :  { %v751_v38 = vadd.f32 %v750_v62, %v749_v16  ;;  %v902_v21 = vadd.f32 %v901_v33, %v900_v10  ;;  %v2042_v16 = vadd.f32 %v1781_v2, %v1688_v30  ;;  %v907_v62 = vsel %vm682_vm3, %v823_v56, 0.0 }
 0x175   :  { %v825_v63 = vmul.f32 %v2033_v3, %v2033_v3  ;;  %v758_v2 = vsel %vm682_vm3, %v2033_v3, 0.0 }
 0x176   :  { %v753_v47 = vadd.f32 %v752_v18, %v751_v38  ;;  %v904_v27 = vadd.f32 %v903_v39, %v902_v21  ;;  %v2051_v38 = vadd.f32 %v1799_v28, %v1688_v30  ;;  %v909_v18 = vsel %vm682_vm3, %v824_v20, 0.0 }
 0x177   :  { %v826_v56 = vmul.f32 %v2042_v16, %v2042_v16  ;;  %v760_v28 = vsel %vm682_vm3, %v2042_v16, 0.0 }
 0x178   :  { %v755_v10 = vadd.f32 %v754_v32, %v753_v47  ;;  %v906_v33 = vadd.f32 %v905_v53, %v904_v27  ;;  %v2060_v47 = vadd.f32 %v1804_v44, %v1688_v30  ;;  %v911_v32 = vsel %vm682_vm3, %v825_v63, 0.0 }
 0x179   :  { %v827_v20 = vmul.f32 %v2051_v38, %v2051_v38  ;;  %v2073_v44 = vadd.f32 %v1831_v24, %v1688_v30  ;;  %v762_v63 = vsel %vm682_vm3, %v2051_v38, 0.0  ;;  %v2087_v24 = vadd.f32 %v1849_v60, %v1688_v30 }
 0x17a   :  { %v757_v21 = vadd.f32 %v756_v55, %v755_v10  ;;  %v908_v39 = vadd.f32 %v907_v62, %v906_v33  ;;  %v2069_v10 = vadd.f32 %v1822_v6, %v1688_v30  ;;  %v913_v55 = vsel %vm682_vm3, %v826_v56, 0.0 }
 0x17b   :  { %2761 = vst [vmem:[#allocation15_spill] sm:$0xff] %v2073_v44  ;;  %v764_v6 = vsel %vm682_vm3, %v2060_v47, 0.0  ;;  %2762 = vst [vmem:[#allocation16_spill] sm:$0xff] %v2087_v24  ;;  %v768_v60 = vsel %vm682_vm3, %v2073_v44, 0.0 }
 0x17c   :  { %v759_v27 = vadd.f32 %v758_v2, %v757_v21  ;;  %v910_v53 = vadd.f32 %v909_v18, %v908_v39  ;;  %2760 = vst [vmem:[#allocation14_spill] sm:$0xff] %v2069_v10  ;;  %v828_v21 = vmul.f32 %v2060_v47, %v2060_v47  ;;  %v915_v2 = vsel %vm682_vm3, %v827_v20, 0.0 }
 0x17d   :  { %v766_v20 = vsel %vm682_vm3, %v2069_v10, 0.0 }
 0x17e   :  { %v912_v33 = vadd.f32 %v911_v32, %v910_v53  ;;  %v761_v62 = vadd.f32 %v760_v28, %v759_v27  ;;  %v829_v27 = vmul.f32 %v2069_v10, %v2069_v10  ;;  %v830_v32 = vmul.f32 %v2073_v44, %v2073_v44 }
 0x17f   :  { %v917_v28 = vsel %vm682_vm3, %v828_v21, 0.0  ;;  %v2105_v21 = vadd.f32 %v1872_v57, %v1688_v30 }
 0x180   :  { %v914_v39 = vadd.f32 %v913_v55, %v912_v33  ;;  %v763_v18 = vadd.f32 %v762_v63, %v761_v62  ;;  %v2096_v33 = vadd.f32 %v1857_v13, %v1688_v30  ;;  %v919_v63 = vsel %vm682_vm3, %v829_v27, 0.0 }
 0x181   :  { %2764 = vst [vmem:[#allocation18_spill] sm:$0xff] %v2105_v21  ;;  %v770_v13 = vsel %vm682_vm3, %v2087_v24, 0.0 }
 0x182   :  { %v916_v56 = vadd.f32 %v915_v2, %v914_v39  ;;  %v765_v53 = vadd.f32 %v764_v6, %v763_v18  ;;  %2763 = vst [vmem:[#allocation17_spill] sm:$0xff] %v2096_v33  ;;  %v831_v39 = vmul.f32 %v2087_v24, %v2087_v24  ;;  %v921_v6 = vsel %vm682_vm3, %v830_v32, 0.0 }
 0x183   :  { %v832_v27 = vmul.f32 %v2096_v33, %v2096_v33  ;;  %v772_v32 = vsel %vm682_vm3, %v2096_v33, 0.0 }
 0x184   :  { %v918_v62 = vadd.f32 %v917_v28, %v916_v56  ;;  %v767_v55 = vadd.f32 %v766_v20, %v765_v53  ;;  %v2114_v56 = vadd.f32 %v1880_v17, %v1688_v30  ;;  %v2118_v53 = vadd.f32 %v1895_v4, %v1688_v30 }
 0x185   :  { %v923_v20 = vsel %vm682_vm3, %v831_v39, 0.0  ;;  %v774_v17 = vsel %vm682_vm3, %v2105_v21, 0.0 }
 0x186   :  { %v920_v18 = vadd.f32 %v919_v63, %v918_v62  ;;  %v769_v2 = vadd.f32 %v768_v60, %v767_v55  ;;  %2765 = vst [vmem:[#allocation19_spill] sm:$0xff] %v2114_v56  ;;  %2766 = vst [vmem:[#allocation20_spill] sm:$0xff] %v2118_v53  ;;  %v833_v62 = vmul.f32 %v2105_v21, %v2105_v21  ;;  %v925_v60 = vsel %vm682_vm3, %v832_v27, 0.0 }
 0x187   :  { %v834_v30 = vmul.f32 %v2114_v56, %v2114_v56  ;;  %v835_v4 = vmul.f32 %v2118_v53, %v2118_v53 }
 0x188   :  { %v922_v57 = vadd.f32 %v921_v6, %v920_v18  ;;  %v771_v28 = vadd.f32 %v770_v13, %v769_v2  ;;  %v927_v2 = vsel %vm682_vm3, %v833_v62, 0.0  ;;  %v776_v6 = vsel %vm682_vm3, %v2114_v56, 0.0 }
 0x189   :  { %v778_v13 = vsel %vm682_vm3, %v2118_v53, 0.0 }
 0x18a   :  { %v924_v55 = vadd.f32 %v923_v20, %v922_v57  ;;  %v773_v63 = vadd.f32 %v772_v32, %v771_v28  ;;  %v929_v28 = vsel %vm682_vm3, %v834_v30, 0.0  ;;  %v931_v20 = vsel %vm682_vm3, %v835_v4, 0.0 }
 0x18c   :  { %v926_v39 = vadd.f32 %v925_v60, %v924_v55  ;;  %v775_v18 = vadd.f32 %v774_v17, %v773_v63 }
 0x18e   :  { %v928_v27 = vadd.f32 %v927_v2, %v926_v39  ;;  %v777_v57 = vadd.f32 %v776_v6, %v775_v18  ;;  %v1044_v6 = vsub.s32 1, %v1675_v19 }
 0x190   :  { %v930_v32 = vadd.f32 %v929_v28, %v928_v27  ;;  %v779_v49 = vadd.f32 %v778_v13, %v777_v57 }
 0x192   :  { %v780_v26 = vrot.slane %v779_v49, 4  ;;  %v932_v45 = vadd.f32 %v931_v20, %v930_v32  ;;  %v2170_v32 = vrot.slane %v1683_v25, %v1044_v6 }
 0x194   :  { %v781_v55 = vadd.f32 %v780_v26, %v779_v49  ;;  %v933_v63 = vrot.slane %v932_v45, 4  ;;  %v1097_v26 = vsub.s32 2, %v1675_v19  ;;  %2767 = vst [vmem:[#allocation21_spill] sm:$0xff] %v2170_v32 }
 0x196   :  { %v782_v60 = vrot.slane %v781_v55, 2  ;;  %v934_v62 = vadd.f32 %v933_v63, %v932_v45 }
 0x198   :  { %v783_v17 = vadd.f32 %v782_v60, %v781_v55  ;;  %v935_v0 = vrot.slane %v934_v62, 2  ;;  %v2173_v55 = vrot.slane %v1683_v25, %v1097_v26 }
 0x19a   :  { %v784_v42 = vrot.slane %v783_v17, 1  ;;  %v936_v15 = vadd.f32 %v935_v0, %v934_v62  ;;  %2768 = vst [vmem:[#allocation22_spill] sm:$0xff] %v2173_v55 }
 0x19c   :  { %v785_v7 = vadd.f32 %v784_v42, %v783_v17  ;;  %v937_v11 = vrot.slane %v936_v15, 1 }
 0x19e   :  { %v2139_v39 = vmul.f32 0.0025510204, %v785_v7  ;;  %v938_v18 = vadd.f32 %v937_v11, %v936_v15 }
 0x1a0   :  { %v939_v30 = vmul.f32 0.0025510204, %v938_v18  ;;  %v940_v4 = vmul.f32 %v2139_v39, %v2139_v39  ;;  %v942_v63 = vsub.f32 %v1696_v34, %v2139_v39  ;;  %v943_v60 = vsub.f32 %v1691_v31, %v2139_v39 }
 0x1a1   :  { %v944_v62 = vsub.f32 %v1699_v35, %v2139_v39  ;;  %v945_v17 = vsub.f32 %v1712_v46, %v2139_v39  ;;  %v946_v18 = vsub.f32 %v1720_v50, %v2139_v39  ;;  %v948_v25 = vsub.f32 %v1741_v9, %v2139_v39 }
 0x1a2   :  { %v941_v2 = vsub.f32 %v939_v30, %v940_v4  ;;  %v947_v30 = vsub.f32 %v1735_v1, %v2139_v39  ;;  %v949_v34 = vsub.f32 %v1753_v23, %v2139_v39  ;;  %v950_v31 = vsub.f32 %v1761_v40, %v2139_v39 }
 0x1a3   :  { %v951_v35 = vsub.f32 %v1771_v51, %v2139_v39  ;;  %v952_v46 = vsub.f32 %v1779_v58, %v2139_v39  ;;  %v953_v50 = vsub.f32 %v1791_v14, %v2139_v39  ;;  %v954_v1 = vsub.f32 %v1797_v22, %v2139_v39  ;;  %v2769_v14 = vld [vmem:[#allocation2_spill] sm:$0xff]  ;;  %v2770_v22 = vld [vmem:[#allocation3_spill] sm:$0xff] }
 0x1a4   :  { %v991_v20 = vadd.f32 1e-05, %v941_v2  ;;  %v955_v9 = vsub.f32 %v1811_v48, %v2139_v39  ;;  %v956_v23 = vsub.f32 %v1817_v59, %v2139_v39  ;;  %v957_v40 = vsub.f32 %v1829_v12, %v2139_v39  ;;  %v2771_v12 = vld [vmem:[#allocation4_spill] sm:$0xff] }
 0x1a5   :  { %v958_v51 = vsub.f32 %v1837_v37, %v2139_v39  ;;  %v959_v58 = vsub.f32 %v1847_v54, %v2139_v39  ;;  %v960_v4 = vsub.f32 %v2769_v14, %v2139_v39  ;;  %v961_v2 = vsub.f32 %v2770_v22, %v2139_v39  ;;  %v2773_v22 = vld [vmem:[#allocation6_spill] sm:$0xff] }
 0x1a6   :  { %1441 = vrsqrt.f32 %v991_v20  ;;  %v962_v48 = vsub.f32 %v1878_v61, %v2139_v39  ;;  %v963_v59 = vsub.f32 %v1887_v36, %v2139_v39  ;;  %v964_v6 = vsub.f32 %v2771_v12, %v2139_v39  ;;  %v2772_v20 = vld [vmem:[#allocation5_spill] sm:$0xff] }
 0x1a7   :  { %v965_v37 = vsub.f32 %v1908_v52, %v2139_v39  ;;  %v966_v54 = vsub.f32 %v1921_v5, %v2139_v39  ;;  %v967_v26 = vsub.f32 %v1932_v41, %v2139_v39  ;;  %v968_v14 = vsub.f32 %v2772_v20, %v2139_v39  ;;  %v2774_v52 = vld [vmem:[#allocation7_spill] sm:$0xff]  ;;  %v2775_v5 = vld [vmem:[#allocation8_spill] sm:$0xff]  ;;  %v2776_v41 = vld [vmem:[#allocation9_spill] sm:$0xff] }
 0x1a8   :  { %v969_v61 = vsub.f32 %v1925_v29, %v2139_v39  ;;  %v970_v36 = vsub.f32 %v1938_v8, %v2139_v39  ;;  %v971_v12 = vsub.f32 %v2773_v22, %v2139_v39  ;;  %v972_v28 = vsub.f32 %v2774_v52, %v2139_v39  ;;  %v2777_v20 = vld [vmem:[#allocation10_spill] sm:$0xff]  ;;  %v2778_v29 = vld [vmem:[#allocation11_spill] sm:$0xff]  ;;  %v2779_v8 = vld [vmem:[#allocation12_spill] sm:$0xff] }
 0x1a9   :  { %v973_v57 = vsub.f32 %v2775_v5, %v2139_v39  ;;  %v974_v27 = vsub.f32 %v2776_v41, %v2139_v39  ;;  %v975_v49 = vsub.f32 %v2777_v20, %v2139_v39  ;;  %v976_v19 = vsub.f32 %v2778_v29, %v2139_v39  ;;  %v2780_v22 = vld [vmem:[#allocation13_spill] sm:$0xff] }
 0x1aa   :  { %v977_v42 = vsub.f32 %v2779_v8, %v2139_v39  ;;  %v978_v15 = vsub.f32 %v2780_v22, %v2139_v39 }
 0x1b0   :  { %v1442_v13 = vpop.eup %1441 }
 0x1b1   :  { %v993_v52 = vmul.f32 %v1442_v13, %v942_v63  ;;  %v994_v11 = vmul.f32 %v1442_v13, %v943_v60  ;;  %v995_v7 = vmul.f32 %v1442_v13, %v944_v62  ;;  %v996_v5 = vmul.f32 %v1442_v13, %v945_v17 }
 0x1b2   :  { %v997_v0 = vmul.f32 %v1442_v13, %v946_v18  ;;  %v998_v45 = vmul.f32 %v1442_v13, %v947_v30  ;;  %v999_v41 = vmul.f32 %v1442_v13, %v948_v25  ;;  %v1000_v55 = vmul.f32 %v1442_v13, %v949_v34 }
 0x1b3   :  { %v1001_v32 = vmul.f32 %v1442_v13, %v950_v31  ;;  %v1002_v53 = vmul.f32 %v1442_v13, %v951_v35  ;;  %v1003_v20 = vmul.f32 %v1442_v13, %v952_v46  ;;  %v1004_v56 = vmul.f32 %v1442_v13, %v953_v50 }
 0x1b4   :  { %v1005_v21 = vmul.f32 %v1442_v13, %v954_v1  ;;  %v1006_v29 = vmul.f32 %v1442_v13, %v955_v9  ;;  %v1007_v33 = vmul.f32 %v1442_v13, %v956_v23  ;;  %v1008_v24 = vmul.f32 %v1442_v13, %v957_v40 }
 0x1b5   :  { %v1009_v8 = vmul.f32 %v1442_v13, %v958_v51  ;;  %v1010_v44 = vmul.f32 %v1442_v13, %v959_v58  ;;  %v1011_v10 = vmul.f32 %v1442_v13, %v960_v4  ;;  %v1012_v22 = vmul.f32 %v1442_v13, %v961_v2 }
 0x1b6   :  { %v1013_v63 = vmul.f32 %v1442_v13, %v962_v48  ;;  %v1014_v60 = vmul.f32 %v1442_v13, %v963_v59  ;;  %v1015_v62 = vmul.f32 %v1442_v13, %v964_v6  ;;  %v1016_v17 = vmul.f32 %v1442_v13, %v965_v37 }
 0x1b7   :  { %v1017_v18 = vmul.f32 %v1442_v13, %v966_v54  ;;  %v1018_v30 = vmul.f32 %v1442_v13, %v967_v26  ;;  %v1019_v25 = vmul.f32 %v1442_v13, %v968_v14  ;;  %v1020_v34 = vmul.f32 %v1442_v13, %v969_v61  ;;  %v2790_v54 = vld [vmem:[#allocation16_spill] sm:$0xff]  ;;  %v2792_v14 = vld [vmem:[#allocation17_spill] sm:$0xff] }
 0x1b8   :  { %v1021_v31 = vmul.f32 %v1442_v13, %v970_v36  ;;  %v1022_v35 = vmul.f32 %v1442_v13, %v971_v12  ;;  %v1023_v46 = vmul.f32 %v1442_v13, %v972_v28  ;;  %v1024_v50 = vmul.f32 %v1442_v13, %v973_v57  ;;  %v2788_v28 = vld [vmem:[#allocation15_spill] sm:$0xff]  ;;  %v2794_v36 = vld [vmem:[#allocation18_spill] sm:$0xff] }
 0x1b9   :  { %v1025_v1 = vmul.f32 %v1442_v13, %v974_v27  ;;  %v1026_v9 = vmul.f32 %v1442_v13, %v975_v49  ;;  %v1027_v23 = vmul.f32 %v1442_v13, %v976_v19  ;;  %v1028_v40 = vmul.f32 %v1442_v13, %v977_v42  ;;  %v2786_v19 = vld [vmem:[#allocation14_spill] sm:$0xff] }
 0x1ba   :  { %v1029_v51 = vmul.f32 %v1442_v13, %v978_v15  ;;  %v2781_v58 = vsub.f32 %v2024_v43, %v2139_v39  ;;  %v2782_v2 = vsub.f32 %v2033_v3, %v2139_v39  ;;  %v2783_v59 = vsub.f32 %v2042_v16, %v2139_v39 }
 0x1bb   :  { %v2784_v57 = vsub.f32 %v2051_v38, %v2139_v39  ;;  %v2785_v42 = vsub.f32 %v2060_v47, %v2139_v39  ;;  %v2787_v43 = vsub.f32 %v2786_v19, %v2139_v39  ;;  %v2789_v3 = vsub.f32 %v2788_v28, %v2139_v39 }
 0x1bc   :  { %v1030_v4 = vmul.f32 %v1442_v13, %v2781_v58  ;;  %v1031_v48 = vmul.f32 %v1442_v13, %v2782_v2  ;;  %v1032_v6 = vmul.f32 %v1442_v13, %v2783_v59  ;;  %v2791_v16 = vsub.f32 %v2790_v54, %v2139_v39  ;;  %v2796_v58 = vld [vmem:[#allocation19_spill] sm:$0xff] }
 0x1bd   :  { %v1033_v27 = vmul.f32 %v1442_v13, %v2784_v57  ;;  %v1034_v15 = vmul.f32 %v1442_v13, %v2785_v42  ;;  %v1035_v49 = vmul.f32 %v1442_v13, %v2787_v43  ;;  %v1036_v37 = vmul.f32 %v1442_v13, %v2789_v3  ;;  %v2798_v57 = vld [vmem:[#allocation20_spill] sm:$0xff]  ;;  %v2800_v43 = vld [vmem:[#allocation21_spill] sm:$0xff] }
 0x1be   :  { %v1037_v26 = vmul.f32 %v1442_v13, %v2791_v16  ;;  %v2793_v38 = vsub.f32 %v2792_v14, %v2139_v39  ;;  %v2795_v47 = vsub.f32 %v2794_v36, %v2139_v39  ;;  %v2797_v2 = vsub.f32 %v2796_v58, %v2139_v39 }
 0x1bf   :  { %v2799_v42 = vsub.f32 %v2798_v57, %v2139_v39  ;;  %v1046_v28 = vmul.f32 %v2800_v43, %v993_v52  ;;  %v1047_v3 = vmul.f32 %v2800_v43, %v994_v11  ;;  %v1048_v54 = vmul.f32 %v2800_v43, %v995_v7 }
 0x1c0   :  { %v1038_v61 = vmul.f32 %v1442_v13, %v2793_v38  ;;  %v1039_v12 = vmul.f32 %v1442_v13, %v2795_v47  ;;  %v1040_v59 = vmul.f32 %v1442_v13, %v2797_v2  ;;  %v1049_v16 = vmul.f32 %v2800_v43, %v996_v5 }
 0x1c1   :  { %v1041_v19 = vmul.f32 %v1442_v13, %v2799_v42  ;;  %v1050_v14 = vmul.f32 %v2800_v43, %v997_v0  ;;  %v1051_v38 = vmul.f32 %v2800_v43, %v998_v45  ;;  %v1052_v36 = vmul.f32 %v2800_v43, %v999_v41 }
 0x1c2   :  { %v1053_v47 = vmul.f32 %v2800_v43, %v1000_v55  ;;  %v1054_v58 = vmul.f32 %v2800_v43, %v1001_v32  ;;  %v1055_v39 = vmul.f32 %v2800_v43, %v1002_v53  ;;  %v1056_v13 = vmul.f32 %v2800_v43, %v1003_v20 }
 0x1c3   :  { %v1057_v11 = vmul.f32 %v2800_v43, %v1004_v56  ;;  %v1058_v7 = vmul.f32 %v2800_v43, %v1005_v21  ;;  %v1059_v52 = vmul.f32 %v2800_v43, %v1006_v29  ;;  %v1060_v0 = vmul.f32 %v2800_v43, %v1007_v33 }
 0x1c4   :  { %v1061_v45 = vmul.f32 %v2800_v43, %v1008_v24  ;;  %v1062_v5 = vmul.f32 %v2800_v43, %v1009_v8  ;;  %v1063_v55 = vmul.f32 %v2800_v43, %v1010_v44  ;;  %v1064_v32 = vmul.f32 %v2800_v43, %v1011_v10 }
 0x1c5   :  { %v1065_v53 = vmul.f32 %v2800_v43, %v1012_v22  ;;  %v1066_v41 = vmul.f32 %v2800_v43, %v1013_v63  ;;  %v1067_v56 = vmul.f32 %v2800_v43, %v1014_v60  ;;  %v1068_v21 = vmul.f32 %v2800_v43, %v1015_v62 }
 0x1c6   :  { %v1069_v20 = vmul.f32 %v2800_v43, %v1016_v17  ;;  %v1070_v33 = vmul.f32 %v2800_v43, %v1017_v18  ;;  %v1071_v24 = vmul.f32 %v2800_v43, %v1018_v30  ;;  %v1072_v29 = vmul.f32 %v2800_v43, %v1019_v25 }
 0x1c7   :  { %v1073_v44 = vmul.f32 %v2800_v43, %v1020_v34  ;;  %v1074_v10 = vmul.f32 %v2800_v43, %v1021_v31  ;;  %v1075_v8 = vmul.f32 %v2800_v43, %v1022_v35  ;;  %v1076_v22 = vmul.f32 %v2800_v43, %v1023_v46 }
 0x1c8   :  { %v1077_v63 = vmul.f32 %v2800_v43, %v1024_v50  ;;  %v1078_v60 = vmul.f32 %v2800_v43, %v1025_v1  ;;  %v1079_v62 = vmul.f32 %v2800_v43, %v1026_v9  ;;  %v1080_v17 = vmul.f32 %v2800_v43, %v1027_v23 }
 0x1c9   :  { %v1081_v18 = vmul.f32 %v2800_v43, %v1028_v40  ;;  %v1082_v30 = vmul.f32 %v2800_v43, %v1029_v51  ;;  %v1083_v25 = vmul.f32 %v2800_v43, %v1030_v4  ;;  %v1084_v34 = vmul.f32 %v2800_v43, %v1031_v48  ;;  %v2801_v48 = vld [vmem:[#allocation22_spill] sm:$0xff] }
 0x1ca   :  { %v1085_v31 = vmul.f32 %v2800_v43, %v1032_v6  ;;  %v1086_v35 = vmul.f32 %v2800_v43, %v1033_v27  ;;  %v1087_v46 = vmul.f32 %v2800_v43, %v1034_v15  ;;  %v1088_v50 = vmul.f32 %v2800_v43, %v1035_v49 }
 0x1cb   :  { %v1089_v1 = vmul.f32 %v2800_v43, %v1036_v37  ;;  %v1090_v9 = vmul.f32 %v2800_v43, %v1037_v26  ;;  %v1091_v23 = vmul.f32 %v2800_v43, %v1038_v61  ;;  %v1092_v40 = vmul.f32 %v2800_v43, %v1039_v12 }
 0x1cc   :  { %v1093_v51 = vmul.f32 %v2800_v43, %v1040_v59  ;;  %v1094_v4 = vmul.f32 %v2800_v43, %v1041_v19  ;;  %v1099_v6 = vadd.f32 %v2801_v48, %v1046_v28  ;;  %v2336_v27 = vadd.f32 %v2801_v48, %v1047_v3 }
 0x1cd   :  { %v2339_v15 = vadd.f32 %v2801_v48, %v1048_v54  ;;  %v2342_v49 = vadd.f32 %v2801_v48, %v1049_v16  ;;  %v2345_v37 = vadd.f32 %v2801_v48, %v1050_v14  ;;  %v2348_v26 = vadd.f32 %v2801_v48, %v1051_v38 }
 0x1ce   :  { %v2351_v61 = vadd.f32 %v2801_v48, %v1052_v36  ;;  %v2354_v12 = vadd.f32 %v2801_v48, %v1053_v47  ;;  %v2357_v2 = vadd.f32 %v2801_v48, %v1054_v58  ;;  %v2360_v59 = vadd.f32 %v2801_v48, %v1055_v39 }
 0x1cf   :  { %v2363_v57 = vadd.f32 %v2801_v48, %v1056_v13  ;;  %v2366_v42 = vadd.f32 %v2801_v48, %v1057_v11  ;;  %v2369_v19 = vadd.f32 %v2801_v48, %v1058_v7  ;;  %v2372_v43 = vadd.f32 %v2801_v48, %v1059_v52 }
 0x1d0   :  { %v2375_v28 = vadd.f32 %v2801_v48, %v1060_v0  ;;  %v2378_v3 = vadd.f32 %v2801_v48, %v1061_v45  ;;  %v2381_v54 = vadd.f32 %v2801_v48, %v1062_v5  ;;  %v2384_v16 = vadd.f32 %v2801_v48, %v1063_v55 }
 0x1d1   :  { %v2387_v14 = vadd.f32 %v2801_v48, %v1064_v32  ;;  %v2390_v38 = vadd.f32 %v2801_v48, %v1065_v53  ;;  %v2393_v36 = vadd.f32 %v2801_v48, %v1066_v41  ;;  %v2396_v47 = vadd.f32 %v2801_v48, %v1067_v56 }
 0x1d2   :  { %v2399_v58 = vadd.f32 %v2801_v48, %v1068_v21  ;;  %v2402_v39 = vadd.f32 %v2801_v48, %v1069_v20  ;;  %v2405_v13 = vadd.f32 %v2801_v48, %v1070_v33  ;;  %v2408_v11 = vadd.f32 %v2801_v48, %v1071_v24 }
 0x1d3   :  { %v2411_v7 = vadd.f32 %v2801_v48, %v1072_v29  ;;  %v2414_v52 = vadd.f32 %v2801_v48, %v1073_v44  ;;  %v2417_v0 = vadd.f32 %v2801_v48, %v1074_v10  ;;  %v2420_v45 = vadd.f32 %v2801_v48, %v1075_v8 }
 0x1d4   :  { %v2423_v5 = vadd.f32 %v2801_v48, %v1076_v22  ;;  %v2426_v55 = vadd.f32 %v2801_v48, %v1077_v63  ;;  %v2429_v32 = vadd.f32 %v2801_v48, %v1078_v60  ;;  %v2432_v53 = vadd.f32 %v2801_v48, %v1079_v62 }
 0x1d5   :  { %v2435_v41 = vadd.f32 %v2801_v48, %v1080_v17  ;;  %v2438_v56 = vadd.f32 %v2801_v48, %v1081_v18  ;;  %v2441_v21 = vadd.f32 %v2801_v48, %v1082_v30  ;;  %v2444_v20 = vadd.f32 %v2801_v48, %v1083_v25 }
 0x1d6   :  { %v2447_v33 = vadd.f32 %v2801_v48, %v1084_v34  ;;  %v2450_v24 = vadd.f32 %v2801_v48, %v1085_v31  ;;  %v2453_v29 = vadd.f32 %v2801_v48, %v1086_v35  ;;  %v2456_v44 = vadd.f32 %v2801_v48, %v1087_v46 }
 0x1d7   :  { %v2459_v10 = vadd.f32 %v2801_v48, %v1088_v50  ;;  %v2462_v8 = vadd.f32 %v2801_v48, %v1089_v1  ;;  %v2465_v22 = vadd.f32 %v2801_v48, %v1090_v9  ;;  %v2468_v63 = vadd.f32 %v2801_v48, %v1091_v23 }
 0x1d8   :  { %v2471_v60 = vadd.f32 %v2801_v48, %v1092_v40  ;;  %v2474_v62 = vadd.f32 %v2801_v48, %v1093_v51  ;;  %v2477_v17 = vadd.f32 %v2801_v48, %v1094_v4  ;;  %v1148_v18 = vmax.f32 %v1099_v6, 0.0 }
 0x1d9   :  { %v1149_v30 = vmax.f32 %v2336_v27, 0.0  ;;  %v1150_v25 = vmax.f32 %v2339_v15, 0.0  ;;  %v1151_v34 = vmax.f32 %v2342_v49, 0.0  ;;  %v1152_v31 = vmax.f32 %v2345_v37, 0.0 }
 0x1da   :  { %v1153_v35 = vmax.f32 %v2348_v26, 0.0  ;;  %v1154_v46 = vmax.f32 %v2351_v61, 0.0  ;;  %v1155_v50 = vmax.f32 %v2354_v12, 0.0  ;;  %v1156_v1 = vmax.f32 %v2357_v2, 0.0  ;;  %1197 = vst.msk [vmem:[%s2726_s3] sm:$0xff] %vm682_vm3, %v1148_v18 }
 0x1db   :  { %v1157_v9 = vmax.f32 %v2360_v59, 0.0  ;;  %v1158_v23 = vmax.f32 %v2363_v57, 0.0  ;;  %v1159_v40 = vmax.f32 %v2366_v42, 0.0  ;;  %v1160_v51 = vmax.f32 %v2369_v19, 0.0  ;;  %1198 = vst.msk [vmem:[%s2726_s3 + $0x8] sm:$0xff] %vm682_vm3, %v1149_v30  ;;  %1199 = vst.msk [vmem:[%s2726_s3 + $0x10] sm:$0xff] %vm682_vm3, %v1150_v25 }
 0x1dc   :  { %1200 = vst.msk [vmem:[%s2726_s3 + $0x18] sm:$0xff] %vm682_vm3, %v1151_v34  ;;  %1201 = vst.msk [vmem:[%s2726_s3 + $0x20] sm:$0xff] %vm682_vm3, %v1152_v31  ;;  %v1161_v4 = vmax.f32 %v2372_v43, 0.0  ;;  %v1162_v48 = vmax.f32 %v2375_v28, 0.0  ;;  %v1163_v6 = vmax.f32 %v2378_v3, 0.0  ;;  %v1164_v27 = vmax.f32 %v2381_v54, 0.0 }
 0x1dd   :  { %1202 = vst.msk [vmem:[%s2726_s3 + $0x28] sm:$0xff] %vm682_vm3, %v1153_v35  ;;  %1203 = vst.msk [vmem:[%s2726_s3 + $0x30] sm:$0xff] %vm682_vm3, %v1154_v46  ;;  %v1165_v15 = vmax.f32 %v2384_v16, 0.0  ;;  %v1166_v49 = vmax.f32 %v2387_v14, 0.0  ;;  %v1167_v37 = vmax.f32 %v2390_v38, 0.0  ;;  %v1168_v26 = vmax.f32 %v2393_v36, 0.0 }
 0x1de   :  { %1204 = vst.msk [vmem:[%s2726_s3 + $0x38] sm:$0xff] %vm682_vm3, %v1155_v50  ;;  %1205 = vst.msk [vmem:[%s2726_s3 + $0x40] sm:$0xff] %vm682_vm3, %v1156_v1  ;;  %v1169_v61 = vmax.f32 %v2396_v47, 0.0  ;;  %v1170_v12 = vmax.f32 %v2399_v58, 0.0  ;;  %v1171_v2 = vmax.f32 %v2402_v39, 0.0  ;;  %v1172_v59 = vmax.f32 %v2405_v13, 0.0 }
 0x1df   :  { %1206 = vst.msk [vmem:[%s2726_s3 + $0x48] sm:$0xff] %vm682_vm3, %v1157_v9  ;;  %1207 = vst.msk [vmem:[%s2726_s3 + $0x50] sm:$0xff] %vm682_vm3, %v1158_v23  ;;  %v1173_v57 = vmax.f32 %v2408_v11, 0.0  ;;  %v1174_v42 = vmax.f32 %v2411_v7, 0.0  ;;  %v1175_v19 = vmax.f32 %v2414_v52, 0.0  ;;  %v1176_v43 = vmax.f32 %v2417_v0, 0.0 }
 0x1e0   :  { %1208 = vst.msk [vmem:[%s2726_s3 + $0x58] sm:$0xff] %vm682_vm3, %v1159_v40  ;;  %1209 = vst.msk [vmem:[%s2726_s3 + $0x60] sm:$0xff] %vm682_vm3, %v1160_v51  ;;  %v1177_v28 = vmax.f32 %v2420_v45, 0.0  ;;  %v1178_v3 = vmax.f32 %v2423_v5, 0.0  ;;  %v1179_v54 = vmax.f32 %v2426_v55, 0.0  ;;  %v1180_v16 = vmax.f32 %v2429_v32, 0.0 }
 0x1e1   :  { %1210 = vst.msk [vmem:[%s2726_s3 + $0x68] sm:$0xff] %vm682_vm3, %v1161_v4  ;;  %1211 = vst.msk [vmem:[%s2726_s3 + $0x70] sm:$0xff] %vm682_vm3, %v1162_v48  ;;  %v1181_v14 = vmax.f32 %v2432_v53, 0.0  ;;  %v1182_v38 = vmax.f32 %v2435_v41, 0.0  ;;  %v1183_v36 = vmax.f32 %v2438_v56, 0.0  ;;  %v1184_v47 = vmax.f32 %v2441_v21, 0.0 }
 0x1e2   :  { %1212 = vst.msk [vmem:[%s2726_s3 + $0x78] sm:$0xff] %vm682_vm3, %v1163_v6  ;;  %1213 = vst.msk [vmem:[%s2726_s3 + $0x80] sm:$0xff] %vm682_vm3, %v1164_v27  ;;  %v1185_v58 = vmax.f32 %v2444_v20, 0.0  ;;  %v1186_v39 = vmax.f32 %v2447_v33, 0.0  ;;  %v1187_v13 = vmax.f32 %v2450_v24, 0.0  ;;  %v1188_v11 = vmax.f32 %v2453_v29, 0.0 }
 0x1e3   :  { %1214 = vst.msk [vmem:[%s2726_s3 + $0x88] sm:$0xff] %vm682_vm3, %v1165_v15  ;;  %1215 = vst.msk [vmem:[%s2726_s3 + $0x90] sm:$0xff] %vm682_vm3, %v1166_v49  ;;  %v1189_v7 = vmax.f32 %v2456_v44, 0.0  ;;  %v1190_v52 = vmax.f32 %v2459_v10, 0.0  ;;  %v1191_v0 = vmax.f32 %v2462_v8, 0.0  ;;  %v1192_v45 = vmax.f32 %v2465_v22, 0.0 }
 0x1e4   :  { %1216 = vst.msk [vmem:[%s2726_s3 + $0x98] sm:$0xff] %vm682_vm3, %v1167_v37  ;;  %1217 = vst.msk [vmem:[%s2726_s3 + $0xa0] sm:$0xff] %vm682_vm3, %v1168_v26  ;;  %v1193_v5 = vmax.f32 %v2468_v63, 0.0  ;;  %v1194_v55 = vmax.f32 %v2471_v60, 0.0  ;;  %v1195_v32 = vmax.f32 %v2474_v62, 0.0  ;;  %v1196_v53 = vmax.f32 %v2477_v17, 0.0 }
 0x1e5   :  { %1218 = vst.msk [vmem:[%s2726_s3 + $0xa8] sm:$0xff] %vm682_vm3, %v1169_v61  ;;  %1219 = vst.msk [vmem:[%s2726_s3 + $0xb0] sm:$0xff] %vm682_vm3, %v1170_v12 }
 0x1e6   :  { %1220 = vst.msk [vmem:[%s2726_s3 + $0xb8] sm:$0xff] %vm682_vm3, %v1171_v2  ;;  %1221 = vst.msk [vmem:[%s2726_s3 + $0xc0] sm:$0xff] %vm682_vm3, %v1172_v59 }
 0x1e7   :  { %1222 = vst.msk [vmem:[%s2726_s3 + $0xc8] sm:$0xff] %vm682_vm3, %v1173_v57  ;;  %1223 = vst.msk [vmem:[%s2726_s3 + $0xd0] sm:$0xff] %vm682_vm3, %v1174_v42 }
 0x1e8   :  { %1224 = vst.msk [vmem:[%s2726_s3 + $0xd8] sm:$0xff] %vm682_vm3, %v1175_v19  ;;  %1225 = vst.msk [vmem:[%s2726_s3 + $0xe0] sm:$0xff] %vm682_vm3, %v1176_v43 }
 0x1e9   :  { %1226 = vst.msk [vmem:[%s2726_s3 + $0xe8] sm:$0xff] %vm682_vm3, %v1177_v28  ;;  %1227 = vst.msk [vmem:[%s2726_s3 + $0xf0] sm:$0xff] %vm682_vm3, %v1178_v3 }
 0x1ea   :  { %1228 = vst.msk [vmem:[%s2726_s3 + $0xf8] sm:$0xff] %vm682_vm3, %v1179_v54  ;;  %1229 = vst.msk [vmem:[%s2726_s3 + $0x100] sm:$0xff] %vm682_vm3, %v1180_v16 }
 0x1eb   :  { %1230 = vst.msk [vmem:[%s2726_s3 + $0x108] sm:$0xff] %vm682_vm3, %v1181_v14  ;;  %1231 = vst.msk [vmem:[%s2726_s3 + $0x110] sm:$0xff] %vm682_vm3, %v1182_v38 }
 0x1ec   :  { %1232 = vst.msk [vmem:[%s2726_s3 + $0x118] sm:$0xff] %vm682_vm3, %v1183_v36  ;;  %1233 = vst.msk [vmem:[%s2726_s3 + $0x120] sm:$0xff] %vm682_vm3, %v1184_v47 }
 0x1ed   :  { %1234 = vst.msk [vmem:[%s2726_s3 + $0x128] sm:$0xff] %vm682_vm3, %v1185_v58  ;;  %1235 = vst.msk [vmem:[%s2726_s3 + $0x130] sm:$0xff] %vm682_vm3, %v1186_v39 }
 0x1ee   :  { %1236 = vst.msk [vmem:[%s2726_s3 + $0x138] sm:$0xff] %vm682_vm3, %v1187_v13  ;;  %1237 = vst.msk [vmem:[%s2726_s3 + $0x140] sm:$0xff] %vm682_vm3, %v1188_v11 }
 0x1ef   :  { %1238 = vst.msk [vmem:[%s2726_s3 + $0x148] sm:$0xff] %vm682_vm3, %v1189_v7  ;;  %1239 = vst.msk [vmem:[%s2726_s3 + $0x150] sm:$0xff] %vm682_vm3, %v1190_v52 }
 0x1f0   :  { %1240 = vst.msk [vmem:[%s2726_s3 + $0x158] sm:$0xff] %vm682_vm3, %v1191_v0  ;;  %1241 = vst.msk [vmem:[%s2726_s3 + $0x160] sm:$0xff] %vm682_vm3, %v1192_v45 }
 0x1f1   :  { %1242 = vst.msk [vmem:[%s2726_s3 + $0x168] sm:$0xff] %vm682_vm3, %v1193_v5  ;;  %1243 = vst.msk [vmem:[%s2726_s3 + $0x170] sm:$0xff] %vm682_vm3, %v1194_v55 }
 0x1f2   :  { %1244 = vst.msk [vmem:[%s2726_s3 + $0x178] sm:$0xff] %vm682_vm3, %v1195_v32  ;;  %1245 = vst.msk [vmem:[%s2726_s3 + $0x180] sm:$0xff] %vm682_vm3, %v1196_v53 }

// kernel: inception_net.16
= control target key start
LH: loop header
LB: loop body
LE: loop exit
PB: predicated region body
PF: predicated region fallthrough
CT: control target
= control target key end

     0   :  { %v1284_v34 = vmov 0.0   ;;  %vm1285_vm0 = vmmov 0   ;;  %vm514_vm1 = vcmask 523264   ;;  %vm811_vm2 = vcmask 1041408   ;;  %s1726_s1 = inlined_call_operand.vmem [shape: bf16[576,128], index: 1, kind: input, shape index: {}]   ;;  %s1727_s0 = inlined_call_operand.vmem [shape: bf16[98,576], index: 0, kind: input, shape index: {}]   ;;  %s1728_s2 = inlined_call_operand.vmem [shape: f32[3,128], index: 2, kind: input, shape index: {}]   ;;  %s1729_s3 = inlined_call_operand.vmem [shape: f32[98,128], index: 3, kind: output, shape index: {}]  }
   0x1   :  { %v1199_v0 = vld [vmem:[%s1726_s1 + $0x40] sm:$0xff]   ;;  %v1203_v4 = vld [vmem:[%s1726_s1 + $0x48] sm:$0xff]   ;;  %v1207_v8 = vld [vmem:[%s1726_s1 + $0x50] sm:$0xff]  }
   0x2   :  { %v1200_v1 = vld [vmem:[%s1726_s1 + $0xc0] sm:$0xff]   ;;  %1026 = vmatprep.subr.bf16.mxu0 %v1199_v0  ;;  %v1204_v5 = vld [vmem:[%s1726_s1 + $0xc8] sm:$0xff]   ;;  %v1208_v9 = vld [vmem:[%s1726_s1 + $0xd0] sm:$0xff]  }
   0x3   :  { %v1201_v2 = vld [vmem:[%s1726_s1] sm:$0xff]   ;;  %1084 = vmatprep.subr.bf16.mxu1 %v1200_v1  ;;  %v1205_v6 = vld [vmem:[%s1726_s1 + $0x8] sm:$0xff]   ;;  %v1209_v10 = vld [vmem:[%s1726_s1 + $0x10] sm:$0xff]  }
   0x4   :  { %v1202_v3 = vld [vmem:[%s1726_s1 + $0x80] sm:$0xff]   ;;  %1027 = vmatpush3.bf16.msra.mxu0 %v1201_v2  ;;  %v1206_v7 = vld [vmem:[%s1726_s1 + $0x88] sm:$0xff]   ;;  %v1210_v11 = vld [vmem:[%s1726_s1 + $0x90] sm:$0xff]  }
   0x5   :  { %1085 = vmatpush3.bf16.msra.mxu1 %v1202_v3  ;;  %1028 = vmatprep.subr.bf16.mxu0 %v1203_v4  ;;  %v1211_v12 = vld [vmem:[%s1726_s1 + $0x58] sm:$0xff]   ;;  %v1215_v16 = vld [vmem:[%s1726_s1 + $0x60] sm:$0xff]   ;;  %v1219_v20 = vld [vmem:[%s1726_s1 + $0x68] sm:$0xff]  }
   0x6   :  { %1086 = vmatprep.subr.bf16.mxu1 %v1204_v5  ;;  %v1212_v13 = vld [vmem:[%s1726_s1 + $0xd8] sm:$0xff]   ;;  %v1216_v17 = vld [vmem:[%s1726_s1 + $0xe0] sm:$0xff]   ;;  %v1220_v21 = vld [vmem:[%s1726_s1 + $0xe8] sm:$0xff]  }
   0x7   :  { %v1213_v14 = vld [vmem:[%s1726_s1 + $0x18] sm:$0xff]   ;;  %v1217_v18 = vld [vmem:[%s1726_s1 + $0x20] sm:$0xff]   ;;  %v1221_v22 = vld [vmem:[%s1726_s1 + $0x28] sm:$0xff]  }
   0x8   :  { %1029 = vmatpush3.bf16.msra.mxu0 %v1205_v6  ;;  %v1214_v15 = vld [vmem:[%s1726_s1 + $0x98] sm:$0xff]   ;;  %v1218_v19 = vld [vmem:[%s1726_s1 + $0xa0] sm:$0xff]   ;;  %v1222_v23 = vld [vmem:[%s1726_s1 + $0xa8] sm:$0xff]  }
   0x9   :  { %1087 = vmatpush3.bf16.msra.mxu1 %v1206_v7  ;;  %1030 = vmatprep.subr.bf16.mxu0 %v1207_v8  ;;  %v1223_v24 = vld [vmem:[%s1726_s1 + $0x70] sm:$0xff]   ;;  %v1227_v28 = vld [vmem:[%s1726_s1 + $0x78] sm:$0xff]   ;;  %v1236_v36 = vld [vmem:[%s1727_s0 + $0xc] ss:$20 sps:$4 sm:$0xff]  }
   0xa   :  { %1088 = vmatprep.subr.bf16.mxu1 %v1208_v9  ;;  %v1224_v25 = vld [vmem:[%s1726_s1 + $0xf0] sm:$0xff]   ;;  %v1228_v29 = vld [vmem:[%s1726_s1 + $0xf8] sm:$0xff]   ;;  %v1237_v37 = vld [vmem:[%s1726_s1 + $0x100] sm:$0xff]   ;;  %656 = vmatprep.mubr.bf16.mxu1 %v1236_v36 }
   0xb   :  { %v1225_v26 = vld [vmem:[%s1726_s1 + $0x30] sm:$0xff]   ;;  %v1229_v30 = vld [vmem:[%s1726_s1 + $0x38] sm:$0xff]   ;;  %v1238_v38 = vld [vmem:[%s1727_s0 + $0x2c] ss:$20 sps:$4 sm:$0xff]  }
   0xc   :  { %1031 = vmatpush3.bf16.msra.mxu0 %v1209_v10  ;;  %v1226_v27 = vld [vmem:[%s1726_s1 + $0xb0] sm:$0xff]   ;;  %v1230_v31 = vld [vmem:[%s1726_s1 + $0xb8] sm:$0xff]   ;;  %v1248_v43 = vld [vmem:[%s1726_s1 + $0x108] sm:$0xff]   ;;  %v127_v10 = vlaneseq }
   0xd   :  { %1089 = vmatpush3.bf16.msra.mxu1 %v1210_v11  ;;  %1032 = vmatprep.subr.bf16.mxu0 %v1211_v12  ;;  %v1231_v32 = vld [vmem:[%s1727_s0] ss:$20 sps:$4 sm:$0xff]   ;;  %v1233_v33 = vld [vmem:[%s1727_s0 + $0x4] ss:$20 sps:$4 sm:$0xff]   ;;  %v1234_v35 = vld [vmem:[%s1727_s0 + $0x8] ss:$20 sps:$4 sm:$0xff]  }
   0xe   :  { %1090 = vmatprep.subr.bf16.mxu1 %v1212_v13  ;;  %568 = vmatprep.mubr.bf16.mxu0 %v1233_v33  ;;  %v1240_v39 = vld [vmem:[%s1727_s0 + $0x34] ss:$20 sps:$4 sm:$0xff]   ;;  %v1243_v41 = vld [vmem:[%s1727_s0 + $0x30] ss:$20 sps:$4 sm:$0xff]   ;;  %v1250_v47 = vld [vmem:[%s1727_s0 + $0x58] ss:$20 sps:$4 sm:$0xff]  }
   0xf   :  { %v1242_v40 = vld [vmem:[%s1727_s0 + $0x28] ss:$20 sps:$4 sm:$0xff]   ;;  %v1257_v45 = vld [vmem:[%s1726_s1 + $0x110] sm:$0xff]   ;;  %v1253_v49 = vld [vmem:[%s1727_s0 + $0x84] ss:$20 sps:$4 sm:$0xff]   ;;  %v1542_v11 = vshrl.u32 %v127_v10, 7 }
  0x10   :  { %1033 = vmatpush3.bf16.msra.mxu0 %v1213_v14  ;;  %v1244_v42 = vld [vmem:[%s1727_s0 + $0x54] ss:$20 sps:$4 sm:$0xff]   ;;  %v1246_v44 = vld [vmem:[%s1727_s0 + $0x5c] ss:$20 sps:$4 sm:$0xff]   ;;  %v1255_v51 = vld [vmem:[%s1727_s0 + $0x78] ss:$20 sps:$4 sm:$0xff]  }
  0x11   :  { %1091 = vmatpush3.bf16.msra.mxu1 %v1214_v15  ;;  %1034 = vmatprep.subr.bf16.mxu0 %v1215_v16  ;;  %v1249_v46 = vld [vmem:[%s1727_s0 + $0x50] ss:$20 sps:$4 sm:$0xff]   ;;  %v1270_v50 = vld [vmem:[%s1726_s1 + $0x118] sm:$0xff]   ;;  %v1256_v52 = vld [vmem:[%s1727_s0 + $0x80] ss:$20 sps:$4 sm:$0xff]   ;;  %v903_v12 = vsub.s32 2, %v1542_v11 }
  0x12   :  { %1092 = vmatprep.subr.bf16.mxu1 %v1216_v17  ;;  %v1251_v48 = vld [vmem:[%s1727_s0 + $0x7c] ss:$20 sps:$4 sm:$0xff]   ;;  %v1258_v53 = vld [vmem:[%s1727_s0 + $0xa4] ss:$20 sps:$4 sm:$0xff]   ;;  %v1260_v54 = vld [vmem:[%s1727_s0 + $0xac] ss:$20 sps:$4 sm:$0xff]  }
  0x13   :  { %v1262_v55 = vld [vmem:[%s1727_s0 + $0xa0] ss:$20 sps:$4 sm:$0xff]   ;;  %v1263_v56 = vld [vmem:[%s1727_s0 + $0xa8] ss:$20 sps:$4 sm:$0xff]   ;;  %v1269_v62 = vld [vmem:[%s1727_s0 + $0xd0] ss:$20 sps:$4 sm:$0xff]  }
  0x14   :  { %1035 = vmatpush3.bf16.msra.mxu0 %v1217_v18  ;;  %v1264_v57 = vld [vmem:[%s1727_s0 + $0xcc] ss:$20 sps:$4 sm:$0xff]   ;;  %v1266_v58 = vld [vmem:[%s1727_s0 + $0xd4] ss:$20 sps:$4 sm:$0xff]   ;;  %v52_v60 = vld [vmem:[%s1727_s0 + $0xf8] sm:$0x11] }
  0x15   :  { %1093 = vmatpush3.bf16.msra.mxu1 %v1218_v19  ;;  %1036 = vmatprep.subr.bf16.mxu0 %v1219_v20  ;;  %v51_v59 = vld [vmem:[%s1727_s0 + $0xf0] sm:$0x11]  ;;  %v1268_v61 = vld [vmem:[%s1727_s0 + $0xc8] ss:$20 sps:$4 sm:$0xff]   ;;  %v981_v0 = vcombine.high %v52_v60, %v52_v60  ;;  %v980_v2 = vcombine.low %v52_v60, %v52_v60  ;;  %v1277_v5 = vld [vmem:[%s1727_s0 + $0x38] ss:$20 sps:$4 sm:$0xff]  }
  0x16   :  { %1094 = vmatprep.subr.bf16.mxu1 %v1220_v21  ;;  %v979_v63 = vcombine.high %v51_v59, %v51_v59  ;;  %v978_v1 = vcombine.low %v51_v59, %v51_v59  ;;  %v1275_v3 = vld [vmem:[%s1727_s0 + $0x10] ss:$20 sps:$4 sm:$0xff]   ;;  %v1278_v6 = vld [vmem:[%s1727_s0 + $0xd8] ss:$20 sps:$4 sm:$0xff]   ;;  %v1279_v7 = vld [vmem:[%s1727_s0 + $0x60] ss:$20 sps:$4 sm:$0xff]  }
  0x17   :  { %v1276_v4 = vld [vmem:[%s1727_s0 + $0xb0] ss:$20 sps:$4 sm:$0xff]   ;;  %v1280_v8 = vld [vmem:[%s1727_s0 + $0x100] ss:$0 sps:$4 sm:$0x11]   ;;  %v129_v15 = vsub.s32 0, %v1542_v11 }
  0x18   :  { %1037 = vmatpush3.bf16.msra.mxu0 %v1221_v22  ;;  %v1281_v9 = vld [vmem:[%s1727_s0 + $0x88] ss:$20 sps:$4 sm:$0xff]   ;;  %v1548_v13 = vld [vmem:[%s1728_s2] sm:$0x7] }
  0x19   :  { %1095 = vmatpush3.bf16.msra.mxu1 %v1222_v23  ;;  %1038 = vmatprep.subr.bf16.mxu0 %v1223_v24  ;;  %v1551_v14 = vrot.slane %v1548_v13, %v903_v12  ;;  %v1555_v17 = vrot.slane %v1548_v13, %v129_v15 }
  0x1a   :  { %1096 = vmatprep.subr.bf16.mxu1 %v1224_v25 }
  0x1c   :  { %1039 = vmatpush3.bf16.msra.mxu0 %v1225_v26 }
  0x1d   :  { %1097 = vmatpush3.bf16.msra.mxu1 %v1226_v27  ;;  %1040 = vmatprep.subr.bf16.mxu0 %v1227_v28 }
  0x1e   :  { %1098 = vmatprep.subr.bf16.mxu1 %v1228_v29 }
  0x20   :  { %1041 = vmatpush3.bf16.msra.mxu0 %v1229_v30 }
  0x21   :  { %1099 = vmatpush3.bf16.msra.mxu1 %v1230_v31  ;;  %1153 = vmatprep.subr.bf16.mxu0 %v1284_v34 }
  0x22   :  { %1189 = vmatprep.subr.bf16.mxu1 %v1284_v34 }
  0x23   :  { %569 = vmatmul.mubr.bf16.vlgmr.msra.gmra.mrb[0].mxu0 %v1231_v32 }
  0x24   :  { %657 = vmatmul.mubr.bf16.vlgmr.msra.gmra.mrb[0].mxu1 %v1234_v35  ;;  %1154 = vmatpush3.bf16.msra.mxu0 %v1237_v37 }
  0x25   :  { %576 = vmatprep.mubr.bf16.mxu0 %v1238_v38  ;;  %1155 = vmatprep.subr.bf16.mxu0 %v1284_v34 }
  0x26   :  { %664 = vmatprep.mubr.bf16.mxu1 %v1240_v39  ;;  %1193 = vmatpush3.bf16.msra.mxu1 %v1237_v37 }
  0x27   :  { %1190 = vmatprep.subr.bf16.mxu1 %v1284_v34 }
  0x28   :  { %1156 = vmatpush3.bf16.msra.mxu0 %v1248_v43 }
  0x29   :  { %1157 = vmatprep.subr.bf16.mxu0 %v1284_v34 }
  0x2a   :  { %1194 = vmatpush3.bf16.msra.mxu1 %v1248_v43 }
  0x2b   :  { %577 = vmatmul.mubr.bf16.gmra.mrb[4].mxu0 %v1242_v40  ;;  %1191 = vmatprep.subr.bf16.mxu1 %v1284_v34 }
  0x2c   :  { %665 = vmatmul.mubr.bf16.gmra.mrb[4].mxu1 %v1243_v41  ;;  %584 = vmatprep.mubr.bf16.mxu0 %v1244_v42 }
  0x2d   :  { %672 = vmatprep.mubr.bf16.mxu1 %v1246_v44  ;;  %1158 = vmatpush3.bf16.msra.mxu0 %v1257_v45 }
  0x2e   :  { %1195 = vmatpush3.bf16.msra.mxu1 %v1257_v45  ;;  %1159 = vmatprep.subr.bf16.mxu0 %v1284_v34 }
  0x2f   :  { %1192 = vmatprep.subr.bf16.mxu1 %v1284_v34 }
  0x31   :  { %1160 = vmatpush3.bf16.msra.mxu0 %v1270_v50 }
  0x32   :  { %1196 = vmatpush3.bf16.msra.mxu1 %v1270_v50 }
  0x33   :  { %585 = vmatmul.mubr.bf16.gmra.mrb[8].mxu0 %v1249_v46 }
  0x34   :  { %673 = vmatmul.mubr.bf16.gmra.mrb[8].mxu1 %v1250_v47  ;;  %592 = vmatprep.mubr.bf16.mxu0 %v1251_v48 }
  0x35   :  { %680 = vmatprep.mubr.bf16.mxu1 %v1253_v49 }
  0x3b   :  { %593 = vmatmul.mubr.bf16.gmra.mrb[12].mxu0 %v1255_v51 }
  0x3c   :  { %681 = vmatmul.mubr.bf16.gmra.mrb[12].mxu1 %v1256_v52  ;;  %600 = vmatprep.mubr.bf16.mxu0 %v1258_v53 }
  0x3d   :  { %688 = vmatprep.mubr.bf16.mxu1 %v1260_v54 }
  0x43   :  { %601 = vmatmul.mubr.bf16.gmra.mrb[16].mxu0 %v1262_v55 }
  0x44   :  { %689 = vmatmul.mubr.bf16.gmra.mrb[16].mxu1 %v1263_v56  ;;  %608 = vmatprep.mubr.bf16.mxu0 %v1264_v57 }
  0x45   :  { %696 = vmatprep.mubr.bf16.mxu1 %v1266_v58 }
  0x4b   :  { %609 = vmatmul.mubr.bf16.gmra.mrb[20].mxu0 %v1268_v61 }
  0x4c   :  { %697 = vmatmul.mubr.bf16.gmra.mrb[20].mxu1 %v1269_v62  ;;  %616 = vmatprep.mubr.bf16.mxu0 %v979_v63 }
  0x4d   :  { %704 = vmatprep.mubr.bf16.mxu1 %v981_v0 }
  0x53   :  { %617 = vmatmul.mubr.bf16.gmra.mrb[24].mxu0 %v978_v1 }
  0x54   :  { %705 = vmatmul.mubr.bf16.gmra.mrb[24].mxu1 %v980_v2  ;;  %1161 = vmatprep.mubr.msk.bf16.mxu0 %vm1285_vm0, %v1284_v34 }
  0x55   :  { %1177 = vmatprep.mubr.msk.bf16.mxu1 %vm1285_vm0, %v1284_v34 }
  0x5b   :  { %1162 = vmatmul.mubr.msk.bf16.vlgmr.msra.gmra.mrb[28].mxu0 %vm514_vm1, %v1275_v3 }
  0x5c   :  { %1178 = vmatmul.mubr.msk.bf16.vlgmr.msra.gmra.mrb[28].mxu1 %vm514_vm1, %v1276_v4  ;;  %1165 = vmatprep.mubr.msk.bf16.mxu0 %vm1285_vm0, %v1284_v34 }
  0x5d   :  { %1181 = vmatprep.mubr.msk.bf16.mxu1 %vm1285_vm0, %v1284_v34 }
  0x63   :  { %1166 = vmatmul.mubr.msk.bf16.gmra.mrb[32].mxu0 %vm514_vm1, %v1277_v5 }
  0x64   :  { %1182 = vmatmul.mubr.msk.bf16.gmra.mrb[32].mxu1 %vm514_vm1, %v1278_v6  ;;  %1169 = vmatprep.mubr.msk.bf16.mxu0 %vm1285_vm0, %v1284_v34 }
  0x65   :  { %1185 = vmatprep.mubr.msk.bf16.mxu1 %vm1285_vm0, %v1284_v34 }
  0x6b   :  { %1170 = vmatmul.mubr.msk.bf16.gmra.mrb[36].mxu0 %vm514_vm1, %v1279_v7 }
  0x6c   :  { %1186 = vmatmul.mubr.msk.bf16.gmra.mrb[36].mxu1 %vm514_vm1, %v1280_v8  ;;  %1173 = vmatprep.mubr.msk.bf16.mxu0 %vm1285_vm0, %v1284_v34 }
  0x73   :  { %1174 = vmatmul.mubr.msk.bf16.gmra.mrb[40].mxu0 %vm514_vm1, %v1281_v9 }
  0xf6   :  { %v1042_v16 = vpop.f32.mrb[0].mxu0 }
  0xf7   :  { %v1043_v18 = vpop.f32.mrb[1].mxu0  ;;  %v1100_v19 = vpop.f32.mrb[0].mxu1 }
  0xf8   :  { %v1044_v20 = vadd.f32 %v1043_v18, %v1042_v16  ;;  %v1045_v21 = vpop.f32.mrb[2].mxu0  ;;  %v1101_v22 = vpop.f32.mrb[1].mxu1 }
  0xf9   :  { %v1046_v23 = vpop.f32.mrb[3].mxu0  ;;  %v1102_v24 = vadd.f32 %v1101_v22, %v1100_v19  ;;  %v1103_v25 = vpop.f32.mrb[2].mxu1 }
  0xfa   :  { %v571_v26 = vadd.f32 %v1044_v20, %v1555_v17  ;;  %v1047_v27 = vadd.f32 %v1046_v23, %v1045_v21  ;;  %v1104_v28 = vpop.f32.mrb[3].mxu1 }
  0xfb   :  { %v1105_v29 = vadd.f32 %v1104_v28, %v1103_v25 }
  0xfc   :  { %v574_v30 = vadd.f32 %v1047_v27, %v1555_v17  ;;  %v1559_v31 = vadd.f32 %v1102_v24, %v571_v26 }
  0xfe   :  { %v1048_v32 = vpop.f32.mrb[4].mxu0  ;;  %v1561_v33 = vadd.f32 %v1105_v29, %v574_v30 }
  0xff   :  { %v1049_v34 = vpop.f32.mrb[5].mxu0  ;;  %v1106_v35 = vpop.f32.mrb[4].mxu1 }
 0x100   :  { %v1050_v36 = vadd.f32 %v1049_v34, %v1048_v32  ;;  %v1051_v37 = vpop.f32.mrb[6].mxu0  ;;  %v1107_v38 = vpop.f32.mrb[5].mxu1 }
 0x101   :  { %v1052_v39 = vpop.f32.mrb[7].mxu0  ;;  %v1108_v40 = vadd.f32 %v1107_v38, %v1106_v35  ;;  %v1109_v41 = vpop.f32.mrb[6].mxu1 }
 0x102   :  { %v579_v42 = vadd.f32 %v1050_v36, %v1555_v17  ;;  %v1053_v43 = vadd.f32 %v1052_v39, %v1051_v37  ;;  %v1110_v44 = vpop.f32.mrb[7].mxu1 }
 0x103   :  { %v1111_v45 = vadd.f32 %v1110_v44, %v1109_v41 }
 0x104   :  { %v582_v46 = vadd.f32 %v1053_v43, %v1555_v17  ;;  %v1565_v47 = vadd.f32 %v1108_v40, %v579_v42 }
 0x106   :  { %v1054_v48 = vpop.f32.mrb[8].mxu0  ;;  %v1567_v49 = vadd.f32 %v1111_v45, %v582_v46 }
 0x107   :  { %v1055_v50 = vpop.f32.mrb[9].mxu0  ;;  %v1112_v51 = vpop.f32.mrb[8].mxu1 }
 0x108   :  { %v1056_v52 = vadd.f32 %v1055_v50, %v1054_v48  ;;  %v1057_v53 = vpop.f32.mrb[10].mxu0  ;;  %v1113_v54 = vpop.f32.mrb[9].mxu1 }
 0x109   :  { %v1058_v55 = vpop.f32.mrb[11].mxu0  ;;  %v1114_v56 = vadd.f32 %v1113_v54, %v1112_v51  ;;  %v1115_v57 = vpop.f32.mrb[10].mxu1 }
 0x10a   :  { %v587_v58 = vadd.f32 %v1056_v52, %v1555_v17  ;;  %v1059_v59 = vadd.f32 %v1058_v55, %v1057_v53  ;;  %v1116_v60 = vpop.f32.mrb[11].mxu1 }
 0x10b   :  { %v1117_v61 = vadd.f32 %v1116_v60, %v1115_v57 }
 0x10c   :  { %v590_v62 = vadd.f32 %v1059_v59, %v1555_v17  ;;  %v1571_v63 = vadd.f32 %v1114_v56, %v587_v58 }
 0x10e   :  { %v1060_v0 = vpop.f32.mrb[12].mxu0  ;;  %v1573_v1 = vadd.f32 %v1117_v61, %v590_v62 }
 0x10f   :  { %v1061_v2 = vpop.f32.mrb[13].mxu0  ;;  %v1118_v3 = vpop.f32.mrb[12].mxu1 }
 0x110   :  { %v1062_v4 = vadd.f32 %v1061_v2, %v1060_v0  ;;  %v1063_v5 = vpop.f32.mrb[14].mxu0  ;;  %v1119_v6 = vpop.f32.mrb[13].mxu1 }
 0x111   :  { %v1064_v7 = vpop.f32.mrb[15].mxu0  ;;  %v1120_v8 = vadd.f32 %v1119_v6, %v1118_v3  ;;  %v1121_v9 = vpop.f32.mrb[14].mxu1 }
 0x112   :  { %v595_v10 = vadd.f32 %v1062_v4, %v1555_v17  ;;  %v1065_v12 = vadd.f32 %v1064_v7, %v1063_v5  ;;  %v1122_v15 = vpop.f32.mrb[15].mxu1 }
 0x113   :  { %v1123_v16 = vadd.f32 %v1122_v15, %v1121_v9 }
 0x114   :  { %v598_v18 = vadd.f32 %v1065_v12, %v1555_v17  ;;  %v1577_v19 = vadd.f32 %v1120_v8, %v595_v10 }
 0x116   :  { %v1066_v20 = vpop.f32.mrb[16].mxu0  ;;  %v1579_v21 = vadd.f32 %v1123_v16, %v598_v18 }
 0x117   :  { %v1067_v22 = vpop.f32.mrb[17].mxu0  ;;  %v1124_v23 = vpop.f32.mrb[16].mxu1 }
 0x118   :  { %v1068_v24 = vadd.f32 %v1067_v22, %v1066_v20  ;;  %v1069_v25 = vpop.f32.mrb[18].mxu0  ;;  %v1125_v26 = vpop.f32.mrb[17].mxu1 }
 0x119   :  { %v1070_v27 = vpop.f32.mrb[19].mxu0  ;;  %v1126_v28 = vadd.f32 %v1125_v26, %v1124_v23  ;;  %v1127_v29 = vpop.f32.mrb[18].mxu1 }
 0x11a   :  { %v603_v30 = vadd.f32 %v1068_v24, %v1555_v17  ;;  %v1071_v32 = vadd.f32 %v1070_v27, %v1069_v25  ;;  %v1128_v34 = vpop.f32.mrb[19].mxu1 }
 0x11b   :  { %v1129_v35 = vadd.f32 %v1128_v34, %v1127_v29 }
 0x11c   :  { %v606_v36 = vadd.f32 %v1071_v32, %v1555_v17  ;;  %v691_v37 = vadd.f32 %v1126_v28, %v603_v30 }
 0x11e   :  { %v1072_v38 = vpop.f32.mrb[20].mxu0  ;;  %v694_v39 = vadd.f32 %v1129_v35, %v606_v36 }
 0x11f   :  { %v1073_v40 = vpop.f32.mrb[21].mxu0  ;;  %v1130_v41 = vpop.f32.mrb[20].mxu1 }
 0x120   :  { %v1074_v42 = vadd.f32 %v1073_v40, %v1072_v38  ;;  %v1075_v43 = vpop.f32.mrb[22].mxu0  ;;  %v1131_v44 = vpop.f32.mrb[21].mxu1 }
 0x121   :  { %v1076_v45 = vpop.f32.mrb[23].mxu0  ;;  %v1132_v46 = vadd.f32 %v1131_v44, %v1130_v41  ;;  %v1133_v48 = vpop.f32.mrb[22].mxu1 }
 0x122   :  { %v611_v50 = vadd.f32 %v1074_v42, %v1555_v17  ;;  %v1077_v51 = vadd.f32 %v1076_v45, %v1075_v43  ;;  %v1134_v52 = vpop.f32.mrb[23].mxu1 }
 0x123   :  { %v1135_v53 = vadd.f32 %v1134_v52, %v1133_v48 }
 0x124   :  { %v614_v54 = vadd.f32 %v1077_v51, %v1555_v17  ;;  %v699_v55 = vadd.f32 %v1132_v46, %v611_v50 }
 0x126   :  { %v1078_v56 = vpop.f32.mrb[24].mxu0  ;;  %v702_v57 = vadd.f32 %v1135_v53, %v614_v54 }
 0x127   :  { %v1079_v58 = vpop.f32.mrb[25].mxu0  ;;  %v1136_v59 = vpop.f32.mrb[24].mxu1 }
 0x128   :  { %v1080_v60 = vadd.f32 %v1079_v58, %v1078_v56  ;;  %v1081_v61 = vpop.f32.mrb[26].mxu0  ;;  %v1137_v62 = vpop.f32.mrb[25].mxu1 }
 0x129   :  { %v1082_v0 = vpop.f32.mrb[27].mxu0  ;;  %v1138_v2 = vadd.f32 %v1137_v62, %v1136_v59  ;;  %v1139_v3 = vpop.f32.mrb[26].mxu1 }
 0x12a   :  { %v619_v4 = vadd.f32 %v1080_v60, %v1555_v17  ;;  %v1140_v5 = vpop.f32.mrb[27].mxu1 }
 0x12c   :  { %v707_v6 = vadd.f32 %v1138_v2, %v619_v4 }
 0x12e   :  { %v746_v7 = vpop.f32.mrb[28].mxu0 }
 0x12f   :  { %v1587_v8 = vadd.f32 %v746_v7, %v1559_v31  ;;  %v778_v9 = vpop.f32.mrb[28].mxu1  ;;  %v1163_v10 = vpop.f32.mrb[29].mxu0 }
 0x130   :  { %v1589_v12 = vadd.f32 %v778_v9, %v691_v37  ;;  %v1179_v15 = vpop.f32.mrb[29].mxu1  ;;  %v749_v16 = vpop.f32.mrb[30].mxu0 }
 0x131   :  { %v1592_v18 = vadd.f32 %v749_v16, %v1561_v33  ;;  %v781_v20 = vpop.f32.mrb[30].mxu1  ;;  %v1164_v22 = vpop.f32.mrb[31].mxu0  ;;  %v821_v24 = vmul.f32 %v1587_v8, %v1587_v8 }
 0x132   :  { %v1594_v23 = vadd.f32 %v781_v20, %v694_v39  ;;  %v1180_v17 = vpop.f32.mrb[31].mxu1 }
 0x133   :  { %v800_v31 = vadd.f32 %v1592_v18, %v1587_v8  ;;  %v822_v25 = vmul.f32 %v1592_v18, %v1592_v18 }
 0x134   :  { %v830_v20 = vmul.f32 %v1594_v23, %v1594_v23 }
 0x135   :  { %v834_v26 = vadd.f32 %v822_v25, %v821_v24 }
 0x136   :  { %v754_v27 = vpop.f32.mrb[32].mxu0 }
 0x137   :  { %v1603_v28 = vadd.f32 %v754_v27, %v1565_v47  ;;  %v786_v33 = vpop.f32.mrb[32].mxu1  ;;  %v1167_v29 = vpop.f32.mrb[33].mxu0 }
 0x138   :  { %v1605_v30 = vadd.f32 %v786_v33, %v699_v55  ;;  %v1183_v32 = vpop.f32.mrb[33].mxu1  ;;  %v757_v34 = vpop.f32.mrb[34].mxu0 }
 0x139   :  { %v801_v35 = vadd.f32 %v800_v31, %v1603_v28  ;;  %v823_v36 = vmul.f32 %v1603_v28, %v1603_v28  ;;  %v1611_v37 = vadd.f32 %v757_v34, %v1567_v49  ;;  %v789_v38 = vpop.f32.mrb[34].mxu1  ;;  %v1168_v39 = vpop.f32.mrb[35].mxu0 }
 0x13a   :  { %v1613_v40 = vadd.f32 %v789_v38, %v702_v57  ;;  %v1184_v47 = vpop.f32.mrb[35].mxu1  ;;  %v831_v17 = vmul.f32 %v1605_v30, %v1605_v30 }
 0x13b   :  { %v835_v41 = vadd.f32 %v834_v26, %v823_v36  ;;  %v802_v42 = vadd.f32 %v801_v35, %v1611_v37  ;;  %v824_v43 = vmul.f32 %v1611_v37, %v1611_v37 }
 0x13c   :  { %v832_v26 = vmul.f32 %v1613_v40, %v1613_v40 }
 0x13d   :  { %v836_v44 = vadd.f32 %v835_v41, %v824_v43 }
 0x13e   :  { %v762_v45 = vpop.f32.mrb[36].mxu0 }
 0x13f   :  { %v1619_v46 = vadd.f32 %v762_v45, %v1571_v63  ;;  %v794_v48 = vpop.f32.mrb[36].mxu1  ;;  %v1171_v50 = vpop.f32.mrb[37].mxu0 }
 0x140   :  { %v1621_v49 = vadd.f32 %v794_v48, %v707_v6  ;;  %v765_v51 = vpop.f32.mrb[38].mxu0  ;;  %v1187_v52 = vpop.f32.mrb[37].mxu1 }
 0x141   :  { %v803_v53 = vadd.f32 %v802_v42, %v1619_v46  ;;  %v825_v54 = vmul.f32 %v1619_v46, %v1619_v46  ;;  %v1627_v55 = vadd.f32 %v765_v51, %v1573_v1  ;;  %v1172_v56 = vpop.f32.mrb[39].mxu0  ;;  %v797_v57 = vpop.f32.mrb[38].mxu1 }
 0x142   :  { %v1188_v58 = vpop.f32.mrb[39].mxu1  ;;  %v833_v25 = vmul.f32 %v1621_v49, %v1621_v49  ;;  %v812_v29 = vsel %vm811_vm2, %v1621_v49, 0.0 }
 0x143   :  { %v837_v59 = vadd.f32 %v836_v44, %v825_v54  ;;  %v804_v63 = vadd.f32 %v803_v53, %v1627_v55  ;;  %v826_v60 = vmul.f32 %v1627_v55, %v1627_v55 }
 0x144   :  { %v845_v35 = vsel %vm811_vm2, %v833_v25, 0.0 }
 0x145   :  { %v838_v61 = vadd.f32 %v837_v59, %v826_v60 }
 0x146   :  { %v770_v62 = vpop.f32.mrb[40].mxu0 }
 0x147   :  { %v1633_v0 = vadd.f32 %v770_v62, %v1577_v19  ;;  %v1175_v2 = vpop.f32.mrb[41].mxu0  ;;  %v829_v19 = vmul.f32 %v1589_v12, %v1589_v12 }
 0x148   :  { %v773_v3 = vpop.f32.mrb[42].mxu0 }
 0x149   :  { %v805_v4 = vadd.f32 %v804_v63, %v1633_v0  ;;  %v827_v1 = vmul.f32 %v1633_v0, %v1633_v0  ;;  %v1639_v5 = vadd.f32 %v773_v3, %v1579_v21  ;;  %v1176_v6 = vpop.f32.mrb[43].mxu0 }
 0x14b   :  { %v839_v7 = vadd.f32 %v838_v61, %v827_v1  ;;  %v806_v9 = vadd.f32 %v805_v4, %v1639_v5  ;;  %v828_v10 = vmul.f32 %v1639_v5, %v1639_v5 }
 0x14d   :  { %v807_v15 = vadd.f32 %v806_v9, %v1589_v12  ;;  %v840_v16 = vadd.f32 %v839_v7, %v828_v10 }
 0x14f   :  { %v808_v22 = vadd.f32 %v807_v15, %v1594_v23  ;;  %v841_v21 = vadd.f32 %v840_v16, %v829_v19 }
 0x151   :  { %v809_v24 = vadd.f32 %v808_v22, %v1605_v30  ;;  %v842_v31 = vadd.f32 %v841_v21, %v830_v20 }
 0x153   :  { %v810_v27 = vadd.f32 %v809_v24, %v1613_v40  ;;  %v843_v33 = vadd.f32 %v842_v31, %v831_v17 }
 0x155   :  { %v813_v32 = vadd.f32 %v812_v29, %v810_v27  ;;  %v844_v34 = vadd.f32 %v843_v33, %v832_v26 }
 0x157   :  { %v814_v36 = vrot.slane %v813_v32, 4  ;;  %v846_v38 = vadd.f32 %v845_v35, %v844_v34 }
 0x159   :  { %v815_v39 = vadd.f32 %v814_v36, %v813_v32  ;;  %v847_v47 = vrot.slane %v846_v38, 4 }
 0x15b   :  { %v816_v41 = vrot.slane %v815_v39, 2  ;;  %v848_v42 = vadd.f32 %v847_v47, %v846_v38 }
 0x15d   :  { %v817_v43 = vadd.f32 %v816_v41, %v815_v39  ;;  %v849_v44 = vrot.slane %v848_v42, 2 }
 0x15f   :  { %v818_v45 = vrot.slane %v817_v43, 1  ;;  %v850_v48 = vadd.f32 %v849_v44, %v848_v42 }
 0x161   :  { %v819_v50 = vadd.f32 %v818_v45, %v817_v43  ;;  %v851_v51 = vrot.slane %v850_v48, 1 }
 0x163   :  { %v820_v52 = vmul.f32 0.010204081, %v819_v50  ;;  %v852_v53 = vadd.f32 %v851_v51, %v850_v48 }
 0x165   :  { %v853_v54 = vmul.f32 0.010204081, %v852_v53  ;;  %v854_v56 = vmul.f32 %v820_v52, %v820_v52  ;;  %v856_v57 = vsub.f32 %v1587_v8, %v820_v52  ;;  %v857_v58 = vsub.f32 %v1592_v18, %v820_v52 }
 0x166   :  { %v858_v59 = vsub.f32 %v1603_v28, %v820_v52  ;;  %v859_v63 = vsub.f32 %v1611_v37, %v820_v52  ;;  %v860_v60 = vsub.f32 %v1619_v46, %v820_v52  ;;  %v861_v61 = vsub.f32 %v1627_v55, %v820_v52 }
 0x167   :  { %v855_v62 = vsub.f32 %v853_v54, %v854_v56  ;;  %v862_v2 = vsub.f32 %v1633_v0, %v820_v52  ;;  %v863_v3 = vsub.f32 %v1639_v5, %v820_v52  ;;  %v864_v4 = vsub.f32 %v1589_v12, %v820_v52 }
 0x168   :  { %v865_v1 = vsub.f32 %v1594_v23, %v820_v52  ;;  %v866_v8 = vsub.f32 %v1605_v30, %v820_v52  ;;  %v867_v18 = vsub.f32 %v1613_v40, %v820_v52  ;;  %v868_v28 = vsub.f32 %v1621_v49, %v820_v52 }
 0x169   :  { %v869_v37 = vadd.f32 1e-05, %v855_v62  ;;  %v886_v46 = vsub.s32 1, %v1542_v11 }
 0x16b   :  { %1282 = vrsqrt.f32 %v869_v37  ;;  %v887_v6 = vrot.slane %v1548_v13, %v886_v46 }
 0x175   :  { %v1283_v55 = vpop.eup %1282 }
 0x176   :  { %v871_v0 = vmul.f32 %v1283_v55, %v856_v57  ;;  %v872_v7 = vmul.f32 %v1283_v55, %v857_v58  ;;  %v873_v5 = vmul.f32 %v1283_v55, %v858_v59  ;;  %v874_v9 = vmul.f32 %v1283_v55, %v859_v63 }
 0x177   :  { %v875_v12 = vmul.f32 %v1283_v55, %v860_v60  ;;  %v876_v10 = vmul.f32 %v1283_v55, %v861_v61  ;;  %v877_v23 = vmul.f32 %v1283_v55, %v862_v2  ;;  %v878_v19 = vmul.f32 %v1283_v55, %v863_v3 }
 0x178   :  { %v879_v30 = vmul.f32 %v1283_v55, %v864_v4  ;;  %v880_v15 = vmul.f32 %v1283_v55, %v865_v1  ;;  %v881_v40 = vmul.f32 %v1283_v55, %v866_v8  ;;  %v882_v16 = vmul.f32 %v1283_v55, %v867_v18 }
 0x179   :  { %v883_v49 = vmul.f32 %v1283_v55, %v868_v28  ;;  %v888_v20 = vmul.f32 %v887_v6, %v871_v0  ;;  %v889_v22 = vmul.f32 %v887_v6, %v872_v7  ;;  %v890_v21 = vmul.f32 %v887_v6, %v873_v5 }
 0x17a   :  { %v891_v11 = vmul.f32 %v887_v6, %v874_v9  ;;  %v892_v17 = vmul.f32 %v887_v6, %v875_v12  ;;  %v893_v24 = vmul.f32 %v887_v6, %v876_v10  ;;  %v894_v13 = vmul.f32 %v887_v6, %v877_v23 }
 0x17b   :  { %v895_v31 = vmul.f32 %v887_v6, %v878_v19  ;;  %v896_v25 = vmul.f32 %v887_v6, %v879_v30  ;;  %v897_v26 = vmul.f32 %v887_v6, %v880_v15  ;;  %v898_v27 = vmul.f32 %v887_v6, %v881_v40 }
 0x17c   :  { %v899_v33 = vmul.f32 %v887_v6, %v882_v16  ;;  %v900_v29 = vmul.f32 %v887_v6, %v883_v49  ;;  %v905_v32 = vadd.f32 %v1551_v14, %v888_v20  ;;  %v906_v34 = vadd.f32 %v1551_v14, %v889_v22 }
 0x17d   :  { %v907_v35 = vadd.f32 %v1551_v14, %v890_v21  ;;  %v908_v36 = vadd.f32 %v1551_v14, %v891_v11  ;;  %v909_v38 = vadd.f32 %v1551_v14, %v892_v17  ;;  %v910_v39 = vadd.f32 %v1551_v14, %v893_v24 }
 0x17e   :  { %v911_v47 = vadd.f32 %v1551_v14, %v894_v13  ;;  %v912_v41 = vadd.f32 %v1551_v14, %v895_v31  ;;  %v913_v42 = vadd.f32 %v1551_v14, %v896_v25  ;;  %v914_v43 = vadd.f32 %v1551_v14, %v897_v26 }
 0x17f   :  { %v915_v44 = vadd.f32 %v1551_v14, %v898_v27  ;;  %v916_v45 = vadd.f32 %v1551_v14, %v899_v33  ;;  %v917_v48 = vadd.f32 %v1551_v14, %v900_v29  ;;  %v918_v50 = vmax.f32 %v905_v32, 0.0 }
 0x180   :  { %v919_v51 = vmax.f32 %v906_v34, 0.0  ;;  %v920_v52 = vmax.f32 %v907_v35, 0.0  ;;  %v921_v53 = vmax.f32 %v908_v36, 0.0  ;;  %v922_v54 = vmax.f32 %v909_v38, 0.0 }
 0x181   :  { %v923_v56 = vmax.f32 %v910_v39, 0.0  ;;  %v924_v57 = vmax.f32 %v911_v47, 0.0  ;;  %v925_v58 = vmax.f32 %v912_v41, 0.0  ;;  %v926_v59 = vmax.f32 %v913_v42, 0.0  ;;  %931 = vst [vmem:[%s1729_s3] sm:$0xff] %v918_v50 }
 0x182   :  { %v927_v63 = vmax.f32 %v914_v43, 0.0  ;;  %v928_v60 = vmax.f32 %v915_v44, 0.0  ;;  %v929_v61 = vmax.f32 %v916_v45, 0.0  ;;  %v930_v62 = vmax.f32 %v917_v48, 0.0  ;;  %932 = vst [vmem:[%s1729_s3 + $0x8] sm:$0xff] %v919_v51  ;;  %933 = vst [vmem:[%s1729_s3 + $0x10] sm:$0xff] %v920_v52 }
 0x183   :  { %934 = vst [vmem:[%s1729_s3 + $0x18] sm:$0xff] %v921_v53  ;;  %935 = vst [vmem:[%s1729_s3 + $0x20] sm:$0xff] %v922_v54 }
 0x184   :  { %936 = vst [vmem:[%s1729_s3 + $0x28] sm:$0xff] %v923_v56  ;;  %937 = vst [vmem:[%s1729_s3 + $0x30] sm:$0xff] %v924_v57 }
 0x185   :  { %938 = vst [vmem:[%s1729_s3 + $0x38] sm:$0xff] %v925_v58  ;;  %939 = vst [vmem:[%s1729_s3 + $0x40] sm:$0xff] %v926_v59 }
 0x186   :  { %940 = vst [vmem:[%s1729_s3 + $0x48] sm:$0xff] %v927_v63  ;;  %941 = vst [vmem:[%s1729_s3 + $0x50] sm:$0xff] %v928_v60 }
 0x187   :  { %942 = vst [vmem:[%s1729_s3 + $0x58] sm:$0xff] %v929_v61  ;;  %943 = vst [vmem:[%s1729_s3 + $0x60] sm:$0x3] %v930_v62 }

// kernel: inception_net.17
= control target key start
LH: loop header
LB: loop body
LE: loop exit
PB: predicated region body
PF: predicated region fallthrough
CT: control target
= control target key end

     0   :  { %v507_v0 = vmov 0.0   ;;  %vm508_vm0 = vmmov 0   ;;  %v45_v16 = vlaneseq  ;;  %vm225_vm1 = vcmask 785408   ;;  %s765_s1 = inlined_call_operand.vmem [shape: bf16[128,96], index: 1, kind: input, shape index: {}]   ;;  %s766_s0 = inlined_call_operand.vmem [shape: bf16[98,128], index: 0, kind: input, shape index: {}]   ;;  %s767_s2 = inlined_call_operand.vmem [shape: f32[3,96], index: 2, kind: input, shape index: {}]   ;;  %s768_s3 = inlined_call_operand.vmem [shape: f32[98,96], index: 3, kind: output, shape index: {}]  }
   0x1   :  { %428 = vmatprep.subr.bf16.mxu0 %v507_v0  ;;  %v490_v1 = vld [vmem:[%s765_s1] sm:$0xff]   ;;  %472 = vmatprep.subr.bf16.mxu1 %v507_v0  ;;  %v491_v2 = vld [vmem:[%s765_s1 + $0x8] sm:$0xff]   ;;  %v492_v3 = vld [vmem:[%s765_s1 + $0x10] sm:$0xff]   ;;  %vm249_vm2 = vcmask 779264  }
   0x2   :  { %444 = vmatprep.mubr.msk.bf16.mxu0 %vm508_vm0, %v507_v0  ;;  %460 = vmatprep.mubr.msk.bf16.mxu1 %vm508_vm0, %v507_v0  ;;  %v493_v4 = vld [vmem:[%s765_s1 + $0x18] sm:$0xff]   ;;  %v494_v5 = vld [vmem:[%s765_s1 + $0x20] sm:$0xff]   ;;  %v495_v6 = vld [vmem:[%s765_s1 + $0x28] sm:$0xff]   ;;  %v581_v17 = vshrl.u32 %v45_v16, 7 }
   0x3   :  { %429 = vmatpush3.bf16.msra.mxu0 %v490_v1  ;;  %480 = vmatpush3.bf16.msra.mxu1 %v490_v1  ;;  %v496_v7 = vld [vmem:[%s765_s1 + $0x30] sm:$0xff]   ;;  %v497_v8 = vld [vmem:[%s765_s1 + $0x38] sm:$0xff]   ;;  %v498_v9 = vld [vmem:[%s766_s0] sm:$0xff]  }
   0x4   :  { %430 = vmatprep.subr.bf16.mxu0 %v507_v0  ;;  %473 = vmatprep.subr.bf16.mxu1 %v507_v0  ;;  %v501_v10 = vld [vmem:[%s766_s0 + $0x20] sm:$0xff]   ;;  %v499_v11 = vld [vmem:[%s766_s0 + $0x8] sm:$0xff]   ;;  %v500_v13 = vld [vmem:[%s766_s0 + $0x10] sm:$0xff]   ;;  %v47_v18 = vsub.s32 0, %v581_v17 }
   0x5   :  { %v503_v12 = vld [vmem:[%s766_s0 + $0x28] sm:$0xff]   ;;  %v504_v14 = vld [vmem:[%s766_s0 + $0x30] ss:$0 sps:$4 sm:$0x11]   ;;  %v502_v15 = vld [vmem:[%s766_s0 + $0x18] sm:$0xff]  }
   0x6   :  { %v587_v19 = vld [vmem:[%s767_s2] sm:$0x7] }
   0x7   :  { %431 = vmatpush3.bf16.msra.mxu0 %v491_v2  ;;  %481 = vmatpush3.bf16.msra.mxu1 %v491_v2  ;;  %v590_v20 = vrot.slane %v587_v19, %v47_v18 }
   0x8   :  { %432 = vmatprep.subr.bf16.mxu0 %v507_v0  ;;  %474 = vmatprep.subr.bf16.mxu1 %v507_v0 }
   0xb   :  { %433 = vmatpush3.bf16.msra.mxu0 %v492_v3  ;;  %482 = vmatpush3.bf16.msra.mxu1 %v492_v3 }
   0xc   :  { %434 = vmatprep.subr.bf16.mxu0 %v507_v0  ;;  %475 = vmatprep.subr.bf16.mxu1 %v507_v0 }
   0xf   :  { %435 = vmatpush3.bf16.msra.mxu0 %v493_v4  ;;  %483 = vmatpush3.bf16.msra.mxu1 %v493_v4 }
  0x10   :  { %436 = vmatprep.subr.bf16.mxu0 %v507_v0  ;;  %476 = vmatprep.subr.bf16.mxu1 %v507_v0 }
  0x13   :  { %437 = vmatpush3.bf16.msra.mxu0 %v494_v5  ;;  %484 = vmatpush3.bf16.msra.mxu1 %v494_v5 }
  0x14   :  { %438 = vmatprep.subr.bf16.mxu0 %v507_v0  ;;  %477 = vmatprep.subr.bf16.mxu1 %v507_v0 }
  0x17   :  { %439 = vmatpush3.bf16.msra.mxu0 %v495_v6  ;;  %485 = vmatpush3.bf16.msra.mxu1 %v495_v6 }
  0x18   :  { %440 = vmatprep.subr.bf16.mxu0 %v507_v0  ;;  %478 = vmatprep.subr.bf16.mxu1 %v507_v0 }
  0x1b   :  { %441 = vmatpush3.bf16.msra.mxu0 %v496_v7  ;;  %486 = vmatpush3.bf16.msra.mxu1 %v496_v7 }
  0x1c   :  { %442 = vmatprep.subr.bf16.mxu0 %v507_v0  ;;  %479 = vmatprep.subr.bf16.mxu1 %v507_v0 }
  0x1f   :  { %443 = vmatpush3.bf16.msra.mxu0 %v497_v8  ;;  %487 = vmatpush3.bf16.msra.mxu1 %v497_v8 }
  0x22   :  { %445 = vmatmul.mubr.bf16.vlgmr.msra.gmra.mrb[0].mxu0 %v498_v9  ;;  %461 = vmatmul.mubr.bf16.vlgmr.msra.gmra.mrb[0].mxu1 %v501_v10 }
  0x23   :  { %448 = vmatprep.mubr.msk.bf16.mxu0 %vm508_vm0, %v507_v0  ;;  %464 = vmatprep.mubr.msk.bf16.mxu1 %vm508_vm0, %v507_v0 }
  0x2a   :  { %449 = vmatmul.mubr.bf16.gmra.mrb[4].mxu0 %v499_v11  ;;  %465 = vmatmul.mubr.bf16.gmra.mrb[4].mxu1 %v503_v12 }
  0x2b   :  { %452 = vmatprep.mubr.msk.bf16.mxu0 %vm508_vm0, %v507_v0  ;;  %468 = vmatprep.mubr.msk.bf16.mxu1 %vm508_vm0, %v507_v0 }
  0x32   :  { %453 = vmatmul.mubr.bf16.gmra.mrb[8].mxu0 %v500_v13  ;;  %469 = vmatmul.mubr.bf16.gmra.mrb[8].mxu1 %v504_v14 }
  0x33   :  { %456 = vmatprep.mubr.msk.bf16.mxu0 %vm508_vm0, %v507_v0 }
  0x3a   :  { %457 = vmatmul.mubr.bf16.gmra.mrb[12].mxu0 %v502_v15 }
  0xf5   :  { %v171_v21 = vpop.f32.mrb[0].mxu0  ;;  %v203_v22 = vpop.f32.mrb[0].mxu1 }
  0xf6   :  { %v593_v23 = vadd.f32 %v171_v21, %v590_v20  ;;  %v446_v24 = vpop.f32.mrb[1].mxu0  ;;  %v462_v25 = vpop.f32.mrb[1].mxu1  ;;  %v641_v14 = vadd.f32 %v203_v22, %v590_v20 }
  0xf7   :  { %v174_v26 = vpop.f32.mrb[2].mxu0  ;;  %v206_v27 = vpop.f32.mrb[2].mxu1 }
  0xf8   :  { %v259_v28 = vmul.f32 %v593_v23, %v593_v23  ;;  %v598_v29 = vadd.f32 %v174_v26, %v590_v20  ;;  %v447_v30 = vpop.f32.mrb[3].mxu0  ;;  %v463_v31 = vpop.f32.mrb[3].mxu1  ;;  %v226_v32 = vsel %vm225_vm1, %v593_v23, 0.0  ;;  %v647_v25 = vadd.f32 %v206_v27, %v590_v20 }
  0xf9   :  { %v267_v31 = vmul.f32 %v641_v14, %v641_v14 }
  0xfa   :  { %v227_v33 = vsel %vm225_vm1, %v598_v29, 0.0  ;;  %v260_v34 = vmul.f32 %v598_v29, %v598_v29  ;;  %v272_v36 = vsel %vm225_vm1, %v259_v28, 0.0 }
  0xfb   :  { %v228_v35 = vadd.f32 %v227_v33, %v226_v32 }
  0xfc   :  { %v273_v37 = vsel %vm225_vm1, %v260_v34, 0.0 }
  0xfd   :  { %v274_v38 = vadd.f32 %v273_v37, %v272_v36  ;;  %v179_v39 = vpop.f32.mrb[4].mxu0  ;;  %v211_v40 = vpop.f32.mrb[4].mxu1  ;;  %v241_v36 = vsel %vm225_vm1, %v641_v14, 0.0 }
  0xfe   :  { %v609_v41 = vadd.f32 %v179_v39, %v590_v20  ;;  %v450_v42 = vpop.f32.mrb[5].mxu0  ;;  %v466_v43 = vpop.f32.mrb[5].mxu1  ;;  %v660_v34 = vadd.f32 %v211_v40, %v590_v20  ;;  %v268_v39 = vmul.f32 %v647_v25, %v647_v25 }
  0xff   :  { %v182_v44 = vpop.f32.mrb[6].mxu0  ;;  %v214_v45 = vpop.f32.mrb[6].mxu1 }
 0x100   :  { %v229_v46 = vsel %vm225_vm1, %v609_v41, 0.0  ;;  %v261_v47 = vmul.f32 %v609_v41, %v609_v41  ;;  %v616_v48 = vadd.f32 %v182_v44, %v590_v20  ;;  %v451_v49 = vpop.f32.mrb[7].mxu0  ;;  %v467_v50 = vpop.f32.mrb[7].mxu1  ;;  %v672_v43 = vadd.f32 %v214_v45, %v590_v20 }
 0x101   :  { %v230_v51 = vadd.f32 %v229_v46, %v228_v35  ;;  %v243_v49 = vsel %vm225_vm1, %v647_v25, 0.0  ;;  %v269_v50 = vmul.f32 %v660_v34, %v660_v34  ;;  %v245_v45 = vsel %vm225_vm1, %v660_v34, 0.0 }
 0x102   :  { %v275_v52 = vsel %vm225_vm1, %v261_v47, 0.0  ;;  %v231_v53 = vsel %vm225_vm1, %v616_v48, 0.0  ;;  %v262_v54 = vmul.f32 %v616_v48, %v616_v48  ;;  %v287_v47 = vsel %vm225_vm1, %v267_v31, 0.0 }
 0x103   :  { %v276_v55 = vadd.f32 %v275_v52, %v274_v38  ;;  %v232_v56 = vadd.f32 %v231_v53, %v230_v51  ;;  %v289_v53 = vsel %vm225_vm1, %v268_v39, 0.0 }
 0x104   :  { %v277_v57 = vsel %vm225_vm1, %v262_v54, 0.0 }
 0x105   :  { %v278_v58 = vadd.f32 %v277_v57, %v276_v55  ;;  %v187_v59 = vpop.f32.mrb[8].mxu0  ;;  %v219_v60 = vpop.f32.mrb[8].mxu1  ;;  %v291_v57 = vsel %vm225_vm1, %v269_v50, 0.0 }
 0x106   :  { %v625_v61 = vadd.f32 %v187_v59, %v590_v20  ;;  %v454_v62 = vpop.f32.mrb[9].mxu0  ;;  %v470_v63 = vpop.f32.mrb[9].mxu1  ;;  %v675_v40 = vadd.f32 %v219_v60, %v590_v20 }
 0x107   :  { %v190_v0 = vpop.f32.mrb[10].mxu0  ;;  %v222_v1 = vpop.f32.mrb[10].mxu1 }
 0x108   :  { %v233_v2 = vsel %vm225_vm1, %v625_v61, 0.0  ;;  %v263_v3 = vmul.f32 %v625_v61, %v625_v61  ;;  %v632_v4 = vadd.f32 %v190_v0, %v590_v20  ;;  %v455_v5 = vpop.f32.mrb[11].mxu0  ;;  %v471_v6 = vpop.f32.mrb[11].mxu1  ;;  %v271_v54 = vmul.f32 %v675_v40, %v675_v40 }
 0x109   :  { %v234_v7 = vadd.f32 %v233_v2, %v232_v56  ;;  %v250_v59 = vsel %vm249_vm2, %v675_v40, 0.0 }
 0x10a   :  { %v279_v8 = vsel %vm225_vm1, %v263_v3, 0.0  ;;  %v235_v9 = vsel %vm225_vm1, %v632_v4, 0.0  ;;  %v264_v10 = vmul.f32 %v632_v4, %v632_v4  ;;  %v295_v0 = vsel %vm249_vm2, %v271_v54, 0.0 }
 0x10b   :  { %v280_v11 = vadd.f32 %v279_v8, %v278_v58  ;;  %v236_v12 = vadd.f32 %v235_v9, %v234_v7  ;;  %v247_v58 = vsel %vm225_vm1, %v672_v43, 0.0 }
 0x10c   :  { %v281_v13 = vsel %vm225_vm1, %v264_v10, 0.0 }
 0x10d   :  { %v282_v15 = vadd.f32 %v281_v13, %v280_v11  ;;  %v195_v16 = vpop.f32.mrb[12].mxu0 }
 0x10e   :  { %v644_v18 = vadd.f32 %v195_v16, %v590_v20  ;;  %v458_v21 = vpop.f32.mrb[13].mxu0 }
 0x10f   :  { %v198_v24 = vpop.f32.mrb[14].mxu0 }
 0x110   :  { %v237_v26 = vsel %vm225_vm1, %v644_v18, 0.0  ;;  %v265_v28 = vmul.f32 %v644_v18, %v644_v18  ;;  %v654_v30 = vadd.f32 %v198_v24, %v590_v20  ;;  %v459_v22 = vpop.f32.mrb[15].mxu0  ;;  %v270_v20 = vmul.f32 %v672_v43, %v672_v43 }
 0x111   :  { %v238_v32 = vadd.f32 %v237_v26, %v236_v12 }
 0x112   :  { %v283_v33 = vsel %vm225_vm1, %v265_v28, 0.0  ;;  %v239_v27 = vsel %vm225_vm1, %v654_v30, 0.0  ;;  %v266_v35 = vmul.f32 %v654_v30, %v654_v30  ;;  %v293_v63 = vsel %vm225_vm1, %v270_v20, 0.0 }
 0x113   :  { %v284_v37 = vadd.f32 %v283_v33, %v282_v15  ;;  %v240_v38 = vadd.f32 %v239_v27, %v238_v32 }
 0x114   :  { %v285_v42 = vsel %vm225_vm1, %v266_v35, 0.0 }
 0x115   :  { %v242_v44 = vadd.f32 %v241_v36, %v240_v38  ;;  %v286_v46 = vadd.f32 %v285_v42, %v284_v37 }
 0x117   :  { %v288_v51 = vadd.f32 %v287_v47, %v286_v46  ;;  %v244_v52 = vadd.f32 %v243_v49, %v242_v44 }
 0x119   :  { %v246_v55 = vadd.f32 %v245_v45, %v244_v52  ;;  %v290_v56 = vadd.f32 %v289_v53, %v288_v51 }
 0x11b   :  { %v248_v60 = vadd.f32 %v247_v58, %v246_v55  ;;  %v292_v62 = vadd.f32 %v291_v57, %v290_v56 }
 0x11d   :  { %v294_v1 = vadd.f32 %v293_v63, %v292_v62  ;;  %v251_v2 = vadd.f32 %v250_v59, %v248_v60 }
 0x11f   :  { %v252_v3 = vrot.slane %v251_v2, 4  ;;  %v296_v5 = vadd.f32 %v295_v0, %v294_v1 }
 0x121   :  { %v253_v6 = vadd.f32 %v252_v3, %v251_v2  ;;  %v297_v7 = vrot.slane %v296_v5, 4 }
 0x123   :  { %v254_v8 = vrot.slane %v253_v6, 2  ;;  %v298_v9 = vadd.f32 %v297_v7, %v296_v5 }
 0x125   :  { %v255_v10 = vadd.f32 %v254_v8, %v253_v6  ;;  %v299_v11 = vrot.slane %v298_v9, 2 }
 0x127   :  { %v256_v12 = vrot.slane %v255_v10, 1  ;;  %v300_v13 = vadd.f32 %v299_v11, %v298_v9 }
 0x129   :  { %v257_v15 = vadd.f32 %v256_v12, %v255_v10  ;;  %v301_v16 = vrot.slane %v300_v13, 1 }
 0x12b   :  { %v258_v21 = vmul.f32 0.010204081, %v257_v15  ;;  %v302_v24 = vadd.f32 %v301_v16, %v300_v13 }
 0x12d   :  { %v303_v26 = vmul.f32 0.010204081, %v302_v24  ;;  %v304_v28 = vmul.f32 %v258_v21, %v258_v21  ;;  %v306_v22 = vsub.f32 %v593_v23, %v258_v21  ;;  %v307_v31 = vsub.f32 %v598_v29, %v258_v21 }
 0x12e   :  { %v308_v32 = vsub.f32 %v609_v41, %v258_v21  ;;  %v309_v33 = vsub.f32 %v616_v48, %v258_v21  ;;  %v310_v27 = vsub.f32 %v625_v61, %v258_v21  ;;  %v311_v35 = vsub.f32 %v632_v4, %v258_v21 }
 0x12f   :  { %v305_v36 = vsub.f32 %v303_v26, %v304_v28  ;;  %v312_v37 = vsub.f32 %v644_v18, %v258_v21  ;;  %v313_v38 = vsub.f32 %v654_v30, %v258_v21  ;;  %v314_v39 = vsub.f32 %v641_v14, %v258_v21 }
 0x130   :  { %v315_v42 = vsub.f32 %v647_v25, %v258_v21  ;;  %v316_v23 = vsub.f32 %v660_v34, %v258_v21  ;;  %v317_v29 = vsub.f32 %v672_v43, %v258_v21  ;;  %v318_v41 = vsub.f32 %v675_v40, %v258_v21 }
 0x131   :  { %v319_v48 = vadd.f32 1e-05, %v305_v36  ;;  %v336_v61 = vsub.s32 1, %v581_v17  ;;  %v353_v4 = vsub.s32 2, %v581_v17 }
 0x133   :  { %505 = vrsqrt.f32 %v319_v48  ;;  %v337_v18 = vrot.slane %v587_v19, %v336_v61  ;;  %v354_v30 = vrot.slane %v587_v19, %v353_v4 }
 0x13d   :  { %v506_v44 = vpop.eup %505 }
 0x13e   :  { %v321_v14 = vmul.f32 %v506_v44, %v306_v22  ;;  %v322_v46 = vmul.f32 %v506_v44, %v307_v31  ;;  %v323_v25 = vmul.f32 %v506_v44, %v308_v32  ;;  %v324_v47 = vmul.f32 %v506_v44, %v309_v33 }
 0x13f   :  { %v325_v34 = vmul.f32 %v506_v44, %v310_v27  ;;  %v326_v49 = vmul.f32 %v506_v44, %v311_v35  ;;  %v327_v43 = vmul.f32 %v506_v44, %v312_v37  ;;  %v328_v50 = vmul.f32 %v506_v44, %v313_v38 }
 0x140   :  { %v329_v40 = vmul.f32 %v506_v44, %v314_v39  ;;  %v330_v51 = vmul.f32 %v506_v44, %v315_v42  ;;  %v331_v52 = vmul.f32 %v506_v44, %v316_v23  ;;  %v332_v53 = vmul.f32 %v506_v44, %v317_v29 }
 0x141   :  { %v333_v45 = vmul.f32 %v506_v44, %v318_v41  ;;  %v338_v20 = vmul.f32 %v337_v18, %v321_v14  ;;  %v339_v17 = vmul.f32 %v337_v18, %v322_v46  ;;  %v340_v54 = vmul.f32 %v337_v18, %v323_v25 }
 0x142   :  { %v341_v55 = vmul.f32 %v337_v18, %v324_v47  ;;  %v342_v56 = vmul.f32 %v337_v18, %v325_v34  ;;  %v343_v57 = vmul.f32 %v337_v18, %v326_v49  ;;  %v344_v19 = vmul.f32 %v337_v18, %v327_v43 }
 0x143   :  { %v345_v58 = vmul.f32 %v337_v18, %v328_v50  ;;  %v346_v59 = vmul.f32 %v337_v18, %v329_v40  ;;  %v347_v60 = vmul.f32 %v337_v18, %v330_v51  ;;  %v348_v62 = vmul.f32 %v337_v18, %v331_v52 }
 0x144   :  { %v349_v63 = vmul.f32 %v337_v18, %v332_v53  ;;  %v350_v0 = vmul.f32 %v337_v18, %v333_v45  ;;  %v355_v1 = vadd.f32 %v354_v30, %v338_v20  ;;  %v356_v2 = vadd.f32 %v354_v30, %v339_v17 }
 0x145   :  { %v357_v3 = vadd.f32 %v354_v30, %v340_v54  ;;  %v358_v5 = vadd.f32 %v354_v30, %v341_v55  ;;  %v359_v6 = vadd.f32 %v354_v30, %v342_v56  ;;  %v360_v7 = vadd.f32 %v354_v30, %v343_v57 }
 0x146   :  { %v361_v8 = vadd.f32 %v354_v30, %v344_v19  ;;  %v362_v9 = vadd.f32 %v354_v30, %v345_v58  ;;  %v363_v10 = vadd.f32 %v354_v30, %v346_v59  ;;  %v364_v11 = vadd.f32 %v354_v30, %v347_v60 }
 0x147   :  { %v365_v12 = vadd.f32 %v354_v30, %v348_v62  ;;  %v366_v13 = vadd.f32 %v354_v30, %v349_v63  ;;  %v367_v15 = vadd.f32 %v354_v30, %v350_v0  ;;  %v368_v16 = vmax.f32 %v355_v1, 0.0 }
 0x148   :  { %v369_v21 = vmax.f32 %v356_v2, 0.0  ;;  %v370_v24 = vmax.f32 %v357_v3, 0.0  ;;  %v371_v26 = vmax.f32 %v358_v5, 0.0  ;;  %v372_v28 = vmax.f32 %v359_v6, 0.0 }
 0x149   :  { %v373_v22 = vmax.f32 %v360_v7, 0.0  ;;  %v374_v31 = vmax.f32 %v361_v8, 0.0  ;;  %v375_v32 = vmax.f32 %v362_v9, 0.0  ;;  %v376_v33 = vmax.f32 %v363_v10, 0.0  ;;  %381 = vst.msk [vmem:[%s768_s3] sm:$0xff] %vm225_vm1, %v368_v16 }
 0x14a   :  { %v377_v27 = vmax.f32 %v364_v11, 0.0  ;;  %v378_v35 = vmax.f32 %v365_v12, 0.0  ;;  %v379_v36 = vmax.f32 %v366_v13, 0.0  ;;  %v380_v37 = vmax.f32 %v367_v15, 0.0  ;;  %382 = vst.msk [vmem:[%s768_s3 + $0x8] sm:$0xff] %vm225_vm1, %v369_v21  ;;  %383 = vst.msk [vmem:[%s768_s3 + $0x10] sm:$0xff] %vm225_vm1, %v370_v24 }
 0x14b   :  { %384 = vst.msk [vmem:[%s768_s3 + $0x18] sm:$0xff] %vm225_vm1, %v371_v26  ;;  %385 = vst.msk [vmem:[%s768_s3 + $0x20] sm:$0xff] %vm225_vm1, %v372_v28 }
 0x14c   :  { %386 = vst.msk [vmem:[%s768_s3 + $0x28] sm:$0xff] %vm225_vm1, %v373_v22  ;;  %387 = vst.msk [vmem:[%s768_s3 + $0x30] sm:$0xff] %vm225_vm1, %v374_v31 }
 0x14d   :  { %388 = vst.msk [vmem:[%s768_s3 + $0x38] sm:$0xff] %vm225_vm1, %v375_v32  ;;  %389 = vst.msk [vmem:[%s768_s3 + $0x40] sm:$0xff] %vm225_vm1, %v376_v33 }
 0x14e   :  { %390 = vst.msk [vmem:[%s768_s3 + $0x48] sm:$0xff] %vm225_vm1, %v377_v27  ;;  %391 = vst.msk [vmem:[%s768_s3 + $0x50] sm:$0xff] %vm225_vm1, %v378_v35 }
 0x14f   :  { %392 = vst.msk [vmem:[%s768_s3 + $0x58] sm:$0xff] %vm225_vm1, %v379_v36 }
 0x150   :  { %393 = vst.msk [vmem:[%s768_s3 + $0x60] sm:$0x3] %vm249_vm2, %v380_v37 }

// kernel: inception_net.18
= control target key start
LH: loop header
LB: loop body
LE: loop exit
PB: predicated region body
PF: predicated region fallthrough
CT: control target
= control target key end

     0   :  { %v528_v0 = vmov 0   ;;  %vm165_vm0 = vcmask 130048   ;;  %v47_v25 = vlaneseq  ;;  %vm275_vm1 = vcmask 523264   ;;  %s806_s1 = inlined_call_operand.vmem [shape: bf16[144,64], index: 1, kind: input, shape index: {}]   ;;  %s807_s0 = inlined_call_operand.vmem [shape: bf16[98,144], index: 0, kind: input, shape index: {}]   ;;  %s808_s2 = inlined_call_operand.vmem [shape: f32[3,64], index: 2, kind: input, shape index: {}]   ;;  %s809_s3 = inlined_call_operand.vmem [shape: f32[98,64], index: 3, kind: output, shape index: {}]  }
   0x1   :  { %187 = vmatprep.subr.bf16.mxu0 %v528_v0  ;;  %v497_v1 = vld [vmem:[%s806_s1] sm:$0xff]   ;;  %478 = vmatprep.subr.bf16.mxu1 %v528_v0  ;;  %v498_v2 = vld [vmem:[%s806_s1 + $0x8] sm:$0xff]   ;;  %v499_v3 = vld [vmem:[%s806_s1 + $0x10] sm:$0xff]   ;;  %vm299_vm2 = vcmask 517120  }
   0x2   :  { %188 = vmatpush1.bf16.msra.mxu0 %v497_v1  ;;  %487 = vmatpush1.bf16.msra.mxu1 %v497_v1  ;;  %v500_v4 = vld [vmem:[%s806_s1 + $0x18] sm:$0xff]   ;;  %v508_v5 = vld [vmem:[%s807_s0 + $0x4] ss:$8 sps:$4 sm:$0xff]   ;;  %v503_v9 = vld [vmem:[%s806_s1 + $0x30] sm:$0xff]   ;;  %v622_v26 = vshrl.u32 %v47_v25, 7 }
   0x3   :  { %189 = vmatprep.subr.bf16.mxu0 %v528_v0  ;;  %479 = vmatprep.subr.bf16.mxu1 %v528_v0  ;;  %v501_v6 = vld [vmem:[%s806_s1 + $0x20] sm:$0xff]   ;;  %v502_v8 = vld [vmem:[%s806_s1 + $0x28] sm:$0xff]   ;;  %v504_v10 = vld [vmem:[%s806_s1 + $0x38] sm:$0xff]  }
   0x4   :  { %471 = vmatprep.mubr.msk.bf16.mxu0 %vm165_vm0, %v508_v5  ;;  %v517_v7 = vld [vmem:[%s807_s0 + $0x44] ss:$8 sps:$4 sm:$0xff]   ;;  %v506_v12 = vld [vmem:[%s807_s0] ss:$8 sps:$4 sm:$0xff]   ;;  %v509_v14 = vld [vmem:[%s807_s0 + $0x14] ss:$8 sps:$4 sm:$0xff]  }
   0x5   :  { %475 = vmatprep.mubr.msk.bf16.mxu1 %vm165_vm0, %v517_v7  ;;  %v505_v11 = vld [vmem:[%s806_s1 + $0x40] sm:$0xff]   ;;  %v521_v15 = vld [vmem:[%s807_s0 + $0x54] ss:$8 sps:$4 sm:$0xff]   ;;  %v511_v17 = vld [vmem:[%s807_s0 + $0x10] ss:$8 sps:$4 sm:$0xff]   ;;  %v49_v27 = vsub.s32 0, %v622_v26 }
   0x6   :  { %190 = vmatpush1.bf16.msra.mxu0 %v498_v2  ;;  %488 = vmatpush1.bf16.msra.mxu1 %v498_v2  ;;  %v515_v13 = vld [vmem:[%s807_s0 + $0x40] ss:$8 sps:$4 sm:$0xff]   ;;  %v523_v18 = vld [vmem:[%s807_s0 + $0x50] ss:$8 sps:$4 sm:$0xff]   ;;  %v512_v19 = vld [vmem:[%s807_s0 + $0x24] ss:$8 sps:$4 sm:$0xff]  }
   0x7   :  { %191 = vmatprep.subr.bf16.mxu0 %v528_v0  ;;  %480 = vmatprep.subr.bf16.mxu1 %v528_v0  ;;  %v27_v16 = vld [vmem:[%s807_s0 + $0x60] sm:$0x11]  ;;  %v518_v23 = vld [vmem:[%s807_s0 + $0x34] ss:$8 sps:$4 sm:$0xff]   ;;  %v520_v24 = vld [vmem:[%s807_s0 + $0x30] ss:$8 sps:$4 sm:$0xff]  }
   0x8   :  { %v461_v20 = vcombine.high %v27_v16, %v27_v16  ;;  %v514_v21 = vld [vmem:[%s807_s0 + $0x20] ss:$8 sps:$4 sm:$0xff]   ;;  %v460_v22 = vcombine.low %v27_v16, %v27_v16 }
   0x9   :  { %v628_v28 = vld [vmem:[%s808_s2] sm:$0x7] }
   0xa   :  { %192 = vmatpush1.bf16.msra.mxu0 %v499_v3  ;;  %489 = vmatpush1.bf16.msra.mxu1 %v499_v3  ;;  %v631_v29 = vrot.slane %v628_v28, %v49_v27 }
   0xb   :  { %193 = vmatprep.subr.bf16.mxu0 %v528_v0  ;;  %481 = vmatprep.subr.bf16.mxu1 %v528_v0 }
   0xe   :  { %194 = vmatpush1.bf16.msra.mxu0 %v500_v4  ;;  %490 = vmatpush1.bf16.msra.mxu1 %v500_v4 }
   0xf   :  { %195 = vmatprep.subr.bf16.mxu0 %v528_v0  ;;  %482 = vmatprep.subr.bf16.mxu1 %v528_v0 }
  0x12   :  { %196 = vmatpush1.bf16.msra.mxu0 %v501_v6  ;;  %491 = vmatpush1.bf16.msra.mxu1 %v501_v6 }
  0x13   :  { %197 = vmatprep.subr.bf16.mxu0 %v528_v0  ;;  %483 = vmatprep.subr.bf16.mxu1 %v528_v0 }
  0x16   :  { %198 = vmatpush1.bf16.msra.mxu0 %v502_v8  ;;  %492 = vmatpush1.bf16.msra.mxu1 %v502_v8 }
  0x17   :  { %199 = vmatprep.subr.bf16.mxu0 %v528_v0  ;;  %484 = vmatprep.subr.bf16.mxu1 %v528_v0 }
  0x1a   :  { %200 = vmatpush1.bf16.msra.mxu0 %v503_v9  ;;  %493 = vmatpush1.bf16.msra.mxu1 %v503_v9 }
  0x1b   :  { %201 = vmatprep.subr.bf16.mxu0 %v528_v0  ;;  %485 = vmatprep.subr.bf16.mxu1 %v528_v0 }
  0x1e   :  { %202 = vmatpush1.bf16.msra.mxu0 %v504_v10  ;;  %494 = vmatpush1.bf16.msra.mxu1 %v504_v10 }
  0x1f   :  { %203 = vmatprep.subr.bf16.mxu0 %v528_v0  ;;  %486 = vmatprep.subr.bf16.mxu1 %v528_v0 }
  0x22   :  { %204 = vmatpush1.bf16.msra.mxu0 %v505_v11  ;;  %495 = vmatpush1.bf16.msra.mxu1 %v505_v11 }
  0x25   :  { %220 = vmatmul.mubr.bf16.vlgmr.msra.gmra.mrb[0].mxu0 %v506_v12  ;;  %252 = vmatmul.mubr.bf16.vlgmr.msra.gmra.mrb[0].mxu1 %v515_v13 }
  0x26   :  { %472 = vmatprep.mubr.msk.bf16.mxu0 %vm165_vm0, %v509_v14  ;;  %476 = vmatprep.mubr.msk.bf16.mxu1 %vm165_vm0, %v521_v15 }
  0x2d   :  { %228 = vmatmul.mubr.bf16.gmra.mrb[4].mxu0 %v511_v17  ;;  %260 = vmatmul.mubr.bf16.gmra.mrb[4].mxu1 %v523_v18 }
  0x2e   :  { %473 = vmatprep.mubr.msk.bf16.mxu0 %vm165_vm0, %v512_v19  ;;  %477 = vmatprep.mubr.msk.bf16.mxu1 %vm165_vm0, %v461_v20 }
  0x35   :  { %236 = vmatmul.mubr.bf16.gmra.mrb[8].mxu0 %v514_v21  ;;  %268 = vmatmul.mubr.bf16.gmra.mrb[8].mxu1 %v460_v22 }
  0x36   :  { %474 = vmatprep.mubr.msk.bf16.mxu0 %vm165_vm0, %v518_v23 }
  0x3d   :  { %244 = vmatmul.mubr.bf16.gmra.mrb[12].mxu0 %v520_v24 }
  0xf8   :  { %v221_v30 = vpop.f32.mrb[0].mxu0  ;;  %v253_v31 = vpop.f32.mrb[0].mxu1 }
  0xf9   :  { %v634_v32 = vadd.f32 %v221_v30, %v631_v29  ;;  %v223_v33 = vpop.f32.mrb[1].mxu0  ;;  %v255_v34 = vpop.f32.mrb[1].mxu1  ;;  %v682_v23 = vadd.f32 %v253_v31, %v631_v29 }
  0xfa   :  { %v224_v35 = vpop.f32.mrb[2].mxu0  ;;  %v256_v36 = vpop.f32.mrb[2].mxu1 }
  0xfb   :  { %v309_v37 = vmul.f32 %v634_v32, %v634_v32  ;;  %v639_v38 = vadd.f32 %v224_v35, %v631_v29  ;;  %v226_v39 = vpop.f32.mrb[3].mxu0  ;;  %v258_v40 = vpop.f32.mrb[3].mxu1  ;;  %v276_v41 = vsel %vm275_vm1, %v634_v32, 0.0  ;;  %v688_v34 = vadd.f32 %v256_v36, %v631_v29 }
  0xfc   :  { %v317_v40 = vmul.f32 %v682_v23, %v682_v23 }
  0xfd   :  { %v277_v42 = vsel %vm275_vm1, %v639_v38, 0.0  ;;  %v310_v43 = vmul.f32 %v639_v38, %v639_v38  ;;  %v322_v45 = vsel %vm275_vm1, %v309_v37, 0.0 }
  0xfe   :  { %v278_v44 = vadd.f32 %v277_v42, %v276_v41 }
  0xff   :  { %v323_v46 = vsel %vm275_vm1, %v310_v43, 0.0 }
 0x100   :  { %v324_v47 = vadd.f32 %v323_v46, %v322_v45  ;;  %v229_v48 = vpop.f32.mrb[4].mxu0  ;;  %v261_v49 = vpop.f32.mrb[4].mxu1  ;;  %v291_v45 = vsel %vm275_vm1, %v682_v23, 0.0 }
 0x101   :  { %v650_v50 = vadd.f32 %v229_v48, %v631_v29  ;;  %v231_v51 = vpop.f32.mrb[5].mxu0  ;;  %v263_v52 = vpop.f32.mrb[5].mxu1  ;;  %v701_v43 = vadd.f32 %v261_v49, %v631_v29  ;;  %v318_v48 = vmul.f32 %v688_v34, %v688_v34 }
 0x102   :  { %v232_v53 = vpop.f32.mrb[6].mxu0  ;;  %v264_v54 = vpop.f32.mrb[6].mxu1 }
 0x103   :  { %v279_v55 = vsel %vm275_vm1, %v650_v50, 0.0  ;;  %v311_v56 = vmul.f32 %v650_v50, %v650_v50  ;;  %v657_v57 = vadd.f32 %v232_v53, %v631_v29  ;;  %v234_v58 = vpop.f32.mrb[7].mxu0  ;;  %v266_v59 = vpop.f32.mrb[7].mxu1  ;;  %v713_v52 = vadd.f32 %v264_v54, %v631_v29 }
 0x104   :  { %v280_v60 = vadd.f32 %v279_v55, %v278_v44  ;;  %v293_v58 = vsel %vm275_vm1, %v688_v34, 0.0  ;;  %v319_v59 = vmul.f32 %v701_v43, %v701_v43  ;;  %v295_v54 = vsel %vm275_vm1, %v701_v43, 0.0 }
 0x105   :  { %v325_v61 = vsel %vm275_vm1, %v311_v56, 0.0  ;;  %v281_v62 = vsel %vm275_vm1, %v657_v57, 0.0  ;;  %v312_v63 = vmul.f32 %v657_v57, %v657_v57  ;;  %v337_v56 = vsel %vm275_vm1, %v317_v40, 0.0 }
 0x106   :  { %v326_v0 = vadd.f32 %v325_v61, %v324_v47  ;;  %v282_v1 = vadd.f32 %v281_v62, %v280_v60  ;;  %v339_v62 = vsel %vm275_vm1, %v318_v48, 0.0 }
 0x107   :  { %v327_v2 = vsel %vm275_vm1, %v312_v63, 0.0 }
 0x108   :  { %v328_v3 = vadd.f32 %v327_v2, %v326_v0  ;;  %v237_v4 = vpop.f32.mrb[8].mxu0  ;;  %v269_v5 = vpop.f32.mrb[8].mxu1  ;;  %v341_v2 = vsel %vm275_vm1, %v319_v59, 0.0 }
 0x109   :  { %v666_v6 = vadd.f32 %v237_v4, %v631_v29  ;;  %v239_v7 = vpop.f32.mrb[9].mxu0  ;;  %v271_v8 = vpop.f32.mrb[9].mxu1  ;;  %v716_v49 = vadd.f32 %v269_v5, %v631_v29 }
 0x10a   :  { %v240_v9 = vpop.f32.mrb[10].mxu0  ;;  %v272_v10 = vpop.f32.mrb[10].mxu1 }
 0x10b   :  { %v283_v11 = vsel %vm275_vm1, %v666_v6, 0.0  ;;  %v313_v12 = vmul.f32 %v666_v6, %v666_v6  ;;  %v673_v13 = vadd.f32 %v240_v9, %v631_v29  ;;  %v242_v14 = vpop.f32.mrb[11].mxu0  ;;  %v273_v15 = vpop.f32.mrb[11].mxu1  ;;  %v321_v63 = vmul.f32 %v716_v49, %v716_v49 }
 0x10c   :  { %v284_v16 = vadd.f32 %v283_v11, %v282_v1  ;;  %v300_v4 = vsel %vm299_vm2, %v716_v49, 0.0 }
 0x10d   :  { %v329_v17 = vsel %vm275_vm1, %v313_v12, 0.0  ;;  %v285_v18 = vsel %vm275_vm1, %v673_v13, 0.0  ;;  %v314_v19 = vmul.f32 %v673_v13, %v673_v13  ;;  %v345_v9 = vsel %vm299_vm2, %v321_v63, 0.0 }
 0x10e   :  { %v330_v20 = vadd.f32 %v329_v17, %v328_v3  ;;  %v286_v21 = vadd.f32 %v285_v18, %v284_v16  ;;  %v297_v3 = vsel %vm275_vm1, %v713_v52, 0.0 }
 0x10f   :  { %v331_v22 = vsel %vm275_vm1, %v314_v19, 0.0 }
 0x110   :  { %v332_v24 = vadd.f32 %v331_v22, %v330_v20  ;;  %v245_v25 = vpop.f32.mrb[12].mxu0 }
 0x111   :  { %v685_v27 = vadd.f32 %v245_v25, %v631_v29  ;;  %v247_v30 = vpop.f32.mrb[13].mxu0 }
 0x112   :  { %v248_v33 = vpop.f32.mrb[14].mxu0 }
 0x113   :  { %v287_v35 = vsel %vm275_vm1, %v685_v27, 0.0  ;;  %v315_v37 = vmul.f32 %v685_v27, %v685_v27  ;;  %v695_v39 = vadd.f32 %v248_v33, %v631_v29  ;;  %v250_v31 = vpop.f32.mrb[15].mxu0  ;;  %v320_v29 = vmul.f32 %v713_v52, %v713_v52 }
 0x114   :  { %v288_v41 = vadd.f32 %v287_v35, %v286_v21 }
 0x115   :  { %v333_v42 = vsel %vm275_vm1, %v315_v37, 0.0  ;;  %v289_v36 = vsel %vm275_vm1, %v695_v39, 0.0  ;;  %v316_v44 = vmul.f32 %v695_v39, %v695_v39  ;;  %v343_v8 = vsel %vm275_vm1, %v320_v29, 0.0 }
 0x116   :  { %v334_v46 = vadd.f32 %v333_v42, %v332_v24  ;;  %v290_v47 = vadd.f32 %v289_v36, %v288_v41 }
 0x117   :  { %v335_v51 = vsel %vm275_vm1, %v316_v44, 0.0 }
 0x118   :  { %v292_v53 = vadd.f32 %v291_v45, %v290_v47  ;;  %v336_v55 = vadd.f32 %v335_v51, %v334_v46 }
 0x11a   :  { %v338_v60 = vadd.f32 %v337_v56, %v336_v55  ;;  %v294_v61 = vadd.f32 %v293_v58, %v292_v53 }
 0x11c   :  { %v296_v0 = vadd.f32 %v295_v54, %v294_v61  ;;  %v340_v1 = vadd.f32 %v339_v62, %v338_v60 }
 0x11e   :  { %v298_v5 = vadd.f32 %v297_v3, %v296_v0  ;;  %v342_v7 = vadd.f32 %v341_v2, %v340_v1 }
 0x120   :  { %v344_v10 = vadd.f32 %v343_v8, %v342_v7  ;;  %v301_v11 = vadd.f32 %v300_v4, %v298_v5 }
 0x122   :  { %v302_v12 = vrot.slane %v301_v11, 4  ;;  %v346_v14 = vadd.f32 %v345_v9, %v344_v10 }
 0x124   :  { %v303_v15 = vadd.f32 %v302_v12, %v301_v11  ;;  %v347_v16 = vrot.slane %v346_v14, 4 }
 0x126   :  { %v304_v17 = vrot.slane %v303_v15, 2  ;;  %v348_v18 = vadd.f32 %v347_v16, %v346_v14 }
 0x128   :  { %v305_v19 = vadd.f32 %v304_v17, %v303_v15  ;;  %v349_v20 = vrot.slane %v348_v18, 2 }
 0x12a   :  { %v306_v21 = vrot.slane %v305_v19, 1  ;;  %v350_v22 = vadd.f32 %v349_v20, %v348_v18 }
 0x12c   :  { %v307_v24 = vadd.f32 %v306_v21, %v305_v19  ;;  %v351_v25 = vrot.slane %v350_v22, 1 }
 0x12e   :  { %v308_v30 = vmul.f32 0.010204081, %v307_v24  ;;  %v352_v33 = vadd.f32 %v351_v25, %v350_v22 }
 0x130   :  { %v353_v35 = vmul.f32 0.010204081, %v352_v33  ;;  %v354_v37 = vmul.f32 %v308_v30, %v308_v30  ;;  %v356_v31 = vsub.f32 %v634_v32, %v308_v30  ;;  %v357_v40 = vsub.f32 %v639_v38, %v308_v30 }
 0x131   :  { %v358_v41 = vsub.f32 %v650_v50, %v308_v30  ;;  %v359_v42 = vsub.f32 %v657_v57, %v308_v30  ;;  %v360_v36 = vsub.f32 %v666_v6, %v308_v30  ;;  %v361_v44 = vsub.f32 %v673_v13, %v308_v30 }
 0x132   :  { %v355_v45 = vsub.f32 %v353_v35, %v354_v37  ;;  %v362_v46 = vsub.f32 %v685_v27, %v308_v30  ;;  %v363_v47 = vsub.f32 %v695_v39, %v308_v30  ;;  %v364_v48 = vsub.f32 %v682_v23, %v308_v30 }
 0x133   :  { %v365_v51 = vsub.f32 %v688_v34, %v308_v30  ;;  %v366_v32 = vsub.f32 %v701_v43, %v308_v30  ;;  %v367_v38 = vsub.f32 %v713_v52, %v308_v30  ;;  %v368_v50 = vsub.f32 %v716_v49, %v308_v30 }
 0x134   :  { %v369_v57 = vadd.f32 1e-05, %v355_v45  ;;  %v386_v6 = vsub.s32 1, %v622_v26  ;;  %v403_v13 = vsub.s32 2, %v622_v26 }
 0x136   :  { %526 = vrsqrt.f32 %v369_v57  ;;  %v387_v27 = vrot.slane %v628_v28, %v386_v6  ;;  %v404_v39 = vrot.slane %v628_v28, %v403_v13 }
 0x140   :  { %v527_v53 = vpop.eup %526 }
 0x141   :  { %v371_v23 = vmul.f32 %v527_v53, %v356_v31  ;;  %v372_v55 = vmul.f32 %v527_v53, %v357_v40  ;;  %v373_v34 = vmul.f32 %v527_v53, %v358_v41  ;;  %v374_v56 = vmul.f32 %v527_v53, %v359_v42 }
 0x142   :  { %v375_v43 = vmul.f32 %v527_v53, %v360_v36  ;;  %v376_v58 = vmul.f32 %v527_v53, %v361_v44  ;;  %v377_v52 = vmul.f32 %v527_v53, %v362_v46  ;;  %v378_v59 = vmul.f32 %v527_v53, %v363_v47 }
 0x143   :  { %v379_v49 = vmul.f32 %v527_v53, %v364_v48  ;;  %v380_v60 = vmul.f32 %v527_v53, %v365_v51  ;;  %v381_v61 = vmul.f32 %v527_v53, %v366_v32  ;;  %v382_v62 = vmul.f32 %v527_v53, %v367_v38 }
 0x144   :  { %v383_v54 = vmul.f32 %v527_v53, %v368_v50  ;;  %v388_v29 = vmul.f32 %v387_v27, %v371_v23  ;;  %v389_v26 = vmul.f32 %v387_v27, %v372_v55  ;;  %v390_v63 = vmul.f32 %v387_v27, %v373_v34 }
 0x145   :  { %v391_v0 = vmul.f32 %v387_v27, %v374_v56  ;;  %v392_v1 = vmul.f32 %v387_v27, %v375_v43  ;;  %v393_v2 = vmul.f32 %v387_v27, %v376_v58  ;;  %v394_v28 = vmul.f32 %v387_v27, %v377_v52 }
 0x146   :  { %v395_v3 = vmul.f32 %v387_v27, %v378_v59  ;;  %v396_v4 = vmul.f32 %v387_v27, %v379_v49  ;;  %v397_v5 = vmul.f32 %v387_v27, %v380_v60  ;;  %v398_v7 = vmul.f32 %v387_v27, %v381_v61 }
 0x147   :  { %v399_v8 = vmul.f32 %v387_v27, %v382_v62  ;;  %v400_v9 = vmul.f32 %v387_v27, %v383_v54  ;;  %v405_v10 = vadd.f32 %v404_v39, %v388_v29  ;;  %v406_v11 = vadd.f32 %v404_v39, %v389_v26 }
 0x148   :  { %v407_v12 = vadd.f32 %v404_v39, %v390_v63  ;;  %v408_v14 = vadd.f32 %v404_v39, %v391_v0  ;;  %v409_v15 = vadd.f32 %v404_v39, %v392_v1  ;;  %v410_v16 = vadd.f32 %v404_v39, %v393_v2 }
 0x149   :  { %v411_v17 = vadd.f32 %v404_v39, %v394_v28  ;;  %v412_v18 = vadd.f32 %v404_v39, %v395_v3  ;;  %v413_v19 = vadd.f32 %v404_v39, %v396_v4  ;;  %v414_v20 = vadd.f32 %v404_v39, %v397_v5 }
 0x14a   :  { %v415_v21 = vadd.f32 %v404_v39, %v398_v7  ;;  %v416_v22 = vadd.f32 %v404_v39, %v399_v8  ;;  %v417_v24 = vadd.f32 %v404_v39, %v400_v9  ;;  %v418_v25 = vmax.f32 %v405_v10, 0.0 }
 0x14b   :  { %v419_v30 = vmax.f32 %v406_v11, 0.0  ;;  %v420_v33 = vmax.f32 %v407_v12, 0.0  ;;  %v421_v35 = vmax.f32 %v408_v14, 0.0  ;;  %v422_v37 = vmax.f32 %v409_v15, 0.0 }
 0x14c   :  { %v423_v31 = vmax.f32 %v410_v16, 0.0  ;;  %v424_v40 = vmax.f32 %v411_v17, 0.0  ;;  %v425_v41 = vmax.f32 %v412_v18, 0.0  ;;  %v426_v42 = vmax.f32 %v413_v19, 0.0  ;;  %431 = vst.msk [vmem:[%s809_s3] sm:$0xff] %vm275_vm1, %v418_v25 }
 0x14d   :  { %v427_v36 = vmax.f32 %v414_v20, 0.0  ;;  %v428_v44 = vmax.f32 %v415_v21, 0.0  ;;  %v429_v45 = vmax.f32 %v416_v22, 0.0  ;;  %v430_v46 = vmax.f32 %v417_v24, 0.0  ;;  %432 = vst.msk [vmem:[%s809_s3 + $0x8] sm:$0xff] %vm275_vm1, %v419_v30  ;;  %433 = vst.msk [vmem:[%s809_s3 + $0x10] sm:$0xff] %vm275_vm1, %v420_v33 }
 0x14e   :  { %434 = vst.msk [vmem:[%s809_s3 + $0x18] sm:$0xff] %vm275_vm1, %v421_v35  ;;  %435 = vst.msk [vmem:[%s809_s3 + $0x20] sm:$0xff] %vm275_vm1, %v422_v37 }
 0x14f   :  { %436 = vst.msk [vmem:[%s809_s3 + $0x28] sm:$0xff] %vm275_vm1, %v423_v31  ;;  %437 = vst.msk [vmem:[%s809_s3 + $0x30] sm:$0xff] %vm275_vm1, %v424_v40 }
 0x150   :  { %438 = vst.msk [vmem:[%s809_s3 + $0x38] sm:$0xff] %vm275_vm1, %v425_v41  ;;  %439 = vst.msk [vmem:[%s809_s3 + $0x40] sm:$0xff] %vm275_vm1, %v426_v42 }
 0x151   :  { %440 = vst.msk [vmem:[%s809_s3 + $0x48] sm:$0xff] %vm275_vm1, %v427_v36  ;;  %441 = vst.msk [vmem:[%s809_s3 + $0x50] sm:$0xff] %vm275_vm1, %v428_v44 }
 0x152   :  { %442 = vst.msk [vmem:[%s809_s3 + $0x58] sm:$0xff] %vm275_vm1, %v429_v45 }
 0x153   :  { %443 = vst.msk [vmem:[%s809_s3 + $0x60] sm:$0x3] %vm299_vm2, %v430_v46 }

// kernel: inception_net.19
= control target key start
LH: loop header
LB: loop body
LE: loop exit
PB: predicated region body
PF: predicated region fallthrough
CT: control target
= control target key end

     0   :  { %v930_v0 = vmov 0   ;;  %vm373_vm0 = vcmask 130048   ;;  %v92_v56 = vlaneseq  ;;  %vm571_vm1 = vcmask 523264   ;;  %s1313_s1 = inlined_call_operand.vmem [shape: bf16[400,64], index: 1, kind: input, shape index: {}]   ;;  %s1314_s0 = inlined_call_operand.vmem [shape: bf16[98,400], index: 0, kind: input, shape index: {}]   ;;  %s1315_s2 = inlined_call_operand.vmem [shape: f32[3,64], index: 2, kind: input, shape index: {}]   ;;  %s1316_s3 = inlined_call_operand.vmem [shape: f32[98,64], index: 3, kind: output, shape index: {}]  }
   0x1   :  { %483 = vmatprep.subr.bf16.mxu1 %v930_v0  ;;  %v863_v1 = vld [vmem:[%s1313_s1 + $0x40] sm:$0xff]   ;;  %v866_v4 = vld [vmem:[%s1313_s1 + $0x48] sm:$0xff]   ;;  %v869_v7 = vld [vmem:[%s1313_s1 + $0x50] sm:$0xff]   ;;  %vm595_vm2 = vcmask 517120  }
   0x2   :  { %v864_v2 = vld [vmem:[%s1313_s1 + $0x80] sm:$0xff]   ;;  %804 = vmatprep.subr.bf16.mxu0 %v863_v1  ;;  %v867_v5 = vld [vmem:[%s1313_s1 + $0x88] sm:$0xff]   ;;  %v870_v8 = vld [vmem:[%s1313_s1 + $0x90] sm:$0xff]   ;;  %v1120_v57 = vshrl.u32 %v92_v56, 7 }
   0x3   :  { %v865_v3 = vld [vmem:[%s1313_s1] sm:$0xff]   ;;  %484 = vmatpush1.bf16.msra.mxu1 %v864_v2  ;;  %v868_v6 = vld [vmem:[%s1313_s1 + $0x8] sm:$0xff]   ;;  %v871_v9 = vld [vmem:[%s1313_s1 + $0x10] sm:$0xff]  }
   0x4   :  { %805 = vmatpush3.bf16.msra.mxu0 %v865_v3  ;;  %485 = vmatprep.subr.bf16.mxu1 %v930_v0  ;;  %v872_v10 = vld [vmem:[%s1313_s1 + $0x58] sm:$0xff]   ;;  %v875_v13 = vld [vmem:[%s1313_s1 + $0x60] sm:$0xff]   ;;  %v878_v16 = vld [vmem:[%s1313_s1 + $0x68] sm:$0xff]   ;;  %v699_v58 = vsub.s32 2, %v1120_v57  ;;  %v94_v61 = vsub.s32 0, %v1120_v57 }
   0x5   :  { %806 = vmatprep.subr.bf16.mxu0 %v866_v4  ;;  %v873_v11 = vld [vmem:[%s1313_s1 + $0x98] sm:$0xff]   ;;  %v876_v14 = vld [vmem:[%s1313_s1 + $0xa0] sm:$0xff]   ;;  %v879_v17 = vld [vmem:[%s1313_s1 + $0xa8] sm:$0xff]  }
   0x6   :  { %v874_v12 = vld [vmem:[%s1313_s1 + $0x18] sm:$0xff]   ;;  %v877_v15 = vld [vmem:[%s1313_s1 + $0x20] sm:$0xff]   ;;  %v880_v18 = vld [vmem:[%s1313_s1 + $0x28] sm:$0xff]  }
   0x7   :  { %486 = vmatpush1.bf16.msra.mxu1 %v867_v5  ;;  %v881_v19 = vld [vmem:[%s1313_s1 + $0x70] sm:$0xff]   ;;  %v884_v22 = vld [vmem:[%s1313_s1 + $0x78] sm:$0xff]   ;;  %v890_v28 = vld [vmem:[%s1313_s1 + $0xc0] sm:$0xff]  }
   0x8   :  { %807 = vmatpush3.bf16.msra.mxu0 %v868_v6  ;;  %487 = vmatprep.subr.bf16.mxu1 %v930_v0  ;;  %v882_v20 = vld [vmem:[%s1313_s1 + $0xb0] sm:$0xff]   ;;  %v885_v24 = vld [vmem:[%s1313_s1 + $0xb8] sm:$0xff]   ;;  %v39_v48 = vld [vmem:[%s1314_s0 + $0xc0] sm:$0x11] }
   0x9   :  { %808 = vmatprep.subr.bf16.mxu0 %v869_v7  ;;  %v883_v21 = vld [vmem:[%s1313_s1 + $0x30] sm:$0xff]   ;;  %v893_v25 = vld [vmem:[%s1314_s0 + $0xc] ss:$16 sps:$4 sm:$0xff]   ;;  %v891_v30 = vld [vmem:[%s1314_s0 + $0x8] ss:$16 sps:$4 sm:$0xff]   ;;  %v769_v50 = vcombine.high %v39_v48, %v39_v48  ;;  %v768_v54 = vcombine.low %v39_v48, %v39_v48 }
   0xa   :  { %v889_v23 = vld [vmem:[%s1314_s0 + $0x4] ss:$16 sps:$4 sm:$0xff]   ;;  %v886_v26 = vld [vmem:[%s1313_s1 + $0x38] sm:$0xff]   ;;  %797 = vmatprep.mubr.msk.bf16.mxu1 %vm373_vm0, %v893_v25  ;;  %v887_v27 = vld [vmem:[%s1314_s0] ss:$16 sps:$4 sm:$0xff]  }
   0xb   :  { %488 = vmatpush1.bf16.msra.mxu1 %v870_v8  ;;  %427 = vmatprep.mubr.bf16.mxu0 %v889_v23  ;;  %v894_v29 = vld [vmem:[%s1314_s0 + $0x24] ss:$16 sps:$4 sm:$0xff]   ;;  %v897_v31 = vld [vmem:[%s1314_s0 + $0x2c] ss:$16 sps:$4 sm:$0xff]   ;;  %v896_v32 = vld [vmem:[%s1314_s0 + $0x20] ss:$16 sps:$4 sm:$0xff]  }
   0xc   :  { %809 = vmatpush3.bf16.msra.mxu0 %v871_v9  ;;  %489 = vmatprep.subr.bf16.mxu1 %v930_v0  ;;  %v900_v33 = vld [vmem:[%s1314_s0 + $0x44] ss:$16 sps:$4 sm:$0xff]   ;;  %v899_v34 = vld [vmem:[%s1314_s0 + $0x28] ss:$16 sps:$4 sm:$0xff]   ;;  %v903_v35 = vld [vmem:[%s1314_s0 + $0x4c] ss:$16 sps:$4 sm:$0xff]  }
   0xd   :  { %810 = vmatprep.subr.bf16.mxu0 %v872_v10  ;;  %v902_v36 = vld [vmem:[%s1314_s0 + $0x40] ss:$16 sps:$4 sm:$0xff]   ;;  %v906_v37 = vld [vmem:[%s1314_s0 + $0x64] ss:$16 sps:$4 sm:$0xff]   ;;  %v905_v38 = vld [vmem:[%s1314_s0 + $0x48] ss:$16 sps:$4 sm:$0xff]  }
   0xe   :  { %v909_v39 = vld [vmem:[%s1314_s0 + $0x6c] ss:$16 sps:$4 sm:$0xff]   ;;  %v908_v40 = vld [vmem:[%s1314_s0 + $0x60] ss:$16 sps:$4 sm:$0xff]   ;;  %v912_v41 = vld [vmem:[%s1314_s0 + $0x84] ss:$16 sps:$4 sm:$0xff]  }
   0xf   :  { %490 = vmatpush1.bf16.msra.mxu1 %v873_v11  ;;  %v911_v42 = vld [vmem:[%s1314_s0 + $0x68] ss:$16 sps:$4 sm:$0xff]   ;;  %v915_v43 = vld [vmem:[%s1314_s0 + $0x8c] ss:$16 sps:$4 sm:$0xff]   ;;  %v914_v44 = vld [vmem:[%s1314_s0 + $0x80] ss:$16 sps:$4 sm:$0xff]  }
  0x10   :  { %811 = vmatpush3.bf16.msra.mxu0 %v874_v12  ;;  %491 = vmatprep.subr.bf16.mxu1 %v930_v0  ;;  %v918_v45 = vld [vmem:[%s1314_s0 + $0xa4] ss:$16 sps:$4 sm:$0xff]   ;;  %v917_v46 = vld [vmem:[%s1314_s0 + $0x88] ss:$16 sps:$4 sm:$0xff]   ;;  %v921_v47 = vld [vmem:[%s1314_s0 + $0xac] ss:$16 sps:$4 sm:$0xff]  }
  0x11   :  { %812 = vmatprep.subr.bf16.mxu0 %v875_v13  ;;  %v920_v49 = vld [vmem:[%s1314_s0 + $0xa0] ss:$16 sps:$4 sm:$0xff]   ;;  %v40_v51 = vld [vmem:[%s1314_s0 + $0xc8] sm:$0x11] }
  0x12   :  { %v923_v52 = vld [vmem:[%s1314_s0 + $0xa8] ss:$16 sps:$4 sm:$0xff]   ;;  %v771_v53 = vcombine.high %v40_v51, %v40_v51  ;;  %v770_v55 = vcombine.low %v40_v51, %v40_v51  ;;  %v1126_v59 = vld [vmem:[%s1315_s2] sm:$0x7] }
  0x13   :  { %492 = vmatpush1.bf16.msra.mxu1 %v876_v14  ;;  %v1129_v60 = vrot.slane %v1126_v59, %v699_v58  ;;  %v1133_v63 = vrot.slane %v1126_v59, %v94_v61 }
  0x14   :  { %813 = vmatpush3.bf16.msra.mxu0 %v877_v15  ;;  %493 = vmatprep.subr.bf16.mxu1 %v930_v0 }
  0x15   :  { %814 = vmatprep.subr.bf16.mxu0 %v878_v16 }
  0x17   :  { %494 = vmatpush1.bf16.msra.mxu1 %v879_v17 }
  0x18   :  { %815 = vmatpush3.bf16.msra.mxu0 %v880_v18  ;;  %495 = vmatprep.subr.bf16.mxu1 %v930_v0 }
  0x19   :  { %816 = vmatprep.subr.bf16.mxu0 %v881_v19 }
  0x1b   :  { %496 = vmatpush1.bf16.msra.mxu1 %v882_v20 }
  0x1c   :  { %817 = vmatpush3.bf16.msra.mxu0 %v883_v21  ;;  %497 = vmatprep.subr.bf16.mxu1 %v930_v0 }
  0x1d   :  { %818 = vmatprep.subr.bf16.mxu0 %v884_v22 }
  0x1f   :  { %498 = vmatpush1.bf16.msra.mxu1 %v885_v24 }
  0x20   :  { %819 = vmatpush3.bf16.msra.mxu0 %v886_v26  ;;  %499 = vmatprep.subr.bf16.mxu1 %v930_v0 }
  0x23   :  { %428 = vmatmul.mubr.bf16.vlgmr.msra.gmra.mrb[0].mxu0 %v887_v27  ;;  %500 = vmatpush1.bf16.msra.mxu1 %v890_v28 }
  0x24   :  { %435 = vmatprep.mubr.bf16.mxu0 %v894_v29 }
  0x26   :  { %516 = vmatmul.mubr.bf16.vlgmr.msra.gmra.mrb[0].mxu1 %v891_v30 }
  0x27   :  { %798 = vmatprep.mubr.msk.bf16.mxu1 %vm373_vm0, %v897_v31 }
  0x2b   :  { %436 = vmatmul.mubr.bf16.gmra.mrb[4].mxu0 %v896_v32 }
  0x2c   :  { %443 = vmatprep.mubr.bf16.mxu0 %v900_v33 }
  0x2e   :  { %524 = vmatmul.mubr.bf16.gmra.mrb[4].mxu1 %v899_v34 }
  0x2f   :  { %799 = vmatprep.mubr.msk.bf16.mxu1 %vm373_vm0, %v903_v35 }
  0x33   :  { %444 = vmatmul.mubr.bf16.gmra.mrb[8].mxu0 %v902_v36 }
  0x34   :  { %451 = vmatprep.mubr.bf16.mxu0 %v906_v37 }
  0x36   :  { %532 = vmatmul.mubr.bf16.gmra.mrb[8].mxu1 %v905_v38 }
  0x37   :  { %800 = vmatprep.mubr.msk.bf16.mxu1 %vm373_vm0, %v909_v39 }
  0x3b   :  { %452 = vmatmul.mubr.bf16.gmra.mrb[12].mxu0 %v908_v40 }
  0x3c   :  { %459 = vmatprep.mubr.bf16.mxu0 %v912_v41 }
  0x3e   :  { %540 = vmatmul.mubr.bf16.gmra.mrb[12].mxu1 %v911_v42 }
  0x3f   :  { %801 = vmatprep.mubr.msk.bf16.mxu1 %vm373_vm0, %v915_v43 }
  0x43   :  { %460 = vmatmul.mubr.bf16.gmra.mrb[16].mxu0 %v914_v44 }
  0x44   :  { %467 = vmatprep.mubr.bf16.mxu0 %v918_v45 }
  0x46   :  { %548 = vmatmul.mubr.bf16.gmra.mrb[16].mxu1 %v917_v46 }
  0x47   :  { %802 = vmatprep.mubr.msk.bf16.mxu1 %vm373_vm0, %v921_v47 }
  0x4b   :  { %468 = vmatmul.mubr.bf16.gmra.mrb[20].mxu0 %v920_v49 }
  0x4c   :  { %475 = vmatprep.mubr.bf16.mxu0 %v769_v50 }
  0x4e   :  { %556 = vmatmul.mubr.bf16.gmra.mrb[20].mxu1 %v923_v52 }
  0x4f   :  { %803 = vmatprep.mubr.msk.bf16.mxu1 %vm373_vm0, %v771_v53 }
  0x53   :  { %476 = vmatmul.mubr.bf16.gmra.mrb[24].mxu0 %v768_v54 }
  0x56   :  { %564 = vmatmul.mubr.bf16.gmra.mrb[24].mxu1 %v770_v55 }
  0xf6   :  { %v820_v62 = vpop.f32.mrb[0].mxu0 }
  0xf7   :  { %v821_v0 = vpop.f32.mrb[1].mxu0 }
  0xf8   :  { %v822_v1 = vadd.f32 %v821_v0, %v820_v62  ;;  %v823_v2 = vpop.f32.mrb[2].mxu0 }
  0xf9   :  { %v824_v3 = vpop.f32.mrb[3].mxu0  ;;  %v517_v4 = vpop.f32.mrb[0].mxu1 }
  0xfa   :  { %v825_v5 = vadd.f32 %v824_v3, %v823_v2  ;;  %v430_v6 = vadd.f32 %v822_v1, %v1133_v63  ;;  %v519_v7 = vpop.f32.mrb[1].mxu1 }
  0xfb   :  { %v520_v8 = vpop.f32.mrb[2].mxu1 }
  0xfc   :  { %v1136_v9 = vadd.f32 %v517_v4, %v430_v6  ;;  %v433_v10 = vadd.f32 %v825_v5, %v1133_v63  ;;  %v522_v11 = vpop.f32.mrb[3].mxu1 }
  0xfe   :  { %v605_v12 = vmul.f32 %v1136_v9, %v1136_v9  ;;  %v1141_v13 = vadd.f32 %v520_v8, %v433_v10  ;;  %v826_v14 = vpop.f32.mrb[4].mxu0  ;;  %v572_v16 = vsel %vm571_vm1, %v1136_v9, 0.0 }
  0xff   :  { %v827_v15 = vpop.f32.mrb[5].mxu0 }
 0x100   :  { %v573_v17 = vsel %vm571_vm1, %v1141_v13, 0.0  ;;  %v606_v18 = vmul.f32 %v1141_v13, %v1141_v13  ;;  %v828_v19 = vadd.f32 %v827_v15, %v826_v14  ;;  %v829_v20 = vpop.f32.mrb[6].mxu0  ;;  %v618_v24 = vsel %vm571_vm1, %v605_v12, 0.0 }
 0x101   :  { %v574_v21 = vadd.f32 %v573_v17, %v572_v16  ;;  %v830_v22 = vpop.f32.mrb[7].mxu0  ;;  %v525_v23 = vpop.f32.mrb[4].mxu1 }
 0x102   :  { %v619_v25 = vsel %vm571_vm1, %v606_v18, 0.0  ;;  %v831_v26 = vadd.f32 %v830_v22, %v829_v20  ;;  %v438_v27 = vadd.f32 %v828_v19, %v1133_v63  ;;  %v527_v28 = vpop.f32.mrb[5].mxu1 }
 0x103   :  { %v620_v29 = vadd.f32 %v619_v25, %v618_v24  ;;  %v528_v30 = vpop.f32.mrb[6].mxu1 }
 0x104   :  { %v1152_v31 = vadd.f32 %v525_v23, %v438_v27  ;;  %v441_v32 = vadd.f32 %v831_v26, %v1133_v63  ;;  %v530_v33 = vpop.f32.mrb[7].mxu1 }
 0x106   :  { %v575_v34 = vsel %vm571_vm1, %v1152_v31, 0.0  ;;  %v607_v35 = vmul.f32 %v1152_v31, %v1152_v31  ;;  %v1159_v36 = vadd.f32 %v528_v30, %v441_v32  ;;  %v832_v37 = vpop.f32.mrb[8].mxu0 }
 0x107   :  { %v576_v38 = vadd.f32 %v575_v34, %v574_v21  ;;  %v833_v39 = vpop.f32.mrb[9].mxu0 }
 0x108   :  { %v621_v40 = vsel %vm571_vm1, %v607_v35, 0.0  ;;  %v577_v41 = vsel %vm571_vm1, %v1159_v36, 0.0  ;;  %v608_v42 = vmul.f32 %v1159_v36, %v1159_v36  ;;  %v834_v43 = vadd.f32 %v833_v39, %v832_v37  ;;  %v835_v44 = vpop.f32.mrb[10].mxu0 }
 0x109   :  { %v622_v45 = vadd.f32 %v621_v40, %v620_v29  ;;  %v578_v46 = vadd.f32 %v577_v41, %v576_v38  ;;  %v836_v47 = vpop.f32.mrb[11].mxu0  ;;  %v533_v48 = vpop.f32.mrb[8].mxu1 }
 0x10a   :  { %v623_v49 = vsel %vm571_vm1, %v608_v42, 0.0  ;;  %v837_v50 = vadd.f32 %v836_v47, %v835_v44  ;;  %v446_v51 = vadd.f32 %v834_v43, %v1133_v63  ;;  %v535_v52 = vpop.f32.mrb[9].mxu1 }
 0x10b   :  { %v624_v53 = vadd.f32 %v623_v49, %v622_v45  ;;  %v536_v54 = vpop.f32.mrb[10].mxu1 }
 0x10c   :  { %v1168_v55 = vadd.f32 %v533_v48, %v446_v51  ;;  %v449_v56 = vadd.f32 %v837_v50, %v1133_v63  ;;  %v538_v58 = vpop.f32.mrb[11].mxu1 }
 0x10e   :  { %v579_v61 = vsel %vm571_vm1, %v1168_v55, 0.0  ;;  %v609_v62 = vmul.f32 %v1168_v55, %v1168_v55  ;;  %v1175_v0 = vadd.f32 %v536_v54, %v449_v56  ;;  %v838_v1 = vpop.f32.mrb[12].mxu0 }
 0x10f   :  { %v580_v2 = vadd.f32 %v579_v61, %v578_v46  ;;  %v839_v3 = vpop.f32.mrb[13].mxu0 }
 0x110   :  { %v625_v4 = vsel %vm571_vm1, %v609_v62, 0.0  ;;  %v581_v5 = vsel %vm571_vm1, %v1175_v0, 0.0  ;;  %v610_v6 = vmul.f32 %v1175_v0, %v1175_v0  ;;  %v840_v7 = vadd.f32 %v839_v3, %v838_v1  ;;  %v841_v8 = vpop.f32.mrb[14].mxu0 }
 0x111   :  { %v626_v10 = vadd.f32 %v625_v4, %v624_v53  ;;  %v582_v11 = vadd.f32 %v581_v5, %v580_v2  ;;  %v842_v12 = vpop.f32.mrb[15].mxu0  ;;  %v541_v14 = vpop.f32.mrb[12].mxu1 }
 0x112   :  { %v627_v15 = vsel %vm571_vm1, %v610_v6, 0.0  ;;  %v843_v16 = vadd.f32 %v842_v12, %v841_v8  ;;  %v454_v17 = vadd.f32 %v840_v7, %v1133_v63  ;;  %v543_v18 = vpop.f32.mrb[13].mxu1 }
 0x113   :  { %v628_v19 = vadd.f32 %v627_v15, %v626_v10  ;;  %v544_v20 = vpop.f32.mrb[14].mxu1 }
 0x114   :  { %v1184_v21 = vadd.f32 %v541_v14, %v454_v17  ;;  %v457_v22 = vadd.f32 %v843_v16, %v1133_v63  ;;  %v546_v23 = vpop.f32.mrb[15].mxu1 }
 0x116   :  { %v583_v24 = vsel %vm571_vm1, %v1184_v21, 0.0  ;;  %v611_v25 = vmul.f32 %v1184_v21, %v1184_v21  ;;  %v1191_v26 = vadd.f32 %v544_v20, %v457_v22  ;;  %v844_v27 = vpop.f32.mrb[16].mxu0 }
 0x117   :  { %v584_v28 = vadd.f32 %v583_v24, %v582_v11  ;;  %v845_v29 = vpop.f32.mrb[17].mxu0 }
 0x118   :  { %v629_v30 = vsel %vm571_vm1, %v611_v25, 0.0  ;;  %v585_v32 = vsel %vm571_vm1, %v1191_v26, 0.0  ;;  %v612_v33 = vmul.f32 %v1191_v26, %v1191_v26  ;;  %v846_v34 = vadd.f32 %v845_v29, %v844_v27  ;;  %v847_v35 = vpop.f32.mrb[18].mxu0 }
 0x119   :  { %v630_v37 = vadd.f32 %v629_v30, %v628_v19  ;;  %v586_v38 = vadd.f32 %v585_v32, %v584_v28  ;;  %v848_v39 = vpop.f32.mrb[19].mxu0  ;;  %v549_v40 = vpop.f32.mrb[16].mxu1 }
 0x11a   :  { %v631_v41 = vsel %vm571_vm1, %v612_v33, 0.0  ;;  %v849_v42 = vadd.f32 %v848_v39, %v847_v35  ;;  %v462_v43 = vadd.f32 %v846_v34, %v1133_v63  ;;  %v551_v44 = vpop.f32.mrb[17].mxu1 }
 0x11b   :  { %v632_v45 = vadd.f32 %v631_v41, %v630_v37  ;;  %v552_v46 = vpop.f32.mrb[18].mxu1 }
 0x11c   :  { %v1200_v47 = vadd.f32 %v549_v40, %v462_v43  ;;  %v465_v48 = vadd.f32 %v849_v42, %v1133_v63  ;;  %v554_v49 = vpop.f32.mrb[19].mxu1 }
 0x11e   :  { %v587_v50 = vsel %vm571_vm1, %v1200_v47, 0.0  ;;  %v613_v51 = vmul.f32 %v1200_v47, %v1200_v47  ;;  %v1207_v52 = vadd.f32 %v552_v46, %v465_v48  ;;  %v850_v53 = vpop.f32.mrb[20].mxu0 }
 0x11f   :  { %v588_v54 = vadd.f32 %v587_v50, %v586_v38  ;;  %v851_v56 = vpop.f32.mrb[21].mxu0 }
 0x120   :  { %v633_v58 = vsel %vm571_vm1, %v613_v51, 0.0  ;;  %v589_v61 = vsel %vm571_vm1, %v1207_v52, 0.0  ;;  %v614_v62 = vmul.f32 %v1207_v52, %v1207_v52  ;;  %v852_v1 = vadd.f32 %v851_v56, %v850_v53  ;;  %v853_v2 = vpop.f32.mrb[22].mxu0 }
 0x121   :  { %v634_v3 = vadd.f32 %v633_v58, %v632_v45  ;;  %v590_v4 = vadd.f32 %v589_v61, %v588_v54  ;;  %v854_v5 = vpop.f32.mrb[23].mxu0  ;;  %v557_v6 = vpop.f32.mrb[20].mxu1 }
 0x122   :  { %v635_v7 = vsel %vm571_vm1, %v614_v62, 0.0  ;;  %v855_v8 = vadd.f32 %v854_v5, %v853_v2  ;;  %v470_v10 = vadd.f32 %v852_v1, %v1133_v63  ;;  %v559_v11 = vpop.f32.mrb[21].mxu1 }
 0x123   :  { %v636_v12 = vadd.f32 %v635_v7, %v634_v3  ;;  %v560_v14 = vpop.f32.mrb[22].mxu1 }
 0x124   :  { %v1216_v15 = vadd.f32 %v557_v6, %v470_v10  ;;  %v473_v16 = vadd.f32 %v855_v8, %v1133_v63  ;;  %v562_v17 = vpop.f32.mrb[23].mxu1 }
 0x126   :  { %v591_v18 = vsel %vm571_vm1, %v1216_v15, 0.0  ;;  %v615_v19 = vmul.f32 %v1216_v15, %v1216_v15  ;;  %v1223_v20 = vadd.f32 %v560_v14, %v473_v16  ;;  %v856_v22 = vpop.f32.mrb[24].mxu0 }
 0x127   :  { %v592_v23 = vadd.f32 %v591_v18, %v590_v4  ;;  %v857_v24 = vpop.f32.mrb[25].mxu0 }
 0x128   :  { %v637_v25 = vsel %vm571_vm1, %v615_v19, 0.0  ;;  %v593_v27 = vsel %vm571_vm1, %v1223_v20, 0.0  ;;  %v616_v28 = vmul.f32 %v1223_v20, %v1223_v20  ;;  %v858_v29 = vadd.f32 %v857_v24, %v856_v22  ;;  %v859_v30 = vpop.f32.mrb[26].mxu0 }
 0x129   :  { %v638_v32 = vadd.f32 %v637_v25, %v636_v12  ;;  %v594_v33 = vadd.f32 %v593_v27, %v592_v23  ;;  %v860_v34 = vpop.f32.mrb[27].mxu0  ;;  %v565_v35 = vpop.f32.mrb[24].mxu1 }
 0x12a   :  { %v639_v37 = vsel %vm571_vm1, %v616_v28, 0.0  ;;  %v478_v38 = vadd.f32 %v858_v29, %v1133_v63  ;;  %v567_v39 = vpop.f32.mrb[25].mxu1 }
 0x12b   :  { %v640_v40 = vadd.f32 %v639_v37, %v638_v32  ;;  %v568_v41 = vpop.f32.mrb[26].mxu1 }
 0x12c   :  { %v566_v42 = vadd.f32 %v565_v35, %v478_v38  ;;  %v569_v43 = vpop.f32.mrb[27].mxu1 }
 0x12e   :  { %v596_v44 = vsel %vm595_vm2, %v566_v42, 0.0  ;;  %v617_v45 = vmul.f32 %v566_v42, %v566_v42 }
 0x12f   :  { %v597_v46 = vadd.f32 %v596_v44, %v594_v33 }
 0x130   :  { %v641_v48 = vsel %vm595_vm2, %v617_v45, 0.0 }
 0x131   :  { %v598_v49 = vrot.slane %v597_v46, 4  ;;  %v642_v50 = vadd.f32 %v641_v48, %v640_v40 }
 0x133   :  { %v599_v51 = vadd.f32 %v598_v49, %v597_v46  ;;  %v643_v53 = vrot.slane %v642_v50, 4 }
 0x135   :  { %v600_v54 = vrot.slane %v599_v51, 2  ;;  %v644_v56 = vadd.f32 %v643_v53, %v642_v50 }
 0x137   :  { %v601_v58 = vadd.f32 %v600_v54, %v599_v51  ;;  %v645_v63 = vrot.slane %v644_v56, 2 }
 0x139   :  { %v602_v61 = vrot.slane %v601_v58, 1  ;;  %v646_v62 = vadd.f32 %v645_v63, %v644_v56 }
 0x13b   :  { %v603_v1 = vadd.f32 %v602_v61, %v601_v58  ;;  %v647_v2 = vrot.slane %v646_v62, 1 }
 0x13d   :  { %v604_v3 = vmul.f32 0.010204081, %v603_v1  ;;  %v648_v4 = vadd.f32 %v647_v2, %v646_v62 }
 0x13f   :  { %v649_v5 = vmul.f32 0.010204081, %v648_v4  ;;  %v650_v6 = vmul.f32 %v604_v3, %v604_v3  ;;  %v652_v7 = vsub.f32 %v1136_v9, %v604_v3  ;;  %v653_v8 = vsub.f32 %v1141_v13, %v604_v3 }
 0x140   :  { %v654_v10 = vsub.f32 %v1152_v31, %v604_v3  ;;  %v655_v11 = vsub.f32 %v1159_v36, %v604_v3  ;;  %v656_v12 = vsub.f32 %v1168_v55, %v604_v3  ;;  %v657_v14 = vsub.f32 %v1175_v0, %v604_v3 }
 0x141   :  { %v651_v16 = vsub.f32 %v649_v5, %v650_v6  ;;  %v658_v17 = vsub.f32 %v1184_v21, %v604_v3  ;;  %v659_v18 = vsub.f32 %v1191_v26, %v604_v3  ;;  %v660_v19 = vsub.f32 %v1200_v47, %v604_v3 }
 0x142   :  { %v661_v22 = vsub.f32 %v1207_v52, %v604_v3  ;;  %v662_v9 = vsub.f32 %v1216_v15, %v604_v3  ;;  %v663_v13 = vsub.f32 %v1223_v20, %v604_v3  ;;  %v664_v31 = vsub.f32 %v566_v42, %v604_v3 }
 0x143   :  { %v665_v23 = vadd.f32 1e-05, %v651_v16  ;;  %v682_v36 = vsub.s32 1, %v1120_v57 }
 0x145   :  { %928 = vrsqrt.f32 %v665_v23  ;;  %v683_v0 = vrot.slane %v1126_v59, %v682_v36 }
 0x14f   :  { %v929_v55 = vpop.eup %928 }
 0x150   :  { %v667_v24 = vmul.f32 %v929_v55, %v652_v7  ;;  %v668_v21 = vmul.f32 %v929_v55, %v653_v8  ;;  %v669_v25 = vmul.f32 %v929_v55, %v654_v10  ;;  %v670_v26 = vmul.f32 %v929_v55, %v655_v11 }
 0x151   :  { %v671_v27 = vmul.f32 %v929_v55, %v656_v12  ;;  %v672_v47 = vmul.f32 %v929_v55, %v657_v14  ;;  %v673_v28 = vmul.f32 %v929_v55, %v658_v17  ;;  %v674_v52 = vmul.f32 %v929_v55, %v659_v18 }
 0x152   :  { %v675_v29 = vmul.f32 %v929_v55, %v660_v19  ;;  %v676_v15 = vmul.f32 %v929_v55, %v661_v22  ;;  %v677_v30 = vmul.f32 %v929_v55, %v662_v9  ;;  %v678_v20 = vmul.f32 %v929_v55, %v663_v13 }
 0x153   :  { %v679_v32 = vmul.f32 %v929_v55, %v664_v31  ;;  %v684_v33 = vmul.f32 %v683_v0, %v667_v24  ;;  %v685_v34 = vmul.f32 %v683_v0, %v668_v21  ;;  %v686_v35 = vmul.f32 %v683_v0, %v669_v25 }
 0x154   :  { %v687_v57 = vmul.f32 %v683_v0, %v670_v26  ;;  %v688_v37 = vmul.f32 %v683_v0, %v671_v27  ;;  %v689_v38 = vmul.f32 %v683_v0, %v672_v47  ;;  %v690_v59 = vmul.f32 %v683_v0, %v673_v28 }
 0x155   :  { %v691_v39 = vmul.f32 %v683_v0, %v674_v52  ;;  %v692_v40 = vmul.f32 %v683_v0, %v675_v29  ;;  %v693_v41 = vmul.f32 %v683_v0, %v676_v15  ;;  %v694_v42 = vmul.f32 %v683_v0, %v677_v30 }
 0x156   :  { %v695_v43 = vmul.f32 %v683_v0, %v678_v20  ;;  %v696_v44 = vmul.f32 %v683_v0, %v679_v32  ;;  %v701_v45 = vadd.f32 %v1129_v60, %v684_v33  ;;  %v702_v46 = vadd.f32 %v1129_v60, %v685_v34 }
 0x157   :  { %v703_v48 = vadd.f32 %v1129_v60, %v686_v35  ;;  %v704_v49 = vadd.f32 %v1129_v60, %v687_v57  ;;  %v705_v50 = vadd.f32 %v1129_v60, %v688_v37  ;;  %v706_v51 = vadd.f32 %v1129_v60, %v689_v38 }
 0x158   :  { %v707_v53 = vadd.f32 %v1129_v60, %v690_v59  ;;  %v708_v54 = vadd.f32 %v1129_v60, %v691_v39  ;;  %v709_v56 = vadd.f32 %v1129_v60, %v692_v40  ;;  %v710_v58 = vadd.f32 %v1129_v60, %v693_v41 }
 0x159   :  { %v711_v63 = vadd.f32 %v1129_v60, %v694_v42  ;;  %v712_v61 = vadd.f32 %v1129_v60, %v695_v43  ;;  %v713_v62 = vadd.f32 %v1129_v60, %v696_v44  ;;  %v714_v1 = vmax.f32 %v701_v45, 0.0 }
 0x15a   :  { %v715_v2 = vmax.f32 %v702_v46, 0.0  ;;  %v716_v3 = vmax.f32 %v703_v48, 0.0  ;;  %v717_v4 = vmax.f32 %v704_v49, 0.0  ;;  %v718_v5 = vmax.f32 %v705_v50, 0.0 }
 0x15b   :  { %v719_v6 = vmax.f32 %v706_v51, 0.0  ;;  %v720_v7 = vmax.f32 %v707_v53, 0.0  ;;  %v721_v8 = vmax.f32 %v708_v54, 0.0  ;;  %v722_v10 = vmax.f32 %v709_v56, 0.0  ;;  %727 = vst.msk [vmem:[%s1316_s3] sm:$0xff] %vm571_vm1, %v714_v1 }
 0x15c   :  { %v723_v11 = vmax.f32 %v710_v58, 0.0  ;;  %v724_v12 = vmax.f32 %v711_v63, 0.0  ;;  %v725_v14 = vmax.f32 %v712_v61, 0.0  ;;  %v726_v16 = vmax.f32 %v713_v62, 0.0  ;;  %728 = vst.msk [vmem:[%s1316_s3 + $0x8] sm:$0xff] %vm571_vm1, %v715_v2  ;;  %729 = vst.msk [vmem:[%s1316_s3 + $0x10] sm:$0xff] %vm571_vm1, %v716_v3 }
 0x15d   :  { %730 = vst.msk [vmem:[%s1316_s3 + $0x18] sm:$0xff] %vm571_vm1, %v717_v4  ;;  %731 = vst.msk [vmem:[%s1316_s3 + $0x20] sm:$0xff] %vm571_vm1, %v718_v5 }
 0x15e   :  { %732 = vst.msk [vmem:[%s1316_s3 + $0x28] sm:$0xff] %vm571_vm1, %v719_v6  ;;  %733 = vst.msk [vmem:[%s1316_s3 + $0x30] sm:$0xff] %vm571_vm1, %v720_v7 }
 0x15f   :  { %734 = vst.msk [vmem:[%s1316_s3 + $0x38] sm:$0xff] %vm571_vm1, %v721_v8  ;;  %735 = vst.msk [vmem:[%s1316_s3 + $0x40] sm:$0xff] %vm571_vm1, %v722_v10 }
 0x160   :  { %736 = vst.msk [vmem:[%s1316_s3 + $0x48] sm:$0xff] %vm571_vm1, %v723_v11  ;;  %737 = vst.msk [vmem:[%s1316_s3 + $0x50] sm:$0xff] %vm571_vm1, %v724_v12 }
 0x161   :  { %738 = vst.msk [vmem:[%s1316_s3 + $0x58] sm:$0xff] %vm571_vm1, %v725_v14 }
 0x162   :  { %739 = vst.msk [vmem:[%s1316_s3 + $0x60] sm:$0x3] %vm595_vm2, %v726_v16 }

// kernel: inception_net.20
= control target key start
LH: loop header
LB: loop body
LE: loop exit
PB: predicated region body
PF: predicated region fallthrough
CT: control target
= control target key end

     0   :  { %s814_s0 = inlined_call_operand.vmem [shape: f32[9,2,7,7,128], index: 0, kind: input, shape index: {}]   ;;  %s815_s1 = inlined_call_operand.vmem [shape: f32[2,7,7,128], index: 1, kind: output, shape index: {}]  }
   0x1   :  { %v8_v0 = vld [vmem:[%s814_s0] sm:$0x7f]  ;;  %v272_v1 = vld [vmem:[%s814_s0 + $0x70] sm:$0x7f]  ;;  %v9_v6 = vld [vmem:[%s814_s0 + $0x8] sm:$0x7f] }
   0x2   :  { %v286_v2 = vld [vmem:[%s814_s0 + $0xe0] sm:$0x7f]  ;;  %v37_v3 = vmax.f32 %v8_v0, %v272_v1  ;;  %v300_v4 = vld [vmem:[%s814_s0 + $0x150] sm:$0x7f]  ;;  %v273_v7 = vld [vmem:[%s814_s0 + $0x78] sm:$0x7f] }
   0x3   :  { %v287_v8 = vld [vmem:[%s814_s0 + $0xe8] sm:$0x7f]  ;;  %v314_v9 = vld [vmem:[%s814_s0 + $0x1c0] sm:$0x7f]  ;;  %v38_v10 = vmax.f32 %v9_v6, %v273_v7  ;;  %v328_v12 = vld [vmem:[%s814_s0 + $0x230] sm:$0x7f] }
   0x4   :  { %v66_v5 = vmax.f32 %v37_v3, %v286_v2  ;;  %v301_v13 = vld [vmem:[%s814_s0 + $0x158] sm:$0x7f]  ;;  %v10_v15 = vld [vmem:[%s814_s0 + $0x10] sm:$0x7f]  ;;  %v274_v16 = vld [vmem:[%s814_s0 + $0x80] sm:$0x7f] }
   0x5   :  { %v67_v14 = vmax.f32 %v38_v10, %v287_v8  ;;  %v288_v17 = vld [vmem:[%s814_s0 + $0xf0] sm:$0x7f]  ;;  %v315_v19 = vld [vmem:[%s814_s0 + $0x1c8] sm:$0x7f]  ;;  %v39_v20 = vmax.f32 %v10_v15, %v274_v16  ;;  %v342_v21 = vld [vmem:[%s814_s0 + $0x2a0] sm:$0x7f] }
   0x6   :  { %v95_v11 = vmax.f32 %v66_v5, %v300_v4  ;;  %v329_v23 = vld [vmem:[%s814_s0 + $0x238] sm:$0x7f]  ;;  %v302_v24 = vld [vmem:[%s814_s0 + $0x160] sm:$0x7f]  ;;  %v275_v28 = vld [vmem:[%s814_s0 + $0x88] sm:$0x7f] }
   0x7   :  { %v96_v22 = vmax.f32 %v67_v14, %v301_v13  ;;  %v68_v26 = vmax.f32 %v39_v20, %v288_v17  ;;  %v11_v27 = vld [vmem:[%s814_s0 + $0x18] sm:$0x7f]  ;;  %v356_v30 = vld [vmem:[%s814_s0 + $0x310] sm:$0x7f]  ;;  %v370_v31 = vld [vmem:[%s814_s0 + $0x380] sm:$0x7f] }
   0x8   :  { %v124_v18 = vmax.f32 %v95_v11, %v314_v9  ;;  %v289_v29 = vld [vmem:[%s814_s0 + $0xf8] sm:$0x7f]  ;;  %v316_v33 = vld [vmem:[%s814_s0 + $0x1d0] sm:$0x7f]  ;;  %v40_v34 = vmax.f32 %v11_v27, %v275_v28  ;;  %v343_v36 = vld [vmem:[%s814_s0 + $0x2a8] sm:$0x7f] }
   0x9   :  { %v125_v32 = vmax.f32 %v96_v22, %v315_v19  ;;  %v97_v37 = vmax.f32 %v68_v26, %v302_v24  ;;  %v330_v38 = vld [vmem:[%s814_s0 + $0x240] sm:$0x7f]  ;;  %v303_v39 = vld [vmem:[%s814_s0 + $0x168] sm:$0x7f]  ;;  %v276_v43 = vld [vmem:[%s814_s0 + $0x90] sm:$0x7f] }
   0xa   :  { %v153_v25 = vmax.f32 %v124_v18, %v328_v12  ;;  %v69_v41 = vmax.f32 %v40_v34, %v289_v29  ;;  %v12_v42 = vld [vmem:[%s814_s0 + $0x20] sm:$0x7f]  ;;  %v357_v46 = vld [vmem:[%s814_s0 + $0x318] sm:$0x7f]  ;;  %v371_v47 = vld [vmem:[%s814_s0 + $0x388] sm:$0x7f] }
   0xb   :  { %v154_v40 = vmax.f32 %v125_v32, %v329_v23  ;;  %v290_v44 = vld [vmem:[%s814_s0 + $0x100] sm:$0x7f]  ;;  %v126_v48 = vmax.f32 %v97_v37, %v316_v33  ;;  %v317_v49 = vld [vmem:[%s814_s0 + $0x1d8] sm:$0x7f]  ;;  %v41_v50 = vmax.f32 %v12_v42, %v276_v43  ;;  %v344_v52 = vld [vmem:[%s814_s0 + $0x2b0] sm:$0x7f] }
   0xc   :  { %v182_v35 = vmax.f32 %v153_v25, %v342_v21  ;;  %v98_v53 = vmax.f32 %v69_v41, %v303_v39  ;;  %v331_v54 = vld [vmem:[%s814_s0 + $0x248] sm:$0x7f]  ;;  %v304_v55 = vld [vmem:[%s814_s0 + $0x170] sm:$0x7f]  ;;  %v277_v60 = vld [vmem:[%s814_s0 + $0x98] sm:$0x7f] }
   0xd   :  { %v183_v51 = vmax.f32 %v154_v40, %v343_v36  ;;  %v155_v57 = vmax.f32 %v126_v48, %v330_v38  ;;  %v70_v58 = vmax.f32 %v41_v50, %v290_v44  ;;  %v13_v59 = vld [vmem:[%s814_s0 + $0x28] sm:$0x7f]  ;;  %v358_v63 = vld [vmem:[%s814_s0 + $0x320] sm:$0x7f]  ;;  %v372_v0 = vld [vmem:[%s814_s0 + $0x390] sm:$0x7f] }
   0xe   :  { %v211_v45 = vmax.f32 %v182_v35, %v356_v30  ;;  %v291_v61 = vld [vmem:[%s814_s0 + $0x108] sm:$0x7f]  ;;  %v127_v1 = vmax.f32 %v98_v53, %v317_v49  ;;  %v318_v2 = vld [vmem:[%s814_s0 + $0x1e0] sm:$0x7f]  ;;  %v42_v3 = vmax.f32 %v13_v59, %v277_v60  ;;  %v345_v5 = vld [vmem:[%s814_s0 + $0x2b8] sm:$0x7f] }
   0xf   :  { %v212_v62 = vmax.f32 %v183_v51, %v357_v46  ;;  %v184_v4 = vmax.f32 %v155_v57, %v344_v52  ;;  %v99_v6 = vmax.f32 %v70_v58, %v304_v55  ;;  %v332_v7 = vld [vmem:[%s814_s0 + $0x250] sm:$0x7f]  ;;  %v305_v8 = vld [vmem:[%s814_s0 + $0x178] sm:$0x7f]  ;;  %v278_v13 = vld [vmem:[%s814_s0 + $0xa0] sm:$0x7f] }
  0x10   :  { %v240_v56 = vmax.f32 %v211_v45, %v370_v31  ;;  %v156_v10 = vmax.f32 %v127_v1, %v331_v54  ;;  %v71_v11 = vmax.f32 %v42_v3, %v291_v61  ;;  %v14_v12 = vld [vmem:[%s814_s0 + $0x30] sm:$0x7f]  ;;  %v359_v16 = vld [vmem:[%s814_s0 + $0x328] sm:$0x7f]  ;;  %v373_v17 = vld [vmem:[%s814_s0 + $0x398] sm:$0x7f] }
  0x11   :  { %v241_v9 = vmax.f32 %v212_v62, %v371_v47  ;;  %v292_v14 = vld [vmem:[%s814_s0 + $0x110] sm:$0x7f]  ;;  %v213_v15 = vmax.f32 %v184_v4, %v358_v63  ;;  %v128_v18 = vmax.f32 %v99_v6, %v318_v2  ;;  %v319_v19 = vld [vmem:[%s814_s0 + $0x1e8] sm:$0x7f]  ;;  %v43_v20 = vmax.f32 %v14_v12, %v278_v13  ;;  %v346_v22 = vld [vmem:[%s814_s0 + $0x2c0] sm:$0x7f] }
  0x12   :  { %254 = vst [vmem:[%s815_s1] sm:$0x7f] %v240_v56  ;;  %v185_v21 = vmax.f32 %v156_v10, %v345_v5  ;;  %v100_v23 = vmax.f32 %v71_v11, %v305_v8  ;;  %v333_v24 = vld [vmem:[%s814_s0 + $0x258] sm:$0x7f]  ;;  %v306_v25 = vld [vmem:[%s814_s0 + $0x180] sm:$0x7f] }
  0x13   :  { %255 = vst [vmem:[%s815_s1 + $0x8] sm:$0x7f] %v241_v9  ;;  %v242_v26 = vmax.f32 %v213_v15, %v372_v0  ;;  %v157_v27 = vmax.f32 %v128_v18, %v332_v7  ;;  %v72_v28 = vmax.f32 %v43_v20, %v292_v14  ;;  %v15_v29 = vld [vmem:[%s814_s0 + $0x38] sm:$0x7f]  ;;  %v279_v30 = vld [vmem:[%s814_s0 + $0xa8] sm:$0x7f] }
  0x14   :  { %v293_v31 = vld [vmem:[%s814_s0 + $0x118] sm:$0x7f]  ;;  %v214_v32 = vmax.f32 %v185_v21, %v359_v16  ;;  %v360_v33 = vld [vmem:[%s814_s0 + $0x330] sm:$0x7f]  ;;  %v374_v34 = vld [vmem:[%s814_s0 + $0x3a0] sm:$0x7f]  ;;  %v129_v35 = vmax.f32 %v100_v23, %v319_v19  ;;  %v44_v37 = vmax.f32 %v15_v29, %v279_v30 }
  0x15   :  { %v320_v36 = vld [vmem:[%s814_s0 + $0x1f0] sm:$0x7f]  ;;  %256 = vst [vmem:[%s815_s1 + $0x10] sm:$0x7f] %v242_v26  ;;  %v186_v38 = vmax.f32 %v157_v27, %v346_v22  ;;  %v347_v39 = vld [vmem:[%s814_s0 + $0x2c8] sm:$0x7f]  ;;  %v101_v40 = vmax.f32 %v72_v28, %v306_v25 }
  0x16   :  { %v334_v41 = vld [vmem:[%s814_s0 + $0x260] sm:$0x7f]  ;;  %v307_v42 = vld [vmem:[%s814_s0 + $0x188] sm:$0x7f]  ;;  %v243_v43 = vmax.f32 %v214_v32, %v373_v17  ;;  %v158_v44 = vmax.f32 %v129_v35, %v333_v24  ;;  %v73_v45 = vmax.f32 %v44_v37, %v293_v31  ;;  %v280_v47 = vld [vmem:[%s814_s0 + $0xb0] sm:$0x7f] }
  0x17   :  { %v16_v46 = vld [vmem:[%s814_s0 + $0x40] sm:$0x7f]  ;;  %v215_v49 = vmax.f32 %v186_v38, %v360_v33  ;;  %v361_v50 = vld [vmem:[%s814_s0 + $0x338] sm:$0x7f]  ;;  %v375_v51 = vld [vmem:[%s814_s0 + $0x3a8] sm:$0x7f]  ;;  %v130_v52 = vmax.f32 %v101_v40, %v320_v36 }
  0x18   :  { %v294_v48 = vld [vmem:[%s814_s0 + $0x120] sm:$0x7f]  ;;  %v321_v53 = vld [vmem:[%s814_s0 + $0x1f8] sm:$0x7f]  ;;  %v45_v54 = vmax.f32 %v16_v46, %v280_v47  ;;  %257 = vst [vmem:[%s815_s1 + $0x18] sm:$0x7f] %v243_v43  ;;  %v187_v55 = vmax.f32 %v158_v44, %v347_v39  ;;  %v102_v57 = vmax.f32 %v73_v45, %v307_v42 }
  0x19   :  { %v348_v56 = vld [vmem:[%s814_s0 + $0x2d0] sm:$0x7f]  ;;  %v335_v58 = vld [vmem:[%s814_s0 + $0x268] sm:$0x7f]  ;;  %v244_v60 = vmax.f32 %v215_v49, %v374_v34  ;;  %v159_v61 = vmax.f32 %v130_v52, %v334_v41  ;;  %v281_v0 = vld [vmem:[%s814_s0 + $0xb8] sm:$0x7f] }
  0x1a   :  { %v308_v59 = vld [vmem:[%s814_s0 + $0x190] sm:$0x7f]  ;;  %v74_v62 = vmax.f32 %v45_v54, %v294_v48  ;;  %v17_v63 = vld [vmem:[%s814_s0 + $0x48] sm:$0x7f]  ;;  %v216_v2 = vmax.f32 %v187_v55, %v361_v50  ;;  %v362_v3 = vld [vmem:[%s814_s0 + $0x340] sm:$0x7f]  ;;  %v131_v5 = vmax.f32 %v102_v57, %v321_v53 }
  0x1b   :  { %v295_v1 = vld [vmem:[%s814_s0 + $0x128] sm:$0x7f]  ;;  %v376_v4 = vld [vmem:[%s814_s0 + $0x3b0] sm:$0x7f]  ;;  %v322_v6 = vld [vmem:[%s814_s0 + $0x200] sm:$0x7f]  ;;  %v46_v7 = vmax.f32 %v17_v63, %v281_v0  ;;  %v188_v8 = vmax.f32 %v159_v61, %v348_v56 }
  0x1c   :  { %258 = vst [vmem:[%s815_s1 + $0x20] sm:$0x7f] %v244_v60  ;;  %v349_v9 = vld [vmem:[%s814_s0 + $0x2d8] sm:$0x7f]  ;;  %v103_v10 = vmax.f32 %v74_v62, %v308_v59  ;;  %v336_v11 = vld [vmem:[%s814_s0 + $0x270] sm:$0x7f]  ;;  %v245_v13 = vmax.f32 %v216_v2, %v375_v51  ;;  %v160_v14 = vmax.f32 %v131_v5, %v335_v58 }
  0x1d   :  { %v309_v12 = vld [vmem:[%s814_s0 + $0x198] sm:$0x7f]  ;;  %v75_v15 = vmax.f32 %v46_v7, %v295_v1  ;;  %v18_v16 = vld [vmem:[%s814_s0 + $0x50] sm:$0x7f]  ;;  %v282_v17 = vld [vmem:[%s814_s0 + $0xc0] sm:$0x7f]  ;;  %v217_v19 = vmax.f32 %v188_v8, %v362_v3 }
  0x1e   :  { %v296_v18 = vld [vmem:[%s814_s0 + $0x130] sm:$0x7f]  ;;  %v363_v20 = vld [vmem:[%s814_s0 + $0x348] sm:$0x7f]  ;;  %v377_v21 = vld [vmem:[%s814_s0 + $0x3b8] sm:$0x7f]  ;;  %v132_v22 = vmax.f32 %v103_v10, %v322_v6  ;;  %v47_v24 = vmax.f32 %v18_v16, %v282_v17  ;;  %v189_v25 = vmax.f32 %v160_v14, %v349_v9 }
  0x1f   :  { %v323_v23 = vld [vmem:[%s814_s0 + $0x208] sm:$0x7f]  ;;  %259 = vst [vmem:[%s815_s1 + $0x28] sm:$0x7f] %v245_v13  ;;  %v350_v26 = vld [vmem:[%s814_s0 + $0x2e0] sm:$0x7f]  ;;  %v104_v27 = vmax.f32 %v75_v15, %v309_v12  ;;  %v246_v30 = vmax.f32 %v217_v19, %v376_v4 }
  0x20   :  { %v337_v28 = vld [vmem:[%s814_s0 + $0x278] sm:$0x7f]  ;;  %v310_v29 = vld [vmem:[%s814_s0 + $0x1a0] sm:$0x7f]  ;;  %v161_v31 = vmax.f32 %v132_v22, %v336_v11  ;;  %v76_v32 = vmax.f32 %v47_v24, %v296_v18  ;;  %v283_v34 = vld [vmem:[%s814_s0 + $0xc8] sm:$0x7f]  ;;  %v218_v36 = vmax.f32 %v189_v25, %v363_v20 }
  0x21   :  { %v19_v33 = vld [vmem:[%s814_s0 + $0x58] sm:$0x7f]  ;;  %v364_v37 = vld [vmem:[%s814_s0 + $0x350] sm:$0x7f]  ;;  %v378_v38 = vld [vmem:[%s814_s0 + $0x3c0] sm:$0x7f]  ;;  %v133_v39 = vmax.f32 %v104_v27, %v323_v23 }
  0x22   :  { %v297_v35 = vld [vmem:[%s814_s0 + $0x138] sm:$0x7f]  ;;  %v324_v40 = vld [vmem:[%s814_s0 + $0x210] sm:$0x7f]  ;;  %v48_v41 = vmax.f32 %v19_v33, %v283_v34  ;;  %260 = vst [vmem:[%s815_s1 + $0x30] sm:$0x7f] %v246_v30  ;;  %v190_v42 = vmax.f32 %v161_v31, %v350_v26  ;;  %v105_v44 = vmax.f32 %v76_v32, %v310_v29  ;;  %v247_v47 = vmax.f32 %v218_v36, %v377_v21 }
  0x23   :  { %v351_v43 = vld [vmem:[%s814_s0 + $0x2e8] sm:$0x7f]  ;;  %v338_v45 = vld [vmem:[%s814_s0 + $0x280] sm:$0x7f]  ;;  %v162_v48 = vmax.f32 %v133_v39, %v337_v28  ;;  %v284_v51 = vld [vmem:[%s814_s0 + $0xd0] sm:$0x7f] }
  0x24   :  { %v311_v46 = vld [vmem:[%s814_s0 + $0x1a8] sm:$0x7f]  ;;  %v77_v49 = vmax.f32 %v48_v41, %v297_v35  ;;  %v20_v50 = vld [vmem:[%s814_s0 + $0x60] sm:$0x7f]  ;;  %v219_v53 = vmax.f32 %v190_v42, %v364_v37  ;;  %v365_v54 = vld [vmem:[%s814_s0 + $0x358] sm:$0x7f]  ;;  %v134_v56 = vmax.f32 %v105_v44, %v324_v40 }
  0x25   :  { %v298_v52 = vld [vmem:[%s814_s0 + $0x140] sm:$0x7f]  ;;  %v379_v55 = vld [vmem:[%s814_s0 + $0x3c8] sm:$0x7f]  ;;  %v325_v57 = vld [vmem:[%s814_s0 + $0x218] sm:$0x7f]  ;;  %v49_v58 = vmax.f32 %v20_v50, %v284_v51  ;;  %v191_v59 = vmax.f32 %v162_v48, %v351_v43 }
  0x26   :  { %261 = vst [vmem:[%s815_s1 + $0x38] sm:$0x7f] %v247_v47  ;;  %v352_v60 = vld [vmem:[%s814_s0 + $0x2f0] sm:$0x7f]  ;;  %v106_v61 = vmax.f32 %v77_v49, %v311_v46  ;;  %v339_v62 = vld [vmem:[%s814_s0 + $0x288] sm:$0x7f]  ;;  %v248_v0 = vmax.f32 %v219_v53, %v378_v38  ;;  %v163_v1 = vmax.f32 %v134_v56, %v338_v45 }
  0x27   :  { %v312_v63 = vld [vmem:[%s814_s0 + $0x1b0] sm:$0x7f]  ;;  %v78_v2 = vmax.f32 %v49_v58, %v298_v52  ;;  %v21_v3 = vld [vmem:[%s814_s0 + $0x68] sm:$0x7f]  ;;  %v285_v4 = vld [vmem:[%s814_s0 + $0xd8] sm:$0x7f]  ;;  %v220_v6 = vmax.f32 %v191_v59, %v365_v54 }
  0x28   :  { %v299_v5 = vld [vmem:[%s814_s0 + $0x148] sm:$0x7f]  ;;  %v366_v7 = vld [vmem:[%s814_s0 + $0x360] sm:$0x7f]  ;;  %v135_v8 = vmax.f32 %v106_v61, %v325_v57  ;;  %v50_v10 = vmax.f32 %v21_v3, %v285_v4  ;;  %262 = vst [vmem:[%s815_s1 + $0x40] sm:$0x7f] %v248_v0  ;;  %v192_v11 = vmax.f32 %v163_v1, %v352_v60 }
  0x29   :  { %v326_v9 = vld [vmem:[%s814_s0 + $0x220] sm:$0x7f]  ;;  %v353_v12 = vld [vmem:[%s814_s0 + $0x2f8] sm:$0x7f]  ;;  %v107_v13 = vmax.f32 %v78_v2, %v312_v63  ;;  %v249_v15 = vmax.f32 %v220_v6, %v379_v55  ;;  %v380_v16 = vld [vmem:[%s814_s0 + $0x3d0] sm:$0x7f] }
  0x2a   :  { %v313_v14 = vld [vmem:[%s814_s0 + $0x1b8] sm:$0x7f]  ;;  %v164_v17 = vmax.f32 %v135_v8, %v339_v62  ;;  %v340_v18 = vld [vmem:[%s814_s0 + $0x290] sm:$0x7f]  ;;  %v79_v19 = vmax.f32 %v50_v10, %v299_v5  ;;  %v221_v20 = vmax.f32 %v192_v11, %v366_v7  ;;  %v367_v21 = vld [vmem:[%s814_s0 + $0x368] sm:$0x7f] }
  0x2b   :  { %v136_v22 = vmax.f32 %v107_v13, %v326_v9  ;;  %v327_v23 = vld [vmem:[%s814_s0 + $0x228] sm:$0x7f]  ;;  %263 = vst [vmem:[%s815_s1 + $0x48] sm:$0x7f] %v249_v15  ;;  %v354_v25 = vld [vmem:[%s814_s0 + $0x300] sm:$0x7f] }
  0x2c   :  { %v193_v24 = vmax.f32 %v164_v17, %v353_v12  ;;  %v108_v26 = vmax.f32 %v79_v19, %v313_v14  ;;  %v250_v27 = vmax.f32 %v221_v20, %v380_v16  ;;  %v381_v28 = vld [vmem:[%s814_s0 + $0x3d8] sm:$0x7f]  ;;  %v368_v32 = vld [vmem:[%s814_s0 + $0x370] sm:$0x7f]  ;;  %v355_v35 = vld [vmem:[%s814_s0 + $0x308] sm:$0x7f] }
  0x2d   :  { %v165_v29 = vmax.f32 %v136_v22, %v340_v18  ;;  %v341_v30 = vld [vmem:[%s814_s0 + $0x298] sm:$0x7f]  ;;  %v382_v37 = vld [vmem:[%s814_s0 + $0x3e0] sm:$0x7f]  ;;  %v383_v43 = vld [vmem:[%s814_s0 + $0x3e8] sm:$0x7f] }
  0x2e   :  { %v222_v31 = vmax.f32 %v193_v24, %v367_v21  ;;  %v137_v33 = vmax.f32 %v108_v26, %v327_v23  ;;  %264 = vst [vmem:[%s815_s1 + $0x50] sm:$0x7f] %v250_v27  ;;  %v369_v40 = vld [vmem:[%s814_s0 + $0x378] sm:$0x7f] }
  0x2f   :  { %v194_v34 = vmax.f32 %v165_v29, %v354_v25 }
  0x30   :  { %v251_v36 = vmax.f32 %v222_v31, %v381_v28  ;;  %v166_v38 = vmax.f32 %v137_v33, %v341_v30 }
  0x31   :  { %v223_v39 = vmax.f32 %v194_v34, %v368_v32 }
  0x32   :  { %265 = vst [vmem:[%s815_s1 + $0x58] sm:$0x7f] %v251_v36  ;;  %v195_v41 = vmax.f32 %v166_v38, %v355_v35 }
  0x33   :  { %v252_v42 = vmax.f32 %v223_v39, %v382_v37 }
  0x34   :  { %v224_v44 = vmax.f32 %v195_v41, %v369_v40 }
  0x35   :  { %266 = vst [vmem:[%s815_s1 + $0x60] sm:$0x7f] %v252_v42 }
  0x36   :  { %v253_v45 = vmax.f32 %v224_v44, %v383_v43 }
  0x38   :  { %267 = vst [vmem:[%s815_s1 + $0x68] sm:$0x7f] %v253_v45 }

// kernel: inception_net.21
= control target key start
LH: loop header
LB: loop body
LE: loop exit
PB: predicated region body
PF: predicated region fallthrough
CT: control target
= control target key end

     0   :  { %vm2188_vm0 = vmmov 0   ;;  %vm1409_vm1 = vcmask 523264   ;;  %vm1433_vm2 = vcmask 517120   ;;  %s2862_s1 = inlined_call_operand.vmem [shape: bf16[1152,64], index: 1, kind: input, shape index: {}]   ;;  %s2863_s0 = inlined_call_operand.vmem [shape: bf16[98,1152], index: 0, kind: input, shape index: {}]   ;;  %s2864_s2 = inlined_call_operand.vmem [shape: f32[3,64], index: 2, kind: input, shape index: {}]   ;;  %s2865_s3 = inlined_call_operand.vmem [shape: f32[98,64], index: 3, kind: output, shape index: {}]  }
   0x1   :  { %v2026_v0 = vld [vmem:[%s2862_s1 + $0x40] sm:$0xff]   ;;  %v2028_v2 = vld [vmem:[%s2862_s1 + $0x48] sm:$0xff]   ;;  %v2030_v4 = vld [vmem:[%s2862_s1 + $0x50] sm:$0xff]  }
   0x2   :  { %v2027_v1 = vld [vmem:[%s2862_s1] sm:$0xff]   ;;  %2008 = vmatprep.subr.bf16.mxu1 %v2026_v0  ;;  %1717 = vmatprep.subr.bf16.mxu0 %v2026_v0  ;;  %v2029_v3 = vld [vmem:[%s2862_s1 + $0x8] sm:$0xff]   ;;  %v2031_v5 = vld [vmem:[%s2862_s1 + $0x10] sm:$0xff]  }
   0x3   :  { %2016 = vmatpush3.bf16.msra.mxu1 %v2027_v1  ;;  %1718 = vmatpush3.bf16.msra.mxu0 %v2027_v1  ;;  %v2032_v6 = vld [vmem:[%s2862_s1 + $0x58] sm:$0xff]   ;;  %v2034_v8 = vld [vmem:[%s2862_s1 + $0x60] sm:$0xff]   ;;  %v2036_v10 = vld [vmem:[%s2862_s1 + $0x68] sm:$0xff]  }
   0x4   :  { %2009 = vmatprep.subr.bf16.mxu1 %v2028_v2  ;;  %1719 = vmatprep.subr.bf16.mxu0 %v2028_v2  ;;  %v2033_v7 = vld [vmem:[%s2862_s1 + $0x18] sm:$0xff]   ;;  %v2035_v9 = vld [vmem:[%s2862_s1 + $0x20] sm:$0xff]   ;;  %v2037_v12 = vld [vmem:[%s2862_s1 + $0x28] sm:$0xff]  }
   0x5   :  { %v2044_v11 = vld [vmem:[%s2863_s0 + $0x124] ss:$36 sps:$4 sm:$0xff]   ;;  %v2038_v14 = vld [vmem:[%s2862_s1 + $0x70] sm:$0xff]   ;;  %v2040_v16 = vld [vmem:[%s2862_s1 + $0x78] sm:$0xff]  }
   0x6   :  { %v2048_v13 = vld [vmem:[%s2863_s0 + $0x4] ss:$36 sps:$4 sm:$0xff]   ;;  %1033 = vmatprep.mubr.bf16.mxu1 %v2044_v11  ;;  %v2039_v15 = vld [vmem:[%s2862_s1 + $0x30] sm:$0xff]   ;;  %v2041_v17 = vld [vmem:[%s2862_s1 + $0x38] sm:$0xff]  }
   0x7   :  { %2017 = vmatpush3.bf16.msra.mxu1 %v2029_v3  ;;  %1720 = vmatpush3.bf16.msra.mxu0 %v2029_v3  ;;  %v2045_v18 = vld [vmem:[%s2862_s1 + $0xc0] sm:$0xff]   ;;  %v2052_v24 = vld [vmem:[%s2862_s1 + $0xc8] sm:$0xff]   ;;  %v2056_v30 = vld [vmem:[%s2862_s1 + $0xd0] sm:$0xff]  }
   0x8   :  { %2010 = vmatprep.subr.bf16.mxu1 %v2030_v4  ;;  %1721 = vmatprep.subr.bf16.mxu0 %v2030_v4  ;;  %v2042_v19 = vld [vmem:[%s2863_s0 + $0x120] ss:$36 sps:$4 sm:$0xff]   ;;  %v2054_v25 = vld [vmem:[%s2862_s1 + $0x148] sm:$0xff]   ;;  %v2061_v31 = vld [vmem:[%s2862_s1 + $0x150] sm:$0xff]  }
   0x9   :  { %1001 = vmatprep.mubr.bf16.mxu0 %v2048_v13  ;;  %v2046_v20 = vld [vmem:[%s2863_s0] ss:$36 sps:$4 sm:$0xff]   ;;  %v2057_v26 = vld [vmem:[%s2863_s0 + $0x4c] ss:$36 sps:$4 sm:$0xff]   ;;  %v2063_v36 = vld [vmem:[%s2862_s1 + $0xd8] sm:$0xff]  }
   0xa   :  { %v2050_v21 = vld [vmem:[%s2862_s1 + $0x140] sm:$0xff]   ;;  %v2053_v27 = vld [vmem:[%s2862_s1 + $0x88] sm:$0xff]   ;;  %v2059_v32 = vld [vmem:[%s2862_s1 + $0x90] sm:$0xff]  }
   0xb   :  { %2018 = vmatpush3.bf16.msra.mxu1 %v2031_v5  ;;  %1722 = vmatpush3.bf16.msra.mxu0 %v2031_v5  ;;  %v2049_v22 = vld [vmem:[%s2862_s1 + $0x80] sm:$0xff]   ;;  %v2064_v28 = vld [vmem:[%s2863_s0 + $0x16c] ss:$36 sps:$4 sm:$0xff]   ;;  %v2068_v37 = vld [vmem:[%s2862_s1 + $0x158] sm:$0xff]  }
   0xc   :  { %2011 = vmatprep.subr.bf16.mxu1 %v2032_v6  ;;  %1723 = vmatprep.subr.bf16.mxu0 %v2032_v6  ;;  %v2051_v23 = vld [vmem:[%s2862_s1 + $0x100] sm:$0xff]   ;;  %v2055_v29 = vld [vmem:[%s2862_s1 + $0x108] sm:$0xff]   ;;  %v2062_v35 = vld [vmem:[%s2862_s1 + $0x110] sm:$0xff]  }
   0xd   :  { %v2060_v33 = vld [vmem:[%s2863_s0 + $0x48] ss:$36 sps:$4 sm:$0xff]   ;;  %v2066_v38 = vld [vmem:[%s2862_s1 + $0x98] sm:$0xff]   ;;  %v2070_v41 = vld [vmem:[%s2862_s1 + $0xe0] sm:$0xff]  }
   0xe   :  { %v2067_v34 = vld [vmem:[%s2863_s0 + $0x168] ss:$36 sps:$4 sm:$0xff]   ;;  %v2071_v39 = vld [vmem:[%s2863_s0 + $0x94] ss:$36 sps:$4 sm:$0xff]   ;;  %v2075_v43 = vld [vmem:[%s2862_s1 + $0x160] sm:$0xff]  }
   0xf   :  { %2019 = vmatpush3.bf16.msra.mxu1 %v2033_v7  ;;  %1724 = vmatpush3.bf16.msra.mxu0 %v2033_v7  ;;  %v2069_v40 = vld [vmem:[%s2862_s1 + $0x118] sm:$0xff]   ;;  %v75_v42 = vld [vmem:[%s2863_s0 + $0x1b0] sm:$0x11]  ;;  %v2073_v45 = vld [vmem:[%s2862_s1 + $0xa0] sm:$0xff]   ;;  %v2187_v7 = vmov 0.0  }
  0x10   :  { %2012 = vmatprep.subr.bf16.mxu1 %v2034_v8  ;;  %1725 = vmatprep.subr.bf16.mxu0 %v2034_v8  ;;  %v1637_v44 = vcombine.high %v75_v42, %v75_v42  ;;  %v2074_v46 = vld [vmem:[%s2863_s0 + $0x90] ss:$36 sps:$4 sm:$0xff]   ;;  %v2076_v47 = vld [vmem:[%s2862_s1 + $0x120] sm:$0xff]   ;;  %v1636_v48 = vcombine.low %v75_v42, %v75_v42  ;;  %v2077_v49 = vld [vmem:[%s2862_s1 + $0xe8] sm:$0xff]  }
  0x11   :  { %v2081_v50 = vld [vmem:[%s2862_s1 + $0x168] sm:$0xff]   ;;  %v2084_v52 = vld [vmem:[%s2863_s0 + $0xdc] ss:$36 sps:$4 sm:$0xff]   ;;  %v2083_v54 = vld [vmem:[%s2862_s1 + $0xf0] sm:$0xff]  }
  0x12   :  { %v2079_v51 = vld [vmem:[%s2862_s1 + $0xa8] sm:$0xff]   ;;  %v2088_v55 = vld [vmem:[%s2862_s1 + $0x170] sm:$0xff]   ;;  %v2087_v57 = vld [vmem:[%s2863_s0 + $0xd8] ss:$36 sps:$4 sm:$0xff]  }
  0x13   :  { %2020 = vmatpush3.bf16.msra.mxu1 %v2035_v9  ;;  %1726 = vmatpush3.bf16.msra.mxu0 %v2035_v9  ;;  %v2082_v53 = vld [vmem:[%s2862_s1 + $0x128] sm:$0xff]   ;;  %v2086_v56 = vld [vmem:[%s2862_s1 + $0xb0] sm:$0xff]   ;;  %v2090_v59 = vld [vmem:[%s2862_s1 + $0xf8] sm:$0xff]  }
  0x14   :  { %2013 = vmatprep.subr.bf16.mxu1 %v2036_v10  ;;  %1727 = vmatprep.subr.bf16.mxu0 %v2036_v10  ;;  %v2089_v58 = vld [vmem:[%s2862_s1 + $0x130] sm:$0xff]   ;;  %v2092_v60 = vld [vmem:[%s2862_s1 + $0x178] sm:$0xff]   ;;  %v2097_v0 = vld [vmem:[%s2862_s1 + $0x1c0] sm:$0xff]  }
  0x15   :  { %v2095_v61 = vld [vmem:[%s2863_s0 + $0xc] ss:$36 sps:$4 sm:$0xff]   ;;  %v2091_v62 = vld [vmem:[%s2862_s1 + $0xb8] sm:$0xff]   ;;  %v2101_v4 = vld [vmem:[%s2862_s1 + $0x180] sm:$0xff]  }
  0x16   :  { %v2096_v63 = vld [vmem:[%s2862_s1 + $0x138] sm:$0xff]   ;;  %v2093_v2 = vld [vmem:[%s2863_s0 + $0x8] ss:$36 sps:$4 sm:$0xff]   ;;  %v2098_v3 = vld [vmem:[%s2863_s0 + $0x10] ss:$36 sps:$4 sm:$0xff]  }
  0x17   :  { %2021 = vmatpush3.bf16.msra.mxu1 %v2037_v12  ;;  %1728 = vmatpush3.bf16.msra.mxu0 %v2037_v12  ;;  %v2100_v1 = vld [vmem:[%s2863_s0 + $0x14] ss:$36 sps:$4 sm:$0xff]   ;;  %v2102_v5 = vld [vmem:[%s2862_s1 + $0x200] sm:$0xff]   ;;  %v2105_v8 = vld [vmem:[%s2862_s1 + $0x1c8] sm:$0xff]  }
  0x18   :  { %2014 = vmatprep.subr.bf16.mxu1 %v2038_v14  ;;  %1729 = vmatprep.subr.bf16.mxu0 %v2038_v14  ;;  %v2103_v6 = vld [vmem:[%s2863_s0 + $0x54] ss:$36 sps:$4 sm:$0xff]   ;;  %v2107_v9 = vld [vmem:[%s2862_s1 + $0x188] sm:$0xff]   ;;  %v2108_v10 = vld [vmem:[%s2863_s0 + $0x5c] ss:$36 sps:$4 sm:$0xff]  }
  0x19   :  { %v2111_v11 = vld [vmem:[%s2862_s1 + $0x208] sm:$0xff]   ;;  %v2112_v12 = vld [vmem:[%s2862_s1 + $0x1d0] sm:$0xff]   ;;  %v2110_v14 = vld [vmem:[%s2863_s0 + $0x58] ss:$36 sps:$4 sm:$0xff]  }
  0x1a   :  { %v2106_v13 = vld [vmem:[%s2863_s0 + $0x50] ss:$36 sps:$4 sm:$0xff]   ;;  %v2154_v42 = vld [vmem:[%s2862_s1 + $0x1f8] sm:$0xff]  }
  0x1b   :  { %2022 = vmatpush3.bf16.msra.mxu1 %v2039_v15  ;;  %1730 = vmatpush3.bf16.msra.mxu0 %v2039_v15  ;;  %v2113_v15 = vld [vmem:[%s2863_s0 + $0x9c] ss:$36 sps:$4 sm:$0xff]  }
  0x1c   :  { %2015 = vmatprep.subr.bf16.mxu1 %v2040_v16  ;;  %1731 = vmatprep.subr.bf16.mxu0 %v2040_v16  ;;  %v2115_v16 = vld [vmem:[%s2862_s1 + $0x190] sm:$0xff]  }
  0x1f   :  { %2023 = vmatpush3.bf16.msra.mxu1 %v2041_v17  ;;  %1732 = vmatpush3.bf16.msra.mxu0 %v2041_v17  ;;  %v2117_v17 = vld [vmem:[%s2863_s0 + $0xa4] ss:$36 sps:$4 sm:$0xff]  }
  0x20   :  { %1775 = vmatprep.subr.bf16.mxu1 %v2045_v18  ;;  %1833 = vmatprep.subr.bf16.mxu0 %v2050_v21  ;;  %v2120_v18 = vld [vmem:[%s2862_s1 + $0x210] sm:$0xff]   ;;  %v2116_v21 = vld [vmem:[%s2863_s0 + $0x98] ss:$36 sps:$4 sm:$0xff]  }
  0x22   :  { %1034 = vmatmul.mubr.bf16.vlgmr.msra.gmra.mrb[0].mxu1 %v2042_v19  ;;  %1002 = vmatmul.mubr.bf16.vlgmr.msra.gmra.mrb[0].mxu0 %v2046_v20  ;;  %v2121_v19 = vld [vmem:[%s2862_s1 + $0x1d8] sm:$0xff]  }
  0x23   :  { %1776 = vmatpush3.bf16.msra.mxu1 %v2049_v22  ;;  %1834 = vmatpush3.bf16.msra.mxu0 %v2051_v23  ;;  %v2122_v20 = vld [vmem:[%s2862_s1 + $0x198] sm:$0xff]   ;;  %v2119_v22 = vld [vmem:[%s2863_s0 + $0xa0] ss:$36 sps:$4 sm:$0xff]  }
  0x24   :  { %1777 = vmatprep.subr.bf16.mxu1 %v2052_v24  ;;  %1835 = vmatprep.subr.bf16.mxu0 %v2054_v25  ;;  %v2123_v23 = vld [vmem:[%s2863_s0 + $0xe4] ss:$36 sps:$4 sm:$0xff]   ;;  %v2126_v24 = vld [vmem:[%s2863_s0 + $0xec] ss:$36 sps:$4 sm:$0xff]   ;;  %v2129_v25 = vld [vmem:[%s2862_s1 + $0x218] sm:$0xff]  }
  0x25   :  { %1009 = vmatprep.mubr.bf16.mxu0 %v2057_v26  ;;  %1041 = vmatprep.mubr.bf16.mxu1 %v2064_v28  ;;  %v2130_v26 = vld [vmem:[%s2862_s1 + $0x1e0] sm:$0xff]  }
  0x26   :  { %v2125_v28 = vld [vmem:[%s2863_s0 + $0xe0] ss:$36 sps:$4 sm:$0xff]  }
  0x27   :  { %1778 = vmatpush3.bf16.msra.mxu1 %v2053_v27  ;;  %1836 = vmatpush3.bf16.msra.mxu0 %v2055_v29  ;;  %v2131_v27 = vld [vmem:[%s2862_s1 + $0x1a0] sm:$0xff]   ;;  %v2128_v29 = vld [vmem:[%s2863_s0 + $0xe8] ss:$36 sps:$4 sm:$0xff]  }
  0x28   :  { %1779 = vmatprep.subr.bf16.mxu1 %v2056_v30  ;;  %1837 = vmatprep.subr.bf16.mxu0 %v2061_v31  ;;  %v2138_v30 = vld [vmem:[%s2862_s1 + $0x220] sm:$0xff]   ;;  %v2139_v31 = vld [vmem:[%s2862_s1 + $0x1e8] sm:$0xff]  }
  0x2a   :  { %1010 = vmatmul.mubr.bf16.gmra.mrb[4].mxu0 %v2060_v33  ;;  %1042 = vmatmul.mubr.bf16.gmra.mrb[4].mxu1 %v2067_v34  ;;  %v2132_v33 = vld [vmem:[%s2863_s0 + $0x12c] ss:$36 sps:$4 sm:$0xff]   ;;  %v2135_v34 = vld [vmem:[%s2863_s0 + $0x134] ss:$36 sps:$4 sm:$0xff]  }
  0x2b   :  { %1780 = vmatpush3.bf16.msra.mxu1 %v2059_v32  ;;  %1838 = vmatpush3.bf16.msra.mxu0 %v2062_v35  ;;  %v2140_v32 = vld [vmem:[%s2862_s1 + $0x1a8] sm:$0xff]  }
  0x2c   :  { %1781 = vmatprep.subr.bf16.mxu1 %v2063_v36  ;;  %1839 = vmatprep.subr.bf16.mxu0 %v2068_v37  ;;  %v2146_v35 = vld [vmem:[%s2862_s1 + $0x228] sm:$0xff]   ;;  %v2148_v36 = vld [vmem:[%s2862_s1 + $0x1f0] sm:$0xff]  }
  0x2d   :  { %1017 = vmatprep.mubr.bf16.mxu0 %v2071_v39  ;;  %1049 = vmatprep.mubr.bf16.mxu1 %v1637_v44  ;;  %v2134_v37 = vld [vmem:[%s2863_s0 + $0x128] ss:$36 sps:$4 sm:$0xff]   ;;  %v2149_v39 = vld [vmem:[%s2862_s1 + $0x1b0] sm:$0xff]   ;;  %v2156_v44 = vld [vmem:[%s2862_s1 + $0x1b8] sm:$0xff]  }
  0x2f   :  { %1782 = vmatpush3.bf16.msra.mxu1 %v2066_v38  ;;  %1840 = vmatpush3.bf16.msra.mxu0 %v2069_v40  ;;  %v2137_v38 = vld [vmem:[%s2863_s0 + $0x130] ss:$36 sps:$4 sm:$0xff]  }
  0x30   :  { %1783 = vmatprep.subr.bf16.mxu1 %v2070_v41  ;;  %1841 = vmatprep.subr.bf16.mxu0 %v2075_v43  ;;  %v2141_v40 = vld [vmem:[%s2863_s0 + $0x174] ss:$36 sps:$4 sm:$0xff]   ;;  %v2144_v43 = vld [vmem:[%s2863_s0 + $0x17c] ss:$36 sps:$4 sm:$0xff]  }
  0x31   :  { %v2152_v41 = vld [vmem:[%s2862_s1 + $0x230] sm:$0xff]  }
  0x32   :  { %1018 = vmatmul.mubr.bf16.gmra.mrb[8].mxu0 %v2074_v46  ;;  %1050 = vmatmul.mubr.bf16.gmra.mrb[8].mxu1 %v1636_v48  ;;  %v76_v46 = vld [vmem:[%s2863_s0 + $0x1b8] sm:$0x11]  ;;  %v2143_v48 = vld [vmem:[%s2863_s0 + $0x170] ss:$36 sps:$4 sm:$0xff]  }
  0x33   :  { %1784 = vmatpush3.bf16.msra.mxu1 %v2073_v45  ;;  %1842 = vmatpush3.bf16.msra.mxu0 %v2076_v47  ;;  %v2160_v45 = vld [vmem:[%s2862_s1 + $0x238] sm:$0xff]   ;;  %v77_v47 = vld [vmem:[%s2863_s0 + $0x1c0] sm:$0x11] }
  0x34   :  { %1785 = vmatprep.subr.bf16.mxu1 %v2077_v49  ;;  %1843 = vmatprep.subr.bf16.mxu0 %v2081_v50  ;;  %v2147_v49 = vld [vmem:[%s2863_s0 + $0x178] ss:$36 sps:$4 sm:$0xff]   ;;  %v1639_v50 = vcombine.high %v76_v46, %v76_v46 }
  0x35   :  { %1025 = vmatprep.mubr.bf16.mxu0 %v2084_v52  ;;  %1089 = vmatprep.mubr.bf16.mxu1 %v2095_v61  ;;  %v1638_v52 = vcombine.low %v76_v46, %v76_v46  ;;  %v2168_v61 = vld [vmem:[%s2863_s0 + $0xa8] ss:$36 sps:$4 sm:$0xff]   ;;  %v225_v46 = vlaneseq }
  0x37   :  { %1786 = vmatpush3.bf16.msra.mxu1 %v2079_v51  ;;  %1844 = vmatpush3.bf16.msra.mxu0 %v2082_v53  ;;  %v1641_v51 = vcombine.high %v77_v47, %v77_v47  ;;  %v1640_v53 = vcombine.low %v77_v47, %v77_v47 }
  0x38   :  { %1787 = vmatprep.subr.bf16.mxu1 %v2083_v54  ;;  %1845 = vmatprep.subr.bf16.mxu0 %v2088_v55  ;;  %v2159_v54 = vld [vmem:[%s2863_s0 + $0x1c] ss:$36 sps:$4 sm:$0xff]  }
  0x39   :  { %v2157_v55 = vld [vmem:[%s2863_s0 + $0x18] ss:$36 sps:$4 sm:$0xff]  }
  0x3a   :  { %1026 = vmatmul.mubr.bf16.gmra.mrb[12].mxu0 %v2087_v57  ;;  %v2162_v57 = vld [vmem:[%s2863_s0 + $0x64] ss:$36 sps:$4 sm:$0xff]  }
  0x3b   :  { %1788 = vmatpush3.bf16.msra.mxu1 %v2086_v56  ;;  %1846 = vmatpush3.bf16.msra.mxu0 %v2089_v58  ;;  %v2161_v56 = vld [vmem:[%s2863_s0 + $0x20] ss:$36 sps:$4 sm:$0xff]  }
  0x3c   :  { %1789 = vmatprep.subr.bf16.mxu1 %v2090_v59  ;;  %1847 = vmatprep.subr.bf16.mxu0 %v2092_v60  ;;  %v2164_v58 = vld [vmem:[%s2863_s0 + $0x60] ss:$36 sps:$4 sm:$0xff]   ;;  %v2165_v59 = vld [vmem:[%s2863_s0 + $0x68] ss:$36 sps:$4 sm:$0xff]  }
  0x3d   :  { %1177 = vmatprep.mubr.bf16.mxu0 %v2100_v1  ;;  %v2166_v60 = vld [vmem:[%s2863_s0 + $0xac] ss:$36 sps:$4 sm:$0xff]   ;;  %v2173_v1 = vld [vmem:[%s2863_s0 + $0xf8] ss:$36 sps:$4 sm:$0xff]  }
  0x3f   :  { %1790 = vmatpush3.bf16.msra.mxu1 %v2091_v62  ;;  %1848 = vmatpush3.bf16.msra.mxu0 %v2096_v63  ;;  %v2169_v62 = vld [vmem:[%s2863_s0 + $0xb0] ss:$36 sps:$4 sm:$0xff]  }
  0x40   :  { %1891 = vmatprep.subr.bf16.mxu1 %v2097_v0  ;;  %1964 = vmatprep.subr.bf16.mxu0 %v2187_v7  ;;  %v2170_v63 = vld [vmem:[%s2863_s0 + $0xf4] ss:$36 sps:$4 sm:$0xff]  }
  0x41   :  { %v2172_v0 = vld [vmem:[%s2863_s0 + $0xf0] ss:$36 sps:$4 sm:$0xff]  }
  0x42   :  { %1090 = vmatmul.mubr.bf16.vlgmr.msra.gmra.mrb[12].mxu1 %v2093_v2  ;;  %1178 = vmatmul.mubr.bf16.vlgmr.msra.gmra.mrb[16].mxu0 %v2098_v3  ;;  %v2174_v2 = vld [vmem:[%s2863_s0 + $0x13c] ss:$36 sps:$4 sm:$0xff]  }
  0x43   :  { %1892 = vmatpush3.bf16.msra.mxu1 %v2101_v4  ;;  %1965 = vmatpush3.bf16.msra.mxu0 %v2102_v5  ;;  %v2176_v3 = vld [vmem:[%s2863_s0 + $0x138] ss:$36 sps:$4 sm:$0xff]   ;;  %v2177_v4 = vld [vmem:[%s2863_s0 + $0x140] ss:$36 sps:$4 sm:$0xff]  }
  0x44   :  { %1097 = vmatprep.mubr.bf16.mxu1 %v2103_v6  ;;  %1893 = vmatprep.subr.bf16.mxu1 %v2105_v8  ;;  %v2178_v5 = vld [vmem:[%s2863_s0 + $0x184] ss:$36 sps:$4 sm:$0xff]  }
  0x45   :  { %1185 = vmatprep.mubr.bf16.mxu0 %v2108_v10  ;;  %1966 = vmatprep.subr.bf16.mxu0 %v2187_v7  ;;  %v78_v6 = vld [vmem:[%s2863_s0 + $0x1c8] sm:$0x11]  ;;  %v2180_v8 = vld [vmem:[%s2863_s0 + $0x180] ss:$36 sps:$4 sm:$0xff]  }
  0x46   :  { %v1643_v10 = vcombine.high %v78_v6, %v78_v6 }
  0x47   :  { %1894 = vmatpush3.bf16.msra.mxu1 %v2107_v9  ;;  %1967 = vmatpush3.bf16.msra.mxu0 %v2111_v11  ;;  %v2181_v9 = vld [vmem:[%s2863_s0 + $0x188] ss:$36 sps:$4 sm:$0xff]   ;;  %v1642_v11 = vcombine.low %v78_v6, %v78_v6 }
  0x48   :  { %1895 = vmatprep.subr.bf16.mxu1 %v2112_v12  ;;  %1968 = vmatprep.subr.bf16.mxu0 %v2187_v7  ;;  %v2184_v12 = vld [vmem:[%s2863_s0 + $0x1d0] ss:$0 sps:$4 sm:$0x11]  }
  0x4a   :  { %1098 = vmatmul.mubr.bf16.gmra.mrb[16].mxu1 %v2106_v13  ;;  %1186 = vmatmul.mubr.bf16.gmra.mrb[20].mxu0 %v2110_v14 }
  0x4b   :  { %1105 = vmatprep.mubr.bf16.mxu1 %v2113_v15  ;;  %1896 = vmatpush3.bf16.msra.mxu1 %v2115_v16 }
  0x4c   :  { %1193 = vmatprep.mubr.bf16.mxu0 %v2117_v17  ;;  %1969 = vmatpush3.bf16.msra.mxu0 %v2120_v18 }
  0x4d   :  { %1897 = vmatprep.subr.bf16.mxu1 %v2121_v19  ;;  %1970 = vmatprep.subr.bf16.mxu0 %v2187_v7 }
  0x4f   :  { %1898 = vmatpush3.bf16.msra.mxu1 %v2122_v20 }
  0x50   :  { %1971 = vmatpush3.bf16.msra.mxu0 %v2129_v25  ;;  %1899 = vmatprep.subr.bf16.mxu1 %v2130_v26 }
  0x51   :  { %1972 = vmatprep.subr.bf16.mxu0 %v2187_v7 }
  0x52   :  { %1106 = vmatmul.mubr.bf16.gmra.mrb[20].mxu1 %v2116_v21  ;;  %1194 = vmatmul.mubr.bf16.gmra.mrb[24].mxu0 %v2119_v22 }
  0x53   :  { %1113 = vmatprep.mubr.bf16.mxu1 %v2123_v23  ;;  %1201 = vmatprep.mubr.bf16.mxu0 %v2126_v24 }
  0x54   :  { %1900 = vmatpush3.bf16.msra.mxu1 %v2131_v27  ;;  %1973 = vmatpush3.bf16.msra.mxu0 %v2138_v30 }
  0x55   :  { %1901 = vmatprep.subr.bf16.mxu1 %v2139_v31  ;;  %1974 = vmatprep.subr.bf16.mxu0 %v2187_v7 }
  0x58   :  { %1902 = vmatpush3.bf16.msra.mxu1 %v2140_v32  ;;  %1975 = vmatpush3.bf16.msra.mxu0 %v2146_v35 }
  0x59   :  { %1903 = vmatprep.subr.bf16.mxu1 %v2148_v36  ;;  %1976 = vmatprep.subr.bf16.mxu0 %v2187_v7 }
  0x5a   :  { %1114 = vmatmul.mubr.bf16.gmra.mrb[24].mxu1 %v2125_v28  ;;  %1202 = vmatmul.mubr.bf16.gmra.mrb[28].mxu0 %v2128_v29 }
  0x5b   :  { %1121 = vmatprep.mubr.bf16.mxu1 %v2132_v33  ;;  %1209 = vmatprep.mubr.bf16.mxu0 %v2135_v34 }
  0x5c   :  { %1904 = vmatpush3.bf16.msra.mxu1 %v2149_v39  ;;  %1977 = vmatpush3.bf16.msra.mxu0 %v2152_v41 }
  0x5d   :  { %1905 = vmatprep.subr.bf16.mxu1 %v2154_v42  ;;  %1978 = vmatprep.subr.bf16.mxu0 %v2187_v7 }
  0x60   :  { %1906 = vmatpush3.bf16.msra.mxu1 %v2156_v44  ;;  %1979 = vmatpush3.bf16.msra.mxu0 %v2160_v45 }
  0x62   :  { %1122 = vmatmul.mubr.bf16.gmra.mrb[28].mxu1 %v2134_v37  ;;  %1210 = vmatmul.mubr.bf16.gmra.mrb[32].mxu0 %v2137_v38 }
  0x63   :  { %1129 = vmatprep.mubr.bf16.mxu1 %v2141_v40  ;;  %1217 = vmatprep.mubr.bf16.mxu0 %v2144_v43 }
  0x6a   :  { %1130 = vmatmul.mubr.bf16.gmra.mrb[32].mxu1 %v2143_v48  ;;  %1218 = vmatmul.mubr.bf16.gmra.mrb[36].mxu0 %v2147_v49  ;;  %v2634_v48 = vshrl.u32 %v225_v46, 7 }
  0x6b   :  { %1137 = vmatprep.mubr.bf16.mxu1 %v1639_v50  ;;  %1225 = vmatprep.mubr.bf16.mxu0 %v1641_v51 }
  0x72   :  { %1138 = vmatmul.mubr.bf16.gmra.mrb[36].mxu1 %v1638_v52  ;;  %1226 = vmatmul.mubr.bf16.gmra.mrb[40].mxu0 %v1640_v53 }
  0x73   :  { %1265 = vmatprep.mubr.bf16.mxu1 %v2159_v54  ;;  %1980 = vmatprep.mubr.msk.bf16.mxu0 %vm2188_vm0, %v2187_v7  ;;  %v227_v54 = vsub.s32 0, %v2634_v48 }
  0x7a   :  { %1266 = vmatmul.mubr.bf16.vlgmr.msra.gmra.mrb[40].mxu1 %v2157_v55  ;;  %1981 = vmatmul.mubr.bf16.vlgmr.msra.gmra.mrb[44].mxu0 %v2161_v56  ;;  %v2644_v56 = vld [vmem:[%s2864_s2] sm:$0x7] }
  0x7b   :  { %1273 = vmatprep.mubr.bf16.mxu1 %v2162_v57  ;;  %1984 = vmatprep.mubr.msk.bf16.mxu0 %vm2188_vm0, %v2187_v7  ;;  %v2647_v57 = vrot.slane %v2644_v56, %v227_v54 }
  0x82   :  { %1274 = vmatmul.mubr.bf16.gmra.mrb[44].mxu1 %v2164_v58  ;;  %1985 = vmatmul.mubr.bf16.gmra.mrb[48].mxu0 %v2165_v59 }
  0x83   :  { %1281 = vmatprep.mubr.bf16.mxu1 %v2166_v60  ;;  %1988 = vmatprep.mubr.msk.bf16.mxu0 %vm2188_vm0, %v2187_v7 }
  0x8a   :  { %1282 = vmatmul.mubr.bf16.gmra.mrb[48].mxu1 %v2168_v61  ;;  %1989 = vmatmul.mubr.bf16.gmra.mrb[52].mxu0 %v2169_v62 }
  0x8b   :  { %1289 = vmatprep.mubr.bf16.mxu1 %v2170_v63  ;;  %1992 = vmatprep.mubr.msk.bf16.mxu0 %vm2188_vm0, %v2187_v7 }
  0x92   :  { %1290 = vmatmul.mubr.bf16.gmra.mrb[52].mxu1 %v2172_v0  ;;  %1993 = vmatmul.mubr.bf16.gmra.mrb[56].mxu0 %v2173_v1 }
  0x93   :  { %1297 = vmatprep.mubr.bf16.mxu1 %v2174_v2  ;;  %1996 = vmatprep.mubr.msk.bf16.mxu0 %vm2188_vm0, %v2187_v7 }
  0x9a   :  { %1298 = vmatmul.mubr.bf16.gmra.mrb[56].mxu1 %v2176_v3  ;;  %1997 = vmatmul.mubr.bf16.gmra.mrb[60].mxu0 %v2177_v4 }
  0x9b   :  { %1305 = vmatprep.mubr.bf16.mxu1 %v2178_v5  ;;  %2000 = vmatprep.mubr.msk.bf16.mxu0 %vm2188_vm0, %v2187_v7 }
  0xa2   :  { %1306 = vmatmul.mubr.bf16.gmra.mrb[60].mxu1 %v2180_v8  ;;  %2001 = vmatmul.mubr.bf16.gmra.mrb[64].mxu0 %v2181_v9 }
  0xa3   :  { %1313 = vmatprep.mubr.bf16.mxu1 %v1643_v10  ;;  %2004 = vmatprep.mubr.msk.bf16.mxu0 %vm2188_vm0, %v2187_v7 }
  0xaa   :  { %1314 = vmatmul.mubr.bf16.gmra.mrb[64].mxu1 %v1642_v11  ;;  %2005 = vmatmul.mubr.bf16.gmra.mrb[68].mxu0 %v2184_v12 }
  0xf5   :  { %v1757_v13 = vpop.f32.mrb[0].mxu1  ;;  %v1733_v14 = vpop.f32.mrb[0].mxu0 }
  0xf6   :  { %v1758_v15 = vpop.f32.mrb[1].mxu1  ;;  %v1734_v16 = vpop.f32.mrb[1].mxu0 }
  0xf7   :  { %v2624_v17 = vadd.f32 %v1758_v15, %v1757_v13  ;;  %v1760_v18 = vpop.f32.mrb[2].mxu1  ;;  %v1735_v19 = vadd.f32 %v1734_v16, %v1733_v14  ;;  %v1736_v20 = vpop.f32.mrb[2].mxu0 }
  0xf8   :  { %v1761_v21 = vpop.f32.mrb[3].mxu1  ;;  %v1737_v22 = vpop.f32.mrb[3].mxu0 }
  0xf9   :  { %v2626_v23 = vadd.f32 %v1761_v21, %v1760_v18  ;;  %v1738_v7 = vadd.f32 %v1737_v22, %v1736_v20  ;;  %v1004_v62 = vadd.f32 %v1735_v19, %v2647_v57 }
  0xfb   :  { %v1007_v5 = vadd.f32 %v1738_v7, %v2647_v57 }
  0xfd   :  { %v1739_v24 = vpop.f32.mrb[4].mxu0  ;;  %v1763_v25 = vpop.f32.mrb[4].mxu1 }
  0xfe   :  { %v1740_v26 = vpop.f32.mrb[5].mxu0  ;;  %v1764_v27 = vpop.f32.mrb[5].mxu1 }
  0xff   :  { %v1741_v28 = vadd.f32 %v1740_v26, %v1739_v24  ;;  %v1742_v29 = vpop.f32.mrb[6].mxu0  ;;  %v2628_v30 = vadd.f32 %v1764_v27, %v1763_v25  ;;  %v1766_v31 = vpop.f32.mrb[6].mxu1 }
 0x100   :  { %v1743_v32 = vpop.f32.mrb[7].mxu0  ;;  %v1767_v33 = vpop.f32.mrb[7].mxu1 }
 0x101   :  { %v1744_v34 = vadd.f32 %v1743_v32, %v1742_v29  ;;  %v2630_v35 = vadd.f32 %v1767_v33, %v1766_v31  ;;  %v1012_v18 = vadd.f32 %v1741_v28, %v2647_v57 }
 0x103   :  { %v1015_v25 = vadd.f32 %v1744_v34, %v2647_v57 }
 0x105   :  { %v1745_v36 = vpop.f32.mrb[8].mxu0  ;;  %v1769_v37 = vpop.f32.mrb[8].mxu1 }
 0x106   :  { %v1746_v38 = vpop.f32.mrb[9].mxu0  ;;  %v1770_v39 = vpop.f32.mrb[9].mxu1 }
 0x107   :  { %v1747_v40 = vadd.f32 %v1746_v38, %v1745_v36  ;;  %v1748_v41 = vpop.f32.mrb[10].mxu0  ;;  %v2632_v42 = vadd.f32 %v1770_v39, %v1769_v37  ;;  %v1772_v43 = vpop.f32.mrb[10].mxu1 }
 0x108   :  { %v1749_v44 = vpop.f32.mrb[11].mxu0  ;;  %v1773_v45 = vpop.f32.mrb[11].mxu1 }
 0x109   :  { %v1750_v47 = vadd.f32 %v1749_v44, %v1748_v41  ;;  %v1020_v39 = vadd.f32 %v1747_v40, %v2647_v57 }
 0x10d   :  { %v1751_v49 = vpop.f32.mrb[12].mxu0 }
 0x10e   :  { %v1752_v50 = vpop.f32.mrb[13].mxu0 }
 0x10f   :  { %v2636_v51 = vadd.f32 %v1752_v50, %v1751_v49  ;;  %v1754_v52 = vpop.f32.mrb[14].mxu0  ;;  %v1023_v49 = vadd.f32 %v1750_v47, %v2647_v57 }
 0x110   :  { %v1755_v53 = vpop.f32.mrb[15].mxu0 }
 0x111   :  { %v2639_v55 = vadd.f32 %v1755_v53, %v1754_v52 }
 0x115   :  { %v1791_v58 = vpop.f32.mrb[12].mxu1  ;;  %v1849_v59 = vpop.f32.mrb[16].mxu0 }
 0x116   :  { %v1792_v60 = vpop.f32.mrb[13].mxu1  ;;  %v1850_v61 = vpop.f32.mrb[17].mxu0 }
 0x117   :  { %v1793_v63 = vadd.f32 %v1792_v60, %v1791_v58  ;;  %v1794_v0 = vpop.f32.mrb[14].mxu1  ;;  %v1851_v1 = vadd.f32 %v1850_v61, %v1849_v59  ;;  %v1852_v2 = vpop.f32.mrb[18].mxu0 }
 0x118   :  { %v1795_v3 = vpop.f32.mrb[15].mxu1  ;;  %v1853_v4 = vpop.f32.mrb[19].mxu0 }
 0x119   :  { %v1092_v6 = vadd.f32 %v1793_v63, %v1004_v62  ;;  %v1796_v8 = vadd.f32 %v1795_v3, %v1794_v0  ;;  %v1854_v9 = vadd.f32 %v1853_v4, %v1852_v2  ;;  %v1028_v63 = vadd.f32 %v2636_v51, %v2647_v57 }
 0x11b   :  { %v1095_v10 = vadd.f32 %v1796_v8, %v1007_v5  ;;  %v2651_v11 = vadd.f32 %v1851_v1, %v1092_v6  ;;  %v1031_v5 = vadd.f32 %v2639_v55, %v2647_v57 }
 0x11d   :  { %v2653_v12 = vadd.f32 %v1854_v9, %v1095_v10  ;;  %v1797_v13 = vpop.f32.mrb[16].mxu1  ;;  %v1855_v14 = vpop.f32.mrb[20].mxu0 }
 0x11e   :  { %v1798_v15 = vpop.f32.mrb[17].mxu1  ;;  %v1856_v16 = vpop.f32.mrb[21].mxu0 }
 0x11f   :  { %v1799_v19 = vadd.f32 %v1798_v15, %v1797_v13  ;;  %v1800_v20 = vpop.f32.mrb[18].mxu1  ;;  %v1857_v21 = vadd.f32 %v1856_v16, %v1855_v14  ;;  %v1858_v22 = vpop.f32.mrb[22].mxu0 }
 0x120   :  { %v1801_v24 = vpop.f32.mrb[19].mxu1  ;;  %v1859_v7 = vpop.f32.mrb[23].mxu0 }
 0x121   :  { %v1100_v26 = vadd.f32 %v1799_v19, %v1012_v18  ;;  %v1802_v27 = vadd.f32 %v1801_v24, %v1800_v20  ;;  %v1860_v29 = vadd.f32 %v1859_v7, %v1858_v22  ;;  %v1036_v19 = vadd.f32 %v2624_v17, %v2647_v57 }
 0x123   :  { %v1103_v31 = vadd.f32 %v1802_v27, %v1015_v25  ;;  %v2657_v32 = vadd.f32 %v1857_v21, %v1100_v26  ;;  %v1039_v25 = vadd.f32 %v2626_v23, %v2647_v57 }
 0x125   :  { %v2659_v33 = vadd.f32 %v1860_v29, %v1103_v31  ;;  %v1803_v36 = vpop.f32.mrb[20].mxu1  ;;  %v1861_v37 = vpop.f32.mrb[24].mxu0 }
 0x126   :  { %v1804_v38 = vpop.f32.mrb[21].mxu1  ;;  %v1862_v28 = vpop.f32.mrb[25].mxu0 }
 0x127   :  { %v1805_v41 = vadd.f32 %v1804_v38, %v1803_v36  ;;  %v1806_v43 = vpop.f32.mrb[22].mxu1  ;;  %v1863_v44 = vadd.f32 %v1862_v28, %v1861_v37  ;;  %v1864_v45 = vpop.f32.mrb[26].mxu0 }
 0x128   :  { %v1807_v46 = vpop.f32.mrb[23].mxu1  ;;  %v1865_v34 = vpop.f32.mrb[27].mxu0 }
 0x129   :  { %v1108_v50 = vadd.f32 %v1805_v41, %v1020_v39  ;;  %v1808_v52 = vadd.f32 %v1807_v46, %v1806_v43  ;;  %v1866_v53 = vadd.f32 %v1865_v34, %v1864_v45  ;;  %v1044_v41 = vadd.f32 %v2628_v30, %v2647_v57 }
 0x12b   :  { %v1111_v54 = vadd.f32 %v1808_v52, %v1023_v49  ;;  %v2663_v58 = vadd.f32 %v1863_v44, %v1108_v50  ;;  %v1047_v49 = vadd.f32 %v2630_v35, %v2647_v57 }
 0x12d   :  { %v2665_v59 = vadd.f32 %v1866_v53, %v1111_v54  ;;  %v1809_v60 = vpop.f32.mrb[24].mxu1  ;;  %v1867_v61 = vpop.f32.mrb[28].mxu0 }
 0x12e   :  { %v1810_v62 = vpop.f32.mrb[25].mxu1  ;;  %v1868_v40 = vpop.f32.mrb[29].mxu0 }
 0x12f   :  { %v1811_v0 = vadd.f32 %v1810_v62, %v1809_v60  ;;  %v1812_v1 = vpop.f32.mrb[26].mxu1  ;;  %v1869_v2 = vadd.f32 %v1868_v40, %v1867_v61  ;;  %v1870_v3 = vpop.f32.mrb[30].mxu0 }
 0x130   :  { %v1813_v47 = vpop.f32.mrb[27].mxu1  ;;  %v1871_v4 = vpop.f32.mrb[31].mxu0 }
 0x131   :  { %v1116_v6 = vadd.f32 %v1811_v0, %v1028_v63  ;;  %v1814_v8 = vadd.f32 %v1813_v47, %v1812_v1  ;;  %v1872_v9 = vadd.f32 %v1871_v4, %v1870_v3  ;;  %v1052_v0 = vadd.f32 %v2632_v42, %v2647_v57 }
 0x133   :  { %v1119_v10 = vadd.f32 %v1814_v8, %v1031_v5  ;;  %v2671_v13 = vadd.f32 %v1869_v2, %v1116_v6 }
 0x135   :  { %v2673_v14 = vadd.f32 %v1872_v9, %v1119_v10  ;;  %v1815_v15 = vpop.f32.mrb[28].mxu1  ;;  %v1873_v16 = vpop.f32.mrb[32].mxu0 }
 0x136   :  { %v1816_v51 = vpop.f32.mrb[29].mxu1  ;;  %v1874_v18 = vpop.f32.mrb[33].mxu0 }
 0x137   :  { %v1817_v20 = vadd.f32 %v1816_v51, %v1815_v15  ;;  %v1818_v21 = vpop.f32.mrb[30].mxu1  ;;  %v1875_v22 = vadd.f32 %v1874_v18, %v1873_v16  ;;  %v1876_v24 = vpop.f32.mrb[34].mxu0 }
 0x138   :  { %v1819_v55 = vpop.f32.mrb[31].mxu1  ;;  %v1877_v7 = vpop.f32.mrb[35].mxu0 }
 0x139   :  { %v1124_v26 = vadd.f32 %v1817_v20, %v1036_v19  ;;  %v1820_v27 = vadd.f32 %v1819_v55, %v1818_v21  ;;  %v1878_v29 = vadd.f32 %v1877_v7, %v1876_v24 }
 0x13b   :  { %v1127_v31 = vadd.f32 %v1820_v27, %v1039_v25  ;;  %v2679_v36 = vadd.f32 %v1875_v22, %v1124_v26 }
 0x13d   :  { %v2681_v37 = vadd.f32 %v1878_v29, %v1127_v31  ;;  %v1821_v38 = vpop.f32.mrb[32].mxu1  ;;  %v1879_v28 = vpop.f32.mrb[36].mxu0 }
 0x13e   :  { %v1822_v17 = vpop.f32.mrb[33].mxu1  ;;  %v1880_v39 = vpop.f32.mrb[37].mxu0 }
 0x13f   :  { %v1823_v43 = vadd.f32 %v1822_v17, %v1821_v38  ;;  %v1824_v44 = vpop.f32.mrb[34].mxu1  ;;  %v1881_v45 = vadd.f32 %v1880_v39, %v1879_v28  ;;  %v1882_v46 = vpop.f32.mrb[38].mxu0 }
 0x140   :  { %v1825_v23 = vpop.f32.mrb[35].mxu1  ;;  %v1883_v34 = vpop.f32.mrb[39].mxu0 }
 0x141   :  { %v1132_v50 = vadd.f32 %v1823_v43, %v1044_v41  ;;  %v1826_v52 = vadd.f32 %v1825_v23, %v1824_v44  ;;  %v1884_v53 = vadd.f32 %v1883_v34, %v1882_v46 }
 0x143   :  { %v1135_v54 = vadd.f32 %v1826_v52, %v1047_v49  ;;  %v2687_v60 = vadd.f32 %v1881_v45, %v1132_v50 }
 0x145   :  { %v2689_v61 = vadd.f32 %v1884_v53, %v1135_v54  ;;  %v1827_v62 = vpop.f32.mrb[36].mxu1  ;;  %v1885_v40 = vpop.f32.mrb[40].mxu0 }
 0x146   :  { %v1828_v30 = vpop.f32.mrb[37].mxu1  ;;  %v1886_v63 = vpop.f32.mrb[41].mxu0 }
 0x147   :  { %v1829_v1 = vadd.f32 %v1828_v30, %v1827_v62  ;;  %v1830_v2 = vpop.f32.mrb[38].mxu1  ;;  %v1887_v3 = vadd.f32 %v1886_v63, %v1885_v40  ;;  %v1888_v47 = vpop.f32.mrb[42].mxu0 }
 0x148   :  { %v1831_v35 = vpop.f32.mrb[39].mxu1  ;;  %v1889_v4 = vpop.f32.mrb[43].mxu0 }
 0x149   :  { %v1140_v5 = vadd.f32 %v1829_v1, %v1052_v0 }
 0x14b   :  { %v2693_v6 = vadd.f32 %v1887_v3, %v1140_v5 }
 0x14d   :  { %v1907_v8 = vpop.f32.mrb[40].mxu1  ;;  %v1355_v9 = vpop.f32.mrb[44].mxu0 }
 0x14e   :  { %v1908_v10 = vpop.f32.mrb[41].mxu1  ;;  %v1982_v15 = vpop.f32.mrb[45].mxu0 }
 0x14f   :  { %v1909_v16 = vadd.f32 %v1908_v10, %v1907_v8  ;;  %v1910_v51 = vpop.f32.mrb[42].mxu1  ;;  %v1358_v18 = vpop.f32.mrb[46].mxu0 }
 0x150   :  { %v1911_v19 = vpop.f32.mrb[43].mxu1  ;;  %v1983_v20 = vpop.f32.mrb[47].mxu0 }
 0x151   :  { %v1912_v21 = vadd.f32 %v1911_v19, %v1910_v51  ;;  %v1268_v42 = vadd.f32 %v1909_v16, %v2651_v11 }
 0x153   :  { %v2696_v57 = vadd.f32 %v1355_v9, %v1268_v42  ;;  %v1271_v22 = vadd.f32 %v1912_v21, %v2653_v12 }
 0x155   :  { %v1443_v24 = vmul.f32 %v2696_v57, %v2696_v57  ;;  %v2701_v55 = vadd.f32 %v1358_v18, %v1271_v22  ;;  %v1913_v7 = vpop.f32.mrb[44].mxu1  ;;  %v1363_v25 = vpop.f32.mrb[48].mxu0  ;;  %v1410_v29 = vsel %vm1409_vm1, %v2696_v57, 0.0 }
 0x156   :  { %v1914_v26 = vpop.f32.mrb[45].mxu1  ;;  %v1986_v27 = vpop.f32.mrb[49].mxu0 }
 0x157   :  { %v1411_v11 = vsel %vm1409_vm1, %v2701_v55, 0.0  ;;  %v1444_v31 = vmul.f32 %v2701_v55, %v2701_v55  ;;  %v1915_v12 = vadd.f32 %v1914_v26, %v1913_v7  ;;  %v1916_v38 = vpop.f32.mrb[46].mxu1  ;;  %v1366_v28 = vpop.f32.mrb[50].mxu0  ;;  %v1456_v43 = vsel %vm1409_vm1, %v1443_v24, 0.0 }
 0x158   :  { %v1412_v17 = vadd.f32 %v1411_v11, %v1410_v29  ;;  %v1917_v39 = vpop.f32.mrb[47].mxu1  ;;  %v1987_v41 = vpop.f32.mrb[51].mxu0 }
 0x159   :  { %v1457_v44 = vsel %vm1409_vm1, %v1444_v31, 0.0  ;;  %v1918_v45 = vadd.f32 %v1917_v39, %v1916_v38  ;;  %v1276_v46 = vadd.f32 %v1915_v12, %v2657_v32 }
 0x15a   :  { %v1458_v23 = vadd.f32 %v1457_v44, %v1456_v43 }
 0x15b   :  { %v2712_v34 = vadd.f32 %v1363_v25, %v1276_v46  ;;  %v1279_v49 = vadd.f32 %v1918_v45, %v2659_v33 }
 0x15d   :  { %v1413_v50 = vsel %vm1409_vm1, %v2712_v34, 0.0  ;;  %v1445_v52 = vmul.f32 %v2712_v34, %v2712_v34  ;;  %v2719_v53 = vadd.f32 %v1366_v28, %v1279_v49  ;;  %v1919_v54 = vpop.f32.mrb[48].mxu1  ;;  %v1371_v62 = vpop.f32.mrb[52].mxu0 }
 0x15e   :  { %v1414_v40 = vadd.f32 %v1413_v50, %v1412_v17  ;;  %v1920_v30 = vpop.f32.mrb[49].mxu1  ;;  %v1990_v63 = vpop.f32.mrb[53].mxu0 }
 0x15f   :  { %v1459_v32 = vsel %vm1409_vm1, %v1445_v52, 0.0  ;;  %v1415_v0 = vsel %vm1409_vm1, %v2719_v53, 0.0  ;;  %v1446_v33 = vmul.f32 %v2719_v53, %v2719_v53  ;;  %v1921_v1 = vadd.f32 %v1920_v30, %v1919_v54  ;;  %v1922_v2 = vpop.f32.mrb[50].mxu1  ;;  %v1374_v3 = vpop.f32.mrb[54].mxu0 }
 0x160   :  { %v1460_v47 = vadd.f32 %v1459_v32, %v1458_v23  ;;  %v1416_v35 = vadd.f32 %v1415_v0, %v1414_v40  ;;  %v1923_v4 = vpop.f32.mrb[51].mxu1  ;;  %v1991_v5 = vpop.f32.mrb[55].mxu0 }
 0x161   :  { %v1461_v8 = vsel %vm1409_vm1, %v1446_v33, 0.0  ;;  %v1924_v9 = vadd.f32 %v1923_v4, %v1922_v2  ;;  %v1284_v10 = vadd.f32 %v1921_v1, %v2663_v58 }
 0x162   :  { %v1462_v15 = vadd.f32 %v1461_v8, %v1460_v47 }
 0x163   :  { %v2728_v16 = vadd.f32 %v1371_v62, %v1284_v10  ;;  %v1287_v51 = vadd.f32 %v1924_v9, %v2665_v59 }
 0x165   :  { %v1417_v18 = vsel %vm1409_vm1, %v2728_v16, 0.0  ;;  %v1447_v19 = vmul.f32 %v2728_v16, %v2728_v16  ;;  %v2735_v20 = vadd.f32 %v1374_v3, %v1287_v51  ;;  %v1925_v21 = vpop.f32.mrb[52].mxu1  ;;  %v1379_v42 = vpop.f32.mrb[56].mxu0 }
 0x166   :  { %v1418_v22 = vadd.f32 %v1417_v18, %v1416_v35  ;;  %v1926_v24 = vpop.f32.mrb[53].mxu1  ;;  %v1994_v7 = vpop.f32.mrb[57].mxu0 }
 0x167   :  { %v1463_v58 = vsel %vm1409_vm1, %v1447_v19, 0.0  ;;  %v1419_v25 = vsel %vm1409_vm1, %v2735_v20, 0.0  ;;  %v1448_v59 = vmul.f32 %v2735_v20, %v2735_v20  ;;  %v1927_v26 = vadd.f32 %v1926_v24, %v1925_v21  ;;  %v1928_v27 = vpop.f32.mrb[54].mxu1  ;;  %v1382_v29 = vpop.f32.mrb[58].mxu0 }
 0x168   :  { %v1464_v11 = vadd.f32 %v1463_v58, %v1462_v15  ;;  %v1420_v31 = vadd.f32 %v1419_v25, %v1418_v22  ;;  %v1929_v12 = vpop.f32.mrb[55].mxu1  ;;  %v1995_v38 = vpop.f32.mrb[59].mxu0 }
 0x169   :  { %v1465_v28 = vsel %vm1409_vm1, %v1448_v59, 0.0  ;;  %v1930_v17 = vadd.f32 %v1929_v12, %v1928_v27  ;;  %v1292_v39 = vadd.f32 %v1927_v26, %v2671_v13 }
 0x16a   :  { %v1466_v41 = vadd.f32 %v1465_v28, %v1464_v11 }
 0x16b   :  { %v2744_v43 = vadd.f32 %v1379_v42, %v1292_v39  ;;  %v1295_v44 = vadd.f32 %v1930_v17, %v2673_v14 }
 0x16d   :  { %v1421_v45 = vsel %vm1409_vm1, %v2744_v43, 0.0  ;;  %v1449_v46 = vmul.f32 %v2744_v43, %v2744_v43  ;;  %v2751_v23 = vadd.f32 %v1382_v29, %v1295_v44  ;;  %v1931_v49 = vpop.f32.mrb[56].mxu1  ;;  %v1387_v50 = vpop.f32.mrb[60].mxu0 }
 0x16e   :  { %v1422_v52 = vadd.f32 %v1421_v45, %v1420_v31  ;;  %v1932_v54 = vpop.f32.mrb[57].mxu1  ;;  %v1998_v62 = vpop.f32.mrb[61].mxu0 }
 0x16f   :  { %v1467_v13 = vsel %vm1409_vm1, %v1449_v46, 0.0  ;;  %v1423_v40 = vsel %vm1409_vm1, %v2751_v23, 0.0  ;;  %v1450_v14 = vmul.f32 %v2751_v23, %v2751_v23  ;;  %v1933_v30 = vadd.f32 %v1932_v54, %v1931_v49  ;;  %v1934_v63 = vpop.f32.mrb[58].mxu1  ;;  %v1390_v32 = vpop.f32.mrb[62].mxu0 }
 0x170   :  { %v1468_v0 = vadd.f32 %v1467_v13, %v1466_v41  ;;  %v1424_v33 = vadd.f32 %v1423_v40, %v1422_v52  ;;  %v1935_v1 = vpop.f32.mrb[59].mxu1  ;;  %v1999_v2 = vpop.f32.mrb[63].mxu0 }
 0x171   :  { %v1469_v3 = vsel %vm1409_vm1, %v1450_v14, 0.0  ;;  %v1936_v47 = vadd.f32 %v1935_v1, %v1934_v63  ;;  %v1300_v35 = vadd.f32 %v1933_v30, %v2679_v36 }
 0x172   :  { %v1470_v4 = vadd.f32 %v1469_v3, %v1468_v0 }
 0x173   :  { %v2760_v5 = vadd.f32 %v1387_v50, %v1300_v35  ;;  %v1303_v8 = vadd.f32 %v1936_v47, %v2681_v37 }
 0x175   :  { %v1425_v9 = vsel %vm1409_vm1, %v2760_v5, 0.0  ;;  %v1451_v10 = vmul.f32 %v2760_v5, %v2760_v5  ;;  %v2767_v15 = vadd.f32 %v1390_v32, %v1303_v8  ;;  %v1937_v51 = vpop.f32.mrb[60].mxu1  ;;  %v1395_v18 = vpop.f32.mrb[64].mxu0 }
 0x176   :  { %v1426_v19 = vadd.f32 %v1425_v9, %v1424_v33  ;;  %v1938_v21 = vpop.f32.mrb[61].mxu1  ;;  %v2002_v42 = vpop.f32.mrb[65].mxu0 }
 0x177   :  { %v1471_v36 = vsel %vm1409_vm1, %v1451_v10, 0.0  ;;  %v1427_v22 = vsel %vm1409_vm1, %v2767_v15, 0.0  ;;  %v1452_v37 = vmul.f32 %v2767_v15, %v2767_v15  ;;  %v1939_v24 = vadd.f32 %v1938_v21, %v1937_v51  ;;  %v1940_v7 = vpop.f32.mrb[62].mxu1  ;;  %v1398_v58 = vpop.f32.mrb[66].mxu0 }
 0x178   :  { %v1472_v25 = vadd.f32 %v1471_v36, %v1470_v4  ;;  %v1428_v59 = vadd.f32 %v1427_v22, %v1426_v19  ;;  %v1941_v26 = vpop.f32.mrb[63].mxu1  ;;  %v2003_v27 = vpop.f32.mrb[67].mxu0 }
 0x179   :  { %v1473_v29 = vsel %vm1409_vm1, %v1452_v37, 0.0  ;;  %v1942_v11 = vadd.f32 %v1941_v26, %v1940_v7  ;;  %v1308_v31 = vadd.f32 %v1939_v24, %v2687_v60 }
 0x17a   :  { %v1474_v12 = vadd.f32 %v1473_v29, %v1472_v25 }
 0x17b   :  { %v2776_v38 = vadd.f32 %v1395_v18, %v1308_v31  ;;  %v1311_v28 = vadd.f32 %v1942_v11, %v2689_v61 }
 0x17d   :  { %v1429_v17 = vsel %vm1409_vm1, %v2776_v38, 0.0  ;;  %v1453_v39 = vmul.f32 %v2776_v38, %v2776_v38  ;;  %v2783_v41 = vadd.f32 %v1398_v58, %v1311_v28  ;;  %v1943_v44 = vpop.f32.mrb[64].mxu1  ;;  %v1403_v45 = vpop.f32.mrb[68].mxu0 }
 0x17e   :  { %v1430_v46 = vadd.f32 %v1429_v17, %v1428_v59  ;;  %v1944_v49 = vpop.f32.mrb[65].mxu1  ;;  %v2006_v50 = vpop.f32.mrb[69].mxu0 }
 0x17f   :  { %v1475_v60 = vsel %vm1409_vm1, %v1453_v39, 0.0  ;;  %v1431_v52 = vsel %vm1409_vm1, %v2783_v41, 0.0  ;;  %v1454_v61 = vmul.f32 %v2783_v41, %v2783_v41  ;;  %v1945_v54 = vadd.f32 %v1944_v49, %v1943_v44  ;;  %v1946_v62 = vpop.f32.mrb[66].mxu1  ;;  %v1406_v13 = vpop.f32.mrb[70].mxu0 }
 0x180   :  { %v1476_v40 = vadd.f32 %v1475_v60, %v1474_v12  ;;  %v1432_v14 = vadd.f32 %v1431_v52, %v1430_v46  ;;  %v1947_v30 = vpop.f32.mrb[67].mxu1  ;;  %v2007_v63 = vpop.f32.mrb[71].mxu0 }
 0x181   :  { %v1477_v32 = vsel %vm1409_vm1, %v1454_v61, 0.0  ;;  %v1316_v0 = vadd.f32 %v1945_v54, %v2693_v6 }
 0x182   :  { %v1478_v33 = vadd.f32 %v1477_v32, %v1476_v40 }
 0x183   :  { %v1404_v1 = vadd.f32 %v1403_v45, %v1316_v0 }
 0x185   :  { %v1434_v2 = vsel %vm1433_vm2, %v1404_v1, 0.0  ;;  %v1455_v3 = vmul.f32 %v1404_v1, %v1404_v1 }
 0x186   :  { %v1435_v47 = vadd.f32 %v1434_v2, %v1432_v14 }
 0x187   :  { %v1479_v35 = vsel %vm1433_vm2, %v1455_v3, 0.0 }
 0x188   :  { %v1436_v4 = vrot.slane %v1435_v47, 4  ;;  %v1480_v8 = vadd.f32 %v1479_v35, %v1478_v33 }
 0x18a   :  { %v1437_v9 = vadd.f32 %v1436_v4, %v1435_v47  ;;  %v1481_v10 = vrot.slane %v1480_v8, 4 }
 0x18c   :  { %v1438_v51 = vrot.slane %v1437_v9, 2  ;;  %v1482_v18 = vadd.f32 %v1481_v10, %v1480_v8 }
 0x18e   :  { %v1439_v19 = vadd.f32 %v1438_v51, %v1437_v9  ;;  %v1483_v21 = vrot.slane %v1482_v18, 2 }
 0x190   :  { %v1440_v42 = vrot.slane %v1439_v19, 1  ;;  %v1484_v36 = vadd.f32 %v1483_v21, %v1482_v18 }
 0x192   :  { %v1441_v6 = vadd.f32 %v1440_v42, %v1439_v19  ;;  %v1485_v22 = vrot.slane %v1484_v36, 1 }
 0x194   :  { %v1442_v37 = vmul.f32 0.010204081, %v1441_v6  ;;  %v1486_v24 = vadd.f32 %v1485_v22, %v1484_v36 }
 0x196   :  { %v1487_v7 = vmul.f32 0.010204081, %v1486_v24  ;;  %v1488_v58 = vmul.f32 %v1442_v37, %v1442_v37  ;;  %v1490_v25 = vsub.f32 %v2696_v57, %v1442_v37  ;;  %v1491_v59 = vsub.f32 %v2701_v55, %v1442_v37 }
 0x197   :  { %v1492_v26 = vsub.f32 %v2712_v34, %v1442_v37  ;;  %v1493_v27 = vsub.f32 %v2719_v53, %v1442_v37  ;;  %v1494_v29 = vsub.f32 %v2728_v16, %v1442_v37  ;;  %v1495_v11 = vsub.f32 %v2735_v20, %v1442_v37 }
 0x198   :  { %v1489_v31 = vsub.f32 %v1487_v7, %v1488_v58  ;;  %v1496_v12 = vsub.f32 %v2744_v43, %v1442_v37  ;;  %v1497_v28 = vsub.f32 %v2751_v23, %v1442_v37  ;;  %v1498_v17 = vsub.f32 %v2760_v5, %v1442_v37 }
 0x199   :  { %v1499_v39 = vsub.f32 %v2767_v15, %v1442_v37  ;;  %v1500_v57 = vsub.f32 %v2776_v38, %v1442_v37  ;;  %v1501_v55 = vsub.f32 %v2783_v41, %v1442_v37  ;;  %v1502_v34 = vsub.f32 %v1404_v1, %v1442_v37 }
 0x19a   :  { %v1503_v44 = vadd.f32 1e-05, %v1489_v31  ;;  %v1520_v53 = vsub.s32 1, %v2634_v48  ;;  %v1537_v16 = vsub.s32 2, %v2634_v48 }
 0x19c   :  { %2185 = vrsqrt.f32 %v1503_v44  ;;  %v1521_v43 = vrot.slane %v2644_v56, %v1520_v53  ;;  %v1538_v23 = vrot.slane %v2644_v56, %v1537_v16 }
 0x1a6   :  { %v2186_v20 = vpop.eup %2185 }
 0x1a7   :  { %v1505_v45 = vmul.f32 %v2186_v20, %v1490_v25  ;;  %v1506_v5 = vmul.f32 %v2186_v20, %v1491_v59  ;;  %v1507_v46 = vmul.f32 %v2186_v20, %v1492_v26  ;;  %v1508_v15 = vmul.f32 %v2186_v20, %v1493_v27 }
 0x1a8   :  { %v1509_v49 = vmul.f32 %v2186_v20, %v1494_v29  ;;  %v1510_v38 = vmul.f32 %v2186_v20, %v1495_v11  ;;  %v1511_v50 = vmul.f32 %v2186_v20, %v1496_v12  ;;  %v1512_v41 = vmul.f32 %v2186_v20, %v1497_v28 }
 0x1a9   :  { %v1513_v60 = vmul.f32 %v2186_v20, %v1498_v17  ;;  %v1514_v52 = vmul.f32 %v2186_v20, %v1499_v39  ;;  %v1515_v61 = vmul.f32 %v2186_v20, %v1500_v57  ;;  %v1516_v54 = vmul.f32 %v2186_v20, %v1501_v55 }
 0x1aa   :  { %v1517_v62 = vmul.f32 %v2186_v20, %v1502_v34  ;;  %v1522_v13 = vmul.f32 %v1521_v43, %v1505_v45  ;;  %v1523_v48 = vmul.f32 %v1521_v43, %v1506_v5  ;;  %v1524_v40 = vmul.f32 %v1521_v43, %v1507_v46 }
 0x1ab   :  { %v1525_v14 = vmul.f32 %v1521_v43, %v1508_v15  ;;  %v1526_v30 = vmul.f32 %v1521_v43, %v1509_v49  ;;  %v1527_v63 = vmul.f32 %v1521_v43, %v1510_v38  ;;  %v1528_v56 = vmul.f32 %v1521_v43, %v1511_v50 }
 0x1ac   :  { %v1529_v32 = vmul.f32 %v1521_v43, %v1512_v41  ;;  %v1530_v0 = vmul.f32 %v1521_v43, %v1513_v60  ;;  %v1531_v33 = vmul.f32 %v1521_v43, %v1514_v52  ;;  %v1532_v1 = vmul.f32 %v1521_v43, %v1515_v61 }
 0x1ad   :  { %v1533_v2 = vmul.f32 %v1521_v43, %v1516_v54  ;;  %v1534_v3 = vmul.f32 %v1521_v43, %v1517_v62  ;;  %v1539_v47 = vadd.f32 %v1538_v23, %v1522_v13  ;;  %v1540_v35 = vadd.f32 %v1538_v23, %v1523_v48 }
 0x1ae   :  { %v1541_v4 = vadd.f32 %v1538_v23, %v1524_v40  ;;  %v1542_v8 = vadd.f32 %v1538_v23, %v1525_v14  ;;  %v1543_v9 = vadd.f32 %v1538_v23, %v1526_v30  ;;  %v1544_v10 = vadd.f32 %v1538_v23, %v1527_v63 }
 0x1af   :  { %v1545_v51 = vadd.f32 %v1538_v23, %v1528_v56  ;;  %v1546_v18 = vadd.f32 %v1538_v23, %v1529_v32  ;;  %v1547_v19 = vadd.f32 %v1538_v23, %v1530_v0  ;;  %v1548_v21 = vadd.f32 %v1538_v23, %v1531_v33 }
 0x1b0   :  { %v1549_v42 = vadd.f32 %v1538_v23, %v1532_v1  ;;  %v1550_v36 = vadd.f32 %v1538_v23, %v1533_v2  ;;  %v1551_v6 = vadd.f32 %v1538_v23, %v1534_v3  ;;  %v1552_v22 = vmax.f32 %v1539_v47, 0.0 }
 0x1b1   :  { %v1553_v37 = vmax.f32 %v1540_v35, 0.0  ;;  %v1554_v24 = vmax.f32 %v1541_v4, 0.0  ;;  %v1555_v7 = vmax.f32 %v1542_v8, 0.0  ;;  %v1556_v58 = vmax.f32 %v1543_v9, 0.0 }
 0x1b2   :  { %v1557_v25 = vmax.f32 %v1544_v10, 0.0  ;;  %v1558_v59 = vmax.f32 %v1545_v51, 0.0  ;;  %v1559_v26 = vmax.f32 %v1546_v18, 0.0  ;;  %v1560_v27 = vmax.f32 %v1547_v19, 0.0  ;;  %1565 = vst.msk [vmem:[%s2865_s3] sm:$0xff] %vm1409_vm1, %v1552_v22 }
 0x1b3   :  { %v1561_v29 = vmax.f32 %v1548_v21, 0.0  ;;  %v1562_v11 = vmax.f32 %v1549_v42, 0.0  ;;  %v1563_v31 = vmax.f32 %v1550_v36, 0.0  ;;  %v1564_v12 = vmax.f32 %v1551_v6, 0.0  ;;  %1566 = vst.msk [vmem:[%s2865_s3 + $0x8] sm:$0xff] %vm1409_vm1, %v1553_v37  ;;  %1567 = vst.msk [vmem:[%s2865_s3 + $0x10] sm:$0xff] %vm1409_vm1, %v1554_v24 }
 0x1b4   :  { %1568 = vst.msk [vmem:[%s2865_s3 + $0x18] sm:$0xff] %vm1409_vm1, %v1555_v7  ;;  %1569 = vst.msk [vmem:[%s2865_s3 + $0x20] sm:$0xff] %vm1409_vm1, %v1556_v58 }
 0x1b5   :  { %1570 = vst.msk [vmem:[%s2865_s3 + $0x28] sm:$0xff] %vm1409_vm1, %v1557_v25  ;;  %1571 = vst.msk [vmem:[%s2865_s3 + $0x30] sm:$0xff] %vm1409_vm1, %v1558_v59 }
 0x1b6   :  { %1572 = vst.msk [vmem:[%s2865_s3 + $0x38] sm:$0xff] %vm1409_vm1, %v1559_v26  ;;  %1573 = vst.msk [vmem:[%s2865_s3 + $0x40] sm:$0xff] %vm1409_vm1, %v1560_v27 }
 0x1b7   :  { %1574 = vst.msk [vmem:[%s2865_s3 + $0x48] sm:$0xff] %vm1409_vm1, %v1561_v29  ;;  %1575 = vst.msk [vmem:[%s2865_s3 + $0x50] sm:$0xff] %vm1409_vm1, %v1562_v11 }
 0x1b8   :  { %1576 = vst.msk [vmem:[%s2865_s3 + $0x58] sm:$0xff] %vm1409_vm1, %v1563_v31 }
 0x1b9   :  { %1577 = vst.msk [vmem:[%s2865_s3 + $0x60] sm:$0x3] %vm1433_vm2, %v1564_v12 }

// kernel: inception_net.22
= control target key start
LH: loop header
LB: loop body
LE: loop exit
PB: predicated region body
PF: predicated region fallthrough
CT: control target
= control target key end

     0   :  { %s478_s0 = inlined_call_operand.vmem [shape: f32[9,2,4,4,256], index: 0, kind: input, shape index: {}]   ;;  %s479_s1 = inlined_call_operand.vmem [shape: f32[2,4,4,256], index: 1, kind: output, shape index: {}]  }
   0x1   :  { %v8_v0 = vld [vmem:[%s478_s0] sm:$0xff]  ;;  %v9_v6 = vld [vmem:[%s478_s0 + $0x8] sm:$0xff]  ;;  %v10_v15 = vld [vmem:[%s478_s0 + $0x10] sm:$0xff] }
   0x2   :  { %v164_v1 = vld [vmem:[%s478_s0 + $0x40] sm:$0xff]  ;;  %v165_v7 = vld [vmem:[%s478_s0 + $0x48] sm:$0xff]  ;;  %v166_v16 = vld [vmem:[%s478_s0 + $0x50] sm:$0xff] }
   0x3   :  { %v172_v2 = vld [vmem:[%s478_s0 + $0x80] sm:$0xff]  ;;  %v25_v3 = vmax.f32 %v8_v0, %v164_v1  ;;  %v173_v8 = vld [vmem:[%s478_s0 + $0x88] sm:$0xff]  ;;  %v26_v10 = vmax.f32 %v9_v6, %v165_v7  ;;  %v174_v17 = vld [vmem:[%s478_s0 + $0x90] sm:$0xff]  ;;  %v27_v20 = vmax.f32 %v10_v15, %v166_v16 }
   0x4   :  { %v180_v4 = vld [vmem:[%s478_s0 + $0xc0] sm:$0xff]  ;;  %v181_v13 = vld [vmem:[%s478_s0 + $0xc8] sm:$0xff]  ;;  %v182_v24 = vld [vmem:[%s478_s0 + $0xd0] sm:$0xff] }
   0x5   :  { %v42_v5 = vmax.f32 %v25_v3, %v172_v2  ;;  %v188_v9 = vld [vmem:[%s478_s0 + $0x100] sm:$0xff]  ;;  %v43_v14 = vmax.f32 %v26_v10, %v173_v8  ;;  %v189_v19 = vld [vmem:[%s478_s0 + $0x108] sm:$0xff]  ;;  %v44_v26 = vmax.f32 %v27_v20, %v174_v17  ;;  %v11_v27 = vld [vmem:[%s478_s0 + $0x18] sm:$0xff] }
   0x6   :  { %v196_v12 = vld [vmem:[%s478_s0 + $0x140] sm:$0xff]  ;;  %v197_v23 = vld [vmem:[%s478_s0 + $0x148] sm:$0xff]  ;;  %v167_v28 = vld [vmem:[%s478_s0 + $0x58] sm:$0xff] }
   0x7   :  { %v59_v11 = vmax.f32 %v42_v5, %v180_v4  ;;  %v204_v21 = vld [vmem:[%s478_s0 + $0x180] sm:$0xff]  ;;  %v60_v22 = vmax.f32 %v43_v14, %v181_v13  ;;  %v175_v29 = vld [vmem:[%s478_s0 + $0x98] sm:$0xff]  ;;  %v190_v33 = vld [vmem:[%s478_s0 + $0x110] sm:$0xff]  ;;  %v28_v34 = vmax.f32 %v11_v27, %v167_v28  ;;  %v61_v37 = vmax.f32 %v44_v26, %v182_v24 }
   0x8   :  { %v212_v30 = vld [vmem:[%s478_s0 + $0x1c0] sm:$0xff]  ;;  %v205_v36 = vld [vmem:[%s478_s0 + $0x188] sm:$0xff]  ;;  %v198_v38 = vld [vmem:[%s478_s0 + $0x150] sm:$0xff] }
   0x9   :  { %v76_v18 = vmax.f32 %v59_v11, %v188_v9  ;;  %v220_v31 = vld [vmem:[%s478_s0 + $0x200] sm:$0xff]  ;;  %v77_v32 = vmax.f32 %v60_v22, %v189_v19  ;;  %v183_v39 = vld [vmem:[%s478_s0 + $0xd8] sm:$0xff]  ;;  %v45_v41 = vmax.f32 %v28_v34, %v175_v29  ;;  %v213_v46 = vld [vmem:[%s478_s0 + $0x1c8] sm:$0xff]  ;;  %v78_v48 = vmax.f32 %v61_v37, %v190_v33 }
   0xa   :  { %v12_v42 = vld [vmem:[%s478_s0 + $0x20] sm:$0xff]  ;;  %v221_v47 = vld [vmem:[%s478_s0 + $0x208] sm:$0xff]  ;;  %v191_v49 = vld [vmem:[%s478_s0 + $0x118] sm:$0xff] }
   0xb   :  { %v93_v25 = vmax.f32 %v76_v18, %v196_v12  ;;  %v94_v40 = vmax.f32 %v77_v32, %v197_v23  ;;  %v168_v43 = vld [vmem:[%s478_s0 + $0x60] sm:$0xff]  ;;  %v206_v52 = vld [vmem:[%s478_s0 + $0x190] sm:$0xff]  ;;  %v62_v53 = vmax.f32 %v45_v41, %v183_v39  ;;  %v199_v54 = vld [vmem:[%s478_s0 + $0x158] sm:$0xff]  ;;  %v95_v57 = vmax.f32 %v78_v48, %v198_v38 }
   0xc   :  { %v176_v44 = vld [vmem:[%s478_s0 + $0xa0] sm:$0xff]  ;;  %v29_v50 = vmax.f32 %v12_v42, %v168_v43  ;;  %v13_v59 = vld [vmem:[%s478_s0 + $0x28] sm:$0xff]  ;;  %v214_v63 = vld [vmem:[%s478_s0 + $0x1d0] sm:$0xff] }
   0xd   :  { %v110_v35 = vmax.f32 %v93_v25, %v204_v21  ;;  %v111_v51 = vmax.f32 %v94_v40, %v205_v36  ;;  %v184_v55 = vld [vmem:[%s478_s0 + $0xe0] sm:$0xff]  ;;  %v169_v60 = vld [vmem:[%s478_s0 + $0x68] sm:$0xff]  ;;  %v222_v0 = vld [vmem:[%s478_s0 + $0x210] sm:$0xff]  ;;  %v79_v1 = vmax.f32 %v62_v53, %v191_v49  ;;  %v112_v4 = vmax.f32 %v95_v57, %v206_v52 }
   0xe   :  { %v46_v58 = vmax.f32 %v29_v50, %v176_v44  ;;  %v177_v61 = vld [vmem:[%s478_s0 + $0xa8] sm:$0xff]  ;;  %v192_v2 = vld [vmem:[%s478_s0 + $0x120] sm:$0xff]  ;;  %v30_v3 = vmax.f32 %v13_v59, %v169_v60  ;;  %v207_v5 = vld [vmem:[%s478_s0 + $0x198] sm:$0xff] }
   0xf   :  { %v127_v45 = vmax.f32 %v110_v35, %v212_v30  ;;  %v128_v62 = vmax.f32 %v111_v51, %v213_v46  ;;  %v200_v7 = vld [vmem:[%s478_s0 + $0x160] sm:$0xff]  ;;  %v185_v8 = vld [vmem:[%s478_s0 + $0xe8] sm:$0xff]  ;;  %v96_v10 = vmax.f32 %v79_v1, %v199_v54  ;;  %v14_v12 = vld [vmem:[%s478_s0 + $0x30] sm:$0xff]  ;;  %v129_v15 = vmax.f32 %v112_v4, %v214_v63 }
  0x10   :  { %v63_v6 = vmax.f32 %v46_v58, %v184_v55  ;;  %v47_v11 = vmax.f32 %v30_v3, %v177_v61  ;;  %v170_v13 = vld [vmem:[%s478_s0 + $0x70] sm:$0xff]  ;;  %v215_v16 = vld [vmem:[%s478_s0 + $0x1d8] sm:$0xff]  ;;  %v193_v19 = vld [vmem:[%s478_s0 + $0x128] sm:$0xff] }
  0x11   :  { %v144_v56 = vmax.f32 %v127_v45, %v220_v31  ;;  %v145_v9 = vmax.f32 %v128_v62, %v221_v47  ;;  %v178_v14 = vld [vmem:[%s478_s0 + $0xb0] sm:$0xff]  ;;  %v223_v17 = vld [vmem:[%s478_s0 + $0x218] sm:$0xff]  ;;  %v31_v20 = vmax.f32 %v14_v12, %v170_v13  ;;  %v113_v21 = vmax.f32 %v96_v10, %v207_v5  ;;  %v208_v22 = vld [vmem:[%s478_s0 + $0x1a0] sm:$0xff] }
  0x12   :  { %v80_v18 = vmax.f32 %v63_v6, %v192_v2  ;;  %v64_v23 = vmax.f32 %v47_v11, %v185_v8  ;;  %v201_v24 = vld [vmem:[%s478_s0 + $0x168] sm:$0xff]  ;;  %v186_v25 = vld [vmem:[%s478_s0 + $0xf0] sm:$0xff]  ;;  %v146_v26 = vmax.f32 %v129_v15, %v222_v0  ;;  %v15_v29 = vld [vmem:[%s478_s0 + $0x38] sm:$0xff] }
  0x13   :  { %152 = vst [vmem:[%s479_s1] sm:$0xff] %v144_v56  ;;  %153 = vst [vmem:[%s479_s1 + $0x8] sm:$0xff] %v145_v9  ;;  %v48_v28 = vmax.f32 %v31_v20, %v178_v14  ;;  %v171_v30 = vld [vmem:[%s478_s0 + $0x78] sm:$0xff]  ;;  %v130_v32 = vmax.f32 %v113_v21, %v215_v16  ;;  %v216_v33 = vld [vmem:[%s478_s0 + $0x1e0] sm:$0xff] }
  0x14   :  { %v97_v27 = vmax.f32 %v80_v18, %v200_v7  ;;  %v179_v31 = vld [vmem:[%s478_s0 + $0xb8] sm:$0xff]  ;;  %v81_v34 = vmax.f32 %v64_v23, %v193_v19  ;;  %v194_v35 = vld [vmem:[%s478_s0 + $0x130] sm:$0xff]  ;;  %v32_v36 = vmax.f32 %v15_v29, %v171_v30  ;;  %154 = vst [vmem:[%s479_s1 + $0x10] sm:$0xff] %v146_v26  ;;  %v209_v38 = vld [vmem:[%s478_s0 + $0x1a8] sm:$0xff] }
  0x15   :  { %v65_v39 = vmax.f32 %v48_v28, %v186_v25  ;;  %v187_v40 = vld [vmem:[%s478_s0 + $0xf8] sm:$0xff]  ;;  %v147_v41 = vmax.f32 %v130_v32, %v223_v17  ;;  %v224_v42 = vld [vmem:[%s478_s0 + $0x220] sm:$0xff]  ;;  %v202_v44 = vld [vmem:[%s478_s0 + $0x170] sm:$0xff] }
  0x16   :  { %v114_v37 = vmax.f32 %v97_v27, %v208_v22  ;;  %v98_v43 = vmax.f32 %v81_v34, %v201_v24  ;;  %v49_v45 = vmax.f32 %v32_v36, %v179_v31  ;;  %v217_v47 = vld [vmem:[%s478_s0 + $0x1e8] sm:$0xff]  ;;  %v195_v49 = vld [vmem:[%s478_s0 + $0x138] sm:$0xff]  ;;  %v210_v51 = vld [vmem:[%s478_s0 + $0x1b0] sm:$0xff] }
  0x17   :  { %v82_v48 = vmax.f32 %v65_v39, %v194_v35  ;;  %155 = vst [vmem:[%s479_s1 + $0x18] sm:$0xff] %v147_v41  ;;  %v225_v54 = vld [vmem:[%s478_s0 + $0x228] sm:$0xff]  ;;  %v203_v56 = vld [vmem:[%s478_s0 + $0x178] sm:$0xff]  ;;  %v218_v58 = vld [vmem:[%s478_s0 + $0x1f0] sm:$0xff] }
  0x18   :  { %v131_v46 = vmax.f32 %v114_v37, %v216_v33  ;;  %v115_v50 = vmax.f32 %v98_v43, %v209_v38  ;;  %v66_v52 = vmax.f32 %v49_v45, %v187_v40  ;;  %v211_v61 = vld [vmem:[%s478_s0 + $0x1b8] sm:$0xff]  ;;  %v226_v63 = vld [vmem:[%s478_s0 + $0x230] sm:$0xff] }
  0x19   :  { %v99_v55 = vmax.f32 %v82_v48, %v202_v44  ;;  %v219_v2 = vld [vmem:[%s478_s0 + $0x1f8] sm:$0xff] }
  0x1a   :  { %v148_v53 = vmax.f32 %v131_v46, %v224_v42  ;;  %v132_v57 = vmax.f32 %v115_v50, %v217_v47  ;;  %v83_v59 = vmax.f32 %v66_v52, %v195_v49  ;;  %v227_v5 = vld [vmem:[%s478_s0 + $0x238] sm:$0xff] }
  0x1b   :  { %v116_v60 = vmax.f32 %v99_v55, %v210_v51 }
  0x1c   :  { %156 = vst [vmem:[%s479_s1 + $0x20] sm:$0xff] %v148_v53  ;;  %v149_v62 = vmax.f32 %v132_v57, %v225_v54  ;;  %v100_v0 = vmax.f32 %v83_v59, %v203_v56 }
  0x1d   :  { %v133_v1 = vmax.f32 %v116_v60, %v218_v58 }
  0x1e   :  { %157 = vst [vmem:[%s479_s1 + $0x28] sm:$0xff] %v149_v62  ;;  %v117_v3 = vmax.f32 %v100_v0, %v211_v61 }
  0x1f   :  { %v150_v4 = vmax.f32 %v133_v1, %v226_v63 }
  0x20   :  { %v134_v6 = vmax.f32 %v117_v3, %v219_v2 }
  0x21   :  { %158 = vst [vmem:[%s479_s1 + $0x30] sm:$0xff] %v150_v4 }
  0x22   :  { %v151_v7 = vmax.f32 %v134_v6, %v227_v5 }
  0x24   :  { %159 = vst [vmem:[%s479_s1 + $0x38] sm:$0xff] %v151_v7 }

// kernel: inception_net.23
= control target key start
LH: loop header
LB: loop body
LE: loop exit
PB: predicated region body
PF: predicated region fallthrough
CT: control target
= control target key end

     0   :  { %v52_v36 = vlaneseq  ;;  %vm312_vm0 = vcmask 261120   ;;  %s813_s1 = inlined_call_operand.vmem [shape: bf16[256,160], index: 1, kind: input, shape index: {}]   ;;  %s814_s0 = inlined_call_operand.vmem [shape: bf16[32,256], index: 0, kind: input, shape index: {}]   ;;  %s815_s2 = inlined_call_operand.vmem [shape: f32[3,160], index: 2, kind: input, shape index: {}]   ;;  %s816_s3 = inlined_call_operand.vmem [shape: f32[32,160], index: 3, kind: output, shape index: {}]  }
   0x1   :  { %v524_v0 = vld [vmem:[%s813_s1 + $0x4] ss:$8 sps:$4 sm:$0xff]   ;;  %v526_v1 = vld [vmem:[%s813_s1] ss:$8 sps:$4 sm:$0xff]   ;;  %v527_v2 = vld [vmem:[%s813_s1 + $0x14] ss:$8 sps:$4 sm:$0xff]  }
   0x2   :  { %250 = vmatprep.subr.bf16.mxu0 %v524_v0  ;;  %492 = vmatprep.subr.bf16.mxu1 %v524_v0  ;;  %v529_v3 = vld [vmem:[%s813_s1 + $0x10] ss:$8 sps:$4 sm:$0xff]   ;;  %v530_v4 = vld [vmem:[%s813_s1 + $0x24] ss:$8 sps:$4 sm:$0xff]   ;;  %v532_v5 = vld [vmem:[%s813_s1 + $0x20] ss:$8 sps:$4 sm:$0xff]  }
   0x3   :  { %251 = vmatpush1.bf16.msra.mxu0 %v526_v1  ;;  %508 = vmatpush1.bf16.msra.mxu1 %v526_v1  ;;  %v533_v6 = vld [vmem:[%s813_s1 + $0x34] ss:$8 sps:$4 sm:$0xff]   ;;  %v535_v7 = vld [vmem:[%s813_s1 + $0x30] ss:$8 sps:$4 sm:$0xff]   ;;  %v536_v8 = vld [vmem:[%s813_s1 + $0x44] ss:$8 sps:$4 sm:$0xff]  }
   0x4   :  { %252 = vmatprep.subr.bf16.mxu0 %v527_v2  ;;  %493 = vmatprep.subr.bf16.mxu1 %v527_v2  ;;  %v538_v9 = vld [vmem:[%s813_s1 + $0x40] ss:$8 sps:$4 sm:$0xff]   ;;  %v539_v10 = vld [vmem:[%s813_s1 + $0x54] ss:$8 sps:$4 sm:$0xff]   ;;  %v541_v11 = vld [vmem:[%s813_s1 + $0x50] ss:$8 sps:$4 sm:$0xff]  }
   0x5   :  { %v542_v12 = vld [vmem:[%s813_s1 + $0x64] ss:$8 sps:$4 sm:$0xff]   ;;  %v544_v14 = vld [vmem:[%s813_s1 + $0x60] ss:$8 sps:$4 sm:$0xff]   ;;  %v577_v15 = vld [vmem:[%s814_s0 + $0x14] ss:$8 sps:$4 sm:$0xff]  }
   0x6   :  { %v574_v13 = vld [vmem:[%s814_s0 + $0x4] ss:$8 sps:$4 sm:$0xff]   ;;  %v545_v16 = vld [vmem:[%s813_s1 + $0x74] ss:$8 sps:$4 sm:$0xff]   ;;  %292 = vmatprep.mubr.bf16.mxu1 %v577_v15  ;;  %v547_v17 = vld [vmem:[%s813_s1 + $0x70] ss:$8 sps:$4 sm:$0xff]  }
   0x7   :  { %253 = vmatpush1.bf16.msra.mxu0 %v529_v3  ;;  %509 = vmatpush1.bf16.msra.mxu1 %v529_v3  ;;  %v548_v18 = vld [vmem:[%s813_s1 + $0x84] ss:$8 sps:$4 sm:$0xff]   ;;  %v550_v19 = vld [vmem:[%s813_s1 + $0x80] ss:$8 sps:$4 sm:$0xff]   ;;  %v551_v20 = vld [vmem:[%s813_s1 + $0x94] ss:$8 sps:$4 sm:$0xff]  }
   0x8   :  { %254 = vmatprep.subr.bf16.mxu0 %v530_v4  ;;  %494 = vmatprep.subr.bf16.mxu1 %v530_v4  ;;  %v553_v21 = vld [vmem:[%s813_s1 + $0x90] ss:$8 sps:$4 sm:$0xff]   ;;  %v554_v22 = vld [vmem:[%s813_s1 + $0xa4] ss:$8 sps:$4 sm:$0xff]   ;;  %v556_v23 = vld [vmem:[%s813_s1 + $0xa0] ss:$8 sps:$4 sm:$0xff]  }
   0x9   :  { %282 = vmatprep.mubr.bf16.mxu0 %v574_v13  ;;  %v557_v24 = vld [vmem:[%s813_s1 + $0xb4] ss:$8 sps:$4 sm:$0xff]   ;;  %v559_v25 = vld [vmem:[%s813_s1 + $0xb0] ss:$8 sps:$4 sm:$0xff]   ;;  %v560_v26 = vld [vmem:[%s813_s1 + $0xc4] ss:$8 sps:$4 sm:$0xff]  }
   0xa   :  { %v562_v27 = vld [vmem:[%s813_s1 + $0xc0] ss:$8 sps:$4 sm:$0xff]   ;;  %v563_v28 = vld [vmem:[%s813_s1 + $0xd4] ss:$8 sps:$4 sm:$0xff]   ;;  %v565_v29 = vld [vmem:[%s813_s1 + $0xd0] ss:$8 sps:$4 sm:$0xff]  }
   0xb   :  { %255 = vmatpush1.bf16.msra.mxu0 %v532_v5  ;;  %510 = vmatpush1.bf16.msra.mxu1 %v532_v5  ;;  %v566_v30 = vld [vmem:[%s813_s1 + $0xe4] ss:$8 sps:$4 sm:$0xff]   ;;  %v568_v31 = vld [vmem:[%s813_s1 + $0xe0] ss:$8 sps:$4 sm:$0xff]   ;;  %v569_v32 = vld [vmem:[%s813_s1 + $0xf4] ss:$8 sps:$4 sm:$0xff]  }
   0xc   :  { %256 = vmatprep.subr.bf16.mxu0 %v533_v6  ;;  %495 = vmatprep.subr.bf16.mxu1 %v533_v6  ;;  %v571_v33 = vld [vmem:[%s813_s1 + $0xf0] ss:$8 sps:$4 sm:$0xff]   ;;  %v572_v34 = vld [vmem:[%s814_s0] ss:$8 sps:$4 sm:$0xff]   ;;  %v710_v37 = vshrl.u32 %v52_v36, 7 }
   0xd   :  { %v575_v35 = vld [vmem:[%s814_s0 + $0x10] ss:$8 sps:$4 sm:$0xff]   ;;  %v716_v39 = vld [vmem:[%s815_s2] sm:$0x77] }
   0xe   :  { %v54_v38 = vsub.s32 0, %v710_v37  ;;  %v58_v40 = vsub.s32 4, %v710_v37 }
   0xf   :  { %257 = vmatpush1.bf16.msra.mxu0 %v535_v7  ;;  %511 = vmatpush1.bf16.msra.mxu1 %v535_v7 }
  0x10   :  { %258 = vmatprep.subr.bf16.mxu0 %v536_v8  ;;  %496 = vmatprep.subr.bf16.mxu1 %v536_v8  ;;  %v55_v41 = vrot.slane %v716_v39, %v54_v38  ;;  %v59_v42 = vrot.slane %v716_v39, %v58_v40 }
  0x12   :  { %v65_v43 = vrot.slane %v55_v41, %v54_v38  ;;  %v69_v44 = vrot.slane %v59_v42, %v54_v38 }
  0x13   :  { %259 = vmatpush1.bf16.msra.mxu0 %v538_v9  ;;  %512 = vmatpush1.bf16.msra.mxu1 %v538_v9 }
  0x14   :  { %260 = vmatprep.subr.bf16.mxu0 %v539_v10  ;;  %497 = vmatprep.subr.bf16.mxu1 %v539_v10 }
  0x17   :  { %261 = vmatpush1.bf16.msra.mxu0 %v541_v11  ;;  %513 = vmatpush1.bf16.msra.mxu1 %v541_v11 }
  0x18   :  { %262 = vmatprep.subr.bf16.mxu0 %v542_v12  ;;  %498 = vmatprep.subr.bf16.mxu1 %v542_v12 }
  0x1b   :  { %263 = vmatpush1.bf16.msra.mxu0 %v544_v14  ;;  %514 = vmatpush1.bf16.msra.mxu1 %v544_v14 }
  0x1c   :  { %264 = vmatprep.subr.bf16.mxu0 %v545_v16  ;;  %499 = vmatprep.subr.bf16.mxu1 %v545_v16 }
  0x1f   :  { %265 = vmatpush1.bf16.msra.mxu0 %v547_v17  ;;  %515 = vmatpush1.bf16.msra.mxu1 %v547_v17 }
  0x20   :  { %266 = vmatprep.subr.bf16.mxu0 %v548_v18  ;;  %500 = vmatprep.subr.bf16.mxu1 %v548_v18 }
  0x23   :  { %267 = vmatpush1.bf16.msra.mxu0 %v550_v19  ;;  %516 = vmatpush1.bf16.msra.mxu1 %v550_v19 }
  0x24   :  { %268 = vmatprep.subr.bf16.mxu0 %v551_v20  ;;  %501 = vmatprep.subr.bf16.mxu1 %v551_v20 }
  0x27   :  { %269 = vmatpush1.bf16.msra.mxu0 %v553_v21  ;;  %517 = vmatpush1.bf16.msra.mxu1 %v553_v21 }
  0x28   :  { %270 = vmatprep.subr.bf16.mxu0 %v554_v22  ;;  %502 = vmatprep.subr.bf16.mxu1 %v554_v22 }
  0x2b   :  { %271 = vmatpush1.bf16.msra.mxu0 %v556_v23  ;;  %518 = vmatpush1.bf16.msra.mxu1 %v556_v23 }
  0x2c   :  { %272 = vmatprep.subr.bf16.mxu0 %v557_v24  ;;  %503 = vmatprep.subr.bf16.mxu1 %v557_v24 }
  0x2f   :  { %273 = vmatpush1.bf16.msra.mxu0 %v559_v25  ;;  %519 = vmatpush1.bf16.msra.mxu1 %v559_v25 }
  0x30   :  { %274 = vmatprep.subr.bf16.mxu0 %v560_v26  ;;  %504 = vmatprep.subr.bf16.mxu1 %v560_v26 }
  0x33   :  { %275 = vmatpush1.bf16.msra.mxu0 %v562_v27  ;;  %520 = vmatpush1.bf16.msra.mxu1 %v562_v27 }
  0x34   :  { %276 = vmatprep.subr.bf16.mxu0 %v563_v28  ;;  %505 = vmatprep.subr.bf16.mxu1 %v563_v28 }
  0x37   :  { %277 = vmatpush1.bf16.msra.mxu0 %v565_v29  ;;  %521 = vmatpush1.bf16.msra.mxu1 %v565_v29 }
  0x38   :  { %278 = vmatprep.subr.bf16.mxu0 %v566_v30  ;;  %506 = vmatprep.subr.bf16.mxu1 %v566_v30 }
  0x3b   :  { %279 = vmatpush1.bf16.msra.mxu0 %v568_v31  ;;  %522 = vmatpush1.bf16.msra.mxu1 %v568_v31 }
  0x3c   :  { %280 = vmatprep.subr.bf16.mxu0 %v569_v32  ;;  %507 = vmatprep.subr.bf16.mxu1 %v569_v32 }
  0x3f   :  { %281 = vmatpush1.bf16.msra.mxu0 %v571_v33  ;;  %523 = vmatpush1.bf16.msra.mxu1 %v571_v33 }
  0x42   :  { %283 = vmatmul.mubr.bf16.vlgmr.msra.gmra.mrb[0].mxu0 %v572_v34  ;;  %293 = vmatmul.mubr.bf16.vlgmr.msra.gmra.mrb[0].mxu1 %v575_v35 }
 0x115   :  { %v284_v45 = vpop.f32.mrb[0].mxu0  ;;  %v294_v46 = vpop.f32.mrb[0].mxu1 }
 0x116   :  { %v721_v47 = vadd.f32 %v284_v45, %v65_v43  ;;  %v286_v48 = vpop.f32.mrb[1].mxu0  ;;  %v723_v49 = vadd.f32 %v294_v46, %v65_v43  ;;  %v296_v50 = vpop.f32.mrb[1].mxu1 }
 0x117   :  { %v725_v51 = vadd.f32 %v286_v48, %v69_v44  ;;  %v288_v52 = vpop.f32.mrb[2].mxu0  ;;  %v727_v53 = vadd.f32 %v296_v50, %v69_v44  ;;  %v298_v54 = vpop.f32.mrb[2].mxu1 }
 0x118   :  { %v729_v55 = vadd.f32 %v288_v52, %v65_v43  ;;  %v290_v56 = vpop.f32.mrb[3].mxu0  ;;  %v300_v57 = vpop.f32.mrb[3].mxu1  ;;  %v328_v58 = vmul.f32 %v721_v47, %v721_v47  ;;  %v737_v61 = vadd.f32 %v298_v54, %v65_v43  ;;  %v332_v62 = vmul.f32 %v723_v49, %v723_v49 }
 0x119   :  { %v329_v59 = vmul.f32 %v725_v51, %v725_v51  ;;  %v333_v60 = vmul.f32 %v727_v53, %v727_v53  ;;  %v745_v1 = vadd.f32 %v290_v56, %v69_v44  ;;  %v313_v2 = vsel %vm312_vm0, %v725_v51, 0.0 }
 0x11a   :  { %v303_v63 = vadd.f32 %v729_v55, %v721_v47  ;;  %v330_v0 = vmul.f32 %v729_v55, %v729_v55  ;;  %v316_v3 = vsel %vm312_vm0, %v727_v53, 0.0  ;;  %v751_v4 = vadd.f32 %v300_v57, %v69_v44 }
 0x11b   :  { %v314_v6 = vsel %vm312_vm0, %v745_v1, 0.0  ;;  %v331_v7 = vmul.f32 %v745_v1, %v745_v1  ;;  %v345_v9 = vsel %vm312_vm0, %v329_v59, 0.0  ;;  %v348_v10 = vsel %vm312_vm0, %v333_v60, 0.0 }
 0x11c   :  { %v336_v5 = vadd.f32 %v330_v0, %v328_v58  ;;  %v304_v8 = vadd.f32 %v303_v63, %v723_v49  ;;  %v315_v11 = vadd.f32 %v314_v6, %v313_v2  ;;  %v334_v12 = vmul.f32 %v737_v61, %v737_v61 }
 0x11d   :  { %v346_v13 = vsel %vm312_vm0, %v331_v7, 0.0  ;;  %v335_v16 = vmul.f32 %v751_v4, %v751_v4  ;;  %v318_v21 = vsel %vm312_vm0, %v751_v4, 0.0 }
 0x11e   :  { %v305_v14 = vadd.f32 %v304_v8, %v737_v61  ;;  %v337_v15 = vadd.f32 %v336_v5, %v332_v62  ;;  %v347_v17 = vadd.f32 %v346_v13, %v345_v9  ;;  %v317_v18 = vadd.f32 %v316_v3, %v315_v11 }
 0x11f   :  { %v350_v26 = vsel %vm312_vm0, %v335_v16, 0.0  ;;  %v390_v11 = vsub.s32 5, %v710_v37 }
 0x120   :  { %v306_v19 = vrot.slane %v305_v14, 4  ;;  %v338_v20 = vadd.f32 %v337_v15, %v334_v12  ;;  %v319_v22 = vadd.f32 %v318_v21, %v317_v18  ;;  %v349_v23 = vadd.f32 %v348_v10, %v347_v17 }
 0x121   :  { %v416_v12 = vsub.s32 6, %v710_v37 }
 0x122   :  { %v307_v24 = vadd.f32 %v306_v19, %v305_v14  ;;  %v339_v25 = vrot.slane %v338_v20, 4  ;;  %v320_v27 = vrot.slane %v319_v22, 4  ;;  %v351_v28 = vadd.f32 %v350_v26, %v349_v23 }
 0x124   :  { %v308_v29 = vrot.slane %v307_v24, 2  ;;  %v340_v30 = vadd.f32 %v339_v25, %v338_v20  ;;  %v321_v31 = vadd.f32 %v320_v27, %v319_v22  ;;  %v352_v32 = vrot.slane %v351_v28, 4 }
 0x126   :  { %v309_v33 = vadd.f32 %v308_v29, %v307_v24  ;;  %v341_v34 = vrot.slane %v340_v30, 2  ;;  %v322_v35 = vrot.slane %v321_v31, 2  ;;  %v353_v36 = vadd.f32 %v352_v32, %v351_v28 }
 0x128   :  { %v310_v38 = vrot.slane %v309_v33, 1  ;;  %v342_v40 = vadd.f32 %v341_v34, %v340_v30  ;;  %v323_v41 = vadd.f32 %v322_v35, %v321_v31  ;;  %v354_v42 = vrot.slane %v353_v36, 2 }
 0x12a   :  { %v311_v43 = vadd.f32 %v310_v38, %v309_v33  ;;  %v343_v44 = vrot.slane %v342_v40, 1  ;;  %v324_v45 = vrot.slane %v323_v41, 1  ;;  %v355_v46 = vadd.f32 %v354_v42, %v353_v36 }
 0x12c   :  { %v326_v48 = vmul.f32 0.03125, %v311_v43  ;;  %v344_v50 = vadd.f32 %v343_v44, %v342_v40  ;;  %v325_v52 = vadd.f32 %v324_v45, %v323_v41  ;;  %v356_v54 = vrot.slane %v355_v46, 1 }
 0x12e   :  { %v358_v56 = vmul.f32 0.03125, %v344_v50  ;;  %v360_v57 = vmul.f32 %v326_v48, %v326_v48  ;;  %v364_v58 = vsub.f32 %v721_v47, %v326_v48  ;;  %v366_v59 = vsub.f32 %v729_v55, %v326_v48 }
 0x12f   :  { %v368_v60 = vsub.f32 %v723_v49, %v326_v48  ;;  %v370_v62 = vsub.f32 %v737_v61, %v326_v48  ;;  %v327_v63 = vmul.f32 0.03125, %v325_v52  ;;  %v357_v0 = vadd.f32 %v356_v54, %v355_v46 }
 0x130   :  { %v362_v2 = vsub.f32 %v358_v56, %v360_v57  ;;  %v386_v49 = vsub.s32 1, %v710_v37  ;;  %v412_v61 = vsub.s32 2, %v710_v37 }
 0x131   :  { %v359_v3 = vmul.f32 0.03125, %v357_v0  ;;  %v361_v5 = vmul.f32 %v327_v63, %v327_v63  ;;  %v365_v6 = vsub.f32 %v725_v51, %v327_v63  ;;  %v367_v7 = vsub.f32 %v745_v1, %v327_v63 }
 0x132   :  { %v372_v8 = vadd.f32 1e-05, %v362_v2  ;;  %v369_v9 = vsub.f32 %v727_v53, %v327_v63  ;;  %v371_v47 = vsub.f32 %v751_v4, %v327_v63  ;;  %v387_v51 = vrot.slane %v716_v39, %v386_v49 }
 0x133   :  { %v363_v10 = vsub.f32 %v359_v3, %v361_v5  ;;  %v413_v1 = vrot.slane %v716_v39, %v412_v61  ;;  %v391_v53 = vrot.slane %v716_v39, %v390_v11  ;;  %v417_v4 = vrot.slane %v716_v39, %v416_v12 }
 0x134   :  { %578 = vrsqrt.f32 %v372_v8  ;;  %v397_v13 = vrot.slane %v387_v51, %v386_v49 }
 0x135   :  { %v373_v55 = vadd.f32 1e-05, %v363_v10  ;;  %v423_v15 = vrot.slane %v413_v1, %v412_v61  ;;  %v401_v20 = vrot.slane %v391_v53, %v386_v49  ;;  %v427_v21 = vrot.slane %v417_v4, %v412_v61 }
 0x137   :  { %580 = vrsqrt.f32 %v373_v55 }
 0x13e   :  { %v579_v14 = vpop.eup %578 }
 0x13f   :  { %v376_v16 = vmul.f32 %v579_v14, %v364_v58  ;;  %v378_v17 = vmul.f32 %v579_v14, %v366_v59  ;;  %v380_v18 = vmul.f32 %v579_v14, %v368_v60  ;;  %v382_v19 = vmul.f32 %v579_v14, %v370_v62 }
 0x141   :  { %v581_v22 = vpop.eup %580  ;;  %v402_v23 = vmul.f32 %v397_v13, %v376_v16  ;;  %v404_v37 = vmul.f32 %v397_v13, %v378_v17  ;;  %v406_v24 = vmul.f32 %v397_v13, %v380_v18  ;;  %v408_v25 = vmul.f32 %v397_v13, %v382_v19 }
 0x142   :  { %v377_v26 = vmul.f32 %v581_v22, %v365_v6  ;;  %v379_v27 = vmul.f32 %v581_v22, %v367_v7  ;;  %v381_v28 = vmul.f32 %v581_v22, %v369_v9  ;;  %v383_v29 = vmul.f32 %v581_v22, %v371_v47 }
 0x143   :  { %v428_v30 = vadd.f32 %v423_v15, %v402_v23  ;;  %v430_v39 = vadd.f32 %v423_v15, %v404_v37  ;;  %v432_v31 = vadd.f32 %v423_v15, %v406_v24  ;;  %v434_v32 = vadd.f32 %v423_v15, %v408_v25 }
 0x144   :  { %v403_v33 = vmul.f32 %v401_v20, %v377_v26  ;;  %v405_v34 = vmul.f32 %v401_v20, %v379_v27  ;;  %v407_v35 = vmul.f32 %v401_v20, %v381_v28  ;;  %v409_v36 = vmul.f32 %v401_v20, %v383_v29 }
 0x145   :  { %v436_v38 = vmax.f32 %v428_v30, 0.0  ;;  %v438_v40 = vmax.f32 %v430_v39, 0.0  ;;  %v440_v41 = vmax.f32 %v432_v31, 0.0  ;;  %v442_v42 = vmax.f32 %v434_v32, 0.0 }
 0x146   :  { %v429_v43 = vadd.f32 %v427_v21, %v403_v33  ;;  %v431_v44 = vadd.f32 %v427_v21, %v405_v34  ;;  %v433_v45 = vadd.f32 %v427_v21, %v407_v35  ;;  %v435_v46 = vadd.f32 %v427_v21, %v409_v36 }
 0x147   :  { %444 = vst [vmem:[%s816_s3] sm:$0xff] %v436_v38  ;;  %446 = vst [vmem:[%s816_s3 + $0x10] sm:$0xff] %v438_v40 }
 0x148   :  { %448 = vst [vmem:[%s816_s3 + $0x20] sm:$0xff] %v440_v41  ;;  %450 = vst [vmem:[%s816_s3 + $0x30] sm:$0xff] %v442_v42  ;;  %v437_v48 = vmax.f32 %v429_v43, 0.0  ;;  %v439_v50 = vmax.f32 %v431_v44, 0.0  ;;  %v441_v52 = vmax.f32 %v433_v45, 0.0  ;;  %v443_v54 = vmax.f32 %v435_v46, 0.0 }
 0x14a   :  { %445 = vst.msk [vmem:[%s816_s3 + $0x8] sm:$0xff] %vm312_vm0, %v437_v48  ;;  %447 = vst.msk [vmem:[%s816_s3 + $0x18] sm:$0xff] %vm312_vm0, %v439_v50 }
 0x14b   :  { %449 = vst.msk [vmem:[%s816_s3 + $0x28] sm:$0xff] %vm312_vm0, %v441_v52  ;;  %451 = vst.msk [vmem:[%s816_s3 + $0x38] sm:$0xff] %vm312_vm0, %v443_v54 }

// kernel: inception_net.24
= control target key start
LH: loop header
LB: loop body
LE: loop exit
PB: predicated region body
PF: predicated region fallthrough
CT: control target
= control target key end

     0   :  { %vm202_vm0 = vcmask 261120   ;;  %v60_v24 = vlaneseq  ;;  %vm307_vm1 = vcmask 785408   ;;  %s603_s1 = inlined_call_operand.vmem [shape: bf16[288,96], index: 1, kind: input, shape index: {}]   ;;  %s604_s0 = inlined_call_operand.vmem [shape: bf16[32,288], index: 0, kind: input, shape index: {}]   ;;  %s605_s2 = inlined_call_operand.vmem [shape: f32[3,96], index: 2, kind: input, shape index: {}]   ;;  %s606_s3 = inlined_call_operand.vmem [shape: f32[32,96], index: 3, kind: output, shape index: {}]  }
   0x1   :  { %v446_v0 = vld [vmem:[%s603_s1 + $0x40] sm:$0xff]   ;;  %v448_v2 = vld [vmem:[%s603_s1 + $0x48] sm:$0xff]   ;;  %v450_v4 = vld [vmem:[%s603_s1 + $0x50] sm:$0xff]  }
   0x2   :  { %v447_v1 = vld [vmem:[%s603_s1] sm:$0xff]   ;;  %406 = vmatprep.subr.bf16.mxu0 %v446_v0  ;;  %v449_v3 = vld [vmem:[%s603_s1 + $0x8] sm:$0xff]   ;;  %v451_v5 = vld [vmem:[%s603_s1 + $0x10] sm:$0xff]   ;;  %v566_v26 = vshrl.u32 %v60_v24, 7 }
   0x3   :  { %407 = vmatpush3.bf16.msra.mxu0 %v447_v1  ;;  %v452_v6 = vld [vmem:[%s603_s1 + $0x58] sm:$0xff]   ;;  %v454_v8 = vld [vmem:[%s603_s1 + $0x60] sm:$0xff]   ;;  %v456_v11 = vld [vmem:[%s603_s1 + $0x68] sm:$0xff]  }
   0x4   :  { %408 = vmatprep.subr.bf16.mxu0 %v448_v2  ;;  %v453_v7 = vld [vmem:[%s603_s1 + $0x18] sm:$0xff]   ;;  %v455_v9 = vld [vmem:[%s603_s1 + $0x20] sm:$0xff]   ;;  %v457_v12 = vld [vmem:[%s603_s1 + $0x28] sm:$0xff]   ;;  %v62_v30 = vsub.s32 0, %v566_v26 }
   0x5   :  { %v461_v10 = vld [vmem:[%s603_s1 + $0x80] sm:$0xff]   ;;  %v458_v13 = vld [vmem:[%s603_s1 + $0x70] sm:$0xff]   ;;  %v466_v15 = vld [vmem:[%s603_s1 + $0x88] sm:$0xff]  }
   0x6   :  { %438 = vmatprep.subr.bf16.mxu1 %v461_v10  ;;  %v465_v14 = vld [vmem:[%s604_s0 + $0x4] ss:$12 sps:$4 sm:$0xff]   ;;  %v467_v16 = vld [vmem:[%s604_s0 + $0x8] ss:$12 sps:$4 sm:$0xff]   ;;  %v468_v17 = vld [vmem:[%s604_s0 + $0x20] ss:$12 sps:$4 sm:$0xff]  }
   0x7   :  { %409 = vmatpush3.bf16.msra.mxu0 %v449_v3  ;;  %439 = vmatpush3.bf16.msra.mxu1 %v461_v10  ;;  %v459_v18 = vld [vmem:[%s603_s1 + $0x30] sm:$0xff]   ;;  %v460_v19 = vld [vmem:[%s603_s1 + $0x78] sm:$0xff]   ;;  %v463_v21 = vld [vmem:[%s604_s0] ss:$12 sps:$4 sm:$0xff]  }
   0x8   :  { %410 = vmatprep.subr.bf16.mxu0 %v450_v4  ;;  %241 = vmatprep.mubr.bf16.mxu0 %v465_v14  ;;  %v462_v20 = vld [vmem:[%s603_s1 + $0x38] sm:$0xff]   ;;  %v572_v31 = vld [vmem:[%s605_s2] sm:$0x7] }
   0x9   :  { %440 = vmatprep.subr.bf16.mxu1 %v466_v15  ;;  %442 = vmatprep.mubr.msk.bf16.mxu1 %vm202_vm0, %v467_v16  ;;  %v469_v22 = vld [vmem:[%s604_s0 + $0x1c] ss:$12 sps:$4 sm:$0xff]   ;;  %v471_v23 = vld [vmem:[%s604_s0 + $0x18] ss:$12 sps:$4 sm:$0xff]   ;;  %v63_v33 = vrot.slane %v572_v31, %v62_v30  ;;  %v362_v30 = vsub.s32 2, %v566_v26 }
   0xb   :  { %411 = vmatpush3.bf16.msra.mxu0 %v451_v5  ;;  %441 = vmatpush3.bf16.msra.mxu1 %v466_v15 }
   0xc   :  { %412 = vmatprep.subr.bf16.mxu0 %v452_v6 }
   0xe   :  { %443 = vmatmul.mubr.msk.bf16.vlgmr.msra.gmra.mrb[0].mxu1 %vm202_vm0, %v468_v17 }
   0xf   :  { %413 = vmatpush3.bf16.msra.mxu0 %v453_v7 }
  0x10   :  { %414 = vmatprep.subr.bf16.mxu0 %v454_v8 }
  0x13   :  { %415 = vmatpush3.bf16.msra.mxu0 %v455_v9 }
  0x14   :  { %416 = vmatprep.subr.bf16.mxu0 %v456_v11 }
  0x17   :  { %417 = vmatpush3.bf16.msra.mxu0 %v457_v12 }
  0x18   :  { %418 = vmatprep.subr.bf16.mxu0 %v458_v13 }
  0x1b   :  { %419 = vmatpush3.bf16.msra.mxu0 %v459_v18 }
  0x1c   :  { %420 = vmatprep.subr.bf16.mxu0 %v460_v19 }
  0x1f   :  { %421 = vmatpush3.bf16.msra.mxu0 %v462_v20 }
  0x22   :  { %242 = vmatmul.mubr.bf16.vlgmr.msra.gmra.mrb[0].mxu0 %v463_v21 }
  0x23   :  { %249 = vmatprep.mubr.bf16.mxu0 %v469_v22 }
  0x2a   :  { %250 = vmatmul.mubr.bf16.gmra.mrb[4].mxu0 %v471_v23 }
  0xe1   :  { %v444_v25 = vpop.f32.mrb[0].mxu1 }
  0xe2   :  { %v292_v27 = vpop.f32.mrb[1].mxu1 }
  0xe3   :  { %v445_v28 = vpop.f32.mrb[2].mxu1 }
  0xe4   :  { %v295_v29 = vpop.f32.mrb[3].mxu1 }
  0xf5   :  { %v422_v32 = vpop.f32.mrb[0].mxu0 }
  0xf6   :  { %v423_v34 = vpop.f32.mrb[1].mxu0 }
  0xf7   :  { %v424_v35 = vadd.f32 %v423_v34, %v422_v32  ;;  %v425_v36 = vpop.f32.mrb[2].mxu0  ;;  %v363_v34 = vrot.slane %v572_v31, %v362_v30 }
  0xf8   :  { %v426_v37 = vpop.f32.mrb[3].mxu0 }
  0xf9   :  { %v427_v38 = vadd.f32 %v426_v37, %v425_v36  ;;  %v244_v39 = vadd.f32 %v424_v35, %v63_v33 }
  0xfb   :  { %v293_v40 = vadd.f32 %v292_v27, %v244_v39  ;;  %v247_v41 = vadd.f32 %v427_v38, %v63_v33 }
  0xfd   :  { %v322_v42 = vmul.f32 %v293_v40, %v293_v40  ;;  %v296_v43 = vadd.f32 %v295_v29, %v247_v41  ;;  %v428_v44 = vpop.f32.mrb[4].mxu0  ;;  %v308_v46 = vsel %vm307_vm1, %v293_v40, 0.0  ;;  %v354_v29 = vsub.s32 1, %v566_v26 }
  0xfe   :  { %v429_v45 = vpop.f32.mrb[5].mxu0 }
  0xff   :  { %v309_v47 = vsel %vm307_vm1, %v296_v43, 0.0  ;;  %v323_v48 = vmul.f32 %v296_v43, %v296_v43  ;;  %v430_v49 = vadd.f32 %v429_v45, %v428_v44  ;;  %v431_v50 = vpop.f32.mrb[6].mxu0  ;;  %v326_v53 = vsel %vm307_vm1, %v322_v42, 0.0 }
 0x100   :  { %v310_v51 = vadd.f32 %v309_v47, %v308_v46  ;;  %v432_v52 = vpop.f32.mrb[7].mxu0  ;;  %v355_v32 = vrot.slane %v572_v31, %v354_v29 }
 0x101   :  { %v327_v54 = vsel %vm307_vm1, %v323_v48, 0.0  ;;  %v252_v55 = vadd.f32 %v430_v49, %v63_v33  ;;  %v433_v56 = vadd.f32 %v432_v52, %v431_v50 }
 0x102   :  { %v328_v57 = vadd.f32 %v327_v54, %v326_v53 }
 0x103   :  { %v301_v58 = vadd.f32 %v444_v25, %v252_v55  ;;  %v255_v59 = vadd.f32 %v433_v56, %v63_v33 }
 0x105   :  { %v311_v60 = vsel %vm307_vm1, %v301_v58, 0.0  ;;  %v324_v61 = vmul.f32 %v301_v58, %v301_v58  ;;  %v304_v62 = vadd.f32 %v445_v28, %v255_v59 }
 0x106   :  { %v312_v63 = vadd.f32 %v311_v60, %v310_v51 }
 0x107   :  { %v329_v0 = vsel %vm307_vm1, %v324_v61, 0.0  ;;  %v313_v1 = vsel %vm307_vm1, %v304_v62, 0.0  ;;  %v325_v2 = vmul.f32 %v304_v62, %v304_v62 }
 0x108   :  { %v330_v3 = vadd.f32 %v329_v0, %v328_v57  ;;  %v314_v4 = vadd.f32 %v313_v1, %v312_v63 }
 0x109   :  { %v331_v5 = vsel %vm307_vm1, %v325_v2, 0.0 }
 0x10a   :  { %v315_v6 = vrot.slane %v314_v4, 4  ;;  %v332_v7 = vadd.f32 %v331_v5, %v330_v3 }
 0x10c   :  { %v316_v8 = vadd.f32 %v315_v6, %v314_v4  ;;  %v333_v9 = vrot.slane %v332_v7, 4 }
 0x10e   :  { %v317_v10 = vrot.slane %v316_v8, 2  ;;  %v334_v11 = vadd.f32 %v333_v9, %v332_v7 }
 0x110   :  { %v318_v12 = vadd.f32 %v317_v10, %v316_v8  ;;  %v335_v13 = vrot.slane %v334_v11, 2 }
 0x112   :  { %v319_v14 = vrot.slane %v318_v12, 1  ;;  %v336_v15 = vadd.f32 %v335_v13, %v334_v11 }
 0x114   :  { %v320_v16 = vadd.f32 %v319_v14, %v318_v12  ;;  %v337_v17 = vrot.slane %v336_v15, 1 }
 0x116   :  { %v321_v18 = vmul.f32 0.03125, %v320_v16  ;;  %v338_v19 = vadd.f32 %v337_v17, %v336_v15 }
 0x118   :  { %v339_v20 = vmul.f32 0.03125, %v338_v19  ;;  %v340_v21 = vmul.f32 %v321_v18, %v321_v18  ;;  %v342_v22 = vsub.f32 %v293_v40, %v321_v18  ;;  %v343_v23 = vsub.f32 %v296_v43, %v321_v18 }
 0x119   :  { %v344_v24 = vsub.f32 %v301_v58, %v321_v18  ;;  %v345_v25 = vsub.f32 %v304_v62, %v321_v18 }
 0x11a   :  { %v341_v27 = vsub.f32 %v339_v20, %v340_v21 }
 0x11c   :  { %v346_v28 = vadd.f32 1e-05, %v341_v27 }
 0x11e   :  { %472 = vrsqrt.f32 %v346_v28 }
 0x128   :  { %v473_v33 = vpop.eup %472 }
 0x129   :  { %v348_v35 = vmul.f32 %v473_v33, %v342_v22  ;;  %v349_v36 = vmul.f32 %v473_v33, %v343_v23  ;;  %v350_v37 = vmul.f32 %v473_v33, %v344_v24  ;;  %v351_v38 = vmul.f32 %v473_v33, %v345_v25 }
 0x12b   :  { %v356_v39 = vmul.f32 %v355_v32, %v348_v35  ;;  %v357_v40 = vmul.f32 %v355_v32, %v349_v36  ;;  %v358_v41 = vmul.f32 %v355_v32, %v350_v37  ;;  %v359_v42 = vmul.f32 %v355_v32, %v351_v38 }
 0x12d   :  { %v364_v43 = vadd.f32 %v363_v34, %v356_v39  ;;  %v365_v44 = vadd.f32 %v363_v34, %v357_v40  ;;  %v366_v45 = vadd.f32 %v363_v34, %v358_v41  ;;  %v367_v46 = vadd.f32 %v363_v34, %v359_v42 }
 0x12f   :  { %v368_v47 = vmax.f32 %v364_v43, 0.0  ;;  %v369_v48 = vmax.f32 %v365_v44, 0.0  ;;  %v370_v26 = vmax.f32 %v366_v45, 0.0  ;;  %v371_v49 = vmax.f32 %v367_v46, 0.0 }
 0x131   :  { %372 = vst.msk [vmem:[%s606_s3] sm:$0xff] %vm307_vm1, %v368_v47  ;;  %373 = vst.msk [vmem:[%s606_s3 + $0x8] sm:$0xff] %vm307_vm1, %v369_v48 }
 0x132   :  { %374 = vst.msk [vmem:[%s606_s3 + $0x10] sm:$0xff] %vm307_vm1, %v370_v26  ;;  %375 = vst.msk [vmem:[%s606_s3 + $0x18] sm:$0xff] %vm307_vm1, %v371_v49 }

// kernel: inception_net.25
= control target key start
LH: loop header
LB: loop body
LE: loop exit
PB: predicated region body
PF: predicated region fallthrough
CT: control target
= control target key end

     0   :  { %vm506_vm0 = vcmask 261120   ;;  %vm709_vm1 = vcmask 785408   ;;  %s1265_s1 = inlined_call_operand.vmem [shape: bf16[800,96], index: 1, kind: input, shape index: {}]   ;;  %s1266_s0 = inlined_call_operand.vmem [shape: bf16[32,800], index: 0, kind: input, shape index: {}]   ;;  %s1267_s2 = inlined_call_operand.vmem [shape: f32[3,96], index: 2, kind: input, shape index: {}]   ;;  %s1268_s3 = inlined_call_operand.vmem [shape: f32[32,96], index: 3, kind: output, shape index: {}]  }
   0x1   :  { %v944_v0 = vld [vmem:[%s1265_s1 + $0x40] sm:$0xff]   ;;  %v948_v4 = vld [vmem:[%s1265_s1 + $0x48] sm:$0xff]   ;;  %v952_v8 = vld [vmem:[%s1265_s1 + $0x50] sm:$0xff]  }
   0x2   :  { %v945_v1 = vld [vmem:[%s1265_s1] sm:$0xff]   ;;  %848 = vmatprep.subr.bf16.mxu0 %v944_v0  ;;  %v949_v5 = vld [vmem:[%s1265_s1 + $0x8] sm:$0xff]   ;;  %v953_v9 = vld [vmem:[%s1265_s1 + $0x10] sm:$0xff]   ;;  %v132_v0 = vlaneseq }
   0x3   :  { %v946_v2 = vld [vmem:[%s1265_s1 + $0xc0] sm:$0xff]   ;;  %849 = vmatpush3.bf16.msra.mxu0 %v945_v1  ;;  %v950_v6 = vld [vmem:[%s1265_s1 + $0xc8] sm:$0xff]   ;;  %v954_v10 = vld [vmem:[%s1265_s1 + $0xd0] sm:$0xff]  }
   0x4   :  { %v947_v3 = vld [vmem:[%s1265_s1 + $0x80] sm:$0xff]   ;;  %876 = vmatprep.subr.bf16.mxu1 %v946_v2  ;;  %850 = vmatprep.subr.bf16.mxu0 %v948_v4  ;;  %v951_v7 = vld [vmem:[%s1265_s1 + $0x88] sm:$0xff]   ;;  %v955_v11 = vld [vmem:[%s1265_s1 + $0x90] sm:$0xff]   ;;  %v1228_v1 = vshrl.u32 %v132_v0, 7 }
   0x5   :  { %877 = vmatpush3.bf16.msra.mxu1 %v947_v3  ;;  %v956_v12 = vld [vmem:[%s1265_s1 + $0x58] sm:$0xff]   ;;  %v960_v16 = vld [vmem:[%s1265_s1 + $0x60] sm:$0xff]   ;;  %v964_v20 = vld [vmem:[%s1265_s1 + $0x68] sm:$0xff]  }
   0x6   :  { %878 = vmatprep.subr.bf16.mxu1 %v950_v6  ;;  %v957_v13 = vld [vmem:[%s1265_s1 + $0x18] sm:$0xff]   ;;  %v961_v17 = vld [vmem:[%s1265_s1 + $0x20] sm:$0xff]   ;;  %v965_v21 = vld [vmem:[%s1265_s1 + $0x28] sm:$0xff]   ;;  %v134_v2 = vsub.s32 0, %v1228_v1 }
   0x7   :  { %851 = vmatpush3.bf16.msra.mxu0 %v949_v5  ;;  %v958_v14 = vld [vmem:[%s1265_s1 + $0xd8] sm:$0xff]   ;;  %v962_v18 = vld [vmem:[%s1265_s1 + $0xe0] sm:$0xff]   ;;  %v966_v22 = vld [vmem:[%s1265_s1 + $0xe8] sm:$0xff]  }
   0x8   :  { %852 = vmatprep.subr.bf16.mxu0 %v952_v8  ;;  %v959_v15 = vld [vmem:[%s1265_s1 + $0x98] sm:$0xff]   ;;  %v963_v19 = vld [vmem:[%s1265_s1 + $0xa0] sm:$0xff]   ;;  %v967_v23 = vld [vmem:[%s1265_s1 + $0xa8] sm:$0xff]  }
   0x9   :  { %879 = vmatpush3.bf16.msra.mxu1 %v951_v7  ;;  %v968_v24 = vld [vmem:[%s1265_s1 + $0x70] sm:$0xff]   ;;  %v972_v28 = vld [vmem:[%s1265_s1 + $0x78] sm:$0xff]   ;;  %v977_v32 = vld [vmem:[%s1266_s0 + $0x4] ss:$28 sps:$4 sm:$0xff]  }
   0xa   :  { %880 = vmatprep.subr.bf16.mxu1 %v954_v10  ;;  %v969_v25 = vld [vmem:[%s1265_s1 + $0x30] sm:$0xff]   ;;  %v973_v29 = vld [vmem:[%s1265_s1 + $0x38] sm:$0xff]   ;;  %545 = vmatprep.mubr.bf16.mxu0 %v977_v32  ;;  %v979_v34 = vld [vmem:[%s1265_s1 + $0x140] sm:$0xff]  }
   0xb   :  { %853 = vmatpush3.bf16.msra.mxu0 %v953_v9  ;;  %v970_v26 = vld [vmem:[%s1265_s1 + $0xf0] sm:$0xff]   ;;  %v974_v30 = vld [vmem:[%s1265_s1 + $0xf8] sm:$0xff]   ;;  %v980_v35 = vld [vmem:[%s1266_s0 + $0x8] ss:$28 sps:$4 sm:$0xff]  }
   0xc   :  { %854 = vmatprep.subr.bf16.mxu0 %v956_v12  ;;  %v971_v27 = vld [vmem:[%s1265_s1 + $0xb0] sm:$0xff]   ;;  %v975_v31 = vld [vmem:[%s1266_s0] ss:$28 sps:$4 sm:$0xff]   ;;  %v982_v36 = vld [vmem:[%s1266_s0 + $0xc] ss:$28 sps:$4 sm:$0xff]  }
   0xd   :  { %881 = vmatpush3.bf16.msra.mxu1 %v955_v11  ;;  %v978_v33 = vld [vmem:[%s1265_s1 + $0xb8] sm:$0xff]   ;;  %v983_v37 = vld [vmem:[%s1265_s1 + $0x100] sm:$0xff]   ;;  %594 = vmatprep.mubr.bf16.mxu1 %v982_v36  ;;  %v984_v38 = vld [vmem:[%s1265_s1 + $0x148] sm:$0xff]  }
   0xe   :  { %882 = vmatprep.subr.bf16.mxu1 %v958_v14  ;;  %v985_v39 = vld [vmem:[%s1265_s1 + $0x108] sm:$0xff]   ;;  %v986_v40 = vld [vmem:[%s1265_s1 + $0x150] sm:$0xff]   ;;  %v988_v42 = vld [vmem:[%s1265_s1 + $0x158] sm:$0xff]  }
   0xf   :  { %855 = vmatpush3.bf16.msra.mxu0 %v957_v13  ;;  %v987_v41 = vld [vmem:[%s1265_s1 + $0x110] sm:$0xff]   ;;  %v992_v43 = vld [vmem:[%s1266_s0 + $0x3c] ss:$28 sps:$4 sm:$0xff]   ;;  %v990_v46 = vld [vmem:[%s1265_s1 + $0x160] sm:$0xff]  }
  0x10   :  { %856 = vmatprep.subr.bf16.mxu0 %v960_v16  ;;  %v989_v44 = vld [vmem:[%s1265_s1 + $0x118] sm:$0xff]   ;;  %v991_v47 = vld [vmem:[%s1265_s1 + $0x120] sm:$0xff]   ;;  %v994_v51 = vld [vmem:[%s1265_s1 + $0x168] sm:$0xff]  }
  0x11   :  { %883 = vmatpush3.bf16.msra.mxu1 %v959_v15  ;;  %v995_v45 = vld [vmem:[%s1266_s0 + $0x38] ss:$28 sps:$4 sm:$0xff]   ;;  %v997_v48 = vld [vmem:[%s1266_s0 + $0x44] ss:$28 sps:$4 sm:$0xff]   ;;  %v996_v52 = vld [vmem:[%s1265_s1 + $0x128] sm:$0xff]  }
  0x12   :  { %884 = vmatprep.subr.bf16.mxu1 %v962_v18  ;;  %v999_v49 = vld [vmem:[%s1266_s0 + $0x40] ss:$28 sps:$4 sm:$0xff]   ;;  %v1001_v53 = vld [vmem:[%s1265_s1 + $0x170] sm:$0xff]   ;;  %v1008_v56 = vld [vmem:[%s1265_s1 + $0x188] sm:$0xff]  }
  0x13   :  { %857 = vmatpush3.bf16.msra.mxu0 %v961_v17  ;;  %v1000_v50 = vld [vmem:[%s1265_s1 + $0x180] sm:$0xff]   ;;  %v1007_v54 = vld [vmem:[%s1266_s0 + $0x14] ss:$28 sps:$4 sm:$0xff]   ;;  %v1003_v59 = vld [vmem:[%s1265_s1 + $0x178] sm:$0xff]  }
  0x14   :  { %858 = vmatprep.subr.bf16.mxu0 %v964_v20  ;;  %v1002_v55 = vld [vmem:[%s1265_s1 + $0x130] sm:$0xff]   ;;  %v1004_v60 = vld [vmem:[%s1265_s1 + $0x138] sm:$0xff]   ;;  %v1011_v62 = vld [vmem:[%s1266_s0 + $0x4c] ss:$28 sps:$4 sm:$0xff]  }
  0x15   :  { %885 = vmatpush3.bf16.msra.mxu1 %v963_v19  ;;  %v1009_v57 = vld [vmem:[%s1266_s0 + $0x18] ss:$28 sps:$4 sm:$0xff]   ;;  %v1010_v58 = vld [vmem:[%s1266_s0 + $0x50] ss:$28 sps:$4 sm:$0xff]   ;;  %v1013_v63 = vld [vmem:[%s1266_s0 + $0x48] ss:$28 sps:$4 sm:$0xff]  }
  0x16   :  { %886 = vmatprep.subr.bf16.mxu1 %v966_v22  ;;  %v1005_v61 = vld [vmem:[%s1266_s0 + $0x10] ss:$28 sps:$4 sm:$0xff]   ;;  %v1234_v3 = vld [vmem:[%s1267_s2] sm:$0x7] }
  0x17   :  { %859 = vmatpush3.bf16.msra.mxu0 %v965_v21  ;;  %v135_v5 = vrot.slane %v1234_v3, %v134_v2 }
  0x18   :  { %860 = vmatprep.subr.bf16.mxu0 %v968_v24 }
  0x19   :  { %887 = vmatpush3.bf16.msra.mxu1 %v967_v23 }
  0x1a   :  { %888 = vmatprep.subr.bf16.mxu1 %v970_v26 }
  0x1b   :  { %861 = vmatpush3.bf16.msra.mxu0 %v969_v25 }
  0x1c   :  { %862 = vmatprep.subr.bf16.mxu0 %v972_v28 }
  0x1d   :  { %889 = vmatpush3.bf16.msra.mxu1 %v971_v27 }
  0x1e   :  { %890 = vmatprep.subr.bf16.mxu1 %v974_v30 }
  0x1f   :  { %863 = vmatpush3.bf16.msra.mxu0 %v973_v29 }
  0x20   :  { %904 = vmatprep.subr.bf16.mxu0 %v979_v34 }
  0x21   :  { %891 = vmatpush3.bf16.msra.mxu1 %v978_v33 }
  0x22   :  { %546 = vmatmul.mubr.bf16.vlgmr.msra.gmra.mrb[0].mxu0 %v975_v31  ;;  %936 = vmatprep.subr.bf16.mxu1 %v1000_v50 }
  0x23   :  { %905 = vmatpush3.bf16.msra.mxu0 %v983_v37  ;;  %553 = vmatprep.mubr.bf16.mxu0 %v992_v43 }
  0x24   :  { %595 = vmatmul.mubr.bf16.vlgmr.msra.gmra.mrb[0].mxu1 %v980_v35  ;;  %906 = vmatprep.subr.bf16.mxu0 %v984_v38 }
  0x25   :  { %602 = vmatprep.mubr.bf16.mxu1 %v997_v48  ;;  %937 = vmatpush3.bf16.msra.mxu1 %v1000_v50 }
  0x26   :  { %938 = vmatprep.subr.bf16.mxu1 %v1008_v56 }
  0x27   :  { %907 = vmatpush3.bf16.msra.mxu0 %v985_v39 }
  0x28   :  { %908 = vmatprep.subr.bf16.mxu0 %v986_v40 }
  0x29   :  { %939 = vmatpush3.bf16.msra.mxu1 %v1008_v56 }
  0x2a   :  { %554 = vmatmul.mubr.bf16.gmra.mrb[4].mxu0 %v995_v45 }
  0x2b   :  { %909 = vmatpush3.bf16.msra.mxu0 %v987_v41  ;;  %643 = vmatprep.mubr.bf16.mxu0 %v1007_v54 }
  0x2c   :  { %910 = vmatprep.subr.bf16.mxu0 %v988_v42  ;;  %603 = vmatmul.mubr.bf16.gmra.mrb[4].mxu1 %v999_v49 }
  0x2d   :  { %940 = vmatprep.mubr.msk.bf16.mxu1 %vm506_vm0, %v1009_v57 }
  0x2f   :  { %911 = vmatpush3.bf16.msra.mxu0 %v989_v44 }
  0x30   :  { %912 = vmatprep.subr.bf16.mxu0 %v990_v46 }
  0x33   :  { %913 = vmatpush3.bf16.msra.mxu0 %v991_v47 }
  0x34   :  { %914 = vmatprep.subr.bf16.mxu0 %v994_v51  ;;  %941 = vmatmul.mubr.msk.bf16.vlgmr.msra.gmra.mrb[8].mxu1 %vm506_vm0, %v1010_v58 }
  0x37   :  { %915 = vmatpush3.bf16.msra.mxu0 %v996_v52 }
  0x38   :  { %916 = vmatprep.subr.bf16.mxu0 %v1001_v53 }
  0x3b   :  { %917 = vmatpush3.bf16.msra.mxu0 %v1002_v55 }
  0x3c   :  { %918 = vmatprep.subr.bf16.mxu0 %v1003_v59 }
  0x3f   :  { %919 = vmatpush3.bf16.msra.mxu0 %v1004_v60 }
  0x42   :  { %644 = vmatmul.mubr.bf16.vlgmr.msra.gmra.mrb[8].mxu0 %v1005_v61 }
  0x43   :  { %651 = vmatprep.mubr.bf16.mxu0 %v1011_v62 }
  0x4a   :  { %652 = vmatmul.mubr.bf16.gmra.mrb[12].mxu0 %v1013_v63 }
  0xf5   :  { %v864_v4 = vpop.f32.mrb[0].mxu0 }
  0xf6   :  { %v865_v6 = vpop.f32.mrb[1].mxu0 }
  0xf7   :  { %v866_v7 = vadd.f32 %v865_v6, %v864_v4  ;;  %v867_v8 = vpop.f32.mrb[2].mxu0  ;;  %v892_v9 = vpop.f32.mrb[0].mxu1 }
  0xf8   :  { %v868_v10 = vpop.f32.mrb[3].mxu0  ;;  %v893_v13 = vpop.f32.mrb[1].mxu1 }
  0xf9   :  { %v548_v11 = vadd.f32 %v866_v7, %v135_v5  ;;  %v869_v12 = vadd.f32 %v868_v10, %v867_v8  ;;  %v894_v14 = vadd.f32 %v893_v13, %v892_v9  ;;  %v895_v15 = vpop.f32.mrb[2].mxu1 }
  0xfa   :  { %v896_v17 = vpop.f32.mrb[3].mxu1 }
  0xfb   :  { %v551_v16 = vadd.f32 %v869_v12, %v135_v5  ;;  %v597_v18 = vadd.f32 %v894_v14, %v548_v11  ;;  %v897_v19 = vadd.f32 %v896_v17, %v895_v15 }
  0xfd   :  { %v600_v20 = vadd.f32 %v897_v19, %v551_v16  ;;  %v870_v21 = vpop.f32.mrb[4].mxu0 }
  0xfe   :  { %v871_v22 = vpop.f32.mrb[5].mxu0 }
  0xff   :  { %v872_v23 = vadd.f32 %v871_v22, %v870_v21  ;;  %v873_v24 = vpop.f32.mrb[6].mxu0  ;;  %v898_v25 = vpop.f32.mrb[4].mxu1 }
 0x100   :  { %v874_v26 = vpop.f32.mrb[7].mxu0  ;;  %v899_v29 = vpop.f32.mrb[5].mxu1 }
 0x101   :  { %v556_v27 = vadd.f32 %v872_v23, %v135_v5  ;;  %v875_v28 = vadd.f32 %v874_v26, %v873_v24  ;;  %v900_v30 = vadd.f32 %v899_v29, %v898_v25  ;;  %v901_v31 = vpop.f32.mrb[6].mxu1 }
 0x102   :  { %v902_v33 = vpop.f32.mrb[7].mxu1 }
 0x103   :  { %v559_v32 = vadd.f32 %v875_v28, %v135_v5  ;;  %v605_v34 = vadd.f32 %v900_v30, %v556_v27  ;;  %v903_v35 = vadd.f32 %v902_v33, %v901_v31 }
 0x105   :  { %v608_v36 = vadd.f32 %v903_v35, %v559_v32 }
 0x107   :  { %v942_v37 = vpop.f32.mrb[8].mxu1 }
 0x108   :  { %v694_v38 = vpop.f32.mrb[9].mxu1 }
 0x109   :  { %v943_v39 = vpop.f32.mrb[10].mxu1 }
 0x10a   :  { %v697_v40 = vpop.f32.mrb[11].mxu1 }
 0x115   :  { %v920_v41 = vpop.f32.mrb[8].mxu0 }
 0x116   :  { %v921_v42 = vpop.f32.mrb[9].mxu0 }
 0x117   :  { %v922_v43 = vadd.f32 %v921_v42, %v920_v41  ;;  %v923_v44 = vpop.f32.mrb[10].mxu0 }
 0x118   :  { %v924_v45 = vpop.f32.mrb[11].mxu0 }
 0x119   :  { %v925_v46 = vadd.f32 %v924_v45, %v923_v44  ;;  %v646_v47 = vadd.f32 %v922_v43, %v597_v18 }
 0x11b   :  { %v695_v48 = vadd.f32 %v694_v38, %v646_v47  ;;  %v649_v49 = vadd.f32 %v925_v46, %v600_v20  ;;  %v756_v38 = vsub.s32 1, %v1228_v1 }
 0x11d   :  { %v724_v50 = vmul.f32 %v695_v48, %v695_v48  ;;  %v698_v51 = vadd.f32 %v697_v40, %v649_v49  ;;  %v926_v52 = vpop.f32.mrb[12].mxu0  ;;  %v710_v54 = vsel %vm709_vm1, %v695_v48, 0.0  ;;  %v757_v40 = vrot.slane %v1234_v3, %v756_v38 }
 0x11e   :  { %v927_v53 = vpop.f32.mrb[13].mxu0 }
 0x11f   :  { %v711_v55 = vsel %vm709_vm1, %v698_v51, 0.0  ;;  %v725_v56 = vmul.f32 %v698_v51, %v698_v51  ;;  %v928_v57 = vadd.f32 %v927_v53, %v926_v52  ;;  %v929_v58 = vpop.f32.mrb[14].mxu0  ;;  %v728_v61 = vsel %vm709_vm1, %v724_v50, 0.0 }
 0x120   :  { %v712_v59 = vadd.f32 %v711_v55, %v710_v54  ;;  %v930_v60 = vpop.f32.mrb[15].mxu0 }
 0x121   :  { %v729_v62 = vsel %vm709_vm1, %v725_v56, 0.0  ;;  %v654_v63 = vadd.f32 %v928_v57, %v605_v34  ;;  %v931_v0 = vadd.f32 %v930_v60, %v929_v58 }
 0x122   :  { %v730_v2 = vadd.f32 %v729_v62, %v728_v61 }
 0x123   :  { %v703_v4 = vadd.f32 %v942_v37, %v654_v63  ;;  %v657_v5 = vadd.f32 %v931_v0, %v608_v36 }
 0x125   :  { %v713_v6 = vsel %vm709_vm1, %v703_v4, 0.0  ;;  %v726_v7 = vmul.f32 %v703_v4, %v703_v4  ;;  %v706_v8 = vadd.f32 %v943_v39, %v657_v5  ;;  %v764_v39 = vsub.s32 2, %v1228_v1 }
 0x126   :  { %v714_v9 = vadd.f32 %v713_v6, %v712_v59 }
 0x127   :  { %v731_v10 = vsel %vm709_vm1, %v726_v7, 0.0  ;;  %v715_v11 = vsel %vm709_vm1, %v706_v8, 0.0  ;;  %v727_v12 = vmul.f32 %v706_v8, %v706_v8  ;;  %v765_v42 = vrot.slane %v1234_v3, %v764_v39 }
 0x128   :  { %v732_v13 = vadd.f32 %v731_v10, %v730_v2  ;;  %v716_v14 = vadd.f32 %v715_v11, %v714_v9 }
 0x129   :  { %v733_v15 = vsel %vm709_vm1, %v727_v12, 0.0 }
 0x12a   :  { %v717_v16 = vrot.slane %v716_v14, 4  ;;  %v734_v17 = vadd.f32 %v733_v15, %v732_v13 }
 0x12c   :  { %v718_v18 = vadd.f32 %v717_v16, %v716_v14  ;;  %v735_v19 = vrot.slane %v734_v17, 4 }
 0x12e   :  { %v719_v20 = vrot.slane %v718_v18, 2  ;;  %v736_v21 = vadd.f32 %v735_v19, %v734_v17 }
 0x130   :  { %v720_v22 = vadd.f32 %v719_v20, %v718_v18  ;;  %v737_v23 = vrot.slane %v736_v21, 2 }
 0x132   :  { %v721_v24 = vrot.slane %v720_v22, 1  ;;  %v738_v25 = vadd.f32 %v737_v23, %v736_v21 }
 0x134   :  { %v722_v26 = vadd.f32 %v721_v24, %v720_v22  ;;  %v739_v27 = vrot.slane %v738_v25, 1 }
 0x136   :  { %v723_v28 = vmul.f32 0.03125, %v722_v26  ;;  %v740_v29 = vadd.f32 %v739_v27, %v738_v25 }
 0x138   :  { %v741_v30 = vmul.f32 0.03125, %v740_v29  ;;  %v742_v31 = vmul.f32 %v723_v28, %v723_v28  ;;  %v744_v32 = vsub.f32 %v695_v48, %v723_v28  ;;  %v745_v33 = vsub.f32 %v698_v51, %v723_v28 }
 0x139   :  { %v746_v34 = vsub.f32 %v703_v4, %v723_v28  ;;  %v747_v35 = vsub.f32 %v706_v8, %v723_v28 }
 0x13a   :  { %v743_v36 = vsub.f32 %v741_v30, %v742_v31 }
 0x13c   :  { %v748_v37 = vadd.f32 1e-05, %v743_v36 }
 0x13e   :  { %1014 = vrsqrt.f32 %v748_v37 }
 0x148   :  { %v1015_v41 = vpop.eup %1014 }
 0x149   :  { %v750_v43 = vmul.f32 %v1015_v41, %v744_v32  ;;  %v751_v44 = vmul.f32 %v1015_v41, %v745_v33  ;;  %v752_v45 = vmul.f32 %v1015_v41, %v746_v34  ;;  %v753_v46 = vmul.f32 %v1015_v41, %v747_v35 }
 0x14b   :  { %v758_v47 = vmul.f32 %v757_v40, %v750_v43  ;;  %v759_v48 = vmul.f32 %v757_v40, %v751_v44  ;;  %v760_v49 = vmul.f32 %v757_v40, %v752_v45  ;;  %v761_v50 = vmul.f32 %v757_v40, %v753_v46 }
 0x14d   :  { %v766_v51 = vadd.f32 %v765_v42, %v758_v47  ;;  %v767_v52 = vadd.f32 %v765_v42, %v759_v48  ;;  %v768_v53 = vadd.f32 %v765_v42, %v760_v49  ;;  %v769_v54 = vadd.f32 %v765_v42, %v761_v50 }
 0x14f   :  { %v770_v55 = vmax.f32 %v766_v51, 0.0  ;;  %v771_v56 = vmax.f32 %v767_v52, 0.0  ;;  %v772_v1 = vmax.f32 %v768_v53, 0.0  ;;  %v773_v57 = vmax.f32 %v769_v54, 0.0 }
 0x151   :  { %774 = vst.msk [vmem:[%s1268_s3] sm:$0xff] %vm709_vm1, %v770_v55  ;;  %775 = vst.msk [vmem:[%s1268_s3 + $0x8] sm:$0xff] %vm709_vm1, %v771_v56 }
 0x152   :  { %776 = vst.msk [vmem:[%s1268_s3 + $0x10] sm:$0xff] %vm709_vm1, %v772_v1  ;;  %777 = vst.msk [vmem:[%s1268_s3 + $0x18] sm:$0xff] %vm709_vm1, %v773_v57 }

// kernel: inception_net.27
= control target key start
LH: loop header
LB: loop body
LE: loop exit
PB: predicated region body
PF: predicated region fallthrough
CT: control target
= control target key end

     0   :  { %vm1829_vm0 = vcmask 785408   ;;  %s3147_s1 = inlined_call_operand.vmem [shape: bf16[2304,96], index: 1, kind: input, shape index: {}]   ;;  %s3148_s0 = inlined_call_operand.vmem [shape: bf16[32,2304], index: 0, kind: input, shape index: {}]   ;;  %s3149_s2 = inlined_call_operand.vmem [shape: f32[3,96], index: 2, kind: input, shape index: {}]   ;;  %s3150_s3 = inlined_call_operand.vmem [shape: f32[32,96], index: 3, kind: output, shape index: {}]  }
   0x1   :  { %v2350_v0 = vld [vmem:[%s3147_s1 + $0x40] sm:$0xff]   ;;  %v2354_v4 = vld [vmem:[%s3147_s1 + $0x48] sm:$0xff]   ;;  %v2358_v8 = vld [vmem:[%s3147_s1 + $0x50] sm:$0xff]  }
   0x2   :  { %v2351_v1 = vld [vmem:[%s3147_s1 + $0xc0] sm:$0xff]   ;;  %2082 = vmatprep.subr.bf16.mxu0 %v2350_v0  ;;  %v2355_v5 = vld [vmem:[%s3147_s1 + $0xc8] sm:$0xff]   ;;  %v2359_v9 = vld [vmem:[%s3147_s1 + $0xd0] sm:$0xff]  }
   0x3   :  { %v2352_v2 = vld [vmem:[%s3147_s1] sm:$0xff]   ;;  %2110 = vmatprep.subr.bf16.mxu1 %v2351_v1  ;;  %v2356_v6 = vld [vmem:[%s3147_s1 + $0x8] sm:$0xff]   ;;  %v2360_v10 = vld [vmem:[%s3147_s1 + $0x10] sm:$0xff]  }
   0x4   :  { %v2353_v3 = vld [vmem:[%s3147_s1 + $0x80] sm:$0xff]   ;;  %2083 = vmatpush3.bf16.msra.mxu0 %v2352_v2  ;;  %v2357_v7 = vld [vmem:[%s3147_s1 + $0x88] sm:$0xff]   ;;  %v2361_v11 = vld [vmem:[%s3147_s1 + $0x90] sm:$0xff]  }
   0x5   :  { %2111 = vmatpush3.bf16.msra.mxu1 %v2353_v3  ;;  %2084 = vmatprep.subr.bf16.mxu0 %v2354_v4  ;;  %v2362_v12 = vld [vmem:[%s3147_s1 + $0x58] sm:$0xff]   ;;  %v2366_v16 = vld [vmem:[%s3147_s1 + $0x60] sm:$0xff]   ;;  %v2370_v20 = vld [vmem:[%s3147_s1 + $0x68] sm:$0xff]  }
   0x6   :  { %2112 = vmatprep.subr.bf16.mxu1 %v2355_v5  ;;  %v2363_v13 = vld [vmem:[%s3147_s1 + $0xd8] sm:$0xff]   ;;  %v2367_v17 = vld [vmem:[%s3147_s1 + $0xe0] sm:$0xff]   ;;  %v2371_v21 = vld [vmem:[%s3147_s1 + $0xe8] sm:$0xff]  }
   0x7   :  { %v2364_v14 = vld [vmem:[%s3147_s1 + $0x18] sm:$0xff]   ;;  %v2368_v18 = vld [vmem:[%s3147_s1 + $0x20] sm:$0xff]   ;;  %v2372_v22 = vld [vmem:[%s3147_s1 + $0x28] sm:$0xff]  }
   0x8   :  { %2085 = vmatpush3.bf16.msra.mxu0 %v2356_v6  ;;  %v2365_v15 = vld [vmem:[%s3147_s1 + $0x98] sm:$0xff]   ;;  %v2369_v19 = vld [vmem:[%s3147_s1 + $0xa0] sm:$0xff]   ;;  %v2373_v23 = vld [vmem:[%s3147_s1 + $0xa8] sm:$0xff]  }
   0x9   :  { %2113 = vmatpush3.bf16.msra.mxu1 %v2357_v7  ;;  %2086 = vmatprep.subr.bf16.mxu0 %v2358_v8  ;;  %v2374_v24 = vld [vmem:[%s3147_s1 + $0x70] sm:$0xff]   ;;  %v2378_v28 = vld [vmem:[%s3147_s1 + $0x78] sm:$0xff]   ;;  %v2382_v32 = vld [vmem:[%s3148_s0] ss:$72 sps:$4 sm:$0xff]  }
   0xa   :  { %2114 = vmatprep.subr.bf16.mxu1 %v2359_v9  ;;  %v2375_v25 = vld [vmem:[%s3147_s1 + $0xf0] sm:$0xff]   ;;  %v2379_v29 = vld [vmem:[%s3147_s1 + $0xf8] sm:$0xff]   ;;  %v2384_v33 = vld [vmem:[%s3148_s0 + $0x4] ss:$72 sps:$4 sm:$0xff]  }
   0xb   :  { %v2376_v26 = vld [vmem:[%s3147_s1 + $0x30] sm:$0xff]   ;;  %v2380_v30 = vld [vmem:[%s3147_s1 + $0x38] sm:$0xff]   ;;  %1420 = vmatprep.mubr.bf16.mxu0 %v2384_v33  ;;  %v2388_v36 = vld [vmem:[%s3147_s1 + $0x140] sm:$0xff]  }
   0xc   :  { %2087 = vmatpush3.bf16.msra.mxu0 %v2360_v10  ;;  %v2377_v27 = vld [vmem:[%s3147_s1 + $0xb0] sm:$0xff]   ;;  %v2381_v31 = vld [vmem:[%s3147_s1 + $0xb8] sm:$0xff]   ;;  %v2389_v37 = vld [vmem:[%s3147_s1 + $0x1c0] sm:$0xff]  }
   0xd   :  { %2115 = vmatpush3.bf16.msra.mxu1 %v2361_v11  ;;  %2088 = vmatprep.subr.bf16.mxu0 %v2362_v12  ;;  %v2385_v34 = vld [vmem:[%s3148_s0 + $0x8] ss:$72 sps:$4 sm:$0xff]   ;;  %v2387_v35 = vld [vmem:[%s3148_s0 + $0xc] ss:$72 sps:$4 sm:$0xff]   ;;  %v2390_v38 = vld [vmem:[%s3147_s1 + $0x100] sm:$0xff]  }
   0xe   :  { %2116 = vmatprep.subr.bf16.mxu1 %v2363_v13  ;;  %1469 = vmatprep.mubr.bf16.mxu1 %v2387_v35  ;;  %v2391_v39 = vld [vmem:[%s3147_s1 + $0x180] sm:$0xff]   ;;  %v2392_v40 = vld [vmem:[%s3147_s1 + $0x148] sm:$0xff]   ;;  %v2396_v44 = vld [vmem:[%s3147_s1 + $0x150] sm:$0xff]  }
   0xf   :  { %v2393_v41 = vld [vmem:[%s3147_s1 + $0x1c8] sm:$0xff]   ;;  %v2397_v45 = vld [vmem:[%s3147_s1 + $0x1d0] sm:$0xff]   ;;  %v2400_v48 = vld [vmem:[%s3147_s1 + $0x158] sm:$0xff]  }
  0x10   :  { %2089 = vmatpush3.bf16.msra.mxu0 %v2364_v14  ;;  %v2394_v42 = vld [vmem:[%s3147_s1 + $0x108] sm:$0xff]   ;;  %v2398_v46 = vld [vmem:[%s3147_s1 + $0x110] sm:$0xff]   ;;  %v2401_v49 = vld [vmem:[%s3147_s1 + $0x1d8] sm:$0xff]  }
  0x11   :  { %2117 = vmatpush3.bf16.msra.mxu1 %v2365_v15  ;;  %2090 = vmatprep.subr.bf16.mxu0 %v2366_v16  ;;  %v2395_v43 = vld [vmem:[%s3147_s1 + $0x188] sm:$0xff]   ;;  %v2399_v47 = vld [vmem:[%s3147_s1 + $0x190] sm:$0xff]   ;;  %v2402_v50 = vld [vmem:[%s3147_s1 + $0x118] sm:$0xff]  }
  0x12   :  { %2118 = vmatprep.subr.bf16.mxu1 %v2367_v17  ;;  %v2403_v51 = vld [vmem:[%s3147_s1 + $0x198] sm:$0xff]   ;;  %v2404_v52 = vld [vmem:[%s3147_s1 + $0x160] sm:$0xff]   ;;  %v2408_v56 = vld [vmem:[%s3147_s1 + $0x168] sm:$0xff]  }
  0x13   :  { %v2405_v53 = vld [vmem:[%s3147_s1 + $0x1e0] sm:$0xff]   ;;  %v2409_v57 = vld [vmem:[%s3147_s1 + $0x1e8] sm:$0xff]   ;;  %v2410_v58 = vld [vmem:[%s3148_s0 + $0x94] ss:$72 sps:$4 sm:$0xff]  }
  0x14   :  { %2091 = vmatpush3.bf16.msra.mxu0 %v2368_v18  ;;  %v2406_v54 = vld [vmem:[%s3147_s1 + $0x120] sm:$0xff]   ;;  %v2412_v59 = vld [vmem:[%s3147_s1 + $0x128] sm:$0xff]   ;;  %v2414_v61 = vld [vmem:[%s3148_s0 + $0x90] ss:$72 sps:$4 sm:$0xff]  }
  0x15   :  { %2119 = vmatpush3.bf16.msra.mxu1 %v2369_v19  ;;  %2092 = vmatprep.subr.bf16.mxu0 %v2370_v20  ;;  %v2407_v55 = vld [vmem:[%s3147_s1 + $0x1a0] sm:$0xff]   ;;  %v2413_v60 = vld [vmem:[%s3147_s1 + $0x1a8] sm:$0xff]   ;;  %v2418_v0 = vld [vmem:[%s3147_s1 + $0x170] sm:$0xff]  }
  0x16   :  { %2120 = vmatprep.subr.bf16.mxu1 %v2371_v21  ;;  %v2415_v62 = vld [vmem:[%s3148_s0 + $0x9c] ss:$72 sps:$4 sm:$0xff]   ;;  %v2417_v63 = vld [vmem:[%s3148_s0 + $0x98] ss:$72 sps:$4 sm:$0xff]   ;;  %v2419_v1 = vld [vmem:[%s3147_s1 + $0x1f0] sm:$0xff]  }
  0x17   :  { %v2420_v2 = vld [vmem:[%s3147_s1 + $0x130] sm:$0xff]   ;;  %v2422_v4 = vld [vmem:[%s3147_s1 + $0x178] sm:$0xff]   ;;  %v2432_v12 = vld [vmem:[%s3147_s1 + $0x240] sm:$0xff]  }
  0x18   :  { %2093 = vmatpush3.bf16.msra.mxu0 %v2372_v22  ;;  %v2421_v3 = vld [vmem:[%s3147_s1 + $0x1b0] sm:$0xff]   ;;  %v2423_v5 = vld [vmem:[%s3147_s1 + $0x1f8] sm:$0xff]   ;;  %v2433_v13 = vld [vmem:[%s3147_s1 + $0x2c0] sm:$0xff]  }
  0x19   :  { %2121 = vmatpush3.bf16.msra.mxu1 %v2373_v23  ;;  %2094 = vmatprep.subr.bf16.mxu0 %v2374_v24  ;;  %v2424_v6 = vld [vmem:[%s3147_s1 + $0x138] sm:$0xff]   ;;  %v2434_v14 = vld [vmem:[%s3147_s1 + $0x200] sm:$0xff]   ;;  %v2436_v16 = vld [vmem:[%s3147_s1 + $0x248] sm:$0xff]  }
  0x1a   :  { %2122 = vmatprep.subr.bf16.mxu1 %v2375_v25  ;;  %v2425_v7 = vld [vmem:[%s3147_s1 + $0x1b8] sm:$0xff]   ;;  %v2435_v15 = vld [vmem:[%s3147_s1 + $0x280] sm:$0xff]   ;;  %v2437_v17 = vld [vmem:[%s3147_s1 + $0x2c8] sm:$0xff]  }
  0x1b   :  { %v2426_v8 = vld [vmem:[%s3148_s0 + $0x10] ss:$72 sps:$4 sm:$0xff]   ;;  %v2428_v9 = vld [vmem:[%s3148_s0 + $0x14] ss:$72 sps:$4 sm:$0xff]   ;;  %v2438_v18 = vld [vmem:[%s3147_s1 + $0x208] sm:$0xff]  }
  0x1c   :  { %2095 = vmatpush3.bf16.msra.mxu0 %v2376_v26  ;;  %v2429_v10 = vld [vmem:[%s3148_s0 + $0x18] ss:$72 sps:$4 sm:$0xff]   ;;  %v2431_v11 = vld [vmem:[%s3148_s0 + $0x1c] ss:$72 sps:$4 sm:$0xff]   ;;  %v2439_v19 = vld [vmem:[%s3147_s1 + $0x288] sm:$0xff]  }
  0x1d   :  { %2123 = vmatpush3.bf16.msra.mxu1 %v2377_v27  ;;  %2096 = vmatprep.subr.bf16.mxu0 %v2378_v28  ;;  %v2440_v20 = vld [vmem:[%s3148_s0 + $0xa4] ss:$72 sps:$4 sm:$0xff]   ;;  %v2442_v21 = vld [vmem:[%s3148_s0 + $0xa0] ss:$72 sps:$4 sm:$0xff]   ;;  %v2443_v22 = vld [vmem:[%s3147_s1 + $0x250] sm:$0xff]  }
  0x1e   :  { %2124 = vmatprep.subr.bf16.mxu1 %v2379_v29  ;;  %v2444_v23 = vld [vmem:[%s3147_s1 + $0x2d0] sm:$0xff]   ;;  %v2450_v28 = vld [vmem:[%s3147_s1 + $0x258] sm:$0xff]   ;;  %v2455_v33 = vld [vmem:[%s3147_s1 + $0x2e0] sm:$0xff]  }
  0x1f   :  { %v2445_v24 = vld [vmem:[%s3148_s0 + $0xac] ss:$72 sps:$4 sm:$0xff]   ;;  %v2449_v27 = vld [vmem:[%s3148_s0 + $0xa8] ss:$72 sps:$4 sm:$0xff]   ;;  %v2451_v29 = vld [vmem:[%s3147_s1 + $0x2d8] sm:$0xff]  }
  0x20   :  { %2097 = vmatpush3.bf16.msra.mxu0 %v2380_v30  ;;  %v2447_v25 = vld [vmem:[%s3147_s1 + $0x210] sm:$0xff]   ;;  %v2452_v30 = vld [vmem:[%s3147_s1 + $0x218] sm:$0xff]   ;;  %v2457_v35 = vld [vmem:[%s3147_s1 + $0x2a0] sm:$0xff]  }
  0x21   :  { %2125 = vmatpush3.bf16.msra.mxu1 %v2381_v31  ;;  %2138 = vmatprep.subr.bf16.mxu0 %v2388_v36  ;;  %v2448_v26 = vld [vmem:[%s3147_s1 + $0x290] sm:$0xff]   ;;  %v2453_v31 = vld [vmem:[%s3147_s1 + $0x298] sm:$0xff]   ;;  %v2458_v36 = vld [vmem:[%s3147_s1 + $0x268] sm:$0xff]  }
  0x22   :  { %2166 = vmatprep.subr.bf16.mxu1 %v2389_v37  ;;  %v2459_v37 = vld [vmem:[%s3147_s1 + $0x2e8] sm:$0xff]  }
  0x23   :  { %1421 = vmatmul.mubr.bf16.vlgmr.msra.gmra.mrb[0].mxu0 %v2382_v32  ;;  %v2454_v32 = vld [vmem:[%s3147_s1 + $0x260] sm:$0xff]  }
  0x24   :  { %1470 = vmatmul.mubr.bf16.vlgmr.msra.gmra.mrb[0].mxu1 %v2385_v34  ;;  %2139 = vmatpush3.bf16.msra.mxu0 %v2390_v38  ;;  %v2456_v34 = vld [vmem:[%s3147_s1 + $0x220] sm:$0xff]   ;;  %v2460_v38 = vld [vmem:[%s3147_s1 + $0x228] sm:$0xff]  }
  0x25   :  { %2167 = vmatpush3.bf16.msra.mxu1 %v2391_v39  ;;  %2140 = vmatprep.subr.bf16.mxu0 %v2392_v40  ;;  %v2461_v39 = vld [vmem:[%s3147_s1 + $0x2a8] sm:$0xff]   ;;  %v2462_v40 = vld [vmem:[%s3147_s1 + $0x270] sm:$0xff]  }
  0x26   :  { %2168 = vmatprep.subr.bf16.mxu1 %v2393_v41  ;;  %1428 = vmatprep.mubr.bf16.mxu0 %v2410_v58  ;;  %v2463_v41 = vld [vmem:[%s3147_s1 + $0x2f0] sm:$0xff]   ;;  %v2482_v58 = vld [vmem:[%s3147_s1 + $0x308] sm:$0xff]  }
  0x27   :  { %1477 = vmatprep.mubr.bf16.mxu1 %v2415_v62  ;;  %v2487_v62 = vld [vmem:[%s3147_s1 + $0x350] sm:$0xff]  }
  0x28   :  { %2141 = vmatpush3.bf16.msra.mxu0 %v2394_v42  ;;  %v2464_v42 = vld [vmem:[%s3147_s1 + $0x230] sm:$0xff]  }
  0x29   :  { %2169 = vmatpush3.bf16.msra.mxu1 %v2395_v43  ;;  %2142 = vmatprep.subr.bf16.mxu0 %v2396_v44  ;;  %v2465_v43 = vld [vmem:[%s3147_s1 + $0x2b0] sm:$0xff]   ;;  %v2466_v44 = vld [vmem:[%s3147_s1 + $0x278] sm:$0xff]  }
  0x2a   :  { %2170 = vmatprep.subr.bf16.mxu1 %v2397_v45  ;;  %v2467_v45 = vld [vmem:[%s3147_s1 + $0x2f8] sm:$0xff]  }
  0x2b   :  { %1429 = vmatmul.mubr.bf16.gmra.mrb[4].mxu0 %v2414_v61  ;;  %v2486_v61 = vld [vmem:[%s3148_s0 + $0xb0] ss:$72 sps:$4 sm:$0xff]  }
  0x2c   :  { %2143 = vmatpush3.bf16.msra.mxu0 %v2398_v46  ;;  %1478 = vmatmul.mubr.bf16.gmra.mrb[4].mxu1 %v2417_v63  ;;  %v2468_v46 = vld [vmem:[%s3147_s1 + $0x238] sm:$0xff]   ;;  %v2488_v63 = vld [vmem:[%s3147_s1 + $0x3d0] sm:$0xff]  }
  0x2d   :  { %2171 = vmatpush3.bf16.msra.mxu1 %v2399_v47  ;;  %2144 = vmatprep.subr.bf16.mxu0 %v2400_v48  ;;  %v2469_v47 = vld [vmem:[%s3147_s1 + $0x2b8] sm:$0xff]   ;;  %v2470_v48 = vld [vmem:[%s3148_s0 + $0x20] ss:$72 sps:$4 sm:$0xff]  }
  0x2e   :  { %2172 = vmatprep.subr.bf16.mxu1 %v2401_v49  ;;  %1518 = vmatprep.mubr.bf16.mxu0 %v2428_v9  ;;  %v2472_v49 = vld [vmem:[%s3148_s0 + $0x24] ss:$72 sps:$4 sm:$0xff]  }
  0x2f   :  { %1567 = vmatprep.mubr.bf16.mxu1 %v2431_v11  ;;  %v2499_v9 = vld [vmem:[%s3147_s1 + $0x3e0] sm:$0xff]  }
  0x30   :  { %2145 = vmatpush3.bf16.msra.mxu0 %v2402_v50  ;;  %v2473_v50 = vld [vmem:[%s3148_s0 + $0x28] ss:$72 sps:$4 sm:$0xff]   ;;  %v2501_v11 = vld [vmem:[%s3147_s1 + $0x3a0] sm:$0xff]  }
  0x31   :  { %2173 = vmatpush3.bf16.msra.mxu1 %v2403_v51  ;;  %2146 = vmatprep.subr.bf16.mxu0 %v2404_v52  ;;  %v2475_v51 = vld [vmem:[%s3148_s0 + $0x2c] ss:$72 sps:$4 sm:$0xff]   ;;  %v2476_v52 = vld [vmem:[%s3147_s1 + $0x340] sm:$0xff]  }
  0x32   :  { %2174 = vmatprep.subr.bf16.mxu1 %v2405_v53  ;;  %v2477_v53 = vld [vmem:[%s3147_s1 + $0x3c0] sm:$0xff]  }
  0x34   :  { %2147 = vmatpush3.bf16.msra.mxu0 %v2406_v54  ;;  %v2478_v54 = vld [vmem:[%s3147_s1 + $0x300] sm:$0xff]  }
  0x35   :  { %2175 = vmatpush3.bf16.msra.mxu1 %v2407_v55  ;;  %2148 = vmatprep.subr.bf16.mxu0 %v2408_v56  ;;  %v2479_v55 = vld [vmem:[%s3147_s1 + $0x380] sm:$0xff]   ;;  %v2480_v56 = vld [vmem:[%s3147_s1 + $0x348] sm:$0xff]  }
  0x36   :  { %2176 = vmatprep.subr.bf16.mxu1 %v2409_v57  ;;  %v2481_v57 = vld [vmem:[%s3147_s1 + $0x3c8] sm:$0xff]  }
  0x38   :  { %2149 = vmatpush3.bf16.msra.mxu0 %v2412_v59  ;;  %v2483_v59 = vld [vmem:[%s3147_s1 + $0x388] sm:$0xff]  }
  0x39   :  { %2177 = vmatpush3.bf16.msra.mxu1 %v2413_v60  ;;  %2150 = vmatprep.subr.bf16.mxu0 %v2418_v0  ;;  %v2484_v60 = vld [vmem:[%s3148_s0 + $0xb4] ss:$72 sps:$4 sm:$0xff]  }
  0x3a   :  { %2178 = vmatprep.subr.bf16.mxu1 %v2419_v1  ;;  %v2489_v0 = vld [vmem:[%s3148_s0 + $0xbc] ss:$72 sps:$4 sm:$0xff]   ;;  %v2491_v1 = vld [vmem:[%s3147_s1 + $0x310] sm:$0xff]  }
  0x3c   :  { %2151 = vmatpush3.bf16.msra.mxu0 %v2420_v2  ;;  %v2492_v2 = vld [vmem:[%s3147_s1 + $0x390] sm:$0xff]  }
  0x3d   :  { %2179 = vmatpush3.bf16.msra.mxu1 %v2421_v3  ;;  %2152 = vmatprep.subr.bf16.mxu0 %v2422_v4  ;;  %v2493_v3 = vld [vmem:[%s3148_s0 + $0xb8] ss:$72 sps:$4 sm:$0xff]  }
  0x3e   :  { %2180 = vmatprep.subr.bf16.mxu1 %v2423_v5  ;;  %v2494_v4 = vld [vmem:[%s3147_s1 + $0x358] sm:$0xff]  }
  0x3f   :  { %v2495_v5 = vld [vmem:[%s3147_s1 + $0x3d8] sm:$0xff]  }
  0x40   :  { %2153 = vmatpush3.bf16.msra.mxu0 %v2424_v6  ;;  %v2496_v6 = vld [vmem:[%s3147_s1 + $0x318] sm:$0xff]  }
  0x41   :  { %2181 = vmatpush3.bf16.msra.mxu1 %v2425_v7  ;;  %2194 = vmatprep.subr.bf16.mxu0 %v2432_v12  ;;  %v2497_v7 = vld [vmem:[%s3147_s1 + $0x398] sm:$0xff]   ;;  %v2502_v12 = vld [vmem:[%s3147_s1 + $0x368] sm:$0xff]  }
  0x42   :  { %2222 = vmatprep.subr.bf16.mxu1 %v2433_v13  ;;  %v2503_v13 = vld [vmem:[%s3147_s1 + $0x3e8] sm:$0xff]  }
  0x43   :  { %1519 = vmatmul.mubr.bf16.vlgmr.msra.gmra.mrb[8].mxu0 %v2426_v8  ;;  %v2498_v8 = vld [vmem:[%s3147_s1 + $0x360] sm:$0xff]  }
  0x44   :  { %1568 = vmatmul.mubr.bf16.vlgmr.msra.gmra.mrb[8].mxu1 %v2429_v10  ;;  %2195 = vmatpush3.bf16.msra.mxu0 %v2434_v14  ;;  %v2500_v10 = vld [vmem:[%s3147_s1 + $0x320] sm:$0xff]   ;;  %v2504_v14 = vld [vmem:[%s3147_s1 + $0x328] sm:$0xff]  }
  0x45   :  { %2223 = vmatpush3.bf16.msra.mxu1 %v2435_v15  ;;  %2196 = vmatprep.subr.bf16.mxu0 %v2436_v16  ;;  %v2505_v15 = vld [vmem:[%s3147_s1 + $0x3a8] sm:$0xff]   ;;  %v2506_v16 = vld [vmem:[%s3147_s1 + $0x370] sm:$0xff]  }
  0x46   :  { %2224 = vmatprep.subr.bf16.mxu1 %v2437_v17  ;;  %1526 = vmatprep.mubr.bf16.mxu0 %v2440_v20  ;;  %v2507_v17 = vld [vmem:[%s3147_s1 + $0x3f0] sm:$0xff]   ;;  %v2510_v20 = vld [vmem:[%s3147_s1 + $0x378] sm:$0xff]  }
  0x47   :  { %1575 = vmatprep.mubr.bf16.mxu1 %v2445_v24  ;;  %v2514_v24 = vld [vmem:[%s3148_s0 + $0x30] ss:$72 sps:$4 sm:$0xff]  }
  0x48   :  { %2197 = vmatpush3.bf16.msra.mxu0 %v2438_v18  ;;  %v2508_v18 = vld [vmem:[%s3147_s1 + $0x330] sm:$0xff]  }
  0x49   :  { %2225 = vmatpush3.bf16.msra.mxu1 %v2439_v19  ;;  %2198 = vmatprep.subr.bf16.mxu0 %v2443_v22  ;;  %v2509_v19 = vld [vmem:[%s3147_s1 + $0x3b0] sm:$0xff]   ;;  %v2512_v22 = vld [vmem:[%s3147_s1 + $0x338] sm:$0xff]  }
  0x4a   :  { %2226 = vmatprep.subr.bf16.mxu1 %v2444_v23  ;;  %v2513_v23 = vld [vmem:[%s3147_s1 + $0x3b8] sm:$0xff]  }
  0x4b   :  { %1527 = vmatmul.mubr.bf16.gmra.mrb[12].mxu0 %v2442_v21  ;;  %v2511_v21 = vld [vmem:[%s3147_s1 + $0x3f8] sm:$0xff]  }
  0x4c   :  { %2199 = vmatpush3.bf16.msra.mxu0 %v2447_v25  ;;  %1576 = vmatmul.mubr.bf16.gmra.mrb[12].mxu1 %v2449_v27  ;;  %v2516_v25 = vld [vmem:[%s3148_s0 + $0x34] ss:$72 sps:$4 sm:$0xff]  }
  0x4d   :  { %2227 = vmatpush3.bf16.msra.mxu1 %v2448_v26  ;;  %2200 = vmatprep.subr.bf16.mxu0 %v2450_v28  ;;  %v2517_v26 = vld [vmem:[%s3148_s0 + $0x38] ss:$72 sps:$4 sm:$0xff]   ;;  %v2519_v27 = vld [vmem:[%s3148_s0 + $0x3c] ss:$72 sps:$4 sm:$0xff]  }
  0x4e   :  { %2228 = vmatprep.subr.bf16.mxu1 %v2451_v29  ;;  %1616 = vmatprep.mubr.bf16.mxu0 %v2472_v49  ;;  %v2520_v28 = vld [vmem:[%s3147_s1 + $0x440] sm:$0xff]   ;;  %v2541_v49 = vld [vmem:[%s3147_s1 + $0x438] sm:$0xff]  }
  0x4f   :  { %1665 = vmatprep.mubr.bf16.mxu1 %v2475_v51  ;;  %v2521_v29 = vld [vmem:[%s3147_s1 + $0x400] sm:$0xff]   ;;  %v2545_v51 = vld [vmem:[%s3148_s0 + $0xd0] ss:$72 sps:$4 sm:$0xff]  }
  0x50   :  { %2201 = vmatpush3.bf16.msra.mxu0 %v2452_v30  ;;  %v2522_v30 = vld [vmem:[%s3147_s1 + $0x448] sm:$0xff]  }
  0x51   :  { %2229 = vmatpush3.bf16.msra.mxu1 %v2453_v31  ;;  %2202 = vmatprep.subr.bf16.mxu0 %v2454_v32  ;;  %v2523_v31 = vld [vmem:[%s3147_s1 + $0x408] sm:$0xff]  }
  0x52   :  { %2230 = vmatprep.subr.bf16.mxu1 %v2455_v33  ;;  %v2524_v32 = vld [vmem:[%s3148_s0 + $0xc4] ss:$72 sps:$4 sm:$0xff]   ;;  %v2526_v33 = vld [vmem:[%s3148_s0 + $0xc0] ss:$72 sps:$4 sm:$0xff]  }
  0x54   :  { %2203 = vmatpush3.bf16.msra.mxu0 %v2456_v34  ;;  %v2527_v34 = vld [vmem:[%s3147_s1 + $0x450] sm:$0xff]  }
  0x55   :  { %2231 = vmatpush3.bf16.msra.mxu1 %v2457_v35  ;;  %2204 = vmatprep.subr.bf16.mxu0 %v2458_v36  ;;  %v2528_v35 = vld [vmem:[%s3148_s0 + $0xcc] ss:$72 sps:$4 sm:$0xff]  }
  0x56   :  { %2232 = vmatprep.subr.bf16.mxu1 %v2459_v37  ;;  %v2530_v36 = vld [vmem:[%s3147_s1 + $0x410] sm:$0xff]  }
  0x57   :  { %v2531_v37 = vld [vmem:[%s3148_s0 + $0xc8] ss:$72 sps:$4 sm:$0xff]  }
  0x58   :  { %2205 = vmatpush3.bf16.msra.mxu0 %v2460_v38  ;;  %v2532_v38 = vld [vmem:[%s3147_s1 + $0x458] sm:$0xff]  }
  0x59   :  { %2233 = vmatpush3.bf16.msra.mxu1 %v2461_v39  ;;  %2206 = vmatprep.subr.bf16.mxu0 %v2462_v40  ;;  %v2533_v39 = vld [vmem:[%s3147_s1 + $0x418] sm:$0xff]   ;;  %v2534_v40 = vld [vmem:[%s3147_s1 + $0x460] sm:$0xff]  }
  0x5a   :  { %2234 = vmatprep.subr.bf16.mxu1 %v2463_v41  ;;  %v2535_v41 = vld [vmem:[%s3147_s1 + $0x420] sm:$0xff]  }
  0x5c   :  { %2207 = vmatpush3.bf16.msra.mxu0 %v2464_v42  ;;  %v2536_v42 = vld [vmem:[%s3147_s1 + $0x468] sm:$0xff]  }
  0x5d   :  { %2235 = vmatpush3.bf16.msra.mxu1 %v2465_v43  ;;  %2208 = vmatprep.subr.bf16.mxu0 %v2466_v44  ;;  %v2537_v43 = vld [vmem:[%s3147_s1 + $0x428] sm:$0xff]  }
  0x5e   :  { %2236 = vmatprep.subr.bf16.mxu1 %v2467_v45  ;;  %v2544_v44 = vld [vmem:[%s3148_s0 + $0x44] ss:$72 sps:$4 sm:$0xff]   ;;  %v2538_v45 = vld [vmem:[%s3147_s1 + $0x470] sm:$0xff]  }
  0x60   :  { %2209 = vmatpush3.bf16.msra.mxu0 %v2468_v46  ;;  %v2547_v46 = vld [vmem:[%s3148_s0 + $0xd4] ss:$72 sps:$4 sm:$0xff]  }
  0x61   :  { %2237 = vmatpush3.bf16.msra.mxu1 %v2469_v47  ;;  %2250 = vmatprep.subr.bf16.mxu0 %v2476_v52  ;;  %v2539_v47 = vld [vmem:[%s3147_s1 + $0x430] sm:$0xff]   ;;  %v340_v52 = vlaneseq }
  0x62   :  { %2278 = vmatprep.subr.bf16.mxu1 %v2477_v53 }
  0x63   :  { %1617 = vmatmul.mubr.bf16.vlgmr.msra.gmra.mrb[16].mxu0 %v2470_v48  ;;  %v2540_v48 = vld [vmem:[%s3147_s1 + $0x478] sm:$0xff]   ;;  %v3110_v53 = vshrl.u32 %v340_v52, 7 }
  0x64   :  { %1666 = vmatmul.mubr.bf16.vlgmr.msra.gmra.mrb[16].mxu1 %v2473_v50  ;;  %2251 = vmatpush3.bf16.msra.mxu0 %v2478_v54  ;;  %v2542_v50 = vld [vmem:[%s3148_s0 + $0x40] ss:$72 sps:$4 sm:$0xff]  }
  0x65   :  { %2279 = vmatpush3.bf16.msra.mxu1 %v2479_v55  ;;  %2252 = vmatprep.subr.bf16.mxu0 %v2480_v56  ;;  %v342_v54 = vsub.s32 0, %v3110_v53  ;;  %v3116_v55 = vld [vmem:[%s3149_s2] sm:$0x7] }
  0x66   :  { %2280 = vmatprep.subr.bf16.mxu1 %v2481_v57  ;;  %1624 = vmatprep.mubr.bf16.mxu0 %v2484_v60 }
  0x67   :  { %1673 = vmatprep.mubr.bf16.mxu1 %v2489_v0  ;;  %v343_v57 = vrot.slane %v3116_v55, %v342_v54 }
  0x68   :  { %2253 = vmatpush3.bf16.msra.mxu0 %v2482_v58 }
  0x69   :  { %2281 = vmatpush3.bf16.msra.mxu1 %v2483_v59  ;;  %2254 = vmatprep.subr.bf16.mxu0 %v2487_v62 }
  0x6a   :  { %2282 = vmatprep.subr.bf16.mxu1 %v2488_v63 }
  0x6b   :  { %1625 = vmatmul.mubr.bf16.gmra.mrb[20].mxu0 %v2486_v61 }
  0x6c   :  { %2255 = vmatpush3.bf16.msra.mxu0 %v2491_v1  ;;  %1674 = vmatmul.mubr.bf16.gmra.mrb[20].mxu1 %v2493_v3 }
  0x6d   :  { %2283 = vmatpush3.bf16.msra.mxu1 %v2492_v2  ;;  %2256 = vmatprep.subr.bf16.mxu0 %v2494_v4 }
  0x6e   :  { %2284 = vmatprep.subr.bf16.mxu1 %v2495_v5  ;;  %1714 = vmatprep.mubr.bf16.mxu0 %v2516_v25 }
  0x6f   :  { %1763 = vmatprep.mubr.bf16.mxu1 %v2519_v27 }
  0x70   :  { %2257 = vmatpush3.bf16.msra.mxu0 %v2496_v6 }
  0x71   :  { %2285 = vmatpush3.bf16.msra.mxu1 %v2497_v7  ;;  %2258 = vmatprep.subr.bf16.mxu0 %v2498_v8 }
  0x72   :  { %2286 = vmatprep.subr.bf16.mxu1 %v2499_v9 }
  0x74   :  { %2259 = vmatpush3.bf16.msra.mxu0 %v2500_v10 }
  0x75   :  { %2287 = vmatpush3.bf16.msra.mxu1 %v2501_v11  ;;  %2260 = vmatprep.subr.bf16.mxu0 %v2502_v12 }
  0x76   :  { %2288 = vmatprep.subr.bf16.mxu1 %v2503_v13 }
  0x78   :  { %2261 = vmatpush3.bf16.msra.mxu0 %v2504_v14 }
  0x79   :  { %2289 = vmatpush3.bf16.msra.mxu1 %v2505_v15  ;;  %2262 = vmatprep.subr.bf16.mxu0 %v2506_v16 }
  0x7a   :  { %2290 = vmatprep.subr.bf16.mxu1 %v2507_v17 }
  0x7c   :  { %2263 = vmatpush3.bf16.msra.mxu0 %v2508_v18 }
  0x7d   :  { %2291 = vmatpush3.bf16.msra.mxu1 %v2509_v19  ;;  %2264 = vmatprep.subr.bf16.mxu0 %v2510_v20 }
  0x7e   :  { %2292 = vmatprep.subr.bf16.mxu1 %v2511_v21 }
  0x80   :  { %2265 = vmatpush3.bf16.msra.mxu0 %v2512_v22 }
  0x81   :  { %2293 = vmatpush3.bf16.msra.mxu1 %v2513_v23  ;;  %2306 = vmatprep.subr.bf16.mxu0 %v2520_v28 }
  0x82   :  { %2334 = vmatprep.subr.bf16.mxu1 %v2520_v28 }
  0x83   :  { %1715 = vmatmul.mubr.bf16.vlgmr.msra.gmra.mrb[24].mxu0 %v2514_v24 }
  0x84   :  { %1764 = vmatmul.mubr.bf16.vlgmr.msra.gmra.mrb[24].mxu1 %v2517_v26  ;;  %2307 = vmatpush3.bf16.msra.mxu0 %v2521_v29 }
  0x85   :  { %2342 = vmatpush3.bf16.msra.mxu1 %v2521_v29  ;;  %2308 = vmatprep.subr.bf16.mxu0 %v2522_v30 }
  0x86   :  { %2335 = vmatprep.subr.bf16.mxu1 %v2522_v30  ;;  %1722 = vmatprep.mubr.bf16.mxu0 %v2524_v32 }
  0x87   :  { %1771 = vmatprep.mubr.bf16.mxu1 %v2528_v35 }
  0x88   :  { %2309 = vmatpush3.bf16.msra.mxu0 %v2523_v31 }
  0x89   :  { %2343 = vmatpush3.bf16.msra.mxu1 %v2523_v31  ;;  %2310 = vmatprep.subr.bf16.mxu0 %v2527_v34 }
  0x8a   :  { %2336 = vmatprep.subr.bf16.mxu1 %v2527_v34 }
  0x8b   :  { %1723 = vmatmul.mubr.bf16.gmra.mrb[28].mxu0 %v2526_v33 }
  0x8c   :  { %2311 = vmatpush3.bf16.msra.mxu0 %v2530_v36  ;;  %1772 = vmatmul.mubr.bf16.gmra.mrb[28].mxu1 %v2531_v37 }
  0x8d   :  { %2344 = vmatpush3.bf16.msra.mxu1 %v2530_v36  ;;  %2312 = vmatprep.subr.bf16.mxu0 %v2532_v38 }
  0x8e   :  { %2337 = vmatprep.subr.bf16.mxu1 %v2532_v38  ;;  %1812 = vmatprep.mubr.bf16.mxu0 %v2544_v44 }
  0x8f   :  { %1820 = vmatprep.mubr.bf16.mxu1 %v2547_v46 }
  0x90   :  { %2313 = vmatpush3.bf16.msra.mxu0 %v2533_v39 }
  0x91   :  { %2345 = vmatpush3.bf16.msra.mxu1 %v2533_v39  ;;  %2314 = vmatprep.subr.bf16.mxu0 %v2534_v40 }
  0x92   :  { %2338 = vmatprep.subr.bf16.mxu1 %v2534_v40 }
  0x94   :  { %2315 = vmatpush3.bf16.msra.mxu0 %v2535_v41 }
  0x95   :  { %2346 = vmatpush3.bf16.msra.mxu1 %v2535_v41  ;;  %2316 = vmatprep.subr.bf16.mxu0 %v2536_v42 }
  0x96   :  { %2339 = vmatprep.subr.bf16.mxu1 %v2536_v42 }
  0x98   :  { %2317 = vmatpush3.bf16.msra.mxu0 %v2537_v43 }
  0x99   :  { %2347 = vmatpush3.bf16.msra.mxu1 %v2537_v43  ;;  %2318 = vmatprep.subr.bf16.mxu0 %v2538_v45 }
  0x9a   :  { %2340 = vmatprep.subr.bf16.mxu1 %v2538_v45 }
  0x9c   :  { %2319 = vmatpush3.bf16.msra.mxu0 %v2539_v47 }
  0x9d   :  { %2348 = vmatpush3.bf16.msra.mxu1 %v2539_v47  ;;  %2320 = vmatprep.subr.bf16.mxu0 %v2540_v48 }
  0x9e   :  { %2341 = vmatprep.subr.bf16.mxu1 %v2540_v48 }
  0xa0   :  { %2321 = vmatpush3.bf16.msra.mxu0 %v2541_v49 }
  0xa1   :  { %2349 = vmatpush3.bf16.msra.mxu1 %v2541_v49 }
  0xa3   :  { %1813 = vmatmul.mubr.bf16.vlgmr.msra.gmra.mrb[32].mxu0 %v2542_v50 }
  0xa4   :  { %1821 = vmatmul.mubr.bf16.vlgmr.msra.gmra.mrb[32].mxu1 %v2545_v51 }
  0xf6   :  { %v2098_v56 = vpop.f32.mrb[0].mxu0 }
  0xf7   :  { %v2099_v58 = vpop.f32.mrb[1].mxu0  ;;  %v2126_v59 = vpop.f32.mrb[0].mxu1 }
  0xf8   :  { %v2100_v60 = vadd.f32 %v2099_v58, %v2098_v56  ;;  %v2101_v61 = vpop.f32.mrb[2].mxu0  ;;  %v2127_v62 = vpop.f32.mrb[1].mxu1 }
  0xf9   :  { %v2102_v63 = vpop.f32.mrb[3].mxu0  ;;  %v2128_v0 = vadd.f32 %v2127_v62, %v2126_v59  ;;  %v2129_v1 = vpop.f32.mrb[2].mxu1 }
  0xfa   :  { %v1423_v2 = vadd.f32 %v2100_v60, %v343_v57  ;;  %v2103_v3 = vadd.f32 %v2102_v63, %v2101_v61  ;;  %v2130_v4 = vpop.f32.mrb[3].mxu1 }
  0xfb   :  { %v2131_v5 = vadd.f32 %v2130_v4, %v2129_v1 }
  0xfc   :  { %v1426_v6 = vadd.f32 %v2103_v3, %v343_v57  ;;  %v1472_v7 = vadd.f32 %v2128_v0, %v1423_v2 }
  0xfe   :  { %v1475_v8 = vadd.f32 %v2131_v5, %v1426_v6  ;;  %v2104_v9 = vpop.f32.mrb[4].mxu0 }
  0xff   :  { %v2105_v10 = vpop.f32.mrb[5].mxu0  ;;  %v2132_v13 = vpop.f32.mrb[4].mxu1 }
 0x100   :  { %v2106_v11 = vadd.f32 %v2105_v10, %v2104_v9  ;;  %v2107_v12 = vpop.f32.mrb[6].mxu0  ;;  %v2133_v15 = vpop.f32.mrb[5].mxu1 }
 0x101   :  { %v2108_v14 = vpop.f32.mrb[7].mxu0  ;;  %v2134_v18 = vadd.f32 %v2133_v15, %v2132_v13  ;;  %v2135_v19 = vpop.f32.mrb[6].mxu1 }
 0x102   :  { %v1431_v16 = vadd.f32 %v2106_v11, %v343_v57  ;;  %v2109_v17 = vadd.f32 %v2108_v14, %v2107_v12  ;;  %v2136_v20 = vpop.f32.mrb[7].mxu1 }
 0x103   :  { %v2137_v23 = vadd.f32 %v2136_v20, %v2135_v19 }
 0x104   :  { %v1434_v21 = vadd.f32 %v2109_v17, %v343_v57  ;;  %v1480_v22 = vadd.f32 %v2134_v18, %v1431_v16 }
 0x106   :  { %v1483_v24 = vadd.f32 %v2137_v23, %v1434_v21 }
 0x116   :  { %v2154_v25 = vpop.f32.mrb[8].mxu0 }
 0x117   :  { %v2155_v26 = vpop.f32.mrb[9].mxu0  ;;  %v2182_v27 = vpop.f32.mrb[8].mxu1 }
 0x118   :  { %v2156_v28 = vadd.f32 %v2155_v26, %v2154_v25  ;;  %v2157_v29 = vpop.f32.mrb[10].mxu0  ;;  %v2183_v30 = vpop.f32.mrb[9].mxu1 }
 0x119   :  { %v2158_v31 = vpop.f32.mrb[11].mxu0  ;;  %v2184_v32 = vadd.f32 %v2183_v30, %v2182_v27  ;;  %v2185_v33 = vpop.f32.mrb[10].mxu1 }
 0x11a   :  { %v1521_v34 = vadd.f32 %v2156_v28, %v1472_v7  ;;  %v2159_v35 = vadd.f32 %v2158_v31, %v2157_v29  ;;  %v2186_v36 = vpop.f32.mrb[11].mxu1 }
 0x11b   :  { %v2187_v37 = vadd.f32 %v2186_v36, %v2185_v33 }
 0x11c   :  { %v1524_v38 = vadd.f32 %v2159_v35, %v1475_v8  ;;  %v1570_v39 = vadd.f32 %v2184_v32, %v1521_v34 }
 0x11e   :  { %v1573_v40 = vadd.f32 %v2187_v37, %v1524_v38  ;;  %v2160_v41 = vpop.f32.mrb[12].mxu0 }
 0x11f   :  { %v2161_v42 = vpop.f32.mrb[13].mxu0  ;;  %v2188_v48 = vpop.f32.mrb[12].mxu1 }
 0x120   :  { %v2162_v43 = vadd.f32 %v2161_v42, %v2160_v41  ;;  %v2163_v44 = vpop.f32.mrb[14].mxu0  ;;  %v2189_v50 = vpop.f32.mrb[13].mxu1 }
 0x121   :  { %v2164_v45 = vpop.f32.mrb[15].mxu0  ;;  %v2190_v51 = vadd.f32 %v2189_v50, %v2188_v48  ;;  %v2191_v52 = vpop.f32.mrb[14].mxu1 }
 0x122   :  { %v1529_v46 = vadd.f32 %v2162_v43, %v1480_v22  ;;  %v2165_v47 = vadd.f32 %v2164_v45, %v2163_v44  ;;  %v2192_v54 = vpop.f32.mrb[15].mxu1 }
 0x123   :  { %v2193_v57 = vadd.f32 %v2192_v54, %v2191_v52 }
 0x124   :  { %v1532_v49 = vadd.f32 %v2165_v47, %v1483_v24  ;;  %v1578_v56 = vadd.f32 %v2190_v51, %v1529_v46 }
 0x126   :  { %v1581_v58 = vadd.f32 %v2193_v57, %v1532_v49 }
 0x136   :  { %v2210_v59 = vpop.f32.mrb[16].mxu0 }
 0x137   :  { %v2211_v60 = vpop.f32.mrb[17].mxu0  ;;  %v2238_v63 = vpop.f32.mrb[16].mxu1 }
 0x138   :  { %v2212_v61 = vadd.f32 %v2211_v60, %v2210_v59  ;;  %v2213_v62 = vpop.f32.mrb[18].mxu0  ;;  %v2239_v1 = vpop.f32.mrb[17].mxu1 }
 0x139   :  { %v2214_v0 = vpop.f32.mrb[19].mxu0  ;;  %v2240_v4 = vadd.f32 %v2239_v1, %v2238_v63  ;;  %v2241_v5 = vpop.f32.mrb[18].mxu1 }
 0x13a   :  { %v1619_v2 = vadd.f32 %v2212_v61, %v1570_v39  ;;  %v2215_v3 = vadd.f32 %v2214_v0, %v2213_v62  ;;  %v2242_v6 = vpop.f32.mrb[19].mxu1 }
 0x13b   :  { %v2243_v9 = vadd.f32 %v2242_v6, %v2241_v5 }
 0x13c   :  { %v1622_v7 = vadd.f32 %v2215_v3, %v1573_v40  ;;  %v1668_v8 = vadd.f32 %v2240_v4, %v1619_v2 }
 0x13e   :  { %v1671_v10 = vadd.f32 %v2243_v9, %v1622_v7  ;;  %v2216_v11 = vpop.f32.mrb[20].mxu0 }
 0x13f   :  { %v2217_v12 = vpop.f32.mrb[21].mxu0  ;;  %v2244_v18 = vpop.f32.mrb[20].mxu1 }
 0x140   :  { %v2218_v13 = vadd.f32 %v2217_v12, %v2216_v11  ;;  %v2219_v14 = vpop.f32.mrb[22].mxu0  ;;  %v2245_v20 = vpop.f32.mrb[21].mxu1 }
 0x141   :  { %v2220_v15 = vpop.f32.mrb[23].mxu0  ;;  %v2246_v21 = vadd.f32 %v2245_v20, %v2244_v18  ;;  %v2247_v22 = vpop.f32.mrb[22].mxu1 }
 0x142   :  { %v1627_v16 = vadd.f32 %v2218_v13, %v1578_v56  ;;  %v2221_v17 = vadd.f32 %v2220_v15, %v2219_v14  ;;  %v2248_v23 = vpop.f32.mrb[23].mxu1 }
 0x143   :  { %v2249_v25 = vadd.f32 %v2248_v23, %v2247_v22 }
 0x144   :  { %v1630_v19 = vadd.f32 %v2221_v17, %v1581_v58  ;;  %v1676_v24 = vadd.f32 %v2246_v21, %v1627_v16 }
 0x146   :  { %v1679_v26 = vadd.f32 %v2249_v25, %v1630_v19 }
 0x156   :  { %v2266_v27 = vpop.f32.mrb[24].mxu0 }
 0x157   :  { %v2267_v28 = vpop.f32.mrb[25].mxu0  ;;  %v2294_v31 = vpop.f32.mrb[24].mxu1 }
 0x158   :  { %v2268_v29 = vadd.f32 %v2267_v28, %v2266_v27  ;;  %v2269_v30 = vpop.f32.mrb[26].mxu0  ;;  %v2295_v33 = vpop.f32.mrb[25].mxu1 }
 0x159   :  { %v2270_v32 = vpop.f32.mrb[27].mxu0  ;;  %v2296_v36 = vadd.f32 %v2295_v33, %v2294_v31  ;;  %v2297_v37 = vpop.f32.mrb[26].mxu1 }
 0x15a   :  { %v1717_v34 = vadd.f32 %v2268_v29, %v1668_v8  ;;  %v2271_v35 = vadd.f32 %v2270_v32, %v2269_v30  ;;  %v2298_v38 = vpop.f32.mrb[27].mxu1 }
 0x15b   :  { %v2299_v41 = vadd.f32 %v2298_v38, %v2297_v37 }
 0x15c   :  { %v1720_v39 = vadd.f32 %v2271_v35, %v1671_v10  ;;  %v1766_v40 = vadd.f32 %v2296_v36, %v1717_v34 }
 0x15e   :  { %v1769_v42 = vadd.f32 %v2299_v41, %v1720_v39  ;;  %v2272_v43 = vpop.f32.mrb[28].mxu0 }
 0x15f   :  { %v2273_v44 = vpop.f32.mrb[29].mxu0  ;;  %v2300_v47 = vpop.f32.mrb[28].mxu1 }
 0x160   :  { %v2274_v45 = vadd.f32 %v2273_v44, %v2272_v43  ;;  %v2275_v46 = vpop.f32.mrb[30].mxu0  ;;  %v2301_v49 = vpop.f32.mrb[29].mxu1 }
 0x161   :  { %v2276_v48 = vpop.f32.mrb[31].mxu0  ;;  %v2302_v52 = vadd.f32 %v2301_v49, %v2300_v47  ;;  %v2303_v54 = vpop.f32.mrb[30].mxu1 }
 0x162   :  { %v1725_v50 = vadd.f32 %v2274_v45, %v1676_v24  ;;  %v2277_v51 = vadd.f32 %v2276_v48, %v2275_v46  ;;  %v2304_v56 = vpop.f32.mrb[31].mxu1 }
 0x163   :  { %v2305_v59 = vadd.f32 %v2304_v56, %v2303_v54  ;;  %v1884_v54 = vsub.s32 2, %v3110_v53 }
 0x164   :  { %v1728_v57 = vadd.f32 %v2277_v51, %v1679_v26  ;;  %v1774_v58 = vadd.f32 %v2302_v52, %v1725_v50  ;;  %v1876_v52 = vsub.s32 1, %v3110_v53 }
 0x166   :  { %v1777_v60 = vadd.f32 %v2305_v59, %v1728_v57  ;;  %v1877_v56 = vrot.slane %v3116_v55, %v1876_v52 }
 0x176   :  { %v2322_v61 = vpop.f32.mrb[32].mxu0 }
 0x177   :  { %v2328_v62 = vpop.f32.mrb[32].mxu1  ;;  %v2323_v63 = vpop.f32.mrb[33].mxu0 }
 0x178   :  { %v2324_v0 = vadd.f32 %v2323_v63, %v2322_v61  ;;  %v2329_v1 = vpop.f32.mrb[33].mxu1  ;;  %v2325_v2 = vpop.f32.mrb[34].mxu0 }
 0x179   :  { %v2330_v3 = vadd.f32 %v2329_v1, %v2328_v62  ;;  %v2331_v4 = vpop.f32.mrb[34].mxu1  ;;  %v2326_v5 = vpop.f32.mrb[35].mxu0 }
 0x17a   :  { %v1815_v6 = vadd.f32 %v2324_v0, %v1766_v40  ;;  %v2327_v7 = vadd.f32 %v2326_v5, %v2325_v2  ;;  %v2332_v8 = vpop.f32.mrb[35].mxu1 }
 0x17b   :  { %v1823_v9 = vadd.f32 %v2330_v3, %v1774_v58  ;;  %v2333_v10 = vadd.f32 %v2332_v8, %v2331_v4  ;;  %v1885_v58 = vrot.slane %v3116_v55, %v1884_v54 }
 0x17c   :  { %v1844_v11 = vmul.f32 %v1815_v6, %v1815_v6  ;;  %v1818_v12 = vadd.f32 %v2327_v7, %v1769_v42  ;;  %v1830_v14 = vsel %vm1829_vm0, %v1815_v6, 0.0 }
 0x17d   :  { %v1826_v13 = vadd.f32 %v2333_v10, %v1777_v60  ;;  %v1846_v15 = vmul.f32 %v1823_v9, %v1823_v9  ;;  %v1833_v20 = vsel %vm1829_vm0, %v1823_v9, 0.0 }
 0x17e   :  { %v1831_v16 = vsel %vm1829_vm0, %v1818_v12, 0.0  ;;  %v1845_v17 = vmul.f32 %v1818_v12, %v1818_v12  ;;  %v1848_v19 = vsel %vm1829_vm0, %v1844_v11, 0.0 }
 0x17f   :  { %v1832_v18 = vadd.f32 %v1831_v16, %v1830_v14  ;;  %v1847_v22 = vmul.f32 %v1826_v13, %v1826_v13  ;;  %v1851_v25 = vsel %vm1829_vm0, %v1846_v15, 0.0  ;;  %v1835_v26 = vsel %vm1829_vm0, %v1826_v13, 0.0 }
 0x180   :  { %v1849_v21 = vsel %vm1829_vm0, %v1845_v17, 0.0 }
 0x181   :  { %v1850_v23 = vadd.f32 %v1849_v21, %v1848_v19  ;;  %v1834_v24 = vadd.f32 %v1833_v20, %v1832_v18  ;;  %v1853_v29 = vsel %vm1829_vm0, %v1847_v22, 0.0 }
 0x183   :  { %v1836_v27 = vadd.f32 %v1835_v26, %v1834_v24  ;;  %v1852_v28 = vadd.f32 %v1851_v25, %v1850_v23 }
 0x185   :  { %v1837_v30 = vrot.slane %v1836_v27, 4  ;;  %v1854_v31 = vadd.f32 %v1853_v29, %v1852_v28 }
 0x187   :  { %v1838_v32 = vadd.f32 %v1837_v30, %v1836_v27  ;;  %v1855_v33 = vrot.slane %v1854_v31, 4 }
 0x189   :  { %v1839_v34 = vrot.slane %v1838_v32, 2  ;;  %v1856_v35 = vadd.f32 %v1855_v33, %v1854_v31 }
 0x18b   :  { %v1840_v36 = vadd.f32 %v1839_v34, %v1838_v32  ;;  %v1857_v37 = vrot.slane %v1856_v35, 2 }
 0x18d   :  { %v1841_v38 = vrot.slane %v1840_v36, 1  ;;  %v1858_v39 = vadd.f32 %v1857_v37, %v1856_v35 }
 0x18f   :  { %v1842_v40 = vadd.f32 %v1841_v38, %v1840_v36  ;;  %v1859_v41 = vrot.slane %v1858_v39, 1 }
 0x191   :  { %v1843_v42 = vmul.f32 0.03125, %v1842_v40  ;;  %v1860_v43 = vadd.f32 %v1859_v41, %v1858_v39 }
 0x193   :  { %v1861_v44 = vmul.f32 0.03125, %v1860_v43  ;;  %v1862_v45 = vmul.f32 %v1843_v42, %v1843_v42  ;;  %v1864_v46 = vsub.f32 %v1815_v6, %v1843_v42  ;;  %v1865_v47 = vsub.f32 %v1818_v12, %v1843_v42 }
 0x194   :  { %v1866_v48 = vsub.f32 %v1823_v9, %v1843_v42  ;;  %v1867_v49 = vsub.f32 %v1826_v13, %v1843_v42 }
 0x195   :  { %v1863_v50 = vsub.f32 %v1861_v44, %v1862_v45 }
 0x197   :  { %v1868_v51 = vadd.f32 1e-05, %v1863_v50 }
 0x199   :  { %2548 = vrsqrt.f32 %v1868_v51 }
 0x1a3   :  { %v2549_v57 = vpop.eup %2548 }
 0x1a4   :  { %v1870_v59 = vmul.f32 %v2549_v57, %v1864_v46  ;;  %v1871_v60 = vmul.f32 %v2549_v57, %v1865_v47  ;;  %v1872_v61 = vmul.f32 %v2549_v57, %v1866_v48  ;;  %v1873_v62 = vmul.f32 %v2549_v57, %v1867_v49 }
 0x1a6   :  { %v1878_v63 = vmul.f32 %v1877_v56, %v1870_v59  ;;  %v1879_v0 = vmul.f32 %v1877_v56, %v1871_v60  ;;  %v1880_v1 = vmul.f32 %v1877_v56, %v1872_v61  ;;  %v1881_v2 = vmul.f32 %v1877_v56, %v1873_v62 }
 0x1a8   :  { %v1886_v3 = vadd.f32 %v1885_v58, %v1878_v63  ;;  %v1887_v4 = vadd.f32 %v1885_v58, %v1879_v0  ;;  %v1888_v5 = vadd.f32 %v1885_v58, %v1880_v1  ;;  %v1889_v6 = vadd.f32 %v1885_v58, %v1881_v2 }
 0x1aa   :  { %v1890_v7 = vmax.f32 %v1886_v3, 0.0  ;;  %v1891_v8 = vmax.f32 %v1887_v4, 0.0  ;;  %v1892_v53 = vmax.f32 %v1888_v5, 0.0  ;;  %v1893_v9 = vmax.f32 %v1889_v6, 0.0 }
 0x1ac   :  { %1894 = vst.msk [vmem:[%s3150_s3] sm:$0xff] %vm1829_vm0, %v1890_v7  ;;  %1895 = vst.msk [vmem:[%s3150_s3 + $0x8] sm:$0xff] %vm1829_vm0, %v1891_v8 }
 0x1ad   :  { %1896 = vst.msk [vmem:[%s3150_s3 + $0x10] sm:$0xff] %vm1829_vm0, %v1892_v53  ;;  %1897 = vst.msk [vmem:[%s3150_s3 + $0x18] sm:$0xff] %vm1829_vm0, %v1893_v9 }

// kernel: inception_net.28
= control target key start
LH: loop header
LB: loop body
LE: loop exit
PB: predicated region body
PF: predicated region fallthrough
CT: control target
= control target key end

     0   :  { %s254_s0 = inlined_call_operand.vmem [shape: f32[9,2,2,2,384], index: 0, kind: input, shape index: {}]   ;;  %s255_s1 = inlined_call_operand.vmem [shape: f32[2,2,2,384], index: 1, kind: output, shape index: {}]  }
   0x1   :  { %v8_v0 = vld [vmem:[%s254_s0] sm:$0x3f]  ;;  %v92_v1 = vld [vmem:[%s254_s0 + $0x18] sm:$0x3f]  ;;  %v96_v2 = vld [vmem:[%s254_s0 + $0x30] sm:$0x3f] }
   0x2   :  { %v17_v3 = vmax.f32 %v8_v0, %v92_v1  ;;  %v100_v4 = vld [vmem:[%s254_s0 + $0x48] sm:$0x3f]  ;;  %v93_v7 = vld [vmem:[%s254_s0 + $0x1e] sm:$0x3f]  ;;  %v97_v8 = vld [vmem:[%s254_s0 + $0x36] sm:$0x3f] }
   0x3   :  { %v9_v6 = vld [vmem:[%s254_s0 + $0x6] sm:$0x3f]  ;;  %v104_v9 = vld [vmem:[%s254_s0 + $0x60] sm:$0x3f]  ;;  %v108_v12 = vld [vmem:[%s254_s0 + $0x78] sm:$0x3f] }
   0x4   :  { %v26_v5 = vmax.f32 %v17_v3, %v96_v2  ;;  %v18_v10 = vmax.f32 %v9_v6, %v93_v7  ;;  %v101_v13 = vld [vmem:[%s254_s0 + $0x4e] sm:$0x3f]  ;;  %v94_v16 = vld [vmem:[%s254_s0 + $0x24] sm:$0x3f]  ;;  %v98_v17 = vld [vmem:[%s254_s0 + $0x3c] sm:$0x3f] }
   0x5   :  { %v10_v15 = vld [vmem:[%s254_s0 + $0xc] sm:$0x3f]  ;;  %v105_v19 = vld [vmem:[%s254_s0 + $0x66] sm:$0x3f]  ;;  %v109_v23 = vld [vmem:[%s254_s0 + $0x7e] sm:$0x3f] }
   0x6   :  { %v35_v11 = vmax.f32 %v26_v5, %v100_v4  ;;  %v27_v14 = vmax.f32 %v18_v10, %v97_v8  ;;  %v19_v20 = vmax.f32 %v10_v15, %v94_v16  ;;  %v112_v21 = vld [vmem:[%s254_s0 + $0x90] sm:$0x3f]  ;;  %v95_v28 = vld [vmem:[%s254_s0 + $0x2a] sm:$0x3f]  ;;  %v99_v29 = vld [vmem:[%s254_s0 + $0x42] sm:$0x3f] }
   0x7   :  { %v102_v24 = vld [vmem:[%s254_s0 + $0x54] sm:$0x3f]  ;;  %v116_v30 = vld [vmem:[%s254_s0 + $0xa8] sm:$0x3f]  ;;  %v103_v37 = vld [vmem:[%s254_s0 + $0x5a] sm:$0x3f] }
   0x8   :  { %v44_v18 = vmax.f32 %v35_v11, %v104_v9  ;;  %v36_v22 = vmax.f32 %v27_v14, %v101_v13  ;;  %v28_v26 = vmax.f32 %v19_v20, %v98_v17  ;;  %v11_v27 = vld [vmem:[%s254_s0 + $0x12] sm:$0x3f]  ;;  %v106_v32 = vld [vmem:[%s254_s0 + $0x6c] sm:$0x3f]  ;;  %v120_v38 = vld [vmem:[%s254_s0 + $0xc0] sm:$0x3f] }
   0x9   :  { %v20_v33 = vmax.f32 %v11_v27, %v95_v28  ;;  %v113_v35 = vld [vmem:[%s254_s0 + $0x96] sm:$0x3f]  ;;  %v110_v40 = vld [vmem:[%s254_s0 + $0x84] sm:$0x3f]  ;;  %v117_v43 = vld [vmem:[%s254_s0 + $0xae] sm:$0x3f] }
   0xa   :  { %v53_v25 = vmax.f32 %v44_v18, %v108_v12  ;;  %v45_v31 = vmax.f32 %v36_v22, %v105_v19  ;;  %v37_v36 = vmax.f32 %v28_v26, %v102_v24  ;;  %v107_v45 = vld [vmem:[%s254_s0 + $0x72] sm:$0x3f]  ;;  %v114_v47 = vld [vmem:[%s254_s0 + $0x9c] sm:$0x3f]  ;;  %v121_v50 = vld [vmem:[%s254_s0 + $0xc6] sm:$0x3f] }
   0xb   :  { %v29_v41 = vmax.f32 %v20_v33, %v99_v29  ;;  %v111_v52 = vld [vmem:[%s254_s0 + $0x8a] sm:$0x3f]  ;;  %v118_v54 = vld [vmem:[%s254_s0 + $0xb4] sm:$0x3f]  ;;  %v115_v57 = vld [vmem:[%s254_s0 + $0xa2] sm:$0x3f] }
   0xc   :  { %v62_v34 = vmax.f32 %v53_v25, %v112_v21  ;;  %v54_v39 = vmax.f32 %v45_v31, %v109_v23  ;;  %v46_v44 = vmax.f32 %v37_v36, %v106_v32  ;;  %v122_v59 = vld [vmem:[%s254_s0 + $0xcc] sm:$0x3f]  ;;  %v119_v62 = vld [vmem:[%s254_s0 + $0xba] sm:$0x3f]  ;;  %v123_v1 = vld [vmem:[%s254_s0 + $0xd2] sm:$0x3f] }
   0xd   :  { %v38_v48 = vmax.f32 %v29_v41, %v103_v37 }
   0xe   :  { %v71_v42 = vmax.f32 %v62_v34, %v116_v30  ;;  %v63_v46 = vmax.f32 %v54_v39, %v113_v35  ;;  %v55_v51 = vmax.f32 %v46_v44, %v110_v40 }
   0xf   :  { %v47_v55 = vmax.f32 %v38_v48, %v107_v45 }
  0x10   :  { %v80_v49 = vmax.f32 %v71_v42, %v120_v38  ;;  %v72_v53 = vmax.f32 %v63_v46, %v117_v43  ;;  %v64_v56 = vmax.f32 %v55_v51, %v114_v47 }
  0x11   :  { %v56_v60 = vmax.f32 %v47_v55, %v111_v52 }
  0x12   :  { %84 = vst [vmem:[%s255_s1] sm:$0x3f] %v80_v49  ;;  %v81_v58 = vmax.f32 %v72_v53, %v121_v50  ;;  %v73_v61 = vmax.f32 %v64_v56, %v118_v54 }
  0x13   :  { %v65_v63 = vmax.f32 %v56_v60, %v115_v57 }
  0x14   :  { %85 = vst [vmem:[%s255_s1 + $0x6] sm:$0x3f] %v81_v58  ;;  %v82_v0 = vmax.f32 %v73_v61, %v122_v59 }
  0x15   :  { %v74_v2 = vmax.f32 %v65_v63, %v119_v62 }
  0x16   :  { %86 = vst [vmem:[%s255_s1 + $0xc] sm:$0x3f] %v82_v0 }
  0x17   :  { %v83_v3 = vmax.f32 %v74_v2, %v123_v1 }
  0x19   :  { %87 = vst [vmem:[%s255_s1 + $0x12] sm:$0x3f] %v83_v3 }

// kernel: inception_net.29
= control target key start
LH: loop header
LB: loop body
LE: loop exit
PB: predicated region body
PF: predicated region fallthrough
CT: control target
= control target key end

     0   :  { %v473_v7 = vmov 0.0|0.0   ;;  %vm474_vm0 = vmmov 0   ;;  %v475_v13 = vmov 0.0   ;;  %vm25_vm1 = vcmask 1043456   ;;  %s685_s0 = inlined_call_operand.vmem [shape: f32[2,4,384], index: 0, kind: input, shape index: {}]   ;;  %s686_s1 = inlined_call_operand.vmem [shape: f32[384,10], index: 1, kind: input, shape index: {}]   ;;  %s687_s2 = inlined_call_operand.vmem [shape: f32[1,10], index: 2, kind: input, shape index: {}]   ;;  %s688_s3 = inlined_call_operand.hbm [shape: f32[2,10], index: 3, kind: output, shape index: {}]  }
   0x1   :  { %v91_v0 = vld [vmem:[%s686_s1 + $0x80] sm:$0xff]  ;;  %v92_v1 = vld [vmem:[%s686_s1 + $0x88] sm:$0xff]  ;;  %v93_v5 = vld [vmem:[%s686_s1 + $0x90] sm:$0xff]  ;;  %419 = vmatprep.subr.bf16.mxu1 %v473_v7  ;;  %384 = vmatprep.mubr.msk.f32.mxu1 %vm474_vm0, %v475_v13 }
   0x2   :  { %v75_v2 = vld [vmem:[%s686_s1] sm:$0xff]  ;;  %v387_v3 = vpack.c.bf16 %v92_v1, %v91_v0  ;;  %v76_v4 = vld [vmem:[%s686_s1 + $0x8] sm:$0xff]  ;;  %v94_v6 = vld [vmem:[%s686_s1 + $0x98] sm:$0xff] }
   0x3   :  { %v389_v8 = vpack.c.bf16 %v76_v4, %v75_v2  ;;  %v391_v9 = vpack.c.bf16 %v94_v6, %v93_v5  ;;  %v77_v10 = vld [vmem:[%s686_s1 + $0x10] sm:$0xff]  ;;  %v78_v11 = vld [vmem:[%s686_s1 + $0x18] sm:$0xff]  ;;  %v107_v12 = vld [vmem:[%s686_s1 + $0x100] sm:$0xff] }
   0x4   :  { %388 = vmatprep.subr.bf16.mxu0 %v387_v3  ;;  %v108_v14 = vld [vmem:[%s686_s1 + $0x108] sm:$0xff]  ;;  %v95_v15 = vld [vmem:[%s686_s1 + $0xa0] sm:$0xff]  ;;  %v393_v17 = vpack.c.bf16 %v78_v11, %v77_v10  ;;  %v109_v19 = vld [vmem:[%s686_s1 + $0x110] sm:$0xff] }
   0x5   :  { %v96_v16 = vld [vmem:[%s686_s1 + $0xa8] sm:$0xff]  ;;  %390 = vmatpush3.bf16.msra.mxu0 %v389_v8  ;;  %v420_v18 = vpack.c.bf16 %v108_v14, %v107_v12  ;;  %v79_v21 = vld [vmem:[%s686_s1 + $0x20] sm:$0xff]  ;;  %v110_v23 = vld [vmem:[%s686_s1 + $0x118] sm:$0xff] }
   0x6   :  { %392 = vmatprep.subr.bf16.mxu0 %v391_v9  ;;  %v395_v20 = vpack.c.bf16 %v96_v16, %v95_v15  ;;  %v80_v22 = vld [vmem:[%s686_s1 + $0x28] sm:$0xff]  ;;  %v423_v24 = vpack.c.bf16 %v110_v23, %v109_v19  ;;  %v97_v25 = vld [vmem:[%s686_s1 + $0xb0] sm:$0xff]  ;;  %v98_v26 = vld [vmem:[%s686_s1 + $0xb8] sm:$0xff] }
   0x7   :  { %421 = vmatpush3.bf16.msra.mxu1 %v420_v18  ;;  %v111_v27 = vld [vmem:[%s686_s1 + $0x120] sm:$0xff]  ;;  %v112_v28 = vld [vmem:[%s686_s1 + $0x128] sm:$0xff]  ;;  %v397_v29 = vpack.c.bf16 %v80_v22, %v79_v21  ;;  %v399_v30 = vpack.c.bf16 %v98_v26, %v97_v25  ;;  %v81_v31 = vld [vmem:[%s686_s1 + $0x30] sm:$0xff] }
   0x8   :  { %422 = vmatprep.subr.bf16.mxu1 %v473_v7  ;;  %v82_v32 = vld [vmem:[%s686_s1 + $0x38] sm:$0xff]  ;;  %v426_v33 = vpack.c.bf16 %v112_v28, %v111_v27  ;;  %v99_v34 = vld [vmem:[%s686_s1 + $0xc0] sm:$0xff]  ;;  %v100_v35 = vld [vmem:[%s686_s1 + $0xc8] sm:$0xff] }
   0x9   :  { %394 = vmatpush3.bf16.msra.mxu0 %v393_v17  ;;  %v113_v36 = vld [vmem:[%s686_s1 + $0x130] sm:$0xff]  ;;  %v114_v37 = vld [vmem:[%s686_s1 + $0x138] sm:$0xff]  ;;  %v401_v38 = vpack.c.bf16 %v82_v32, %v81_v31  ;;  %v83_v39 = vld [vmem:[%s686_s1 + $0x40] sm:$0xff]  ;;  %v403_v41 = vpack.c.bf16 %v100_v35, %v99_v34 }
   0xa   :  { %396 = vmatprep.subr.bf16.mxu0 %v395_v20  ;;  %v84_v40 = vld [vmem:[%s686_s1 + $0x48] sm:$0xff]  ;;  %v101_v42 = vld [vmem:[%s686_s1 + $0xd0] sm:$0xff]  ;;  %v102_v43 = vld [vmem:[%s686_s1 + $0xd8] sm:$0xff]  ;;  %v429_v44 = vpack.c.bf16 %v114_v37, %v113_v36 }
   0xb   :  { %424 = vmatpush3.bf16.msra.mxu1 %v423_v24  ;;  %v115_v45 = vld [vmem:[%s686_s1 + $0x140] sm:$0xff]  ;;  %v116_v46 = vld [vmem:[%s686_s1 + $0x148] sm:$0xff]  ;;  %v405_v47 = vpack.c.bf16 %v84_v40, %v83_v39  ;;  %v85_v48 = vld [vmem:[%s686_s1 + $0x50] sm:$0xff]  ;;  %v407_v51 = vpack.c.bf16 %v102_v43, %v101_v42 }
   0xc   :  { %425 = vmatprep.subr.bf16.mxu1 %v473_v7  ;;  %v15_v49 = vld [vmem:[%s685_s0] sm:$0xff]  ;;  %v17_v50 = vld [vmem:[%s685_s0 + $0xc] sm:$0xff]  ;;  %v86_v52 = vld [vmem:[%s686_s1 + $0x58] sm:$0xff]  ;;  %v432_v58 = vpack.c.bf16 %v116_v46, %v115_v45 }
   0xd   :  { %398 = vmatpush3.bf16.msra.mxu0 %v397_v29  ;;  %v103_v53 = vld [vmem:[%s686_s1 + $0xe0] sm:$0xff]  ;;  %v21_v54 = vcombine.high %v15_v49, %v15_v49  ;;  %v22_v55 = vcombine.high %v17_v50, %v17_v50  ;;  %v26_v56 = vsel %vm25_vm1, %v15_v49, 0.0  ;;  %v16_v57 = vld [vmem:[%s685_s0 + $0x8] sm:$0xf]  ;;  %v47_v61 = vsel %vm25_vm1, %v17_v50, 0.0 }
   0xe   :  { %400 = vmatprep.subr.bf16.mxu0 %v399_v30  ;;  %v104_v59 = vld [vmem:[%s686_s1 + $0xe8] sm:$0xff]  ;;  %v27_v60 = vrot.slane %v26_v56, 4  ;;  %v18_v62 = vld [vmem:[%s685_s0 + $0x14] sm:$0xf]  ;;  %v40_v63 = vsel %vm25_vm1, %v16_v57, 0.0  ;;  %v48_v2 = vrot.slane %v47_v61, 4 }
   0xf   :  { %427 = vmatpush3.bf16.msra.mxu1 %v426_v33  ;;  %v33_v0 = vsel %vm25_vm1, %v21_v54, 0.0  ;;  %v54_v1 = vsel %vm25_vm1, %v22_v55, 0.0  ;;  %v41_v3 = vrot.slane %v40_v63, 4 }
  0x10   :  { %428 = vmatprep.subr.bf16.mxu1 %v473_v7 }
  0x11   :  { %402 = vmatpush3.bf16.msra.mxu0 %v401_v38 }
  0x12   :  { %404 = vmatprep.subr.bf16.mxu0 %v403_v41 }
  0x13   :  { %430 = vmatpush3.bf16.msra.mxu1 %v429_v44 }
  0x14   :  { %8 = vsyncpa [#allocation3], 0  ;;  %431 = vmatprep.subr.bf16.mxu1 %v473_v7  ;;  %v117_v4 = vld [vmem:[%s686_s1 + $0x150] sm:$0xff]  ;;  %v118_v5 = vld [vmem:[%s686_s1 + $0x158] sm:$0xff]  ;;  %v34_v6 = vrot.slane %v33_v0, 4  ;;  %v55_v8 = vrot.slane %v54_v1, 4  ;;  %v28_v9 = vadd.f32 %v27_v60, %v26_v56  ;;  %v409_v11 = vpack.c.bf16 %v86_v52, %v85_v48 }
  0x15   :  { %v61_v10 = vsel %vm25_vm1, %v18_v62, 0.0  ;;  %406 = vmatpush3.bf16.msra.mxu0 %v405_v47  ;;  %v49_v12 = vadd.f32 %v48_v2, %v47_v61  ;;  %v42_v13 = vadd.f32 %v41_v3, %v40_v63  ;;  %v411_v15 = vpack.c.bf16 %v104_v59, %v103_v53  ;;  %v87_v16 = vld [vmem:[%s686_s1 + $0x60] sm:$0xff]  ;;  %v88_v17 = vld [vmem:[%s686_s1 + $0x68] sm:$0xff]  ;;  %v105_v22 = vld [vmem:[%s686_s1 + $0xf0] sm:$0xff]  ;;  %s476_s8 = smov [#allocation2]  }
  0x16   :  { %v62_v14 = vrot.slane %v61_v10, 4  ;;  %408 = vmatprep.subr.bf16.mxu0 %v407_v51  ;;  %v35_v18 = vadd.f32 %v34_v6, %v33_v0  ;;  %v56_v19 = vadd.f32 %v55_v8, %v54_v1  ;;  %v29_v20 = vrot.slane %v28_v9, 2  ;;  %v106_v23 = vld [vmem:[%s686_s1 + $0xf8] sm:$0xff]  ;;  %v119_v27 = vld [vmem:[%s686_s1 + $0x160] sm:$0xff]  ;;  %v120_v28 = vld [vmem:[%s686_s1 + $0x168] sm:$0xff]  ;;  %s291_s9 = sshll.u32 %s476_s8, 4  ;;  %s292_s9 = int_to_ptr.vmem [resolvable:$true] %s291_s9 }
  0x17   :  { %433 = vmatpush3.bf16.msra.mxu1 %v432_v58  ;;  %v435_v21 = vpack.c.bf16 %v118_v5, %v117_v4  ;;  %v50_v24 = vrot.slane %v49_v12, 2  ;;  %v43_v25 = vrot.slane %v42_v13, 2  ;;  %v413_v32 = vpack.c.bf16 %v88_v17, %v87_v16  ;;  %v89_v37 = vld [vmem:[%s686_s1 + $0x70] sm:$0xff]  ;;  %v90_v38 = vld [vmem:[%s686_s1 + $0x78] sm:$0xff]  ;;  %v299_v6 = vld [vmem:[%s687_s2] ss:$0 sm:$0xff]  ;;  %p454_p1 = scmp.lt.s32.totalorder %s292_s9, %s292_s9 }
  0x18   :  { %v63_v26 = vadd.f32 %v62_v14, %v61_v10  ;;  %434 = vmatprep.subr.bf16.mxu1 %v473_v7  ;;  %v36_v29 = vrot.slane %v35_v18, 2  ;;  %v57_v30 = vrot.slane %v56_v19, 2  ;;  %v30_v31 = vadd.f32 %v29_v20, %v28_v9  ;;  %v121_v49 = vld [vmem:[%s686_s1 + $0x170] sm:$0xff]  ;;  %v122_v50 = vld [vmem:[%s686_s1 + $0x178] sm:$0xff]  ;;  %s449_s10 = scalar_lea.vmem %s292_s9, 32 }
  0x19   :  { %410 = vmatpush3.bf16.msra.mxu0 %v409_v11  ;;  %v51_v33 = vadd.f32 %v50_v24, %v49_v12  ;;  %v44_v34 = vadd.f32 %v43_v25, %v42_v13  ;;  %v415_v36 = vpack.c.bf16 %v106_v23, %v105_v22  ;;  %v438_v42 = vpack.c.bf16 %v120_v28, %v119_v27  ;;  %p450_p0 = scmp.ne.s32.totalorder %s292_s9, %s449_s10  ;;  %p455_p2 = scmp.lt.s32.totalorder %s449_s10, %s449_s10 }
  0x1a   :  { %v64_v35 = vrot.slane %v63_v26, 2  ;;  %412 = vmatprep.subr.bf16.mxu0 %v411_v15  ;;  %v37_v39 = vadd.f32 %v36_v29, %v35_v18  ;;  %v58_v40 = vadd.f32 %v57_v30, %v56_v19  ;;  %v31_v41 = vrot.slane %v30_v31, 1 }
  0x1b   :  { %436 = vmatpush3.bf16.msra.mxu1 %v435_v21  ;;  %v52_v43 = vrot.slane %v51_v33, 1  ;;  %v45_v44 = vrot.slane %v44_v34, 1  ;;  %v417_v51 = vpack.c.bf16 %v90_v38, %v89_v37  ;;  %vm136_vm2 = vcmask 1041409   ;;  %p456_p3 = por %p455_p2, %p454_p1 }
  0x1c   :  { %v65_v45 = vadd.f32 %v64_v35, %v63_v26  ;;  %437 = vmatprep.subr.bf16.mxu1 %v473_v7  ;;  %v38_v46 = vrot.slane %v37_v39, 1  ;;  %v59_v47 = vrot.slane %v58_v40, 1  ;;  %v32_v48 = vadd.f32 %v31_v41, %v30_v31 }
  0x1d   :  { %414 = vmatpush3.bf16.msra.mxu0 %v413_v32  ;;  %v53_v52 = vadd.f32 %v52_v43, %v51_v33  ;;  %v46_v53 = vadd.f32 %v45_v44, %v44_v34  ;;  %v441_v59 = vpack.c.bf16 %v122_v50, %v121_v49  ;;  %vm283_vm3 = vcmask 74752   ;;  %p457_p4 = pnand %p456_p3, %p450_p0 }
  0x1e   :  { %v66_v54 = vrot.slane %v65_v45, 1  ;;  %416 = vmatprep.subr.bf16.mxu0 %v415_v36  ;;  %v39_v55 = vadd.f32 %v38_v46, %v37_v39  ;;  %v60_v56 = vadd.f32 %v59_v47, %v58_v40  ;;  %v69_v57 = vmul.f32 0.25, %v32_v48 }
  0x1f   :  { %439 = vmatpush3.bf16.msra.mxu1 %v438_v42  ;;  %v72_v58 = vmul.f32 0.25, %v53_v52  ;;  %v71_v61 = vmul.f32 0.25, %v46_v53 }
  0x20   :  { %v67_v60 = vadd.f32 %v66_v54, %v65_v45  ;;  %v70_v62 = vmul.f32 0.25, %v39_v55  ;;  %v73_v63 = vmul.f32 0.25, %v60_v56  ;;  %440 = vmatprep.subr.bf16.mxu1 %v473_v7 }
  0x21   :  { %418 = vmatpush3.bf16.msra.mxu0 %v417_v51  ;;  %v137_v0 = vsel %vm136_vm2, %v72_v58, %v69_v57 }
  0x22   :  { %v74_v1 = vmul.f32 0.25, %v67_v60  ;;  %v138_v2 = vsel %vm136_vm2, %v73_v63, %v70_v62 }
  0x23   :  { %207 = vmatprep.mubr.f32.mxu0 %v138_v2  ;;  %442 = vmatpush3.bf16.msra.mxu1 %v441_v59 }
  0x24   :  { %v139_v3 = vsel %vm136_vm2, %v74_v1, %v71_v61  ;;  %208 = vmatmul.mubr.f32.vlgmr.msra.gmra.mrb[0].mxu0 %v137_v0 }
  0x26   :  { %385 = vmatmul.mubr.f32.vlgmr.msra.gmra.mrb[0].mxu1 %v139_v3 }
  0xf7   :  { %v332_v4 = vpop.f32.mrb[0].mxu0 }
  0xf8   :  { %v333_v5 = vpop.f32.mrb[1].mxu0 }
  0xf9   :  { %v334_v8 = vadd.f32 %v333_v5, %v332_v4  ;;  %v279_v7 = vpop.f32.mrb[0].mxu1 }
  0xfa   :  { %v386_v9 = vpop.f32.mrb[1].mxu1 }
  0xfb   :  { %v210_v10 = vadd.f32 %v334_v8, %v299_v6 }
  0xfd   :  { %v280_v11 = vadd.f32 %v279_v7, %v210_v10 }
  0xff   :  { %284 = vst.msk [vmem:[#allocation2] sm:$0x3] %vm283_vm3, %v280_v11 }
 0x100   :  { %460 = shalt.err (!%p457_p4)
}
 0x101   :  { %s461_s2 = scalar_lea.hbm %s688_s3, 32 }
 0x102   :  { %p462_p5 = scmp.ne.s32.totalorder %s688_s3, %s461_s2  ;;  %p465_p6 = scmp.lt.u32.totalorder %s461_s2, %s688_s3 }
 0x104   :  { %p467_p7 = pnand %p465_p6, %p462_p5 }
 0x106   :  { %470 = shalt.err (!%p467_p7)
}
 0x107   :  { %294 = dma.vmem_to_hbm [thread:$0]  %s292_s9, 32, %s688_s3, [#allocation3]  }
 0x108   :  { %471 = dma.done.wait [#allocation3], 32  }
 0x109   :  { %472 = vsyncadd [#allocation3], 4294967264 }
 0x10a   :  { %298 = vsyncpa [#allocation3], 1 }

</bundles_post_ra>
